<compile_context>
chip_gen: v6e
topology: v6e:2x2x1
jax: 0.10.0
libtpu: 0.0.40
codegen_flags: <defaults>
</compile_context>

<pallas_src>
import functools

import jax
import jax.numpy as jnp
import numpy as np
from jax import lax
from jax.experimental import pallas as pl
from jax.experimental.pallas import tpu as pltpu

# For stride=2, kernel=4, pad=1 transposed conv, output phase py receives
# contributions only from these (kernel tap ky, slice start into padded input):
#   py=0: ky=1 at padded start 1, ky=3 at padded start 0
#   py=1: ky=2 at padded start 1, ky=0 at padded start 2
_TAPS = {0: ((1, 1), (3, 0)), 1: ((2, 1), (0, 2))}

_EPS = 1e-5          # nn.InstanceNorm2d default
_FUSE_MIN_CIN = 128  # below this, lane-misaligned concat costs more than it saves


def _unet_up_kernel(xp_ref, w_ref, out_ref, acc_ref, *, H, W, Cin, Cout, BM, fuse_taps):
    xp = xp_ref[...]                                    # (BM, H+2, W+2, Cin) bf16

    # Hoist only the two *unaligned* W-axis (sublane) shifts; sx=0 is an
    # aligned slice of xp and stays cheap.
    xw1 = xp[:, :, 1:1 + W, :]
    xw2 = xp[:, :, 2:2 + W, :]

    def shifted(sx):
        if sx == 1:
            return xw1
        if sx == 2:
            return xw2
        return xp[:, :, 0:W, :]

    if fuse_taps:
        # Pair the two W-shifts of each x-phase once (2*Cin lanes); each phase
        # below then only needs a 2-way concat of contiguous H-slices.
        xcat = {px: jnp.concatenate([shifted(sx) for (_kx, sx) in _TAPS[px]], axis=-1)
                for px in (0, 1)}                        # (BM, H+2, W, 2*Cin)

    n_norm = 4 * H * W
    s = jnp.zeros((BM, Cout), jnp.float32)
    sq = jnp.zeros((BM, Cout), jnp.float32)

    for py in (0, 1):
        for px in (0, 1):
            p = 2 * py + px
            if fuse_taps:
                cols = jnp.concatenate(
                    [xcat[px][:, sy:sy + H, :, :] for (_ky, sy) in _TAPS[py]],
                    axis=-1).reshape(BM * H * W, 4 * Cin)
                acc = jnp.dot(cols, w_ref[p].reshape(4 * Cin, Cout),
                              preferred_element_type=jnp.float32)
            else:
                acc = jnp.zeros((BM * H * W, Cout), jnp.float32)
                t = 0
                for (_ky, sy) in _TAPS[py]:
                    for (_kx, sx) in _TAPS[px]:
                        patch = shifted(sx)[:, sy:sy + H, :, :].reshape(BM * H * W, Cin)
                        acc = acc + jnp.dot(patch, w_ref[p, t],
                                            preferred_element_type=jnp.float32)
                        t += 1
            acc = acc.reshape(BM, H * W, Cout)

            # On-the-fly per-(batch, channel) stats for InstanceNorm.
            s = s + jnp.sum(acc, axis=1)
            sq = sq + jnp.sum(acc * acc, axis=1)

            acc_ref[p] = acc                             # f32 VMEM staging

    inv_n = 1.0 / n_norm
    mean = s * inv_n                                     # (BM, Cout)
    var = sq * inv_n - mean * mean
    scale = lax.rsqrt(var + _EPS)
    mean_b = mean.reshape(BM, 1, Cout)
    scale_b = scale.reshape(BM, 1, Cout)

    # Normalize + ReLU each staged phase; emit one lane-dense bf16 store with
    # the 4 phases packed along the last dim (width 4*Cout).
    phases = [jnp.maximum((acc_ref[p] - mean_b) * scale_b, 0.0) for p in range(4)]
    out_ref[...] = jnp.concatenate(phases, axis=-1).astype(out_ref.dtype)


def _vmem_capacity_bytes():
    try:
        return int(pltpu.get_tpu_info().vmem_capacity_bytes)
    except Exception:       # fallback if query unavailable
        return 64 << 20     # conservative: v7x per-TensorCore VMEM


def _per_batch_block_bytes(H, W, Cin, Cout, fuse_taps):
    """Approximate VMEM footprint contributed by one batch element per grid step."""
    in_blk = (H + 2) * (W + 2) * Cin * 2            # bf16 input block
    xw = 2 * (H + 2) * W * Cin * 2                  # hoisted sx=1,2 shift slabs
    out_blk = H * W * 4 * Cout * 2                  # bf16 packed output block
    stage = 4 * H * W * Cout * 4                    # f32 phase scratch
    acc = H * W * Cout * 4                          # live f32 accumulator
    if fuse_taps:
        xw += 2 * (H + 2) * W * 2 * Cin * 2         # paired 2*Cin slabs
        cols = H * W * 4 * Cin * 2                  # fused im2col block
    else:
        cols = H * W * Cin * 2                      # single-tap patch
    # Input/output blocks are double-buffered by the BlockSpec pipeline.
    return 2 * in_blk + 2 * out_blk + stage + xw + cols + acc


def _pick_bm(B, H, W, Cin, Cout, fuse_taps, budget):
    """Largest divisor of B that fits the VMEM budget while keeping >= min(B, 4)
    grid steps (software pipelining; keeps both v7x TensorCores busy)."""
    per = _per_batch_block_bytes(H, W, Cin, Cout, fuse_taps)
    min_steps = min(B, 4)
    bm = 1
    for cand in range(1, B + 1):
        if B % cand or cand * per > budget or B // cand < min_steps:
            continue
        bm = cand
    return bm


def unet_up_forward(x_nchw, skip_nchw, w_pt):
    """x: (B, Cin, H, W); skip: (B, Cs, 2H, 2W); w_pt: (Cin, Cout, 4, 4) PyTorch layout."""
    B, Cin, H, W = x_nchw.shape
    Cout = w_pt.shape[1]
    assert W % 8 == 0 and (H * W) % 8 == 0, (
        "free reshapes inside the kernel assume W (and H*W) are multiples of 8")

    fuse_taps = Cin >= _FUSE_MIN_CIN

    # glue: NCHW -> NHWC bf16, zero-pad spatially by 1 (halo for all taps)
    x = jnp.transpose(x_nchw, (0, 2, 3, 1)).astype(jnp.bfloat16)
    xp = jnp.pad(x, ((0, 0), (1, 1), (1, 1), (0, 0)))

    # Per-phase, per-tap weights (4 phases, 4 taps, Cin, Cout) bf16; tap order
    # matches the kernel's (sy outer, sx inner) patch order.
    w_hwio = jnp.transpose(w_pt, (2, 3, 0, 1)).astype(jnp.float32)   # (ky,kx,Cin,Cout)
    slabs = []
    for py in (0, 1):
        for px in (0, 1):
            taps = [w_hwio[ky, kx]
                    for (ky, _sy) in _TAPS[py] for (kx, _sx) in _TAPS[px]]
            slabs.append(jnp.stack(taps, axis=0))                    # (4, Cin, Cout)
    w_slab = jnp.stack(slabs, axis=0).astype(jnp.bfloat16)           # (4, 4, Cin, Cout)

    vmem_cap = _vmem_capacity_bytes()
    w_bytes = 4 * 4 * Cin * Cout * 2
    block_budget = max(4 << 20, int(0.55 * vmem_cap) - w_bytes)
    BM = _pick_bm(B, H, W, Cin, Cout, fuse_taps, block_budget)
    grid = (B // BM,)

    footprint = w_bytes + BM * _per_batch_block_bytes(H, W, Cin, Cout, fuse_taps)
    vmem_limit = int(min(int(0.9 * vmem_cap), max(16 << 20, int(1.3 * footprint))))

    kernel = functools.partial(_unet_up_kernel, H=H, W=W, Cin=Cin, Cout=Cout,
                               BM=BM, fuse_taps=fuse_taps)
    y = pl.pallas_call(
        kernel,
        out_shape=jax.ShapeDtypeStruct((B, H * W, 4 * Cout), jnp.bfloat16),
        grid_spec=pltpu.PrefetchScalarGridSpec(
            num_scalar_prefetch=0,
            grid=grid,
            in_specs=[
                pl.BlockSpec((BM, H + 2, W + 2, Cin), lambda b: (b, 0, 0, 0)),
                # grid-constant weight: whole array resident in VMEM, single copy
                pl.BlockSpec(memory_space=pltpu.MemorySpace.VMEM),
            ],
            out_specs=pl.BlockSpec((BM, H * W, 4 * Cout), lambda b: (b, 0, 0)),
            scratch_shapes=[pltpu.VMEM((4, BM, H * W, Cout), jnp.float32)],
        ),
        compiler_params=pltpu.CompilerParams(
            dimension_semantics=("parallel",),
            vmem_limit_bytes=vmem_limit,
        ),
    )(xp, w_slab)

    # glue: unpack phases (p = 2*py + px packed on lanes) -> (B, Cout, 2H, 2W)
    y = y.reshape(B, H, W, 2, 2, Cout)              # [b, iy, ix, py, px, c]
    y = jnp.transpose(y, (0, 5, 1, 3, 2, 4))        # [b, c, iy, py, ix, px]
    y = y.reshape(B, Cout, 2 * H, 2 * W).astype(jnp.float32)

    # torch.cat((x, skip_input), dim=1)
    return jnp.concatenate([y, skip_nchw.astype(jnp.float32)], axis=1)


def _reference(x, skip, w_pt):
    # conv_transpose(stride=2, pad=1, k=4) == lhs-dilated conv with flipped kernel.
    # Inputs cast to bf16 (like the kernel) with f32 accumulation for a tight match.
    wf = jnp.transpose(jnp.flip(w_pt, axis=(2, 3)), (1, 0, 2, 3)).astype(jnp.bfloat16)
    y = lax.conv_general_dilated(
        x.astype(jnp.bfloat16), wf, window_strides=(1, 1), padding=((2, 2), (2, 2)),
        lhs_dilation=(2, 2), dimension_numbers=("NCHW", "OIHW", "NCHW"),
        preferred_element_type=jnp.float32)
    mean = jnp.mean(y, axis=(2, 3), keepdims=True)
    var = jnp.mean((y - mean) ** 2, axis=(2, 3), keepdims=True)
    y = jnp.maximum((y - mean) * lax.rsqrt(var + _EPS), 0.0)
    return jnp.concatenate([y, skip], axis=1)


if __name__ == "__main__":
    B, Cin, Cout, H, W = 2, 4, 4, 16, 16
    key = jax.random.PRNGKey(0)
    kx, ks, kw = jax.random.split(key, 3)
    x = jax.random.normal(kx, (B, Cin, H, W), jnp.float32)
    skip = jax.random.normal(ks, (B, Cout, 2 * H, 2 * W), jnp.float32)
    # Deterministic "weights" for ConvTranspose2d(in_size=4, out_size=4, 4, 2, 1, bias=False)
    w_pt = 0.1 * jax.random.normal(kw, (Cin, Cout, 4, 4), jnp.float32)

    out = unet_up_forward(x, skip, w_pt)
    out = jax.block_until_ready(out)

    ref = _reference(x, skip, w_pt)
    # bf16 kernel output adds <=~0.2% relative rounding vs the f32-normed reference.
    np.testing.assert_allclose(np.asarray(out), np.asarray(ref), rtol=1e-2, atol=1e-2)
    assert out.shape == (B, 2 * Cout, 2 * H, 2 * W)
    print("KERNEL_OK")
</pallas_src>

<mosaic_0001>
module attributes {stable_mosaic.version = 11 : i64} {
  func.func @_unet_up_kernel(%arg0: i32, %arg1: memref<1x18x18x4xbf16, #tpu.memory_space<vmem>>, %arg2: memref<4x4x4x4xbf16, #tpu.memory_space<vmem>>, %arg3: memref<1x256x16xbf16, #tpu.memory_space<vmem>>, %arg4: memref<4x1x256x4xf32, #tpu.memory_space<vmem>>) attributes {dimension_semantics = [#tpu.dimension_semantics<parallel>], iteration_bounds = array<i64: 2>, scalar_prefetch = 0 : i64, scratch_operands = 1 : i64, tpu.core_type = #tpu.core_type<tc>, window_params = [{transform_indices = @transform_0, window_bounds = array<i64: 1, 18, 18, 4>}, {pipeline_mode = #tpu.pipeline_mode<synchronous>, transform_indices = @transform_1, window_bounds = array<i64: 4, 4, 4, 4>}, {transform_indices = @transform_2, window_bounds = array<i64: 1, 256, 16>}]} {
    %c0 = arith.constant 0 : index
    %c0_0 = arith.constant 0 : index
    %c0_1 = arith.constant 0 : index
    %c0_2 = arith.constant 0 : index
    %0 = vector.load %arg1[%c0, %c0_0, %c0_1, %c0_2] : memref<1x18x18x4xbf16, #tpu.memory_space<vmem>>, vector<1x18x18x4xbf16>
    %1 = vector.extract_strided_slice %0 {offsets = [0, 0, 1, 0], sizes = [1, 18, 16, 4], strides = [1, 1, 1, 1]} : vector<1x18x18x4xbf16> to vector<1x18x16x4xbf16>
    %2 = vector.extract_strided_slice %0 {offsets = [0, 0, 2, 0], sizes = [1, 18, 16, 4], strides = [1, 1, 1, 1]} : vector<1x18x18x4xbf16> to vector<1x18x16x4xbf16>
    %cst = arith.constant 0.000000e+00 : f32
    %3 = vector.broadcast %cst : f32 to vector<1x4xf32>
    %cst_3 = arith.constant 0.000000e+00 : f32
    %4 = vector.broadcast %cst_3 : f32 to vector<1x4xf32>
    %cst_4 = arith.constant 0.000000e+00 : f32
    %5 = vector.broadcast %cst_4 : f32 to vector<256x4xf32>
    %6 = vector.extract_strided_slice %1 {offsets = [0, 1, 0, 0], sizes = [1, 16, 16, 4], strides = [1, 1, 1, 1]} : vector<1x18x16x4xbf16> to vector<1x16x16x4xbf16>
    %7 = vector.shape_cast %6 : vector<1x16x16x4xbf16> to vector<256x4xbf16>
    %c0_5 = arith.constant 0 : index
    %c0_6 = arith.constant 0 : index
    %c0_7 = arith.constant 0 : index
    %c0_8 = arith.constant 0 : index
    %8 = vector.load %arg2[%c0_5, %c0_6, %c0_7, %c0_8] : memref<4x4x4x4xbf16, #tpu.memory_space<vmem>>, vector<1x1x4x4xbf16>
    %9 = vector.shape_cast %8 : vector<1x1x4x4xbf16> to vector<4x4xbf16>
    %cst_9 = arith.constant dense<0.000000e+00> : vector<256x4xf32>
    %10 = tpu.matmul %7, %9, %cst_9 {dimension_numbers = #tpu.dot_dimension_numbers<[1], [0], [0], [1], [0, 0, 1, 1], [], []>} : vector<256x4xbf16>, vector<4x4xbf16>, vector<256x4xf32> -> vector<256x4xf32>
    %11 = arith.addf %5, %10 : vector<256x4xf32>
    %12 = vector.extract_strided_slice %0 {offsets = [0, 0, 0, 0], sizes = [1, 18, 16, 4], strides = [1, 1, 1, 1]} : vector<1x18x18x4xbf16> to vector<1x18x16x4xbf16>
    %13 = vector.extract_strided_slice %12 {offsets = [0, 1, 0, 0], sizes = [1, 16, 16, 4], strides = [1, 1, 1, 1]} : vector<1x18x16x4xbf16> to vector<1x16x16x4xbf16>
    %14 = vector.shape_cast %13 : vector<1x16x16x4xbf16> to vector<256x4xbf16>
    %c0_10 = arith.constant 0 : index
    %c1 = arith.constant 1 : index
    %c0_11 = arith.constant 0 : index
    %c0_12 = arith.constant 0 : index
    %15 = vector.load %arg2[%c0_10, %c1, %c0_11, %c0_12] : memref<4x4x4x4xbf16, #tpu.memory_space<vmem>>, vector<1x1x4x4xbf16>
    %16 = vector.shape_cast %15 : vector<1x1x4x4xbf16> to vector<4x4xbf16>
    %cst_13 = arith.constant dense<0.000000e+00> : vector<256x4xf32>
    %17 = tpu.matmul %14, %16, %cst_13 {dimension_numbers = #tpu.dot_dimension_numbers<[1], [0], [0], [1], [0, 0, 1, 1], [], []>} : vector<256x4xbf16>, vector<4x4xbf16>, vector<256x4xf32> -> vector<256x4xf32>
    %18 = arith.addf %11, %17 : vector<256x4xf32>
    %19 = vector.extract_strided_slice %1 {offsets = [0, 0, 0, 0], sizes = [1, 16, 16, 4], strides = [1, 1, 1, 1]} : vector<1x18x16x4xbf16> to vector<1x16x16x4xbf16>
    %20 = vector.shape_cast %19 : vector<1x16x16x4xbf16> to vector<256x4xbf16>
    %c0_14 = arith.constant 0 : index
    %c2 = arith.constant 2 : index
    %c0_15 = arith.constant 0 : index
    %c0_16 = arith.constant 0 : index
    %21 = vector.load %arg2[%c0_14, %c2, %c0_15, %c0_16] : memref<4x4x4x4xbf16, #tpu.memory_space<vmem>>, vector<1x1x4x4xbf16>
    %22 = vector.shape_cast %21 : vector<1x1x4x4xbf16> to vector<4x4xbf16>
    %cst_17 = arith.constant dense<0.000000e+00> : vector<256x4xf32>
    %23 = tpu.matmul %20, %22, %cst_17 {dimension_numbers = #tpu.dot_dimension_numbers<[1], [0], [0], [1], [0, 0, 1, 1], [], []>} : vector<256x4xbf16>, vector<4x4xbf16>, vector<256x4xf32> -> vector<256x4xf32>
    %24 = arith.addf %18, %23 : vector<256x4xf32>
    %25 = vector.extract_strided_slice %0 {offsets = [0, 0, 0, 0], sizes = [1, 18, 16, 4], strides = [1, 1, 1, 1]} : vector<1x18x18x4xbf16> to vector<1x18x16x4xbf16>
    %26 = vector.extract_strided_slice %25 {offsets = [0, 0, 0, 0], sizes = [1, 16, 16, 4], strides = [1, 1, 1, 1]} : vector<1x18x16x4xbf16> to vector<1x16x16x4xbf16>
    %27 = vector.shape_cast %26 : vector<1x16x16x4xbf16> to vector<256x4xbf16>
    %c0_18 = arith.constant 0 : index
    %c3 = arith.constant 3 : index
    %c0_19 = arith.constant 0 : index
    %c0_20 = arith.constant 0 : index
    %28 = vector.load %arg2[%c0_18, %c3, %c0_19, %c0_20] : memref<4x4x4x4xbf16, #tpu.memory_space<vmem>>, vector<1x1x4x4xbf16>
    %29 = vector.shape_cast %28 : vector<1x1x4x4xbf16> to vector<4x4xbf16>
    %cst_21 = arith.constant dense<0.000000e+00> : vector<256x4xf32>
    %30 = tpu.matmul %27, %29, %cst_21 {dimension_numbers = #tpu.dot_dimension_numbers<[1], [0], [0], [1], [0, 0, 1, 1], [], []>} : vector<256x4xbf16>, vector<4x4xbf16>, vector<256x4xf32> -> vector<256x4xf32>
    %31 = arith.addf %24, %30 : vector<256x4xf32>
    %32 = vector.shape_cast %31 : vector<256x4xf32> to vector<1x256x4xf32>
    %cst_22 = arith.constant dense<0.000000e+00> : vector<1x4xf32>
    %33 = vector.multi_reduction <add>, %32, %cst_22 [1] : vector<1x256x4xf32> to vector<1x4xf32>
    %34 = arith.addf %3, %33 : vector<1x4xf32>
    %35 = arith.mulf %32, %32 : vector<1x256x4xf32>
    %cst_23 = arith.constant dense<0.000000e+00> : vector<1x4xf32>
    %36 = vector.multi_reduction <add>, %35, %cst_23 [1] : vector<1x256x4xf32> to vector<1x4xf32>
    %37 = arith.addf %4, %36 : vector<1x4xf32>
    %c0_24 = arith.constant 0 : index
    %c0_25 = arith.constant 0 : index
    %c0_26 = arith.constant 0 : index
    %c0_27 = arith.constant 0 : index
    %38 = vector.load %arg4[%c0_24, %c0_25, %c0_26, %c0_27] : memref<4x1x256x4xf32, #tpu.memory_space<vmem>>, vector<1x1x256x4xf32>
    %39 = vector.shape_cast %38 : vector<1x1x256x4xf32> to vector<1x256x4xf32>
    %40 = vector.shape_cast %32 : vector<1x256x4xf32> to vector<1x1x256x4xf32>
    tpu.vector_store %arg4[%c0_24, %c0_25, %c0_26, %c0_27], %40 {strides = array<i32>} : memref<4x1x256x4xf32, #tpu.memory_space<vmem>>, vector<1x1x256x4xf32>,
    %cst_28 = arith.constant 0.000000e+00 : f32
    %41 = vector.broadcast %cst_28 : f32 to vector<256x4xf32>
    %42 = vector.extract_strided_slice %1 {offsets = [0, 1, 0, 0], sizes = [1, 16, 16, 4], strides = [1, 1, 1, 1]} : vector<1x18x16x4xbf16> to vector<1x16x16x4xbf16>
    %43 = vector.shape_cast %42 : vector<1x16x16x4xbf16> to vector<256x4xbf16>
    %c1_29 = arith.constant 1 : index
    %c0_30 = arith.constant 0 : index
    %c0_31 = arith.constant 0 : index
    %c0_32 = arith.constant 0 : index
    %44 = vector.load %arg2[%c1_29, %c0_30, %c0_31, %c0_32] : memref<4x4x4x4xbf16, #tpu.memory_space<vmem>>, vector<1x1x4x4xbf16>
    %45 = vector.shape_cast %44 : vector<1x1x4x4xbf16> to vector<4x4xbf16>
    %cst_33 = arith.constant dense<0.000000e+00> : vector<256x4xf32>
    %46 = tpu.matmul %43, %45, %cst_33 {dimension_numbers = #tpu.dot_dimension_numbers<[1], [0], [0], [1], [0, 0, 1, 1], [], []>} : vector<256x4xbf16>, vector<4x4xbf16>, vector<256x4xf32> -> vector<256x4xf32>
    %47 = arith.addf %41, %46 : vector<256x4xf32>
    %48 = vector.extract_strided_slice %2 {offsets = [0, 1, 0, 0], sizes = [1, 16, 16, 4], strides = [1, 1, 1, 1]} : vector<1x18x16x4xbf16> to vector<1x16x16x4xbf16>
    %49 = vector.shape_cast %48 : vector<1x16x16x4xbf16> to vector<256x4xbf16>
    %c1_34 = arith.constant 1 : index
    %c1_35 = arith.constant 1 : index
    %c0_36 = arith.constant 0 : index
    %c0_37 = arith.constant 0 : index
    %50 = vector.load %arg2[%c1_34, %c1_35, %c0_36, %c0_37] : memref<4x4x4x4xbf16, #tpu.memory_space<vmem>>, vector<1x1x4x4xbf16>
    %51 = vector.shape_cast %50 : vector<1x1x4x4xbf16> to vector<4x4xbf16>
    %cst_38 = arith.constant dense<0.000000e+00> : vector<256x4xf32>
    %52 = tpu.matmul %49, %51, %cst_38 {dimension_numbers = #tpu.dot_dimension_numbers<[1], [0], [0], [1], [0, 0, 1, 1], [], []>} : vector<256x4xbf16>, vector<4x4xbf16>, vector<256x4xf32> -> vector<256x4xf32>
    %53 = arith.addf %47, %52 : vector<256x4xf32>
    %54 = vector.extract_strided_slice %1 {offsets = [0, 0, 0, 0], sizes = [1, 16, 16, 4], strides = [1, 1, 1, 1]} : vector<1x18x16x4xbf16> to vector<1x16x16x4xbf16>
    %55 = vector.shape_cast %54 : vector<1x16x16x4xbf16> to vector<256x4xbf16>
    %c1_39 = arith.constant 1 : index
    %c2_40 = arith.constant 2 : index
    %c0_41 = arith.constant 0 : index
    %c0_42 = arith.constant 0 : index
    %56 = vector.load %arg2[%c1_39, %c2_40, %c0_41, %c0_42] : memref<4x4x4x4xbf16, #tpu.memory_space<vmem>>, vector<1x1x4x4xbf16>
    %57 = vector.shape_cast %56 : vector<1x1x4x4xbf16> to vector<4x4xbf16>
    %cst_43 = arith.constant dense<0.000000e+00> : vector<256x4xf32>
    %58 = tpu.matmul %55, %57, %cst_43 {dimension_numbers = #tpu.dot_dimension_numbers<[1], [0], [0], [1], [0, 0, 1, 1], [], []>} : vector<256x4xbf16>, vector<4x4xbf16>, vector<256x4xf32> -> vector<256x4xf32>
    %59 = arith.addf %53, %58 : vector<256x4xf32>
    %60 = vector.extract_strided_slice %2 {offsets = [0, 0, 0, 0], sizes = [1, 16, 16, 4], strides = [1, 1, 1, 1]} : vector<1x18x16x4xbf16> to vector<1x16x16x4xbf16>
    %61 = vector.shape_cast %60 : vector<1x16x16x4xbf16> to vector<256x4xbf16>
    %c1_44 = arith.constant 1 : index
    %c3_45 = arith.constant 3 : index
    %c0_46 = arith.constant 0 : index
    %c0_47 = arith.constant 0 : index
    %62 = vector.load %arg2[%c1_44, %c3_45, %c0_46, %c0_47] : memref<4x4x4x4xbf16, #tpu.memory_space<vmem>>, vector<1x1x4x4xbf16>
    %63 = vector.shape_cast %62 : vector<1x1x4x4xbf16> to vector<4x4xbf16>
    %cst_48 = arith.constant dense<0.000000e+00> : vector<256x4xf32>
    %64 = tpu.matmul %61, %63, %cst_48 {dimension_numbers = #tpu.dot_dimension_numbers<[1], [0], [0], [1], [0, 0, 1, 1], [], []>} : vector<256x4xbf16>, vector<4x4xbf16>, vector<256x4xf32> -> vector<256x4xf32>
    %65 = arith.addf %59, %64 : vector<256x4xf32>
    %66 = vector.shape_cast %65 : vector<256x4xf32> to vector<1x256x4xf32>
    %cst_49 = arith.constant dense<0.000000e+00> : vector<1x4xf32>
    %67 = vector.multi_reduction <add>, %66, %cst_49 [1] : vector<1x256x4xf32> to vector<1x4xf32>
    %68 = arith.addf %34, %67 : vector<1x4xf32>
    %69 = arith.mulf %66, %66 : vector<1x256x4xf32>
    %cst_50 = arith.constant dense<0.000000e+00> : vector<1x4xf32>
    %70 = vector.multi_reduction <add>, %69, %cst_50 [1] : vector<1x256x4xf32> to vector<1x4xf32>
    %71 = arith.addf %37, %70 : vector<1x4xf32>
    %c1_51 = arith.constant 1 : index
    %c0_52 = arith.constant 0 : index
    %c0_53 = arith.constant 0 : index
    %c0_54 = arith.constant 0 : index
    %72 = vector.load %arg4[%c1_51, %c0_52, %c0_53, %c0_54] : memref<4x1x256x4xf32, #tpu.memory_space<vmem>>, vector<1x1x256x4xf32>
    %73 = vector.shape_cast %72 : vector<1x1x256x4xf32> to vector<1x256x4xf32>
    %74 = vector.shape_cast %66 : vector<1x256x4xf32> to vector<1x1x256x4xf32>
    tpu.vector_store %arg4[%c1_51, %c0_52, %c0_53, %c0_54], %74 {strides = array<i32>} : memref<4x1x256x4xf32, #tpu.memory_space<vmem>>, vector<1x1x256x4xf32>,
    %cst_55 = arith.constant 0.000000e+00 : f32
    %75 = vector.broadcast %cst_55 : f32 to vector<256x4xf32>
    %76 = vector.extract_strided_slice %1 {offsets = [0, 1, 0, 0], sizes = [1, 16, 16, 4], strides = [1, 1, 1, 1]} : vector<1x18x16x4xbf16> to vector<1x16x16x4xbf16>
    %77 = vector.shape_cast %76 : vector<1x16x16x4xbf16> to vector<256x4xbf16>
    %c2_56 = arith.constant 2 : index
    %c0_57 = arith.constant 0 : index
    %c0_58 = arith.constant 0 : index
    %c0_59 = arith.constant 0 : index
    %78 = vector.load %arg2[%c2_56, %c0_57, %c0_58, %c0_59] : memref<4x4x4x4xbf16, #tpu.memory_space<vmem>>, vector<1x1x4x4xbf16>
    %79 = vector.shape_cast %78 : vector<1x1x4x4xbf16> to vector<4x4xbf16>
    %cst_60 = arith.constant dense<0.000000e+00> : vector<256x4xf32>
    %80 = tpu.matmul %77, %79, %cst_60 {dimension_numbers = #tpu.dot_dimension_numbers<[1], [0], [0], [1], [0, 0, 1, 1], [], []>} : vector<256x4xbf16>, vector<4x4xbf16>, vector<256x4xf32> -> vector<256x4xf32>
    %81 = arith.addf %75, %80 : vector<256x4xf32>
    %82 = vector.extract_strided_slice %0 {offsets = [0, 0, 0, 0], sizes = [1, 18, 16, 4], strides = [1, 1, 1, 1]} : vector<1x18x18x4xbf16> to vector<1x18x16x4xbf16>
    %83 = vector.extract_strided_slice %82 {offsets = [0, 1, 0, 0], sizes = [1, 16, 16, 4], strides = [1, 1, 1, 1]} : vector<1x18x16x4xbf16> to vector<1x16x16x4xbf16>
    %84 = vector.shape_cast %83 : vector<1x16x16x4xbf16> to vector<256x4xbf16>
    %c2_61 = arith.constant 2 : index
    %c1_62 = arith.constant 1 : index
    %c0_63 = arith.constant 0 : index
    %c0_64 = arith.constant 0 : index
    %85 = vector.load %arg2[%c2_61, %c1_62, %c0_63, %c0_64] : memref<4x4x4x4xbf16, #tpu.memory_space<vmem>>, vector<1x1x4x4xbf16>
    %86 = vector.shape_cast %85 : vector<1x1x4x4xbf16> to vector<4x4xbf16>
    %cst_65 = arith.constant dense<0.000000e+00> : vector<256x4xf32>
    %87 = tpu.matmul %84, %86, %cst_65 {dimension_numbers = #tpu.dot_dimension_numbers<[1], [0], [0], [1], [0, 0, 1, 1], [], []>} : vector<256x4xbf16>, vector<4x4xbf16>, vector<256x4xf32> -> vector<256x4xf32>
    %88 = arith.addf %81, %87 : vector<256x4xf32>
    %89 = vector.extract_strided_slice %1 {offsets = [0, 2, 0, 0], sizes = [1, 16, 16, 4], strides = [1, 1, 1, 1]} : vector<1x18x16x4xbf16> to vector<1x16x16x4xbf16>
    %90 = vector.shape_cast %89 : vector<1x16x16x4xbf16> to vector<256x4xbf16>
    %c2_66 = arith.constant 2 : index
    %c2_67 = arith.constant 2 : index
    %c0_68 = arith.constant 0 : index
    %c0_69 = arith.constant 0 : index
    %91 = vector.load %arg2[%c2_66, %c2_67, %c0_68, %c0_69] : memref<4x4x4x4xbf16, #tpu.memory_space<vmem>>, vector<1x1x4x4xbf16>
    %92 = vector.shape_cast %91 : vector<1x1x4x4xbf16> to vector<4x4xbf16>
    %cst_70 = arith.constant dense<0.000000e+00> : vector<256x4xf32>
    %93 = tpu.matmul %90, %92, %cst_70 {dimension_numbers = #tpu.dot_dimension_numbers<[1], [0], [0], [1], [0, 0, 1, 1], [], []>} : vector<256x4xbf16>, vector<4x4xbf16>, vector<256x4xf32> -> vector<256x4xf32>
    %94 = arith.addf %88, %93 : vector<256x4xf32>
    %95 = vector.extract_strided_slice %0 {offsets = [0, 0, 0, 0], sizes = [1, 18, 16, 4], strides = [1, 1, 1, 1]} : vector<1x18x18x4xbf16> to vector<1x18x16x4xbf16>
    %96 = vector.extract_strided_slice %95 {offsets = [0, 2, 0, 0], sizes = [1, 16, 16, 4], strides = [1, 1, 1, 1]} : vector<1x18x16x4xbf16> to vector<1x16x16x4xbf16>
    %97 = vector.shape_cast %96 : vector<1x16x16x4xbf16> to vector<256x4xbf16>
    %c2_71 = arith.constant 2 : index
    %c3_72 = arith.constant 3 : index
    %c0_73 = arith.constant 0 : index
    %c0_74 = arith.constant 0 : index
    %98 = vector.load %arg2[%c2_71, %c3_72, %c0_73, %c0_74] : memref<4x4x4x4xbf16, #tpu.memory_space<vmem>>, vector<1x1x4x4xbf16>
    %99 = vector.shape_cast %98 : vector<1x1x4x4xbf16> to vector<4x4xbf16>
    %cst_75 = arith.constant dense<0.000000e+00> : vector<256x4xf32>
    %100 = tpu.matmul %97, %99, %cst_75 {dimension_numbers = #tpu.dot_dimension_numbers<[1], [0], [0], [1], [0, 0, 1, 1], [], []>} : vector<256x4xbf16>, vector<4x4xbf16>, vector<256x4xf32> -> vector<256x4xf32>
    %101 = arith.addf %94, %100 : vector<256x4xf32>
    %102 = vector.shape_cast %101 : vector<256x4xf32> to vector<1x256x4xf32>
    %cst_76 = arith.constant dense<0.000000e+00> : vector<1x4xf32>
    %103 = vector.multi_reduction <add>, %102, %cst_76 [1] : vector<1x256x4xf32> to vector<1x4xf32>
    %104 = arith.addf %68, %103 : vector<1x4xf32>
    %105 = arith.mulf %102, %102 : vector<1x256x4xf32>
    %cst_77 = arith.constant dense<0.000000e+00> : vector<1x4xf32>
    %106 = vector.multi_reduction <add>, %105, %cst_77 [1] : vector<1x256x4xf32> to vector<1x4xf32>
    %107 = arith.addf %71, %106 : vector<1x4xf32>
    %c2_78 = arith.constant 2 : index
    %c0_79 = arith.constant 0 : index
    %c0_80 = arith.constant 0 : index
    %c0_81 = arith.constant 0 : index
    %108 = vector.load %arg4[%c2_78, %c0_79, %c0_80, %c0_81] : memref<4x1x256x4xf32, #tpu.memory_space<vmem>>, vector<1x1x256x4xf32>
    %109 = vector.shape_cast %108 : vector<1x1x256x4xf32> to vector<1x256x4xf32>
    %110 = vector.shape_cast %102 : vector<1x256x4xf32> to vector<1x1x256x4xf32>
    tpu.vector_store %arg4[%c2_78, %c0_79, %c0_80, %c0_81], %110 {strides = array<i32>} : memref<4x1x256x4xf32, #tpu.memory_space<vmem>>, vector<1x1x256x4xf32>,
    %cst_82 = arith.constant 0.000000e+00 : f32
    %111 = vector.broadcast %cst_82 : f32 to vector<256x4xf32>
    %112 = vector.extract_strided_slice %1 {offsets = [0, 1, 0, 0], sizes = [1, 16, 16, 4], strides = [1, 1, 1, 1]} : vector<1x18x16x4xbf16> to vector<1x16x16x4xbf16>
    %113 = vector.shape_cast %112 : vector<1x16x16x4xbf16> to vector<256x4xbf16>
    %c3_83 = arith.constant 3 : index
    %c0_84 = arith.constant 0 : index
    %c0_85 = arith.constant 0 : index
    %c0_86 = arith.constant 0 : index
    %114 = vector.load %arg2[%c3_83, %c0_84, %c0_85, %c0_86] : memref<4x4x4x4xbf16, #tpu.memory_space<vmem>>, vector<1x1x4x4xbf16>
    %115 = vector.shape_cast %114 : vector<1x1x4x4xbf16> to vector<4x4xbf16>
    %cst_87 = arith.constant dense<0.000000e+00> : vector<256x4xf32>
    %116 = tpu.matmul %113, %115, %cst_87 {dimension_numbers = #tpu.dot_dimension_numbers<[1], [0], [0], [1], [0, 0, 1, 1], [], []>} : vector<256x4xbf16>, vector<4x4xbf16>, vector<256x4xf32> -> vector<256x4xf32>
    %117 = arith.addf %111, %116 : vector<256x4xf32>
    %118 = vector.extract_strided_slice %2 {offsets = [0, 1, 0, 0], sizes = [1, 16, 16, 4], strides = [1, 1, 1, 1]} : vector<1x18x16x4xbf16> to vector<1x16x16x4xbf16>
    %119 = vector.shape_cast %118 : vector<1x16x16x4xbf16> to vector<256x4xbf16>
    %c3_88 = arith.constant 3 : index
    %c1_89 = arith.constant 1 : index
    %c0_90 = arith.constant 0 : index
    %c0_91 = arith.constant 0 : index
    %120 = vector.load %arg2[%c3_88, %c1_89, %c0_90, %c0_91] : memref<4x4x4x4xbf16, #tpu.memory_space<vmem>>, vector<1x1x4x4xbf16>
    %121 = vector.shape_cast %120 : vector<1x1x4x4xbf16> to vector<4x4xbf16>
    %cst_92 = arith.constant dense<0.000000e+00> : vector<256x4xf32>
    %122 = tpu.matmul %119, %121, %cst_92 {dimension_numbers = #tpu.dot_dimension_numbers<[1], [0], [0], [1], [0, 0, 1, 1], [], []>} : vector<256x4xbf16>, vector<4x4xbf16>, vector<256x4xf32> -> vector<256x4xf32>
    %123 = arith.addf %117, %122 : vector<256x4xf32>
    %124 = vector.extract_strided_slice %1 {offsets = [0, 2, 0, 0], sizes = [1, 16, 16, 4], strides = [1, 1, 1, 1]} : vector<1x18x16x4xbf16> to vector<1x16x16x4xbf16>
    %125 = vector.shape_cast %124 : vector<1x16x16x4xbf16> to vector<256x4xbf16>
    %c3_93 = arith.constant 3 : index
    %c2_94 = arith.constant 2 : index
    %c0_95 = arith.constant 0 : index
    %c0_96 = arith.constant 0 : index
    %126 = vector.load %arg2[%c3_93, %c2_94, %c0_95, %c0_96] : memref<4x4x4x4xbf16, #tpu.memory_space<vmem>>, vector<1x1x4x4xbf16>
    %127 = vector.shape_cast %126 : vector<1x1x4x4xbf16> to vector<4x4xbf16>
    %cst_97 = arith.constant dense<0.000000e+00> : vector<256x4xf32>
    %128 = tpu.matmul %125, %127, %cst_97 {dimension_numbers = #tpu.dot_dimension_numbers<[1], [0], [0], [1], [0, 0, 1, 1], [], []>} : vector<256x4xbf16>, vector<4x4xbf16>, vector<256x4xf32> -> vector<256x4xf32>
    %129 = arith.addf %123, %128 : vector<256x4xf32>
    %130 = vector.extract_strided_slice %2 {offsets = [0, 2, 0, 0], sizes = [1, 16, 16, 4], strides = [1, 1, 1, 1]} : vector<1x18x16x4xbf16> to vector<1x16x16x4xbf16>
    %131 = vector.shape_cast %130 : vector<1x16x16x4xbf16> to vector<256x4xbf16>
    %c3_98 = arith.constant 3 : index
    %c3_99 = arith.constant 3 : index
    %c0_100 = arith.constant 0 : index
    %c0_101 = arith.constant 0 : index
    %132 = vector.load %arg2[%c3_98, %c3_99, %c0_100, %c0_101] : memref<4x4x4x4xbf16, #tpu.memory_space<vmem>>, vector<1x1x4x4xbf16>
    %133 = vector.shape_cast %132 : vector<1x1x4x4xbf16> to vector<4x4xbf16>
    %cst_102 = arith.constant dense<0.000000e+00> : vector<256x4xf32>
    %134 = tpu.matmul %131, %133, %cst_102 {dimension_numbers = #tpu.dot_dimension_numbers<[1], [0], [0], [1], [0, 0, 1, 1], [], []>} : vector<256x4xbf16>, vector<4x4xbf16>, vector<256x4xf32> -> vector<256x4xf32>
    %135 = arith.addf %129, %134 : vector<256x4xf32>
    %136 = vector.shape_cast %135 : vector<256x4xf32> to vector<1x256x4xf32>
    %cst_103 = arith.constant dense<0.000000e+00> : vector<1x4xf32>
    %137 = vector.multi_reduction <add>, %136, %cst_103 [1] : vector<1x256x4xf32> to vector<1x4xf32>
    %138 = arith.addf %104, %137 : vector<1x4xf32>
    %139 = arith.mulf %136, %136 : vector<1x256x4xf32>
    %cst_104 = arith.constant dense<0.000000e+00> : vector<1x4xf32>
    %140 = vector.multi_reduction <add>, %139, %cst_104 [1] : vector<1x256x4xf32> to vector<1x4xf32>
    %141 = arith.addf %107, %140 : vector<1x4xf32>
    %c3_105 = arith.constant 3 : index
    %c0_106 = arith.constant 0 : index
    %c0_107 = arith.constant 0 : index
    %c0_108 = arith.constant 0 : index
    %142 = vector.load %arg4[%c3_105, %c0_106, %c0_107, %c0_108] : memref<4x1x256x4xf32, #tpu.memory_space<vmem>>, vector<1x1x256x4xf32>
    %143 = vector.shape_cast %142 : vector<1x1x256x4xf32> to vector<1x256x4xf32>
    %144 = vector.shape_cast %136 : vector<1x256x4xf32> to vector<1x1x256x4xf32>
    tpu.vector_store %arg4[%c3_105, %c0_106, %c0_107, %c0_108], %144 {strides = array<i32>} : memref<4x1x256x4xf32, #tpu.memory_space<vmem>>, vector<1x1x256x4xf32>,
    %cst_109 = arith.constant 9.765625E-4 : f32
    %145 = vector.broadcast %cst_109 : f32 to vector<1x4xf32>
    %146 = arith.mulf %138, %145 : vector<1x4xf32>
    %cst_110 = arith.constant 9.765625E-4 : f32
    %147 = vector.broadcast %cst_110 : f32 to vector<1x4xf32>
    %148 = arith.mulf %141, %147 : vector<1x4xf32>
    %149 = arith.mulf %146, %146 : vector<1x4xf32>
    %150 = arith.subf %148, %149 : vector<1x4xf32>
    %cst_111 = arith.constant 9.99999974E-6 : f32
    %151 = vector.broadcast %cst_111 : f32 to vector<1x4xf32>
    %152 = arith.addf %150, %151 : vector<1x4xf32>
    %153 = math.rsqrt %152 : vector<1x4xf32>
    %154 = vector.shape_cast %146 : vector<1x4xf32> to vector<1x1x4xf32>
    %155 = vector.shape_cast %153 : vector<1x4xf32> to vector<1x1x4xf32>
    %c0_112 = arith.constant 0 : index
    %c0_113 = arith.constant 0 : index
    %c0_114 = arith.constant 0 : index
    %c0_115 = arith.constant 0 : index
    %156 = vector.load %arg4[%c0_112, %c0_113, %c0_114, %c0_115] : memref<4x1x256x4xf32, #tpu.memory_space<vmem>>, vector<1x1x256x4xf32>
    %157 = vector.shape_cast %156 : vector<1x1x256x4xf32> to vector<1x256x4xf32>
    %158 = vector.broadcast %154 : vector<1x1x4xf32> to vector<1x256x4xf32>
    %159 = arith.subf %157, %158 : vector<1x256x4xf32>
    %160 = vector.broadcast %155 : vector<1x1x4xf32> to vector<1x256x4xf32>
    %161 = arith.mulf %159, %160 : vector<1x256x4xf32>
    %cst_116 = arith.constant 0.000000e+00 : f32
    %162 = vector.broadcast %cst_116 : f32 to vector<1x256x4xf32>
    %163 = arith.maximumf %161, %162 : vector<1x256x4xf32>
    %c1_117 = arith.constant 1 : index
    %c0_118 = arith.constant 0 : index
    %c0_119 = arith.constant 0 : index
    %c0_120 = arith.constant 0 : index
    %164 = vector.load %arg4[%c1_117, %c0_118, %c0_119, %c0_120] : memref<4x1x256x4xf32, #tpu.memory_space<vmem>>, vector<1x1x256x4xf32>
    %165 = vector.shape_cast %164 : vector<1x1x256x4xf32> to vector<1x256x4xf32>
    %166 = vector.broadcast %154 : vector<1x1x4xf32> to vector<1x256x4xf32>
    %167 = arith.subf %165, %166 : vector<1x256x4xf32>
    %168 = vector.broadcast %155 : vector<1x1x4xf32> to vector<1x256x4xf32>
    %169 = arith.mulf %167, %168 : vector<1x256x4xf32>
    %cst_121 = arith.constant 0.000000e+00 : f32
    %170 = vector.broadcast %cst_121 : f32 to vector<1x256x4xf32>
    %171 = arith.maximumf %169, %170 : vector<1x256x4xf32>
    %c2_122 = arith.constant 2 : index
    %c0_123 = arith.constant 0 : index
    %c0_124 = arith.constant 0 : index
    %c0_125 = arith.constant 0 : index
    %172 = vector.load %arg4[%c2_122, %c0_123, %c0_124, %c0_125] : memref<4x1x256x4xf32, #tpu.memory_space<vmem>>, vector<1x1x256x4xf32>
    %173 = vector.shape_cast %172 : vector<1x1x256x4xf32> to vector<1x256x4xf32>
    %174 = vector.broadcast %154 : vector<1x1x4xf32> to vector<1x256x4xf32>
    %175 = arith.subf %173, %174 : vector<1x256x4xf32>
    %176 = vector.broadcast %155 : vector<1x1x4xf32> to vector<1x256x4xf32>
    %177 = arith.mulf %175, %176 : vector<1x256x4xf32>
    %cst_126 = arith.constant 0.000000e+00 : f32
    %178 = vector.broadcast %cst_126 : f32 to vector<1x256x4xf32>
    %179 = arith.maximumf %177, %178 : vector<1x256x4xf32>
    %c3_127 = arith.constant 3 : index
    %c0_128 = arith.constant 0 : index
    %c0_129 = arith.constant 0 : index
    %c0_130 = arith.constant 0 : index
    %180 = vector.load %arg4[%c3_127, %c0_128, %c0_129, %c0_130] : memref<4x1x256x4xf32, #tpu.memory_space<vmem>>, vector<1x1x256x4xf32>
    %181 = vector.shape_cast %180 : vector<1x1x256x4xf32> to vector<1x256x4xf32>
    %182 = vector.broadcast %154 : vector<1x1x4xf32> to vector<1x256x4xf32>
    %183 = arith.subf %181, %182 : vector<1x256x4xf32>
    %184 = vector.broadcast %155 : vector<1x1x4xf32> to vector<1x256x4xf32>
    %185 = arith.mulf %183, %184 : vector<1x256x4xf32>
    %cst_131 = arith.constant 0.000000e+00 : f32
    %186 = vector.broadcast %cst_131 : f32 to vector<1x256x4xf32>
    %187 = arith.maximumf %185, %186 : vector<1x256x4xf32>
    %188 = tpu.concatenate %163, %171, %179, %187 in 2 : vector<1x256x4xf32>, vector<1x256x4xf32>, vector<1x256x4xf32>, vector<1x256x4xf32> -> vector<1x256x16xf32>
    %189 = arith.truncf %188 : vector<1x256x16xf32> to vector<1x256x16xbf16>
    %c0_132 = arith.constant 0 : index
    %c0_133 = arith.constant 0 : index
    %c0_134 = arith.constant 0 : index
    %190 = vector.load %arg3[%c0_132, %c0_133, %c0_134] : memref<1x256x16xbf16, #tpu.memory_space<vmem>>, vector<1x256x16xbf16>
    tpu.vector_store %arg3[%c0_132, %c0_133, %c0_134], %189 {strides = array<i32>} : memref<1x256x16xbf16, #tpu.memory_space<vmem>>, vector<1x256x16xbf16>,
    return
  }
  func.func @transform_0(%arg0: i32) -> (i32, i32, i32, i32) {
    %c0_i32 = arith.constant 0 : i32
    %c0_i32_0 = arith.constant 0 : i32
    %c0_i32_1 = arith.constant 0 : i32
    %c0_i32_2 = arith.constant 0 : i32
    return %arg0, %c0_i32, %c0_i32_0, %c0_i32_1 : i32, i32, i32, i32
  }
  func.func @transform_1(%arg0: i32) -> (i32, i32, i32, i32) {
    %c0_i32 = arith.constant 0 : i32
    %c0_i32_0 = arith.constant 0 : i32
    %c0_i32_1 = arith.constant 0 : i32
    %c0_i32_2 = arith.constant 0 : i32
    %c0_i32_3 = arith.constant 0 : i32
    return %c0_i32, %c0_i32_0, %c0_i32_1, %c0_i32_2 : i32, i32, i32, i32
  }
  func.func @transform_2(%arg0: i32) -> (i32, i32, i32) {
    %c0_i32 = arith.constant 0 : i32
    %c0_i32_0 = arith.constant 0 : i32
    %c0_i32_1 = arith.constant 0 : i32
    return %arg0, %c0_i32, %c0_i32_0 : i32, i32, i32
  }
}

</mosaic_0001>

<bundles_post_ra>
// kernel: tpu_custom_call.1
= control target key start
LH: loop header
LB: loop body
LE: loop exit
PB: predicated region body
PF: predicated region fallthrough
CT: control target
= control target key end

     0   :  { %s7640_s9 = smov 0   ;;  %s10985_s0 = inlined_call_operand.vmem [shape: bf16[2,18,18,4], index: 0, kind: input, shape index: {}]   ;;  %s10986_s1 = inlined_call_operand.vmem [shape: bf16[4,4,4,4], index: 1, kind: input, shape index: {}]   ;;  %s10987_s2 = inlined_call_operand.vmem [shape: bf16[2,256,16], index: 2, kind: output, shape index: {}]  }
   0x1 LB: > { %s6089_s10 = sadd.s32 4294967295, %s7620_s9   ;;  %p6093_p0 = scmp.ge.s32.totalorder %s7620_s9, 1  ;;  %s7620_s9 = sphi %s7640_s9, %s12_s9  }
   0x2   : > { %p112_p1 = scmp.lt.s32.totalorder %s7620_s9, 3 }
   0x4   : > { %p113_p2 = pnand %p6093_p0, %p112_p1 }
   0x6   : > { %116 = sbr.rel (%p113_p2) target bundleno = 1009 (0x3f1), region = 28 }
   0xb   : > { %v6097_v0 = vld [vmem:[%s10986_s1 + $0x2] sm:$0x3]  ;;  %vm718_vm0 = vcmask 1041408   ;;  %p134_p3 = scmp.lt.s32.totalorder %s6089_s10, 1  ;;  %v586_v2 = vld [vmem:[%s10986_s1] sm:$0x3] }
   0xc   : > { %7323 = vmatprep.subr.msk.bf16.mxu0 %vm718_vm0, %v6097_v0  ;;  %v720_v1 = vsel %vm718_vm0, %v6097_v0, 0  ;;  %7324 = vmatprep.subr.msk.bf16.mxu1 %vm718_vm0, %v586_v2  ;;  %v980_v3 = vsel %vm718_vm0, %v586_v2, 0  ;;  %v6162_v4 = vld [vmem:[%s10986_s1 + $0x4] sm:$0x3]  ;;  %v6180_v5 = vld [vmem:[%s10986_s1 + $0x6] sm:$0x3] }
   0xd   : > { %6780 = vmatpush3.bf16.msra.mxu0 %v720_v1  ;;  %s11488_s10 = smov (!%p134_p3, %s6089_s10), 1  ;;  %6814 = vmatpush3.bf16.msra.mxu1 %v980_v3  ;;  %vm199_vm1 = vsmask.f32 3328  ;;  %vm200_vm2 = vsmask.f32 7440  ;;  %vm669_vm3 = vcmask 31744  }
   0xe   : > { %7325 = vmatprep.subr.msk.bf16.mxu0 %vm718_vm0, %v6162_v4  ;;  %s7339_s19 = smul.u32 216, %s11488_s10  ;;  %7326 = vmatprep.subr.msk.bf16.mxu1 %vm718_vm0, %v6180_v5  ;;  %v1176_v6 = vsel %vm718_vm0, %v6162_v4, 0  ;;  %v7701_v19 = vsel %vm718_vm0, %v6180_v5, 0  ;;  %v7722_v33 = vld [vmem:[%s10986_s1 + $0xa] sm:$0x3]  ;;  %vm7726_vm4 = vmor %vm199_vm1, %vm200_vm2  ;;  %v11121_v34 = vmov 0 }
   0xf   : > { %v11122_v34 = vsel %vm7726_vm4, 4294967295, %v11121_v34  ;;  %vm1799_vm5 = vcmask 1042432   ;;  %vm1800_vm6 = vcmask 1046532   ;;  %s7622_s21 = smov 4   ;;  %s7624_s23 = smov 12   ;;  %vm5807_vm8 = vcmask 64512  }
  0x10   : > { %s7672_s22 = scalar_lea.vmem %s10985_s0, %s7339_s19  ;;  %11123 = vst [vmem:[#allocation5_spill] sm:$0xff] %v11122_v34  ;;  %vm8178_vm7 = vmor %vm1799_vm5, %vm1800_vm6  ;;  %vm5840_vm9 = vcmask 97280   ;;  %vm6001_vm10 = vcmask 125952   ;;  %s6474_s24 = sshll.u32 %s11488_s10, 7 }
  0x11   : > { %v7676_v7 = vld [vmem:[%s7672_s22 + $0xc] sm:$0xf]  ;;  %v7679_v8 = vld [vmem:[%s7672_s22 + $0x10] sm:$0xf]  ;;  %v7682_v9 = vld [vmem:[%s7672_s22 + $0x18] sm:$0xf]  ;;  %s10820_s27 = scalar_lea.vmem %s10987_s2, %s6474_s24 }
  0x12   : > { %v203_v10 = vshrl.u32 %v7676_v7, 16  ;;  %v206_v11 = vshll.u32 %v7676_v7, 16  ;;  %v212_v12 = vshll.u32 %v7679_v8, 16  ;;  %v216_v13 = vshrl.u32 %v7679_v8, 16  ;;  %v7689_v14 = vld [vmem:[%s7672_s22 + $0x1c] sm:$0xf] }
  0x13   : > { %v7693_v15 = vcombine.low %v7676_v7, %v7679_v8  ;;  %v7697_v17 = vld [vmem:[%s7672_s22 + $0x20] sm:$0x1]  ;;  %v227_v18 = vshrl.u32 %v7682_v9, 16  ;;  %v230_v25 = vshll.u32 %v7682_v9, 16  ;;  %v236_v26 = vshll.u32 %v7689_v14, 16 }
  0x14   : > { %v205_v20 = vrot.slane %v203_v10, 4  ;;  %v208_v21 = vrot.slane %v206_v11, 5  ;;  %v7703_v22 = vrot.slane %v212_v12, 5  ;;  %v218_v23 = vrot.slane %v216_v13, 4  ;;  %v7717_v32 = vld [vmem:[%s7672_s22 + $0x24] sm:$0xf] }
  0x15   : > { %6781 = vmatprep.mubr.msk.bf16.mxu0 %vm669_vm3, %v7693_v15  ;;  %v229_v24 = vrot.slane %v227_v18, 4  ;;  %v240_v27 = vshrl.u32 %v7689_v14, 16  ;;  %v246_v30 = vshll.u32 %v7697_v17, 16  ;;  %v7714_v31 = vcombine.low %v7682_v9, %v7689_v14  ;;  %11120 = vst [vmem:[#allocation4_spill] sm:$0xff] %v7717_v32  ;;  %v7732_v39 = vld [vmem:[%s7672_s22 + $0x28] sm:$0xf] }
  0x16   : > { %v209_v28 = vor.u32 %v208_v21, %v205_v20  ;;  %v219_v29 = vor.u32 %v218_v23, %v7703_v22  ;;  %v232_v36 = vrot.slane %v230_v25, 5  ;;  %v238_v37 = vrot.slane %v236_v26, 5  ;;  %11124 = vst [vmem:[#allocation6_spill] sm:$0xff] %v7732_v39  ;;  %v7742_v46 = vld [vmem:[%s7672_s22 + $0x2c] sm:$0x1] }
  0x17   : > { %11119 = vst [vmem:[#allocation3_spill] sm:$0xff] %v7714_v31  ;;  %v242_v38 = vrot.slane %v240_v27, 4  ;;  %v248_v42 = vrot.slane %v246_v30, 5  ;;  %6782 = vmatmul.mubr.msk.bf16.vlgmr.msra.gmra.mxu0 %vm669_vm3, %v7714_v31  ;;  %11125 = vst [vmem:[#allocation7_spill] sm:$0xff] %v7742_v46  ;;  %v251_v47 = vshrl.u32 %v7717_v32, 16  ;;  %v254_v48 = vshll.u32 %v7717_v32, 16 }
  0x18   : > { %v7734_v40 = vrot.slane %v209_v28, 4  ;;  %v7736_v41 = vrot.slane %v219_v29, 4  ;;  %v233_v44 = vor.u32 %v232_v36, %v229_v24  ;;  %6848 = vmatpush3.bf16.msra.mxu0 %v1176_v6  ;;  %v260_v51 = vshll.u32 %v7732_v39, 16  ;;  %v7754_v53 = vld [vmem:[%s7672_s22 + $0x30] sm:$0xf] }
  0x19   : > { %v243_v45 = vor.u32 %v242_v38, %v238_v37  ;;  %v264_v52 = vshrl.u32 %v7732_v39, 16  ;;  %11126 = vst [vmem:[#allocation8_spill] sm:$0xff] %v7754_v53  ;;  %7327 = vmatprep.subr.msk.bf16.mxu0 %vm718_vm0, %v7722_v33  ;;  %v253_v56 = vrot.slane %v251_v47, 4  ;;  %v256_v57 = vrot.slane %v254_v48, 5  ;;  %v7764_v62 = vld [vmem:[%s7672_s22 + $0x34] sm:$0xf] }
  0x1a   : > { %v215_v49 = vsel %vm7726_vm4, %v7734_v40, %v7703_v22  ;;  %v234_v54 = vrot.slane %v233_v44, 4  ;;  %v262_v58 = vrot.slane %v260_v51, 5  ;;  %v270_v60 = vshll.u32 %v7742_v46, 16  ;;  %11128 = vst [vmem:[#allocation10_spill] sm:$0xff] %v7764_v62  ;;  %v7771_v2 = vld [vmem:[%s7672_s22 + $0x38] sm:$0x1] }
  0x1b   : > { %v244_v55 = vrot.slane %v243_v45, 4  ;;  %v266_v59 = vrot.slane %v264_v52, 4  ;;  %v7761_v61 = vcombine.low %v7717_v32, %v7732_v39  ;;  %v257_v1 = vor.u32 %v256_v57, %v253_v56  ;;  %11129 = vst [vmem:[#allocation11_spill] sm:$0xff] %v7771_v2  ;;  %v7780_v11 = vld [vmem:[%s7672_s22 + $0x14] sm:$0x1] }
  0x1c   : > { %v239_v63 = vsel %vm7726_vm4, %v234_v54, %v238_v37  ;;  %v275_v3 = vshrl.u32 %v7754_v53, 16  ;;  %v272_v6 = vrot.slane %v270_v60, 5  ;;  %v278_v10 = vshll.u32 %v7754_v53, 16  ;;  %v7785_v21 = vld [vmem:[%s7672_s22 + $0x3c] sm:$0xf] }
  0x1d   : > { %11127 = vst [vmem:[#allocation9_spill] sm:$0xff] %v7761_v61  ;;  %v249_v0 = vsel %vm7726_vm4, %v244_v55, %v248_v42  ;;  %v267_v5 = vor.u32 %v266_v59, %v262_v58  ;;  %6785 = vmatprep.mubr.msk.bf16.mxu0 %vm669_vm3, %v7761_v61  ;;  %v258_v12 = vrot.slane %v257_v1, 4  ;;  %v284_v18 = vshll.u32 %v7764_v62, 16  ;;  %11130 = vst [vmem:[#allocation12_spill] sm:$0xff] %v7785_v21  ;;  %v7796_v30 = vld [vmem:[%s7672_s22 + $0x40] sm:$0xf] }
  0x1e   : > { %v7774_v4 = vcombine.low %v239_v63, %v249_v0  ;;  %v277_v13 = vrot.slane %v275_v3, 4  ;;  %v288_v20 = vshrl.u32 %v7764_v62, 16  ;;  %v280_v23 = vrot.slane %v278_v10, 5  ;;  %11132 = vst [vmem:[#allocation14_spill] sm:$0xff] %v7796_v30  ;;  %v7803_v40 = vld [vmem:[%s7672_s22 + $0x44] sm:$0x1] }
  0x1f   : > { %v268_v22 = vrot.slane %v267_v5, 4  ;;  %v294_v24 = vshll.u32 %v7771_v2, 16  ;;  %v7790_v25 = vcombine.low %v7754_v53, %v7764_v62  ;;  %v263_v26 = vsel %vm7726_vm4, %v258_v12, %v262_v58  ;;  %11133 = vst [vmem:[#allocation15_spill] sm:$0xff] %v7803_v40  ;;  %v7816_v60 = vld [vmem:[%s7672_s22 + $0x48] sm:$0xf] }
  0x20   : > { %v286_v27 = vrot.slane %v284_v18, 5  ;;  %v290_v28 = vrot.slane %v288_v20, 4  ;;  %v222_v29 = vshll.u32 %v7780_v11, 16  ;;  %v281_v37 = vor.u32 %v280_v23, %v277_v13  ;;  %v7823_v5 = vld [vmem:[%s7672_s22 + $0x4c] sm:$0xf] }
  0x21   : > { %11131 = vst [vmem:[#allocation13_spill] sm:$0xff] %v7790_v25  ;;  %v273_v36 = vsel %vm7726_vm4, %v268_v22, %v272_v6  ;;  %v296_v38 = vrot.slane %v294_v24, 5  ;;  %6786 = vmatmul.mubr.msk.bf16.gmra.mxu0 %vm669_vm3, %v7790_v25  ;;  %v299_v42 = vshrl.u32 %v7785_v21, 16  ;;  %v302_v48 = vshll.u32 %v7785_v21, 16  ;;  %v7826_v6 = vld [vmem:[%s7672_s22 + $0x50] sm:$0x1] }
  0x22   : > { %v7806_v44 = vcombine.low %v263_v26, %v273_v36  ;;  %v291_v45 = vor.u32 %v290_v28, %v286_v27  ;;  %v224_v47 = vrot.slane %v222_v29, 5  ;;  %v282_v51 = vrot.slane %v281_v37, 4  ;;  %v7843_v23 = vld [vmem:[%s10986_s1 + $0x8] sm:$0x3]  ;;  %v7853_v29 = vld [vmem:[%s7672_s22 + $0x54] sm:$0xf] }
  0x23   : > { %v301_v52 = vrot.slane %v299_v42, 4  ;;  %v308_v54 = vshll.u32 %v7796_v30, 16  ;;  %v312_v55 = vshrl.u32 %v7796_v30, 16  ;;  %v304_v58 = vrot.slane %v302_v48, 5  ;;  %v7933_v43 = vld [vmem:[%s7672_s22 + $0x78] sm:$0xf] }
  0x24   : > { %v292_v56 = vrot.slane %v291_v45, 4  ;;  %v225_v57 = vsel %vm7726_vm4, %v7736_v41, %v224_v47  ;;  %v318_v59 = vshll.u32 %v7803_v40, 16  ;;  %v287_v63 = vsel %vm7726_vm4, %v282_v51, %v286_v27  ;;  %v7863_v45 = vld [vmem:[%s7672_s22 + $0x58] sm:$0xf]  ;;  %v7955_v40 = vld [vmem:[%s7672_s22 + $0x80] sm:$0x1] }
  0x25   : > { %v7820_v0 = vcombine.low %v215_v49, %v225_v57  ;;  %v310_v1 = vrot.slane %v308_v54, 5  ;;  %v314_v3 = vrot.slane %v312_v55, 4  ;;  %v305_v41 = vor.u32 %v304_v58, %v301_v52 }
  0x26   : > { %v297_v10 = vsel %vm7726_vm4, %v292_v56, %v296_v38  ;;  %v320_v12 = vrot.slane %v318_v59, 5  ;;  %v7832_v13 = vcombine.low %v7785_v21, %v7796_v30  ;;  %v323_v20 = vshrl.u32 %v7816_v60, 16 }
  0x27   : > { %11134 = vst [vmem:[#allocation16_spill] sm:$0xff] %v7820_v0  ;;  %v7834_v18 = vcombine.low %v287_v63, %v297_v10  ;;  %6815 = vmatprep.mubr.msk.bf16.mxu1 %vm669_vm3, %v7820_v0  ;;  %v315_v49 = vor.u32 %v314_v3, %v310_v1  ;;  %v326_v22 = vshll.u32 %v7816_v60, 16  ;;  %v306_v24 = vrot.slane %v305_v41, 4  ;;  %v7883_v3 = vld [vmem:[%s7672_s22 + $0x60] sm:$0xf] }
  0x28   : > { %11135 = vst [vmem:[#allocation17_spill] sm:$0xff] %v7832_v13  ;;  %6816 = vmatmul.mubr.msk.bf16.vlgmr.msra.gmra.mxu1 %vm669_vm3, %v7774_v4  ;;  %6789 = vmatprep.mubr.msk.bf16.mxu0 %vm669_vm3, %v7832_v13  ;;  %v332_v26 = vshll.u32 %v7823_v5, 16  ;;  %v336_v27 = vshrl.u32 %v7823_v5, 16  ;;  %v342_v28 = vshll.u32 %v7826_v6, 16  ;;  %v325_v37 = vrot.slane %v323_v20, 4 }
  0x29   : > { %6882 = vmatpush3.bf16.msra.mxu1 %v7701_v19  ;;  %v316_v36 = vrot.slane %v315_v49, 4  ;;  %v328_v38 = vrot.slane %v326_v22, 5  ;;  %v7858_v42 = vcombine.low %v7816_v60, %v7823_v5  ;;  %6819 = vmatprep.mubr.msk.bf16.mxu1 %vm669_vm3, %v7806_v44  ;;  %v311_v47 = vsel %vm7726_vm4, %v306_v24, %v310_v1  ;;  %v7868_v19 = vld [vmem:[%s7672_s22 + $0x5c] sm:$0x1]  ;;  %v7887_v20 = vld [vmem:[%s7672_s22 + $0x64] sm:$0xf] }
  0x2a   : > { %v334_v48 = vrot.slane %v332_v26, 5  ;;  %v338_v51 = vrot.slane %v336_v27, 4  ;;  %v344_v52 = vrot.slane %v342_v28, 5  ;;  %7328 = vmatprep.subr.msk.bf16.mxu1 %vm718_vm0, %v7843_v23  ;;  %v347_v56 = vshrl.u32 %v7853_v29, 16 }
  0x2b   : > { %11136 = vst [vmem:[#allocation18_spill] sm:$0xff] %v7858_v42  ;;  %v321_v54 = vsel %vm7726_vm4, %v316_v36, %v320_v12  ;;  %v329_v55 = vor.u32 %v328_v38, %v325_v37  ;;  %6790 = vmatmul.mubr.msk.bf16.gmra.mxu0 %vm669_vm3, %v7858_v42  ;;  %v350_v57 = vshll.u32 %v7853_v29, 16  ;;  %v356_v63 = vshll.u32 %v7863_v45, 16  ;;  %v7896_v38 = vld [vmem:[%s7672_s22 + $0x68] sm:$0x1] }
  0x2c   : > { %v7878_v58 = vcombine.low %v311_v47, %v321_v54  ;;  %v339_v59 = vor.u32 %v338_v51, %v334_v48  ;;  %v360_v1 = vshrl.u32 %v7863_v45, 16  ;;  %v349_v41 = vrot.slane %v347_v56, 4  ;;  %v7908_v56 = vld [vmem:[%s7672_s22 + $0x6c] sm:$0xf] }
  0x2d   : > { %v330_v10 = vrot.slane %v329_v55, 4  ;;  %v352_v12 = vrot.slane %v350_v57, 5  ;;  %v366_v49 = vshll.u32 %v7868_v19, 16  ;;  %v358_v24 = vrot.slane %v356_v63, 5 }
  0x2e   : > { %11137 = vst [vmem:[#allocation19_spill] sm:$0xff] %v7878_v58  ;;  %v340_v22 = vrot.slane %v339_v59, 4  ;;  %v362_v26 = vrot.slane %v360_v1, 4  ;;  %v7891_v27 = vcombine.low %v7853_v29, %v7863_v45  ;;  %v371_v47 = vshrl.u32 %v7883_v3, 16 }
  0x2f   : > { %v335_v28 = vsel %vm7726_vm4, %v330_v10, %v334_v48  ;;  %v353_v36 = vor.u32 %v352_v12, %v349_v41  ;;  %v368_v37 = vrot.slane %v366_v49, 5  ;;  %v374_v55 = vshll.u32 %v7883_v3, 16  ;;  %v7917_v49 = vld [vmem:[%s7672_s22 + $0x70] sm:$0xf] }
  0x30   : > { %11138 = vst [vmem:[#allocation20_spill] sm:$0xff] %v7891_v27  ;;  %v345_v51 = vsel %vm7726_vm4, %v340_v22, %v344_v52  ;;  %6820 = vmatmul.mubr.msk.bf16.gmra.mxu1 %vm669_vm3, %v7834_v18  ;;  %v363_v54 = vor.u32 %v362_v26, %v358_v24  ;;  %6793 = vmatprep.mubr.msk.bf16.mxu0 %vm669_vm3, %v7891_v27  ;;  %v380_v48 = vshll.u32 %v7887_v20, 16  ;;  %v373_v63 = vrot.slane %v371_v47, 4 }
  0x31   : > { %v7910_v57 = vcombine.low %v335_v28, %v345_v51  ;;  %v354_v59 = vrot.slane %v353_v36, 4  ;;  %v384_v52 = vshrl.u32 %v7887_v20, 16  ;;  %6823 = vmatprep.mubr.msk.bf16.mxu1 %vm669_vm3, %v7878_v58  ;;  %v376_v10 = vrot.slane %v374_v55, 5  ;;  %v7926_v36 = vld [vmem:[%s7672_s22 + $0x74] sm:$0x1] }
  0x32   : > { %v364_v1 = vrot.slane %v363_v54, 4  ;;  %v382_v41 = vrot.slane %v380_v48, 5  ;;  %v390_v12 = vshll.u32 %v7896_v38, 16  ;;  %v7923_v28 = vcombine.low %v7883_v3, %v7887_v20 }
  0x33   : > { %11139 = vst [vmem:[#allocation21_spill] sm:$0xff] %v7910_v57  ;;  %v359_v22 = vsel %vm7726_vm4, %v354_v59, %v358_v24  ;;  %v386_v26 = vrot.slane %v384_v52, 4  ;;  %v395_v47 = vshrl.u32 %v7908_v56, 16  ;;  %v377_v54 = vor.u32 %v376_v10, %v373_v63 }
  0x34   : > { %11140 = vst [vmem:[#allocation22_spill] sm:$0xff] %v7923_v28  ;;  %v369_v51 = vsel %vm7726_vm4, %v364_v1, %v368_v37  ;;  %v392_v55 = vrot.slane %v390_v12, 5  ;;  %v398_v48 = vshll.u32 %v7908_v56, 16  ;;  %6794 = vmatmul.mubr.msk.bf16.gmra.mxu0 %vm669_vm3, %v7923_v28  ;;  %v404_v16 = vshll.u32 %v7917_v49, 16  ;;  %v7943_v1 = vld [vmem:[%s7672_s22 + $0x7c] sm:$0xf] }
  0x35   : > { %v7935_v24 = vcombine.low %v359_v22, %v369_v51  ;;  %v387_v59 = vor.u32 %v386_v26, %v382_v41  ;;  %v397_v52 = vrot.slane %v395_v47, 4  ;;  %v378_v35 = vrot.slane %v377_v54, 4 }
  0x36   : > { %v400_v50 = vrot.slane %v398_v48, 5  ;;  %v408_v37 = vshrl.u32 %v7917_v49, 16  ;;  %v414_v63 = vshll.u32 %v7926_v36, 16  ;;  %v406_v12 = vrot.slane %v404_v16, 5 }
  0x37   : > { %11141 = vst [vmem:[#allocation23_spill] sm:$0xff] %v7935_v24  ;;  %v388_v10 = vrot.slane %v387_v59, 4  ;;  %v7947_v22 = vcombine.low %v7908_v56, %v7917_v49  ;;  %v419_v26 = vshrl.u32 %v7933_v43, 16  ;;  %v383_v47 = vsel %vm7726_vm4, %v378_v35, %v382_v41  ;;  %v7966_v41 = vld [vmem:[%s7672_s22 + $0x84] sm:$0xf] }
  0x38   : > { %6824 = vmatmul.mubr.msk.bf16.gmra.mxu1 %vm669_vm3, %v7910_v57  ;;  %v401_v51 = vor.u32 %v400_v50, %v397_v52  ;;  %v410_v54 = vrot.slane %v408_v37, 4  ;;  %v416_v48 = vrot.slane %v414_v63, 5  ;;  %v422_v21 = vshll.u32 %v7933_v43, 16  ;;  %v7972_v63 = vld [vmem:[%s7672_s22 + $0x88] sm:$0xf] }
  0x39   : > { %11142 = vst [vmem:[#allocation24_spill] sm:$0xff] %v7947_v22  ;;  %v393_v16 = vsel %vm7726_vm4, %v388_v10, %v392_v55  ;;  %6797 = vmatprep.mubr.msk.bf16.mxu0 %vm669_vm3, %v7947_v22  ;;  %v421_v59 = vrot.slane %v419_v26, 4  ;;  %v428_v35 = vshll.u32 %v7943_v1, 16  ;;  %6827 = vmatprep.mubr.msk.bf16.mxu1 %vm669_vm3, %v7935_v24  ;;  %v432_v55 = vshrl.u32 %v7943_v1, 16  ;;  %v8045_v24 = vld [vmem:[%s7672_s22 + $0xa8] sm:$0xf] }
  0x3a   : > { %v7968_v50 = vcombine.low %v383_v47, %v393_v16  ;;  %v402_v52 = vrot.slane %v401_v51, 4  ;;  %v411_v37 = vor.u32 %v410_v54, %v406_v12  ;;  %v424_v10 = vrot.slane %v422_v21, 5  ;;  %v7985_v21 = vld [vmem:[%s7672_s22 + $0x8c] sm:$0x1]  ;;  %11152 = vst [vmem:[#allocation34_spill] sm:$0xff] %v8045_v24 }
  0x3b   : > { %v430_v26 = vrot.slane %v428_v35, 5  ;;  %v438_v2 = vshll.u32 %v7955_v40, 16  ;;  %v7977_v53 = vcombine.low %v7933_v43, %v7943_v1  ;;  %v434_v30 = vrot.slane %v432_v55, 4  ;;  %v7993_v55 = vld [vmem:[%s7672_s22 + $0x90] sm:$0xf] }
  0x3c   : > { %11143 = vst [vmem:[#allocation25_spill] sm:$0xff] %v7968_v50  ;;  %v407_v47 = vsel %vm7726_vm4, %v402_v52, %v406_v12  ;;  %v412_v16 = vrot.slane %v411_v37, 4  ;;  %v443_v51 = vshrl.u32 %v7966_v41, 16  ;;  %v425_v54 = vor.u32 %v424_v10, %v421_v59 }
  0x3d   : > { %11144 = vst [vmem:[#allocation26_spill] sm:$0xff] %v7977_v53  ;;  %v440_v62 = vrot.slane %v438_v2, 5  ;;  %6798 = vmatmul.mubr.msk.bf16.gmra.mxu0 %vm669_vm3, %v7977_v53  ;;  %v446_v35 = vshll.u32 %v7966_v41, 16  ;;  %v452_v46 = vshll.u32 %v7972_v63, 16  ;;  %v435_v12 = vor.u32 %v434_v30, %v430_v26  ;;  %v7998_v53 = vld [vmem:[%s7672_s22 + $0x94] sm:$0xf] }
  0x3e   : > { %v417_v32 = vsel %vm7726_vm4, %v412_v16, %v416_v48  ;;  %v445_v52 = vrot.slane %v443_v51, 4  ;;  %v456_v37 = vshrl.u32 %v7972_v63, 16  ;;  %v426_v59 = vrot.slane %v425_v54, 4  ;;  %v8010_v51 = vld [vmem:[%s7672_s22 + $0x98] sm:$0x1] }
  0x3f   : > { %v7995_v2 = vcombine.low %v407_v47, %v417_v32  ;;  %v448_v10 = vrot.slane %v446_v35, 5  ;;  %v454_v39 = vrot.slane %v452_v46, 5  ;;  %v436_v22 = vrot.slane %v435_v12, 4 }
  0x40   : > { %6828 = vmatmul.mubr.msk.bf16.gmra.mxu1 %vm669_vm3, %v7968_v50  ;;  %v458_v48 = vrot.slane %v456_v37, 4  ;;  %v462_v30 = vshll.u32 %v7985_v21, 16  ;;  %v8005_v16 = vcombine.low %v7966_v41, %v7972_v63  ;;  %v431_v32 = vsel %vm7726_vm4, %v426_v59, %v430_v26 }
  0x41   : > { %11145 = vst [vmem:[#allocation27_spill] sm:$0xff] %v7995_v2  ;;  %v449_v47 = vor.u32 %v448_v10, %v445_v52  ;;  %v467_v46 = vshrl.u32 %v7993_v55, 16  ;;  %v470_v54 = vshll.u32 %v7993_v55, 16  ;;  %6831 = vmatprep.mubr.msk.bf16.mxu1 %vm669_vm3, %v7995_v2  ;;  %v441_v35 = vsel %vm7726_vm4, %v436_v22, %v440_v62  ;;  %v8022_v52 = vld [vmem:[%s7672_s22 + $0x9c] sm:$0xf] }
  0x42   : > { %11146 = vst [vmem:[#allocation28_spill] sm:$0xff] %v8005_v16  ;;  %v459_v12 = vor.u32 %v458_v48, %v454_v39  ;;  %v464_v37 = vrot.slane %v462_v30, 5  ;;  %6801 = vmatprep.mubr.msk.bf16.mxu0 %vm669_vm3, %v8005_v16  ;;  %v476_v26 = vshll.u32 %v7998_v53, 16  ;;  %11147 = vst [vmem:[#allocation29_spill] sm:$0xff] %v8022_v52  ;;  %v8024_v59 = vcombine.low %v431_v32, %v441_v35  ;;  %v8029_v48 = vld [vmem:[%s7672_s22 + $0xa0] sm:$0xf] }
  0x43   : > { %v450_v10 = vrot.slane %v449_v47, 4  ;;  %v469_v28 = vrot.slane %v467_v46, 4  ;;  %v472_v27 = vrot.slane %v470_v54, 5  ;;  %v480_v62 = vshrl.u32 %v7998_v53, 16  ;;  %11149 = vst [vmem:[#allocation31_spill] sm:$0xff] %v8029_v48 }
  0x44   : > { %11148 = vst [vmem:[#allocation30_spill] sm:$0xff] %v8024_v59  ;;  %v460_v2 = vrot.slane %v459_v12, 4  ;;  %v478_v50 = vrot.slane %v476_v26, 5  ;;  %v486_v22 = vshll.u32 %v8010_v51, 16  ;;  %v8035_v32 = vcombine.low %v7993_v55, %v7998_v53  ;;  %v8038_v47 = vld [vmem:[%s7672_s22 + $0xa4] sm:$0x1] }
  0x45   : > { %v455_v30 = vsel %vm7726_vm4, %v450_v10, %v454_v39  ;;  %v473_v16 = vor.u32 %v472_v27, %v469_v28  ;;  %11151 = vst [vmem:[#allocation33_spill] sm:$0xff] %v8038_v47  ;;  %v491_v46 = vshrl.u32 %v8022_v52, 16  ;;  %v482_v35 = vrot.slane %v480_v62, 4 }
  0x46   : > { %11150 = vst [vmem:[#allocation32_spill] sm:$0xff] %v8035_v32  ;;  %v465_v54 = vsel %vm7726_vm4, %v460_v2, %v464_v37  ;;  %v488_v12 = vrot.slane %v486_v22, 5  ;;  %v494_v26 = vshll.u32 %v8022_v52, 16  ;;  %6802 = vmatmul.mubr.msk.bf16.gmra.mxu0 %vm669_vm3, %v8035_v32  ;;  %v500_v10 = vshll.u32 %v8029_v48, 16  ;;  %v8057_v22 = vld [vmem:[%s7672_s22 + $0xac] sm:$0xf] }
  0x47   : > { %v8047_v39 = vcombine.low %v455_v30, %v465_v54  ;;  %v474_v27 = vrot.slane %v473_v16, 4  ;;  %v493_v28 = vrot.slane %v491_v46, 4  ;;  %v483_v42 = vor.u32 %v482_v35, %v478_v50  ;;  %11154 = vst [vmem:[#allocation36_spill] sm:$0xff] %v8057_v22  ;;  %v8066_v54 = vld [vmem:[%s7672_s22 + $0xb0] sm:$0x1] }
  0x48   : > { %6832 = vmatmul.mubr.msk.bf16.gmra.mxu1 %vm669_vm3, %v8024_v59  ;;  %v496_v2 = vrot.slane %v494_v26, 5  ;;  %v504_v37 = vshrl.u32 %v8029_v48, 16  ;;  %v510_v62 = vshll.u32 %v8038_v47, 16  ;;  %v502_v30 = vrot.slane %v500_v10, 5  ;;  %11156 = vst [vmem:[#allocation38_spill] sm:$0xff] %v8066_v54 }
  0x49   : > { %11153 = vst [vmem:[#allocation35_spill] sm:$0xff] %v8047_v39  ;;  %v479_v16 = vsel %vm7726_vm4, %v474_v27, %v478_v50  ;;  %v8063_v46 = vcombine.low %v8022_v52, %v8029_v48  ;;  %v515_v35 = vshrl.u32 %v8045_v24, 16  ;;  %6835 = vmatprep.mubr.msk.bf16.mxu1 %vm669_vm3, %v8047_v39  ;;  %v484_v26 = vrot.slane %v483_v42, 4  ;;  %v8088_v48 = vld [vmem:[%s7672_s22 + $0xbc] sm:$0x1] }
  0x4a   : > { %v497_v32 = vor.u32 %v496_v2, %v493_v28  ;;  %v506_v59 = vrot.slane %v504_v37, 4  ;;  %v512_v13 = vrot.slane %v510_v62, 5  ;;  %v518_v27 = vshll.u32 %v8045_v24, 16  ;;  %v8080_v28 = vld [vmem:[%s7672_s22 + $0xb4] sm:$0xf]  ;;  %11160 = vst [vmem:[#allocation42_spill] sm:$0xff] %v8088_v48 }
  0x4b   : > { %11155 = vst [vmem:[#allocation37_spill] sm:$0xff] %v8063_v46  ;;  %6805 = vmatprep.mubr.msk.bf16.mxu0 %vm669_vm3, %v8063_v46  ;;  %v517_v50 = vrot.slane %v515_v35, 4  ;;  %v524_v10 = vshll.u32 %v8057_v22, 16  ;;  %v528_v57 = vshrl.u32 %v8057_v22, 16  ;;  %v489_v58 = vsel %vm7726_vm4, %v484_v26, %v488_v12  ;;  %11157 = vst [vmem:[#allocation39_spill] sm:$0xff] %v8080_v28 }
  0x4c   : > { %v498_v47 = vrot.slane %v497_v32, 4  ;;  %v507_v39 = vor.u32 %v506_v59, %v502_v30  ;;  %v534_v42 = vshll.u32 %v8066_v54, 16  ;;  %v8083_v2 = vld [vmem:[%s7672_s22 + $0xb8] sm:$0xf]  ;;  %v8085_v37 = vcombine.low %v479_v16, %v489_v58 }
  0x4d   : > { %11158 = vst [vmem:[#allocation40_spill] sm:$0xff] %v8083_v2  ;;  %v520_v62 = vrot.slane %v518_v27, 5  ;;  %v526_v35 = vrot.slane %v524_v10, 5  ;;  %v530_v46 = vrot.slane %v528_v57, 4  ;;  %v8094_v59 = vcombine.low %v8045_v24, %v8057_v22 }
  0x4e   : > { %11159 = vst [vmem:[#allocation41_spill] sm:$0xff] %v8085_v37  ;;  %v503_v52 = vsel %vm7726_vm4, %v498_v47, %v502_v30  ;;  %v508_v12 = vrot.slane %v507_v39, 4  ;;  %v536_v32 = vrot.slane %v534_v42, 5  ;;  %v539_v58 = vshrl.u32 %v8080_v28, 16 }
  0x4f   : > { %11161 = vst [vmem:[#allocation43_spill] sm:$0xff] %v8094_v59  ;;  %v521_v26 = vor.u32 %v520_v62, %v517_v50  ;;  %v531_v54 = vor.u32 %v530_v46, %v526_v35  ;;  %v542_v16 = vshll.u32 %v8080_v28, 16  ;;  %6806 = vmatmul.mubr.msk.bf16.gmra.mxu0 %vm669_vm3, %v8094_v59  ;;  %v548_v47 = vshll.u32 %v8083_v2, 16  ;;  %v8108_v46 = vld [vmem:[%s7672_s22 + $0xc0] sm:$0xf] }
  0x50   : > { %v513_v57 = vsel %vm7726_vm4, %v508_v12, %v512_v13  ;;  %6836 = vmatmul.mubr.msk.bf16.gmra.mxu1 %vm669_vm3, %v8085_v37  ;;  %v552_v39 = vshrl.u32 %v8083_v2, 16  ;;  %v558_v30 = vshll.u32 %v8088_v48, 16  ;;  %11162 = vst [vmem:[#allocation44_spill] sm:$0xff] %v8108_v46  ;;  %v541_v13 = vrot.slane %v539_v58, 4  ;;  %v8113_v37 = vld [vmem:[%s7672_s22 + $0xc4] sm:$0xf] }
  0x51   : > { %v8110_v50 = vcombine.low %v503_v52, %v513_v57  ;;  %v522_v27 = vrot.slane %v521_v26, 4  ;;  %v532_v10 = vrot.slane %v531_v54, 4  ;;  %v544_v42 = vrot.slane %v542_v16, 5  ;;  %11164 = vst [vmem:[#allocation46_spill] sm:$0xff] %v8113_v37  ;;  %v8127_v26 = vld [vmem:[%s7672_s22] sm:$0xf] }
  0x52   : > { %v550_v62 = vrot.slane %v548_v47, 5  ;;  %v554_v12 = vrot.slane %v552_v39, 4  ;;  %v560_v59 = vrot.slane %v558_v30, 5  ;;  %v8121_v52 = vcombine.low %v8080_v28, %v8083_v2  ;;  %v8150_v2 = vld [vmem:[%s7672_s22 + $0xc8] sm:$0x1] }
  0x53   : > { %11163 = vst [vmem:[#allocation45_spill] sm:$0xff] %v8110_v50  ;;  %v527_v22 = vsel %vm7726_vm4, %v522_v27, %v526_v35  ;;  %v537_v48 = vsel %vm7726_vm4, %v532_v10, %v536_v32  ;;  %v563_v54 = vshrl.u32 %v8108_v46, 16  ;;  %6839 = vmatprep.mubr.msk.bf16.mxu1 %vm669_vm3, %v8110_v50  ;;  %v545_v16 = vor.u32 %v544_v42, %v541_v13  ;;  %v8133_v32 = vld [vmem:[%s7672_s22 + $0x4] sm:$0xf]  ;;  %v8144_v13 = vld [vmem:[%s7672_s22 + $0x8] sm:$0x1] }
  0x54   : > { %11165 = vst [vmem:[#allocation47_spill] sm:$0xff] %v8121_v52  ;;  %v8129_v58 = vcombine.low %v527_v22, %v537_v48  ;;  %v555_v57 = vor.u32 %v554_v12, %v550_v62  ;;  %v566_v35 = vshll.u32 %v8108_v46, 16  ;;  %6809 = vmatprep.mubr.msk.bf16.mxu0 %vm669_vm3, %v8121_v52  ;;  %v572_v39 = vshll.u32 %v8113_v37, 16 }
  0x55   : > { %v565_v47 = vrot.slane %v563_v54, 4  ;;  %v576_v30 = vshrl.u32 %v8113_v37, 16  ;;  %v8141_v27 = vcombine.low %v8108_v46, %v8113_v37  ;;  %v546_v48 = vrot.slane %v545_v16, 4 }
  0x56   : > { %11166 = vst [vmem:[#allocation48_spill] sm:$0xff] %v8129_v58  ;;  %v556_v22 = vrot.slane %v555_v57, 4  ;;  %v568_v10 = vrot.slane %v566_v35, 5  ;;  %v1144_v42 = vshrl.u32 %v8127_v26, 16  ;;  %v574_v12 = vrot.slane %v572_v39, 5 }
  0x57   : > { %11167 = vst [vmem:[#allocation49_spill] sm:$0xff] %v8141_v27  ;;  %v578_v50 = vrot.slane %v576_v30, 4  ;;  %v1147_v52 = vshll.u32 %v8127_v26, 16  ;;  %v1153_v54 = vshll.u32 %v8133_v32, 16  ;;  %v551_v28 = vsel %vm7726_vm4, %v546_v48, %v550_v62  ;;  %6810 = vmatmul.mubr.msk.bf16.gmra.mxu0 %vm669_vm3, %v8141_v27 }
  0x58   : > { %v561_v16 = vsel %vm7726_vm4, %v556_v22, %v560_v59  ;;  %v569_v57 = vor.u32 %v568_v10, %v565_v47  ;;  %6840 = vmatmul.mubr.msk.bf16.gmra.mxu1 %vm669_vm3, %v8129_v58  ;;  %v1146_v35 = vrot.slane %v1144_v42, 4  ;;  %v1157_v25 = vshrl.u32 %v8133_v32, 16 }
  0x59   : > { %v8160_v39 = vcombine.low %v551_v28, %v561_v16  ;;  %v579_v30 = vor.u32 %v578_v50, %v574_v12  ;;  %v1149_v37 = vrot.slane %v1147_v52, 5  ;;  %v1155_v46 = vrot.slane %v1153_v54, 5 }
  0x5a   : > { %v570_v24 = vrot.slane %v569_v57, 4  ;;  %v1163_v62 = vshll.u32 %v8144_v13, 16  ;;  %v582_v59 = vshll.u32 %v8150_v2, 16  ;;  %v11169_v47 = vrot.slane %v7689_v14, 5 }
  0x5b   : > { %11168 = vst [vmem:[#allocation50_spill] sm:$0xff] %v8160_v39  ;;  %v580_v22 = vrot.slane %v579_v30, 4  ;;  %v1150_v10 = vor.u32 %v1149_v37, %v1146_v35  ;;  %6843 = vmatprep.mubr.msk.bf16.mxu1 %vm669_vm3, %v8160_v39  ;;  %v1159_v28 = vrot.slane %v1157_v25, 4  ;;  %v6181_v42 = vcombine.low %v8127_v26, %v8133_v32 }
  0x5c   : > { %v1813_v48 = vrot.slane %v11169_v47, 4  ;;  %v575_v50 = vsel %vm7726_vm4, %v570_v24, %v574_v12  ;;  %v584_v52 = vrot.slane %v582_v59, 5  ;;  %v11170_v16 = vrot.slane %v7679_v8, 5 }
  0x5d   : > { %v1151_v54 = vrot.slane %v1150_v10, 4  ;;  %v1807_v30 = vrot.slane %v7780_v11, 5  ;;  %v1160_v37 = vor.u32 %v1159_v28, %v1155_v46  ;;  %v1165_v35 = vrot.slane %v1163_v62, 5 }
  0x5e   : > { %v1806_v57 = vrot.slane %v11170_v16, 4  ;;  %v585_v47 = vsel %vm7726_vm4, %v580_v22, %v584_v52  ;;  %v11171_v25 = vmov 0  ;;  %v1814_v24 = vrot.slane %v7697_v17, 5 }
  0x5f   : > { %v11172_v25 = vsel %vm8178_vm7, 4294967295, %v11171_v25  ;;  %v1156_v12 = vsel %vm7726_vm4, %v1151_v54, %v1155_v46  ;;  %v8185_v59 = vcombine.low %v575_v50, %v585_v47  ;;  %v11175_v10 = vmov %v11170_v16 }
  0x60   : > { %11173 = vst [vmem:[#allocation51_spill] sm:$0xff] %v11172_v25  ;;  %v11176_v11 = vrot.slane %v7676_v7, 9  ;;  %v1808_v22 = vsel %vm8178_vm7, %v1806_v57, %v1807_v30  ;;  %v1161_v28 = vrot.slane %v1160_v37, 4  ;;  %v11178_v17 = vrot.slane %v7689_v14, 5  ;;  %v8221_v14 = vld [vmem:[%s10986_s1 + $0xc] sm:$0x3] }
  0x61   : > { %11174 = vst [vmem:[#allocation52_spill] sm:$0xff] %v8185_v59  ;;  %v11179_v16 = vrot.slane %v7682_v9, 9  ;;  %v1815_v8 = vsel %vm8178_vm7, %v1813_v48, %v1814_v24  ;;  %6844 = vmatmul.mubr.msk.bf16.gmra.mxu1 %vm669_vm3, %v8185_v59  ;;  %v2013_v9 = vsel %vm718_vm0, %v7722_v33, 0  ;;  %v6204_v48 = vrot.slane %v7816_v60, 9  ;;  %v8239_v60 = vld [vmem:[%s10986_s1 + $0xe] sm:$0x3] }
  0x62   : > { %v1805_v62 = vsel %vm8178_vm7, %v11176_v11, %v11175_v10  ;;  %v1166_v50 = vsel %vm7726_vm4, %v1161_v28, %v1165_v35  ;;  %6883 = vmatprep.mubr.msk.bf16.mxu1 %vm669_vm3, %v6181_v42  ;;  %v1839_v57 = vrot.slane %v7823_v5, 5  ;;  %v2177_v33 = vsel %vm718_vm0, %v7843_v23, 0 }
  0x63   : > { %v8195_v52 = vcombine.low %v1805_v62, %v1808_v22  ;;  %v1812_v46 = vsel %vm8178_vm7, %v11179_v16, %v11178_v17  ;;  %v8212_v54 = vcombine.low %v1156_v12, %v1166_v50  ;;  %v1842_v37 = vrot.slane %v7826_v6, 5 }
  0x64   : > { %v8207_v7 = vcombine.low %v1812_v46, %v1815_v8  ;;  %v1840_v42 = vsel %vm8178_vm7, %v6204_v48, %v1839_v57  ;;  %v1841_v30 = vrot.slane %v1839_v57, 4  ;;  %v6205_v5 = vrot.slane %v7853_v29, 9 }
  0x65   : > { %11177 = vst [vmem:[#allocation53_spill] sm:$0xff] %v8195_v52  ;;  %6849 = vmatprep.mubr.msk.bf16.mxu0 %vm669_vm3, %v8212_v54  ;;  %v1846_v35 = vrot.slane %v7863_v45, 5  ;;  %v1849_v23 = vrot.slane %v7868_v19, 5  ;;  %v6206_v47 = vrot.slane %v7883_v3, 9  ;;  %v1853_v24 = vrot.slane %v7887_v20, 5 }
  0x66   : > { %11180 = vst [vmem:[#allocation54_spill] sm:$0xff] %v8207_v7  ;;  %6850 = vmatmul.mubr.msk.bf16.vlgmr.msra.gmra.mxu0 %vm669_vm3, %v7820_v0  ;;  %v1843_v6 = vsel %vm8178_vm7, %v1841_v30, %v1842_v37  ;;  %v1856_v19 = vrot.slane %v7896_v38, 5  ;;  %v6207_v20 = vrot.slane %v7908_v56, 9  ;;  %v1860_v11 = vrot.slane %v7917_v49, 5  ;;  %v11186_v37 = vld [vmem:[#allocation13_spill] sm:$0xff] }
  0x67   : > { %6853 = vmatprep.mubr.msk.bf16.mxu0 %vm669_vm3, %v7774_v4  ;;  %6916 = vmatpush3.bf16.msra.mxu0 %v2013_v9  ;;  %v8252_v12 = vcombine.low %v1840_v42, %v1843_v6  ;;  %v1847_v29 = vsel %vm8178_vm7, %v6205_v5, %v1846_v35  ;;  %v1848_v45 = vrot.slane %v1846_v35, 4  ;;  %v1854_v3 = vsel %vm8178_vm7, %v6206_v47, %v1853_v24  ;;  %v11187_v35 = vld [vmem:[#allocation29_spill] sm:$0xff] }
  0x68   : > { %7329 = vmatprep.subr.msk.bf16.mxu0 %vm718_vm0, %v8221_v14  ;;  %v1855_v10 = vrot.slane %v1853_v24, 4  ;;  %v1863_v22 = vrot.slane %v7926_v36, 5  ;;  %v6208_v28 = vrot.slane %v7933_v43, 9  ;;  %v1867_v38 = vrot.slane %v7943_v1, 5  ;;  %v11189_v24 = vld [vmem:[#allocation33_spill] sm:$0xff] }
  0x69   : > { %6884 = vmatmul.mubr.msk.bf16.vlgmr.msra.gmra.mxu1 %vm669_vm3, %v7693_v15  ;;  %11181 = vst [vmem:[#allocation55_spill] sm:$0xff] %v8252_v12  ;;  %v1850_v62 = vsel %vm8178_vm7, %v1848_v45, %v1849_v23  ;;  %v1861_v46 = vsel %vm8178_vm7, %v6207_v20, %v1860_v11  ;;  %v1862_v56 = vrot.slane %v1860_v11, 4  ;;  %v1870_v1 = vrot.slane %v7955_v40, 5  ;;  %v11188_v23 = vld [vmem:[#allocation31_spill] sm:$0xff]  ;;  %v11190_v45 = vld [vmem:[#allocation34_spill] sm:$0xff] }
  0x6a   : > { %6950 = vmatpush3.bf16.msra.mxu1 %v2177_v33  ;;  %6887 = vmatprep.mubr.msk.bf16.mxu1 %vm669_vm3, %v7714_v31  ;;  %v8268_v17 = vcombine.low %v1847_v29, %v1850_v62  ;;  %v1857_v16 = vsel %vm8178_vm7, %v1855_v10, %v1856_v19  ;;  %v1868_v36 = vsel %vm8178_vm7, %v6208_v28, %v1867_v38  ;;  %v1869_v43 = vrot.slane %v1867_v38, 4 }
  0x6b   : > { %7330 = vmatprep.subr.msk.bf16.mxu1 %vm718_vm0, %v8239_v60  ;;  %v8276_v49 = vcombine.low %v1854_v3, %v1857_v16  ;;  %v1864_v8 = vsel %vm8178_vm7, %v1862_v56, %v1863_v22  ;;  %v6209_v50 = vrot.slane %v7966_v41, 9  ;;  %v1874_v9 = vrot.slane %v7972_v63, 5  ;;  %v11191_v3 = vld [vmem:[#allocation36_spill] sm:$0xff]  ;;  %v11194_v16 = vld [vmem:[#allocation38_spill] sm:$0xff]  ;;  %v11195_v56 = vld [vmem:[#allocation19_spill] sm:$0xff] }
  0x6c   : > { %11182 = vst [vmem:[#allocation56_spill] sm:$0xff] %v8268_v17  ;;  %v1877_v48 = vrot.slane %v7985_v21, 5  ;;  %v8288_v57 = vcombine.low %v1861_v46, %v1864_v8  ;;  %v1871_v33 = vsel %vm8178_vm7, %v1869_v43, %v1870_v1  ;;  %v6210_v42 = vrot.slane %v7993_v55, 9  ;;  %v11196_v43 = vld [vmem:[#allocation39_spill] sm:$0xff]  ;;  %v11197_v8 = vld [vmem:[#allocation40_spill] sm:$0xff] }
  0x6d   : > { %11183 = vst [vmem:[#allocation57_spill] sm:$0xff] %v8276_v49  ;;  %v1881_v40 = vrot.slane %v7998_v53, 5  ;;  %v8296_v30 = vcombine.low %v1868_v36, %v1871_v33  ;;  %v1875_v41 = vsel %vm8178_vm7, %v6209_v50, %v1874_v9  ;;  %v1876_v63 = vrot.slane %v1874_v9, 4  ;;  %v11198_v9 = vld [vmem:[#allocation42_spill] sm:$0xff]  ;;  %v11199_v33 = vld [vmem:[#allocation21_spill] sm:$0xff] }
  0x6e   : > { %6854 = vmatmul.mubr.msk.bf16.gmra.mxu0 %vm669_vm3, %v7806_v44  ;;  %11184 = vst [vmem:[#allocation58_spill] sm:$0xff] %v8288_v57  ;;  %v1884_v21 = vrot.slane %v8010_v51, 5  ;;  %v6211_v53 = vrot.slane %v11187_v35, 9  ;;  %v1888_v6 = vrot.slane %v11188_v23, 5  ;;  %v1891_v29 = vrot.slane %v11189_v24, 5 }
  0x6f   : > { %6857 = vmatprep.mubr.msk.bf16.mxu0 %vm669_vm3, %v7834_v18  ;;  %11185 = vst [vmem:[#allocation59_spill] sm:$0xff] %v8296_v30  ;;  %v1882_v5 = vsel %vm8178_vm7, %v6210_v42, %v1881_v40  ;;  %v1883_v55 = vrot.slane %v1881_v40, 4  ;;  %v1878_v47 = vsel %vm8178_vm7, %v1876_v63, %v1877_v48  ;;  %v6212_v19 = vrot.slane %v11190_v45, 9  ;;  %v11205_v45 = vld [vmem:[#allocation18_spill] sm:$0xff] }
  0x70   : > { %v1895_v51 = vrot.slane %v11191_v3, 5  ;;  %v8312_v10 = vcombine.low %v1875_v41, %v1878_v47  ;;  %v1889_v11 = vsel %vm8178_vm7, %v6211_v53, %v1888_v6  ;;  %v1890_v62 = vrot.slane %v1888_v6, 4  ;;  %v11201_v41 = vld [vmem:[#allocation44_spill] sm:$0xff]  ;;  %v11204_v6 = vld [vmem:[#allocation17_spill] sm:$0xff] }
  0x71   : > { %6888 = vmatmul.mubr.msk.bf16.gmra.mxu1 %vm669_vm3, %v7761_v61  ;;  %v1885_v20 = vsel %vm8178_vm7, %v1883_v55, %v1884_v21  ;;  %v1898_v46 = vrot.slane %v11194_v16, 5  ;;  %v6213_v1 = vrot.slane %v11196_v43, 9  ;;  %v1902_v50 = vrot.slane %v11197_v8, 5  ;;  %v11202_v21 = vld [vmem:[#allocation46_spill] sm:$0xff]  ;;  %v11210_v16 = vld [vmem:[#allocation20_spill] sm:$0xff] }
  0x72   : > { %6891 = vmatprep.mubr.msk.bf16.mxu1 %vm669_vm3, %v11186_v37  ;;  %11192 = vst [vmem:[#allocation13_spill] sm:$0xff] %v8312_v10  ;;  %v8318_v22 = vcombine.low %v1882_v5, %v1885_v20  ;;  %v1896_v28 = vsel %vm8178_vm7, %v6212_v19, %v1895_v51  ;;  %v1897_v38 = vrot.slane %v1895_v51, 4  ;;  %v1892_v36 = vsel %vm8178_vm7, %v1890_v62, %v1891_v29  ;;  %v11213_v43 = vld [vmem:[#allocation30_spill] sm:$0xff] }
  0x73   : > { %v1905_v48 = vrot.slane %v11198_v9, 5  ;;  %v8332_v42 = vcombine.low %v1889_v11, %v1892_v36  ;;  %v6214_v63 = vrot.slane %v11201_v41, 9  ;;  %v1909_v5 = vrot.slane %v11202_v21, 5  ;;  %v11212_v36 = vld [vmem:[#allocation27_spill] sm:$0xff]  ;;  %v11215_v8 = vld [vmem:[#allocation26_spill] sm:$0xff]  ;;  %v11217_v9 = vld [vmem:[#allocation41_spill] sm:$0xff] }
  0x74   : > { %11193 = vst [vmem:[#allocation29_spill] sm:$0xff] %v8318_v22  ;;  %v1899_v40 = vsel %vm8178_vm7, %v1897_v38, %v1898_v46  ;;  %v1903_v35 = vsel %vm8178_vm7, %v6213_v1, %v1902_v50  ;;  %v1904_v53 = vrot.slane %v1902_v50, 4  ;;  %v1912_v23 = vrot.slane %v8150_v2, 5  ;;  %v11211_v46 = vld [vmem:[#allocation22_spill] sm:$0xff]  ;;  %v11214_v1 = vld [vmem:[#allocation24_spill] sm:$0xff]  ;;  %v11216_v50 = vld [vmem:[#allocation35_spill] sm:$0xff] }
  0x75   : > { %11200 = vst [vmem:[#allocation31_spill] sm:$0xff] %v8332_v42  ;;  %v8338_v55 = vcombine.low %v1896_v28, %v1899_v40  ;;  %v1910_v47 = vsel %vm8178_vm7, %v6214_v63, %v1909_v5  ;;  %v1911_v24 = vrot.slane %v1909_v5, 4  ;;  %v6281_v29 = vrot.slane %v8127_v26, 9  ;;  %v11208_v28 = vld [vmem:[#allocation23_spill] sm:$0xff]  ;;  %v11219_v40 = vld [vmem:[#allocation32_spill] sm:$0xff]  ;;  %v11220_v41 = vld [vmem:[#allocation45_spill] sm:$0xff] }
  0x76   : > { %6858 = vmatmul.mubr.msk.bf16.gmra.mxu0 %vm669_vm3, %v11195_v56  ;;  %v1906_v19 = vsel %vm8178_vm7, %v1904_v53, %v1905_v48  ;;  %v2541_v3 = vrot.slane %v8133_v32, 5  ;;  %v2544_v51 = vrot.slane %v8144_v13, 5  ;;  %v11209_v13 = vld [vmem:[#allocation25_spill] sm:$0xff]  ;;  %v11218_v48 = vld [vmem:[#allocation28_spill] sm:$0xff]  ;;  %v11221_v63 = vld [vmem:[#allocation6_spill] sm:$0xff] }
  0x77   : > { %6861 = vmatprep.mubr.msk.bf16.mxu0 %vm669_vm3, %v11199_v33  ;;  %11203 = vst [vmem:[#allocation33_spill] sm:$0xff] %v8338_v55  ;;  %v8354_v2 = vcombine.low %v1903_v35, %v1906_v19  ;;  %v1913_v20 = vsel %vm8178_vm7, %v1911_v24, %v1912_v23  ;;  %v1818_v21 = vrot.slane %v11221_v63, 5  ;;  %v11222_v5 = vld [vmem:[#allocation37_spill] sm:$0xff]  ;;  %v11223_v35 = vld [vmem:[#allocation43_spill] sm:$0xff]  ;;  %v11224_v53 = vld [vmem:[#allocation4_spill] sm:$0xff] }
  0x78   : > { %v8358_v11 = vcombine.low %v1910_v47, %v1913_v20  ;;  %v8362_v26 = vsel %vm8178_vm7, %v6281_v29, %v2541_v3  ;;  %v2543_v62 = vrot.slane %v2541_v3, 4  ;;  %v6201_v23 = vrot.slane %v11224_v53, 9  ;;  %v11225_v24 = vld [vmem:[#allocation7_spill] sm:$0xff]  ;;  %v11226_v19 = vld [vmem:[#allocation10_spill] sm:$0xff]  ;;  %v11230_v38 = vld [vmem:[#allocation8_spill] sm:$0xff] }
  0x79   : > { %6892 = vmatmul.mubr.msk.bf16.gmra.mxu1 %vm669_vm3, %v11204_v6  ;;  %11206 = vst [vmem:[#allocation34_spill] sm:$0xff] %v8354_v2  ;;  %v1820_v47 = vrot.slane %v1818_v21, 4  ;;  %v1821_v29 = vrot.slane %v11225_v24, 5  ;;  %v1825_v3 = vrot.slane %v11226_v19, 5  ;;  %v11228_v53 = vld [vmem:[#allocation47_spill] sm:$0xff]  ;;  %v6202_v34 = vrot.slane %v11230_v38, 9 }
  0x7a   : > { %6895 = vmatprep.mubr.msk.bf16.mxu1 %vm669_vm3, %v11205_v45  ;;  %11207 = vst [vmem:[#allocation36_spill] sm:$0xff] %v8358_v11  ;;  %v8368_v32 = vsel %vm8178_vm7, %v2543_v62, %v2544_v51  ;;  %v1819_v51 = vsel %vm8178_vm7, %v6201_v23, %v1818_v21  ;;  %v11227_v62 = vld [vmem:[#allocation14_spill] sm:$0xff]  ;;  %v11231_v19 = vld [vmem:[#allocation11_spill] sm:$0xff]  ;;  %v2343_v21 = vsel %vm718_vm0, %v8221_v14, 0  ;;  %v11232_v23 = vld [vmem:[#allocation12_spill] sm:$0xff] }
  0x7b   : > { %v1822_v20 = vsel %vm8178_vm7, %v1820_v47, %v1821_v29  ;;  %v1832_v63 = vrot.slane %v11227_v62, 5  ;;  %v1827_v27 = vrot.slane %v1825_v3, 4  ;;  %v6203_v47 = vrot.slane %v11232_v23, 9  ;;  %v11233_v62 = vld [vmem:[#allocation15_spill] sm:$0xff] }
  0x7c   : > { %v8419_v24 = vcombine.low %v1819_v51, %v1822_v20  ;;  %v1826_v38 = vsel %vm8178_vm7, %v6202_v34, %v1825_v3  ;;  %v2555_v51 = vsel %vm718_vm0, %v8239_v60, 0  ;;  %v11236_v23 = vcombine.low %v8362_v26, %v8368_v32 }
  0x7d   : > { %v1834_v29 = vrot.slane %v1832_v63, 4  ;;  %v1833_v20 = vsel %vm8178_vm7, %v6203_v47, %v1832_v63 }
  0x7e   : > { %6862 = vmatmul.mubr.msk.bf16.gmra.mxu0 %vm669_vm3, %v11208_v28  ;;  %11229 = vst [vmem:[#allocation38_spill] sm:$0xff] %v8419_v24 }
  0x7f   : > { %6865 = vmatprep.mubr.msk.bf16.mxu0 %vm669_vm3, %v11209_v13 }
  0x81   : > { %6896 = vmatmul.mubr.msk.bf16.gmra.mxu1 %vm669_vm3, %v11210_v16 }
  0x82   : > { %6899 = vmatprep.mubr.msk.bf16.mxu1 %vm669_vm3, %v11211_v46 }
  0x86   : > { %6866 = vmatmul.mubr.msk.bf16.gmra.mxu0 %vm669_vm3, %v11212_v36 }
  0x87   : > { %6869 = vmatprep.mubr.msk.bf16.mxu0 %vm669_vm3, %v11213_v43 }
  0x89   : > { %6900 = vmatmul.mubr.msk.bf16.gmra.mxu1 %vm669_vm3, %v11214_v1 }
  0x8a   : > { %6903 = vmatprep.mubr.msk.bf16.mxu1 %vm669_vm3, %v11215_v8 }
  0x8e   : > { %6870 = vmatmul.mubr.msk.bf16.gmra.mxu0 %vm669_vm3, %v11216_v50 }
  0x8f   : > { %6873 = vmatprep.mubr.msk.bf16.mxu0 %vm669_vm3, %v11217_v9 }
  0x91   : > { %6904 = vmatmul.mubr.msk.bf16.gmra.mxu1 %vm669_vm3, %v11218_v48 }
  0x92   : > { %6907 = vmatprep.mubr.msk.bf16.mxu1 %vm669_vm3, %v11219_v40 }
  0x96   : > { %6874 = vmatmul.mubr.msk.bf16.gmra.mxu0 %vm669_vm3, %v11220_v41 }
  0x97   : > { %6877 = vmatprep.mubr.msk.bf16.mxu0 %vm669_vm3, %v8129_v58 }
  0x99   : > { %6908 = vmatmul.mubr.msk.bf16.gmra.mxu1 %vm669_vm3, %v11222_v5  ;;  %v1835_v5 = vrot.slane %v11233_v62, 5 }
  0x9a   : > { %6911 = vmatprep.mubr.msk.bf16.mxu1 %vm669_vm3, %v11223_v35  ;;  %v1828_v35 = vrot.slane %v11231_v19, 5 }
  0x9b   : > { %v1836_v19 = vsel %vm8178_vm7, %v1834_v29, %v1835_v5 }
  0x9c   : > { %v1829_v14 = vsel %vm8178_vm7, %v1827_v27, %v1828_v35  ;;  %v8454_v27 = vcombine.low %v1833_v20, %v1836_v19 }
  0x9d   : > { %v8450_v34 = vcombine.low %v1826_v38, %v1829_v14 }
  0x9e   : > { %6878 = vmatmul.mubr.msk.bf16.gmra.mxu0 %vm669_vm3, %v8160_v39  ;;  %11235 = vst [vmem:[#allocation39_spill] sm:$0xff] %v8454_v27 }
  0x9f   : > { %6917 = vmatprep.mubr.msk.bf16.mxu0 %vm669_vm3, %v8195_v52  ;;  %11234 = vst [vmem:[#allocation19_spill] sm:$0xff] %v8450_v34 }
  0xa1   : > { %6912 = vmatmul.mubr.msk.bf16.gmra.mxu1 %vm669_vm3, %v11228_v53  ;;  %v6301_v53 = vld [vmem:[%s10986_s1 + $0x12] sm:$0x3] }
  0xa2   : > { %6951 = vmatprep.mubr.msk.bf16.mxu1 %vm669_vm3, %v7820_v0  ;;  %v2960_v29 = vsel %vm718_vm0, %v6301_v53, 0 }
  0xa6   : > { %6918 = vmatmul.mubr.msk.bf16.vlgmr.msra.gmra.mxu0 %vm669_vm3, %v8207_v7 }
  0xa7   : > { %6921 = vmatprep.mubr.msk.bf16.mxu0 %vm669_vm3, %v8419_v24  ;;  %6984 = vmatpush3.bf16.msra.mxu0 %v2343_v21  ;;  %v6300_v21 = vld [vmem:[%s10986_s1 + $0x10] sm:$0x3] }
  0xa8   : > { %7331 = vmatprep.subr.msk.bf16.mxu0 %vm718_vm0, %v6301_v53  ;;  %v3124_v26 = vsel %vm718_vm0, %v6300_v21, 0  ;;  %v8549_v53 = vld [vmem:[%s10986_s1 + $0x16] sm:$0x3] }
  0xa9   : > { %6952 = vmatmul.mubr.msk.bf16.vlgmr.msra.gmra.mxu1 %vm669_vm3, %v7774_v4 }
  0xaa   : > { %7018 = vmatpush3.bf16.msra.mxu1 %v2555_v51  ;;  %6955 = vmatprep.mubr.msk.bf16.mxu1 %vm669_vm3, %v7806_v44 }
  0xab   : > { %7332 = vmatprep.subr.msk.bf16.mxu1 %vm718_vm0, %v6300_v21 }
  0xae   : > { %6922 = vmatmul.mubr.msk.bf16.gmra.mxu0 %vm669_vm3, %v8450_v34 }
  0xaf   : > { %6925 = vmatprep.mubr.msk.bf16.mxu0 %vm669_vm3, %v8454_v27 }
  0xb1   : > { %6956 = vmatmul.mubr.msk.bf16.gmra.mxu1 %vm669_vm3, %v7834_v18 }
  0xb2   : > { %6959 = vmatprep.mubr.msk.bf16.mxu1 %vm669_vm3, %v11195_v56 }
  0xb6   : > { %6926 = vmatmul.mubr.msk.bf16.gmra.mxu0 %vm669_vm3, %v8252_v12 }
  0xb7   : > { %6929 = vmatprep.mubr.msk.bf16.mxu0 %vm669_vm3, %v8268_v17 }
  0xb9   : > { %6960 = vmatmul.mubr.msk.bf16.gmra.mxu1 %vm669_vm3, %v11199_v33 }
  0xba   : > { %6963 = vmatprep.mubr.msk.bf16.mxu1 %vm669_vm3, %v11208_v28 }
  0xbe   : > { %6930 = vmatmul.mubr.msk.bf16.gmra.mxu0 %vm669_vm3, %v8276_v49 }
  0xbf   : > { %6933 = vmatprep.mubr.msk.bf16.mxu0 %vm669_vm3, %v8288_v57 }
  0xc1   : > { %6964 = vmatmul.mubr.msk.bf16.gmra.mxu1 %vm669_vm3, %v11209_v13 }
  0xc2   : > { %6967 = vmatprep.mubr.msk.bf16.mxu1 %vm669_vm3, %v11212_v36 }
  0xc6   : > { %6934 = vmatmul.mubr.msk.bf16.gmra.mxu0 %vm669_vm3, %v8296_v30 }
  0xc7   : > { %6937 = vmatprep.mubr.msk.bf16.mxu0 %vm669_vm3, %v8312_v10 }
  0xc9   : > { %6968 = vmatmul.mubr.msk.bf16.gmra.mxu1 %vm669_vm3, %v11213_v43 }
  0xca   : > { %6971 = vmatprep.mubr.msk.bf16.mxu1 %vm669_vm3, %v11216_v50 }
  0xce   : > { %6938 = vmatmul.mubr.msk.bf16.gmra.mxu0 %vm669_vm3, %v8318_v22 }
  0xcf   : > { %6941 = vmatprep.mubr.msk.bf16.mxu0 %vm669_vm3, %v8332_v42 }
  0xd1   : > { %6972 = vmatmul.mubr.msk.bf16.gmra.mxu1 %vm669_vm3, %v11217_v9 }
  0xd2   : > { %6975 = vmatprep.mubr.msk.bf16.mxu1 %vm669_vm3, %v11220_v41 }
  0xd6   : > { %6942 = vmatmul.mubr.msk.bf16.gmra.mxu0 %vm669_vm3, %v8338_v55 }
  0xd7   : > { %6945 = vmatprep.mubr.msk.bf16.mxu0 %vm669_vm3, %v8354_v2  ;;  %v8501_v60 = vpop.f32.mrf.mxu0 }
  0xd9   : > { %6976 = vmatmul.mubr.msk.bf16.gmra.mxu1 %vm669_vm3, %v8129_v58  ;;  %v8505_v5 = vpop.f32.mrf.mxu0 }
  0xda   : > { %6979 = vmatprep.mubr.msk.bf16.mxu1 %vm669_vm3, %v8160_v39 }
  0xdb   : > { %v8509_v35 = vpop.f32.mrf.mxu0 }
  0xdd   : > { %v8511_v3 = vpop.f32.mrf.mxu0 }
  0xde   : > { %6946 = vmatmul.mubr.msk.bf16.gmra.mxu0 %vm669_vm3, %v8358_v11 }
  0xdf   : > { %6985 = vmatprep.mubr.msk.bf16.mxu0 %vm669_vm3, %v8212_v54  ;;  %v8533_v54 = vld [vmem:[%s10986_s1 + $0x14] sm:$0x3] }
  0xe1   : > { %6980 = vmatmul.mubr.msk.bf16.gmra.mxu1 %vm669_vm3, %v8185_v59  ;;  %v8519_v63 = vpop.f32.mrf.mxu0 }
  0xe2   : > { %7019 = vmatprep.mubr.msk.bf16.mxu1 %vm669_vm3, %v11236_v23 }
  0xe3   : > { %v8525_v47 = vpop.f32.mrf.mxu0 }
  0xe5   : > { %v8528_v62 = vpop.f32.mrf.mxu0 }
  0xe6   : > { %6986 = vmatmul.mubr.msk.bf16.vlgmr.msra.gmra.mxu0 %vm669_vm3, %v7820_v0 }
  0xe7   : > { %6989 = vmatprep.mubr.msk.bf16.mxu0 %vm669_vm3, %v7774_v4  ;;  %7052 = vmatpush3.bf16.msra.mxu0 %v2960_v29  ;;  %v8540_v32 = vpop.f32.mrf.mxu0 }
  0xe8   : > { %v8542_v38 = vpop.f32.mrf.mxu1  ;;  %7333 = vmatprep.subr.msk.bf16.mxu0 %vm718_vm0, %v8533_v54 }
  0xe9   : > { %7020 = vmatmul.mubr.msk.bf16.vlgmr.msra.gmra.mxu1 %vm669_vm3, %v8195_v52 }
  0xea   : > { %7086 = vmatpush3.bf16.msra.mxu1 %v3124_v26  ;;  %v8553_v14 = vpop.f32.mrf.mxu1  ;;  %7023 = vmatprep.mubr.msk.bf16.mxu1 %vm669_vm3, %v8207_v7 }
  0xeb   : > { %v8557_v51 = vpop.f32.mrf.mxu0  ;;  %7334 = vmatprep.subr.msk.bf16.mxu1 %vm718_vm0, %v8549_v53 }
  0xec   : > { %v8561_v20 = vpop.f32.mrf.mxu1 }
  0xed   : > { %v8563_v19 = vpop.f32.mrf.mxu0 }
  0xee   : > { %6990 = vmatmul.mubr.msk.bf16.gmra.mxu0 %vm669_vm3, %v7806_v44  ;;  %v8567_v21 = vpop.f32.mrf.mxu1 }
  0xef   : > { %6993 = vmatprep.mubr.msk.bf16.mxu0 %vm669_vm3, %v7834_v18  ;;  %v8571_v23 = vpop.f32.mrf.mxu0 }
  0xf0   : > { %v8573_v29 = vpop.f32.mrf.mxu1 }
  0xf1   : > { %7024 = vmatmul.mubr.msk.bf16.gmra.mxu1 %vm669_vm3, %v8419_v24  ;;  %v8577_v26 = vpop.f32.mrf.mxu0 }
  0xf2   : > { %v8579_v25 = vpop.f32.mrf.mxu1  ;;  %7027 = vmatprep.mubr.msk.bf16.mxu1 %vm669_vm3, %v8450_v34 }
  0xf4   : > { %v8583_v11 = vpop.f32.mrf.mxu1  ;;  %v8585_v7 = vpop.f32.mrf.mxu0 }
  0xf6   : > { %6994 = vmatmul.mubr.msk.bf16.gmra.mxu0 %vm669_vm3, %v11195_v56  ;;  %v8589_v52 = vpop.f32.mrf.mxu1  ;;  %v8593_v24 = vpop.f32.mrf.mxu0 }
  0xf7   : > { %6997 = vmatprep.mubr.msk.bf16.mxu0 %vm669_vm3, %v11199_v33  ;;  %11237 = vst [vmem:[#allocation40_spill] sm:$0xff] %v8593_v24 }
  0xf8   : > { %v8595_v59 = vpop.f32.mrf.mxu1  ;;  %v8599_v34 = vpop.f32.mrf.mxu0 }
  0xf9   : > { %7028 = vmatmul.mubr.msk.bf16.gmra.mxu1 %vm669_vm3, %v8454_v27  ;;  %11238 = vst [vmem:[#allocation42_spill] sm:$0xff] %v8599_v34 }
  0xfa   : > { %v8601_v40 = vpop.f32.mrf.mxu1  ;;  %7031 = vmatprep.mubr.msk.bf16.mxu1 %vm669_vm3, %v8252_v12  ;;  %v8605_v48 = vpop.f32.mrf.mxu0 }
  0xfb   : > { %11239 = vst [vmem:[#allocation21_spill] sm:$0xff] %v8605_v48 }
  0xfc   : > { %v8607_v8 = vpop.f32.mrf.mxu1 }
  0xfd   : > { %v8609_v1 = vpop.f32.mrf.mxu0 }
  0xfe   : > { %11240 = vst [vmem:[#allocation44_spill] sm:$0xff] %v8609_v1  ;;  %6998 = vmatmul.mubr.msk.bf16.gmra.mxu0 %vm669_vm3, %v11208_v28  ;;  %v8613_v24 = vpop.f32.mrf.mxu1 }
  0xff   : > { %7001 = vmatprep.mubr.msk.bf16.mxu0 %vm669_vm3, %v11209_v13  ;;  %v8617_v27 = vpop.f32.mrf.mxu0 }
 0x100   : > { %11241 = vst [vmem:[#allocation46_spill] sm:$0xff] %v8617_v27  ;;  %v8619_v34 = vpop.f32.mrf.mxu1 }
 0x101   : > { %7032 = vmatmul.mubr.msk.bf16.gmra.mxu1 %vm669_vm3, %v8268_v17  ;;  %v8623_v12 = vpop.f32.mrf.mxu0 }
 0x102   : > { %11242 = vst [vmem:[#allocation17_spill] sm:$0xff] %v8623_v12  ;;  %v8625_v48 = vpop.f32.mrf.mxu1  ;;  %7035 = vmatprep.mubr.msk.bf16.mxu1 %vm669_vm3, %v8276_v49 }
 0x103   : > { %v8629_v1 = vpop.f32.mrf.mxu0 }
 0x104   : > { %11243 = vst [vmem:[#allocation18_spill] sm:$0xff] %v8629_v1  ;;  %v8631_v46 = vpop.f32.mrf.mxu1 }
 0x106   : > { %7002 = vmatmul.mubr.msk.bf16.gmra.mxu0 %vm669_vm3, %v11212_v36  ;;  %v8635_v27 = vpop.f32.mrf.mxu1  ;;  %v8639_v17 = vpop.f32.mrf.mxu0 }
 0x107   : > { %11244 = vst [vmem:[#allocation23_spill] sm:$0xff] %v8635_v27  ;;  %7005 = vmatprep.mubr.msk.bf16.mxu0 %vm669_vm3, %v11213_v43  ;;  %11245 = vst [vmem:[#allocation20_spill] sm:$0xff] %v8639_v17 }
 0x108   : > { %v8641_v12 = vpop.f32.mrf.mxu1  ;;  %v8645_v49 = vpop.f32.mrf.mxu0 }
 0x109   : > { %7036 = vmatmul.mubr.msk.bf16.gmra.mxu1 %vm669_vm3, %v8288_v57  ;;  %11246 = vst [vmem:[#allocation6_spill] sm:$0xff] %v8645_v49 }
 0x10a   : > { %v8647_v1 = vpop.f32.mrf.mxu1  ;;  %7039 = vmatprep.mubr.msk.bf16.mxu1 %vm669_vm3, %v8296_v30  ;;  %v8651_v36 = vpop.f32.mrf.mxu0 }
 0x10b   : > { %11247 = vst [vmem:[#allocation4_spill] sm:$0xff] %v8651_v36 }
 0x10c   : > { %v8653_v27 = vpop.f32.mrf.mxu1  ;;  %v8655_v13 = vpop.f32.mrf.mxu0 }
 0x10d   : > { %11248 = vst [vmem:[#allocation7_spill] sm:$0xff] %v8655_v13 }
 0x10e   : > { %7006 = vmatmul.mubr.msk.bf16.gmra.mxu0 %vm669_vm3, %v11216_v50  ;;  %v8659_v17 = vpop.f32.mrf.mxu1 }
 0x10f   : > { %11249 = vst [vmem:[#allocation10_spill] sm:$0xff] %v8659_v17  ;;  %7009 = vmatprep.mubr.msk.bf16.mxu0 %vm669_vm3, %v11217_v9  ;;  %v8663_v57 = vpop.f32.mrf.mxu0 }
 0x110   : > { %11250 = vst [vmem:[#allocation14_spill] sm:$0xff] %v8663_v57  ;;  %v8665_v49 = vpop.f32.mrf.mxu1 }
 0x111   : > { %7040 = vmatmul.mubr.msk.bf16.gmra.mxu1 %vm669_vm3, %v8312_v10  ;;  %v8669_v30 = vpop.f32.mrf.mxu0 }
 0x112   : > { %11251 = vst [vmem:[#allocation8_spill] sm:$0xff] %v8669_v30  ;;  %v8671_v36 = vpop.f32.mrf.mxu1  ;;  %7043 = vmatprep.mubr.msk.bf16.mxu1 %vm669_vm3, %v8318_v22 }
 0x113   : > { %v8675_v13 = vpop.f32.mrf.mxu0 }
 0x114   : > { %11252 = vst [vmem:[#allocation11_spill] sm:$0xff] %v8675_v13  ;;  %v8677_v17 = vpop.f32.mrf.mxu1 }
 0x115   : > { %v8681_v57 = vpop.f32.mrf.mxu0 }
 0x116   : > { %7010 = vmatmul.mubr.msk.bf16.gmra.mxu0 %vm669_vm3, %v11220_v41  ;;  %11253 = vst [vmem:[#allocation12_spill] sm:$0xff] %v8681_v57  ;;  %v8683_v9 = vpop.f32.mrf.mxu1 }
 0x117   : > { %7013 = vmatprep.mubr.msk.bf16.mxu0 %vm669_vm3, %v8129_v58  ;;  %v8687_v10 = vpop.f32.mrf.mxu0 }
 0x118   : > { %11254 = vst [vmem:[#allocation15_spill] sm:$0xff] %v8687_v10  ;;  %v8689_v30 = vpop.f32.mrf.mxu1 }
 0x119   : > { %7044 = vmatmul.mubr.msk.bf16.gmra.mxu1 %vm669_vm3, %v8332_v42  ;;  %v8693_v22 = vpop.f32.mrf.mxu0 }
 0x11a   : > { %11255 = vst [vmem:[#allocation60_spill] sm:$0xff] %v8693_v22  ;;  %v8695_v13 = vpop.f32.mrf.mxu1  ;;  %7047 = vmatprep.mubr.msk.bf16.mxu1 %vm669_vm3, %v8338_v55 }
 0x11b   : > { %v8703_v58 = vpop.f32.mrf.mxu0 }
 0x11c   : > { %v8699_v57 = vpop.f32.mrf.mxu1  ;;  %11256 = vst [vmem:[#allocation61_spill] sm:$0xff] %v8703_v58  ;;  %v3320_v58 = vsel %vm718_vm0, %v8533_v54, 0  ;;  %v3526_v54 = vsel %vm718_vm0, %v8549_v53, 0 }
 0x11d   : > { %v8713_v22 = vpop.f32.mrf.mxu0 }
 0x11e   : > { %7014 = vmatmul.mubr.msk.bf16.gmra.mxu0 %vm669_vm3, %v8160_v39  ;;  %v8705_v10 = vpop.f32.mrf.mxu1  ;;  %11258 = vst [vmem:[#allocation63_spill] sm:$0xff] %v8713_v22  ;;  %v1017_v22 = vadd.f32 %v8553_v14, %v8505_v5 }
 0x11f   : > { %7053 = vmatprep.mubr.msk.bf16.mxu0 %vm669_vm3, %v7693_v15  ;;  %v8726_v15 = vld [vmem:[%s10986_s1 + $0x1a] sm:$0x3] }
 0x121   : > { %v8709_v42 = vpop.f32.mrf.mxu1  ;;  %7048 = vmatmul.mubr.msk.bf16.gmra.mxu1 %vm669_vm3, %v8354_v2  ;;  %v1025_v2 = vadd.f32 %v8542_v38, %v8501_v60  ;;  %v8745_v60 = vld [vmem:[%s10986_s1 + $0x18] sm:$0x3] }
 0x122   : > { %11257 = vst [vmem:[#allocation62_spill] sm:$0xff] %v8709_v42  ;;  %7087 = vmatprep.mubr.msk.bf16.mxu1 %vm669_vm3, %v7820_v0 }
 0x123   : > { %v8717_v55 = vpop.f32.mrf.mxu1 }
 0x124   : > { %11259 = vst [vmem:[#allocation64_spill] sm:$0xff] %v8717_v55 }
 0x125   : > { %v8721_v39 = vpop.f32.mrf.mxu1 }
 0x126   : > { %11260 = vst [vmem:[#allocation65_spill] sm:$0xff] %v8721_v39  ;;  %v6851_v42 = vpop.f32.mrf.mxu0  ;;  %7054 = vmatmul.mubr.msk.bf16.vlgmr.msra.gmra.mxu0 %vm669_vm3, %v7714_v31 }
 0x127   : > { %v8732_v0 = vpop.f32.mrf.mxu1  ;;  %7057 = vmatprep.mubr.msk.bf16.mxu0 %vm669_vm3, %v7761_v61  ;;  %7120 = vmatpush3.bf16.msra.mxu0 %v3320_v58  ;;  %v1341_v39 = vadd.f32 %v6851_v42, %v1025_v2  ;;  %v1028_v58 = vadd.f32 %v8561_v20, %v8509_v35  ;;  %v1020_v2 = vadd.f32 %v8567_v21, %v8511_v3 }
 0x128   : > { %11261 = vst [vmem:[#allocation66_spill] sm:$0xff] %v8732_v0  ;;  %v1212_v55 = vpop.f32.mrf.mxu0  ;;  %7335 = vmatprep.subr.msk.bf16.mxu0 %vm718_vm0, %v8726_v15 }
 0x129   : > { %v6885_v38 = vpop.f32.mrf.mxu1  ;;  %7088 = vmatmul.mubr.msk.bf16.vlgmr.msra.gmra.mxu1 %vm669_vm3, %v7774_v4  ;;  %v1339_v53 = vadd.f32 %v1212_v55, %v1017_v22 }
 0x12a   : > { %v6852_v61 = vpop.f32.mrf.mxu0  ;;  %v1547_v5 = vadd.f32 %v6885_v38, %v1341_v39  ;;  %7154 = vmatpush3.bf16.msra.mxu1 %v3526_v54  ;;  %7091 = vmatprep.mubr.msk.bf16.mxu1 %vm669_vm3, %v7806_v44  ;;  %v1041_v39 = vadd.f32 %v8573_v29, %v8519_v63  ;;  %v1044_v63 = vadd.f32 %v8583_v11, %v8528_v62 }
 0x12b   : > { %v1418_v42 = vpop.f32.mrf.mxu1  ;;  %7336 = vmatprep.subr.msk.bf16.mxu1 %vm718_vm0, %v8745_v60  ;;  %v1342_v14 = vadd.f32 %v6852_v61, %v1028_v58  ;;  %v1033_v61 = vadd.f32 %v8579_v25, %v8525_v47  ;;  %v1036_v29 = vadd.f32 %v8589_v52, %v8540_v32  ;;  %v1057_v52 = vadd.f32 %v8595_v59, %v8557_v51 }
 0x12c   : > { %v1215_v0 = vpop.f32.mrf.mxu0  ;;  %1751 = vst.msk [vmem:[#allocation2 + $0x10] sm:$0xff] %vm669_vm3, %v1547_v5  ;;  %v1545_v31 = vadd.f32 %v1418_v42, %v1339_v53  ;;  %v1649_v58 = vmul.f32 %v1547_v5, %v1547_v5 }
 0x12d   : > { %v6886_v35 = vpop.f32.mrf.mxu1  ;;  %v1340_v22 = vadd.f32 %v1215_v0, %v1020_v2 }
 0x12e   : > { %v6855_v55 = vpop.f32.mrf.mxu0  ;;  %7058 = vmatmul.mubr.msk.bf16.gmra.mxu0 %vm669_vm3, %v11186_v37  ;;  %1749 = vst.msk [vmem:[#allocation2] sm:$0xff] %vm669_vm3, %v1545_v31  ;;  %v1548_v20 = vadd.f32 %v6886_v35, %v1342_v14  ;;  %v1647_v54 = vmul.f32 %v1545_v31, %v1545_v31  ;;  %v1577_v53 = vsel %vm669_vm3, %v1545_v31, 0.0  ;;  %v1580_v31 = vsel %vm669_vm3, %v1547_v5, 0.0 }
 0x12f   : > { %v1421_v38 = vpop.f32.mrf.mxu1  ;;  %7061 = vmatprep.mubr.msk.bf16.mxu0 %vm669_vm3, %v11204_v6  ;;  %v1345_v3 = vadd.f32 %v6855_v55, %v1041_v39 }
 0x130   : > { %v1228_v21 = vpop.f32.mrf.mxu0  ;;  %1752 = vst.msk [vmem:[#allocation2 + $0x18] sm:$0xff] %vm669_vm3, %v1548_v20  ;;  %v1546_v0 = vadd.f32 %v1421_v38, %v1340_v22  ;;  %v1679_v11 = vsel %vm669_vm3, %v1647_v54, 0.0  ;;  %v1650_v22 = vmul.f32 %v1548_v20, %v1548_v20  ;;  %v1582_v54 = vsel %vm669_vm3, %v1548_v20, 0.0 }
 0x131   : > { %v6889_v42 = vpop.f32.mrf.mxu1  ;;  %7092 = vmatmul.mubr.msk.bf16.gmra.mxu1 %vm669_vm3, %v7834_v18  ;;  %v1343_v2 = vadd.f32 %v1228_v21, %v1033_v61  ;;  %v1682_v21 = vsel %vm669_vm3, %v1649_v58, 0.0  ;;  %v8798_v20 = vsel %vm718_vm0, %v8726_v15, 0 }
 0x132   : > { %v6856_v25 = vpop.f32.mrf.mxu0  ;;  %v1578_v47 = vsel %vm669_vm3, %v1546_v0, 0.0  ;;  %v1648_v14 = vmul.f32 %v1546_v0, %v1546_v0  ;;  %1750 = vst.msk [vmem:[#allocation2 + $0x8] sm:$0xff] %vm669_vm3, %v1546_v0  ;;  %v1551_v35 = vadd.f32 %v6889_v42, %v1345_v3  ;;  %7095 = vmatprep.mubr.msk.bf16.mxu1 %vm669_vm3, %v11195_v56  ;;  %v1049_v3 = vadd.f32 %v8601_v40, %v8563_v19 }
 0x133   : > { %v1579_v62 = vadd.f32 %v1578_v47, %v1577_v53  ;;  %v1434_v32 = vpop.f32.mrf.mxu1  ;;  %v1346_v39 = vadd.f32 %v6856_v25, %v1044_v63 }
 0x134   : > { %v1231_v55 = vpop.f32.mrf.mxu0  ;;  %v1680_v38 = vsel %vm669_vm3, %v1648_v14, 0.0  ;;  %1755 = vst.msk [vmem:[#allocation2 + $0x30] sm:$0xff] %vm669_vm3, %v1551_v35  ;;  %v1549_v61 = vadd.f32 %v1434_v32, %v1343_v2  ;;  %v1060_v2 = vadd.f32 %v8607_v8, %v8571_v23  ;;  %v1653_v8 = vmul.f32 %v1551_v35, %v1551_v35 }
 0x135   : > { %v1581_v59 = vadd.f32 %v1580_v31, %v1579_v62  ;;  %v1681_v51 = vadd.f32 %v1680_v38, %v1679_v11  ;;  %v6890_v5 = vpop.f32.mrf.mxu1  ;;  %v1344_v0 = vadd.f32 %v1231_v55, %v1036_v29  ;;  %v1684_v29 = vsel %vm669_vm3, %v1650_v22, 0.0 }
 0x136   : > { %v6859_v53 = vpop.f32.mrf.mxu0  ;;  %7062 = vmatmul.mubr.msk.bf16.gmra.mxu0 %vm669_vm3, %v11205_v45  ;;  %v1651_v63 = vmul.f32 %v1549_v61, %v1549_v61  ;;  %1753 = vst.msk [vmem:[#allocation2 + $0x20] sm:$0xff] %vm669_vm3, %v1549_v61  ;;  %v1552_v42 = vadd.f32 %v6890_v5, %v1346_v39  ;;  %v1584_v14 = vsel %vm669_vm3, %v1549_v61, 0.0  ;;  %v1052_v38 = vadd.f32 %v8613_v24, %v8577_v26 }
 0x137   : > { %v1683_v40 = vadd.f32 %v1682_v21, %v1681_v51  ;;  %v1583_v19 = vadd.f32 %v1582_v54, %v1581_v59  ;;  %v1437_v58 = vpop.f32.mrf.mxu1  ;;  %7065 = vmatprep.mubr.msk.bf16.mxu0 %vm669_vm3, %v11210_v16  ;;  %v1349_v25 = vadd.f32 %v6859_v53, %v1057_v52  ;;  %v1588_v61 = vsel %vm669_vm3, %v1551_v35, 0.0 }
 0x138   : > { %v1244_v47 = vpop.f32.mrf.mxu0  ;;  %1756 = vst.msk [vmem:[#allocation2 + $0x38] sm:$0xff] %vm669_vm3, %v1552_v42  ;;  %v1550_v31 = vadd.f32 %v1437_v58, %v1344_v0  ;;  %v1686_v62 = vsel %vm669_vm3, %v1651_v63, 0.0  ;;  %v1073_v63 = vadd.f32 %v8619_v34, %v8585_v7  ;;  %v1590_v35 = vsel %vm669_vm3, %v1552_v42, 0.0  ;;  %v11264_v7 = vld [vmem:[#allocation42_spill] sm:$0xff] }
 0x139   : > { %v1585_v23 = vadd.f32 %v1584_v14, %v1583_v19  ;;  %v1685_v11 = vadd.f32 %v1684_v29, %v1683_v40  ;;  %v6893_v32 = vpop.f32.mrf.mxu1  ;;  %7096 = vmatmul.mubr.msk.bf16.gmra.mxu1 %vm669_vm3, %v11199_v33  ;;  %v1347_v15 = vadd.f32 %v1244_v47, %v1049_v3  ;;  %v1654_v3 = vmul.f32 %v1552_v42, %v1552_v42  ;;  %v11263_v14 = vld [vmem:[#allocation40_spill] sm:$0xff] }
 0x13a   : > { %v6860_v39 = vpop.f32.mrf.mxu0  ;;  %v1586_v22 = vsel %vm669_vm3, %v1550_v31, 0.0  ;;  %v1652_v52 = vmul.f32 %v1550_v31, %v1550_v31  ;;  %1754 = vst.msk [vmem:[#allocation2 + $0x28] sm:$0xff] %vm669_vm3, %v1550_v31  ;;  %v1555_v55 = vadd.f32 %v6893_v32, %v1349_v25  ;;  %7099 = vmatprep.mubr.msk.bf16.mxu1 %vm669_vm3, %v11208_v28  ;;  %v1690_v40 = vsel %vm669_vm3, %v1653_v8, 0.0 }
 0x13b   : > { %v1687_v21 = vadd.f32 %v1686_v62, %v1685_v11  ;;  %v1587_v59 = vadd.f32 %v1586_v22, %v1585_v23  ;;  %v1450_v51 = vpop.f32.mrf.mxu1  ;;  %v1350_v5 = vadd.f32 %v6860_v39, %v1060_v2  ;;  %v11262_v2 = vld [vmem:[#allocation22_spill] sm:$0xff]  ;;  %v1065_v31 = vadd.f32 %v8625_v48, %v11263_v14  ;;  %v11265_v62 = vld [vmem:[#allocation24_spill] sm:$0xff] }
 0x13c   : > { %v1247_v54 = vpop.f32.mrf.mxu0  ;;  %v1688_v0 = vsel %vm669_vm3, %v1652_v52, 0.0  ;;  %1759 = vst.msk [vmem:[#allocation2 + $0x50] sm:$0xff] %vm669_vm3, %v1555_v55  ;;  %v1553_v53 = vadd.f32 %v1450_v51, %v1347_v15  ;;  %v1076_v34 = vadd.f32 %v8631_v46, %v11264_v7  ;;  %v1692_v42 = vsel %vm669_vm3, %v1654_v3, 0.0  ;;  %v11270_v7 = vld [vmem:[#allocation44_spill] sm:$0xff] }
 0x13d   : > { %v1589_v19 = vadd.f32 %v1588_v61, %v1587_v59  ;;  %v1689_v24 = vadd.f32 %v1688_v0, %v1687_v21  ;;  %v6894_v26 = vpop.f32.mrf.mxu1  ;;  %v1348_v58 = vadd.f32 %v1247_v54, %v1052_v38  ;;  %v1657_v52 = vmul.f32 %v1555_v55, %v1555_v55  ;;  %v11266_v21 = vld [vmem:[#allocation25_spill] sm:$0xff]  ;;  %v11267_v0 = vld [vmem:[#allocation27_spill] sm:$0xff] }
 0x13e   : > { %v6863_v29 = vpop.f32.mrf.mxu0  ;;  %7066 = vmatmul.mubr.msk.bf16.gmra.mxu0 %vm669_vm3, %v11262_v2  ;;  %v1655_v25 = vmul.f32 %v1553_v53, %v1553_v53  ;;  %1757 = vst.msk [vmem:[#allocation2 + $0x40] sm:$0xff] %vm669_vm3, %v1553_v53  ;;  %v1556_v47 = vadd.f32 %v6894_v26, %v1350_v5  ;;  %v1592_v39 = vsel %vm669_vm3, %v1553_v53, 0.0  ;;  %v11268_v53 = vld [vmem:[#allocation21_spill] sm:$0xff] }
 0x13f   : > { %v1691_v8 = vadd.f32 %v1690_v40, %v1689_v24  ;;  %v1591_v23 = vadd.f32 %v1590_v35, %v1589_v19  ;;  %v1453_v11 = vpop.f32.mrf.mxu1  ;;  %7069 = vmatprep.mubr.msk.bf16.mxu0 %vm669_vm3, %v11265_v62  ;;  %v1353_v32 = vadd.f32 %v6863_v29, %v1073_v63  ;;  %v11269_v63 = vld [vmem:[#allocation23_spill] sm:$0xff]  ;;  %v1596_v19 = vsel %vm669_vm3, %v1555_v55, 0.0 }
 0x140   : > { %v1260_v15 = vpop.f32.mrf.mxu0  ;;  %1760 = vst.msk [vmem:[#allocation2 + $0x58] sm:$0xff] %vm669_vm3, %v1556_v47  ;;  %v1554_v22 = vadd.f32 %v1453_v11, %v1348_v58  ;;  %v1694_v46 = vsel %vm669_vm3, %v1655_v25, 0.0  ;;  %v1068_v40 = vadd.f32 %v11269_v63, %v11268_v53  ;;  %v1658_v29 = vmul.f32 %v1556_v47, %v1556_v47 }
 0x141   : > { %v1593_v48 = vadd.f32 %v1592_v39, %v1591_v23  ;;  %v1693_v38 = vadd.f32 %v1692_v42, %v1691_v8  ;;  %v6897_v61 = vpop.f32.mrf.mxu1  ;;  %7100 = vmatmul.mubr.msk.bf16.gmra.mxu1 %vm669_vm3, %v11266_v21  ;;  %v1351_v59 = vadd.f32 %v1260_v15, %v1065_v31  ;;  %v1089_v8 = vadd.f32 %v8641_v12, %v11270_v7  ;;  %v11273_v12 = vld [vmem:[#allocation17_spill] sm:$0xff]  ;;  %v11276_v7 = vld [vmem:[#allocation10_spill] sm:$0xff] }
 0x142   : > { %v6864_v51 = vpop.f32.mrf.mxu0  ;;  %v1594_v5 = vsel %vm669_vm3, %v1554_v22, 0.0  ;;  %v1656_v3 = vmul.f32 %v1554_v22, %v1554_v22  ;;  %1758 = vst.msk [vmem:[#allocation2 + $0x48] sm:$0xff] %vm669_vm3, %v1554_v22  ;;  %v1559_v54 = vadd.f32 %v6897_v61, %v1353_v32  ;;  %7103 = vmatprep.mubr.msk.bf16.mxu1 %vm669_vm3, %v11267_v0  ;;  %v1698_v23 = vsel %vm669_vm3, %v1657_v52, 0.0 }
 0x143   : > { %v1695_v24 = vadd.f32 %v1694_v46, %v1693_v38  ;;  %v1595_v26 = vadd.f32 %v1594_v5, %v1593_v48  ;;  %v1466_v35 = vpop.f32.mrf.mxu1  ;;  %v1354_v58 = vadd.f32 %v6864_v51, %v1076_v34  ;;  %v1598_v55 = vsel %vm669_vm3, %v1556_v47, 0.0  ;;  %v11271_v34 = vld [vmem:[#allocation26_spill] sm:$0xff]  ;;  %v11274_v5 = vld [vmem:[#allocation28_spill] sm:$0xff] }
 0x144   : > { %v1263_v25 = vpop.f32.mrf.mxu0  ;;  %v1696_v14 = vsel %vm669_vm3, %v1656_v3, 0.0  ;;  %1763 = vst.msk [vmem:[#allocation2 + $0x70] sm:$0xff] %vm669_vm3, %v1559_v54  ;;  %v1557_v31 = vadd.f32 %v1466_v35, %v1351_v59  ;;  %v11272_v38 = vld [vmem:[#allocation46_spill] sm:$0xff]  ;;  %v1092_v52 = vadd.f32 %v8653_v27, %v11273_v12  ;;  %v1700_v47 = vsel %vm669_vm3, %v1658_v29, 0.0 }
 0x145   : > { %v1597_v11 = vadd.f32 %v1596_v19, %v1595_v26  ;;  %v1697_v42 = vadd.f32 %v1696_v14, %v1695_v24  ;;  %v6898_v32 = vpop.f32.mrf.mxu1  ;;  %v1352_v15 = vadd.f32 %v1263_v25, %v1068_v40  ;;  %v1081_v46 = vadd.f32 %v8647_v1, %v11272_v38 }
 0x146   : > { %v6867_v39 = vpop.f32.mrf.mxu0  ;;  %7070 = vmatmul.mubr.msk.bf16.gmra.mxu0 %vm669_vm3, %v11271_v34  ;;  %v1659_v22 = vmul.f32 %v1557_v31, %v1557_v31  ;;  %1761 = vst.msk [vmem:[#allocation2 + $0x60] sm:$0xff] %vm669_vm3, %v1557_v31  ;;  %v1560_v48 = vadd.f32 %v6898_v32, %v1354_v58  ;;  %v1600_v63 = vsel %vm669_vm3, %v1557_v31, 0.0  ;;  %v1661_v19 = vmul.f32 %v1559_v54, %v1559_v54  ;;  %v11275_v31 = vld [vmem:[#allocation18_spill] sm:$0xff] }
 0x147   : > { %v1699_v61 = vadd.f32 %v1698_v23, %v1697_v42  ;;  %v1599_v59 = vadd.f32 %v1598_v55, %v1597_v11  ;;  %v1469_v51 = vpop.f32.mrf.mxu1  ;;  %7073 = vmatprep.mubr.msk.bf16.mxu0 %vm669_vm3, %v11274_v5  ;;  %v1357_v3 = vadd.f32 %v6867_v39, %v1089_v8  ;;  %v1084_v8 = vadd.f32 %v11276_v7, %v11275_v31 }
 0x148   : > { %v1276_v53 = vpop.f32.mrf.mxu0  ;;  %1764 = vst.msk [vmem:[#allocation2 + $0x78] sm:$0xff] %vm669_vm3, %v1560_v48  ;;  %v1558_v40 = vadd.f32 %v1469_v51, %v1352_v15  ;;  %v1702_v27 = vsel %vm669_vm3, %v1659_v22, 0.0  ;;  %v1604_v23 = vsel %vm669_vm3, %v1559_v54, 0.0  ;;  %v1662_v15 = vmul.f32 %v1560_v48, %v1560_v48 }
 0x149   : > { %v1601_v1 = vadd.f32 %v1600_v63, %v1599_v59  ;;  %v1701_v24 = vadd.f32 %v1700_v47, %v1699_v61  ;;  %v6901_v26 = vpop.f32.mrf.mxu1  ;;  %7104 = vmatmul.mubr.msk.bf16.gmra.mxu1 %vm669_vm3, %v11213_v43  ;;  %v1355_v35 = vadd.f32 %v1276_v53, %v1081_v46  ;;  %v11277_v46 = vld [vmem:[#allocation20_spill] sm:$0xff]  ;;  %v1706_v61 = vsel %vm669_vm3, %v1661_v19, 0.0 }
 0x14a   : > { %v6868_v58 = vpop.f32.mrf.mxu0  ;;  %v1602_v29 = vsel %vm669_vm3, %v1558_v40, 0.0  ;;  %v1660_v25 = vmul.f32 %v1558_v40, %v1558_v40  ;;  %1762 = vst.msk [vmem:[#allocation2 + $0x68] sm:$0xff] %vm669_vm3, %v1558_v40  ;;  %v1563_v14 = vadd.f32 %v6901_v26, %v1357_v3  ;;  %7107 = vmatprep.mubr.msk.bf16.mxu1 %vm669_vm3, %v11216_v50  ;;  %v1105_v12 = vadd.f32 %v8665_v49, %v11277_v46  ;;  %v11280_v49 = vld [vmem:[#allocation4_spill] sm:$0xff] }
 0x14b   : > { %v1703_v11 = vadd.f32 %v1702_v27, %v1701_v24  ;;  %v1603_v42 = vadd.f32 %v1602_v29, %v1601_v1  ;;  %v1482_v32 = vpop.f32.mrf.mxu1  ;;  %v1358_v55 = vadd.f32 %v6868_v58, %v1092_v52  ;;  %v1606_v54 = vsel %vm669_vm3, %v1560_v48, 0.0  ;;  %v11278_v52 = vld [vmem:[#allocation32_spill] sm:$0xff]  ;;  %v11279_v1 = vld [vmem:[#allocation6_spill] sm:$0xff]  ;;  %v11281_v58 = vld [vmem:[#allocation37_spill] sm:$0xff] }
 0x14c   : > { %v1279_v39 = vpop.f32.mrf.mxu0  ;;  %v1704_v22 = vsel %vm669_vm3, %v1660_v25, 0.0  ;;  %1767 = vst.msk [vmem:[#allocation2 + $0x90] sm:$0xff] %vm669_vm3, %v1563_v14  ;;  %v1561_v38 = vadd.f32 %v1482_v32, %v1355_v35  ;;  %v1097_v24 = vadd.f32 %v8671_v36, %v11279_v1  ;;  %v1108_v19 = vadd.f32 %v8677_v17, %v11280_v49  ;;  %v11284_v1 = vld [vmem:[#allocation14_spill] sm:$0xff] }
 0x14d   : > { %v1605_v59 = vadd.f32 %v1604_v23, %v1603_v42  ;;  %v1705_v51 = vadd.f32 %v1704_v22, %v1703_v11  ;;  %v6902_v47 = vpop.f32.mrf.mxu1  ;;  %v1356_v3 = vadd.f32 %v1279_v39, %v1084_v8  ;;  %v1708_v48 = vsel %vm669_vm3, %v1662_v15, 0.0  ;;  %v11282_v42 = vld [vmem:[#allocation41_spill] sm:$0xff] }
 0x14e   : > { %v6871_v53 = vpop.f32.mrf.mxu0  ;;  %7074 = vmatmul.mubr.msk.bf16.gmra.mxu0 %vm669_vm3, %v11278_v52  ;;  %v1663_v63 = vmul.f32 %v1561_v38, %v1561_v38  ;;  %1765 = vst.msk [vmem:[#allocation2 + $0x80] sm:$0xff] %vm669_vm3, %v1561_v38  ;;  %v1564_v40 = vadd.f32 %v6902_v47, %v1358_v55  ;;  %v1608_v31 = vsel %vm669_vm3, %v1561_v38, 0.0  ;;  %v1665_v8 = vmul.f32 %v1563_v14, %v1563_v14  ;;  %v11283_v38 = vld [vmem:[#allocation7_spill] sm:$0xff] }
 0x14f   : > { %v1707_v27 = vadd.f32 %v1706_v61, %v1705_v51  ;;  %v1607_v26 = vadd.f32 %v1606_v54, %v1605_v59  ;;  %v1485_v35 = vpop.f32.mrf.mxu1  ;;  %7077 = vmatprep.mubr.msk.bf16.mxu0 %vm669_vm3, %v11281_v58  ;;  %v1361_v29 = vadd.f32 %v6871_v53, %v1105_v12  ;;  %v1100_v46 = vadd.f32 %v8683_v9, %v11283_v38 }
 0x150   : > { %v1292_v25 = vpop.f32.mrf.mxu0  ;;  %1768 = vst.msk [vmem:[#allocation2 + $0x98] sm:$0xff] %vm669_vm3, %v1564_v40  ;;  %v1562_v7 = vadd.f32 %v1485_v35, %v1356_v3  ;;  %v1710_v17 = vsel %vm669_vm3, %v1663_v63, 0.0  ;;  %v1612_v12 = vsel %vm669_vm3, %v1563_v14, 0.0  ;;  %v1666_v54 = vmul.f32 %v1564_v40, %v1564_v40 }
 0x151   : > { %v1609_v36 = vadd.f32 %v1608_v31, %v1607_v26  ;;  %v1709_v23 = vadd.f32 %v1708_v48, %v1707_v27  ;;  %v6905_v11 = vpop.f32.mrf.mxu1  ;;  %7108 = vmatmul.mubr.msk.bf16.gmra.mxu1 %vm669_vm3, %v11282_v42  ;;  %v1359_v32 = vadd.f32 %v1292_v25, %v1097_v24  ;;  %v1121_v24 = vadd.f32 %v8689_v30, %v11284_v1  ;;  %v11286_v31 = vld [vmem:[#allocation8_spill] sm:$0xff]  ;;  %v11287_v30 = vld [vmem:[#allocation11_spill] sm:$0xff] }
 0x152   : > { %v6872_v55 = vpop.f32.mrf.mxu0  ;;  %v1610_v15 = vsel %vm669_vm3, %v1562_v7, 0.0  ;;  %v1664_v39 = vmul.f32 %v1562_v7, %v1562_v7  ;;  %1766 = vst.msk [vmem:[#allocation2 + $0x88] sm:$0xff] %vm669_vm3, %v1562_v7  ;;  %v1567_v22 = vadd.f32 %v6905_v11, %v1361_v29  ;;  %7111 = vmatprep.mubr.msk.bf16.mxu1 %vm669_vm3, %v11220_v41  ;;  %v1714_v49 = vsel %vm669_vm3, %v1665_v8, 0.0  ;;  %v11288_v11 = vld [vmem:[#allocation47_spill] sm:$0xff] }
 0x153   : > { %v1711_v61 = vadd.f32 %v1710_v17, %v1709_v23  ;;  %v1611_v59 = vadd.f32 %v1610_v15, %v1609_v36  ;;  %v1498_v51 = vpop.f32.mrf.mxu1  ;;  %v1362_v47 = vadd.f32 %v6872_v55, %v1108_v19  ;;  %v1614_v14 = vsel %vm669_vm3, %v1564_v40, 0.0  ;;  %v11285_v19 = vld [vmem:[#allocation43_spill] sm:$0xff] }
 0x154   : > { %v1295_v3 = vpop.f32.mrf.mxu0  ;;  %v1712_v53 = vsel %vm669_vm3, %v1664_v39, 0.0  ;;  %1771 = vst.msk [vmem:[#allocation2 + $0xb0] sm:$0xff] %vm669_vm3, %v1567_v22  ;;  %v1565_v63 = vadd.f32 %v1498_v51, %v1359_v32  ;;  %v1113_v7 = vadd.f32 %v8695_v13, %v11286_v31  ;;  %v1124_v8 = vadd.f32 %v8699_v57, %v11287_v30  ;;  %v11292_v31 = vld [vmem:[#allocation15_spill] sm:$0xff] }
 0x155   : > { %v1613_v27 = vadd.f32 %v1612_v12, %v1611_v59  ;;  %v1713_v9 = vadd.f32 %v1712_v53, %v1711_v61  ;;  %v6906_v26 = vpop.f32.mrf.mxu1  ;;  %v1360_v35 = vadd.f32 %v1295_v3, %v1100_v46  ;;  %v1716_v40 = vsel %vm669_vm3, %v1666_v54, 0.0  ;;  %v11289_v61 = vld [vmem:[#allocation48_spill] sm:$0xff]  ;;  %v11290_v53 = vld [vmem:[#allocation50_spill] sm:$0xff] }
 0x156   : > { %v6875_v48 = vpop.f32.mrf.mxu0  ;;  %7078 = vmatmul.mubr.msk.bf16.gmra.mxu0 %vm669_vm3, %v11285_v19  ;;  %v1667_v29 = vmul.f32 %v1565_v63, %v1565_v63  ;;  %1769 = vst.msk [vmem:[#allocation2 + $0xa0] sm:$0xff] %vm669_vm3, %v1565_v63  ;;  %v1568_v25 = vadd.f32 %v6906_v26, %v1362_v47  ;;  %v1616_v15 = vsel %vm669_vm3, %v1565_v63, 0.0  ;;  %v1669_v38 = vmul.f32 %v1567_v22, %v1567_v22  ;;  %v11291_v63 = vld [vmem:[#allocation12_spill] sm:$0xff] }
 0x157   : > { %v1715_v36 = vadd.f32 %v1714_v49, %v1713_v9  ;;  %v1615_v23 = vadd.f32 %v1614_v14, %v1613_v27  ;;  %v1501_v17 = vpop.f32.mrf.mxu1  ;;  %7081 = vmatprep.mubr.msk.bf16.mxu0 %vm669_vm3, %v11288_v11  ;;  %v1365_v32 = vadd.f32 %v6875_v48, %v1121_v24  ;;  %v1116_v1 = vadd.f32 %v8705_v10, %v11291_v63 }
 0x158   : > { %v1308_v55 = vpop.f32.mrf.mxu0  ;;  %1772 = vst.msk [vmem:[#allocation2 + $0xb8] sm:$0xff] %vm669_vm3, %v1568_v25  ;;  %v1566_v39 = vadd.f32 %v1501_v17, %v1360_v35  ;;  %v1718_v57 = vsel %vm669_vm3, %v1667_v29, 0.0  ;;  %v1620_v24 = vsel %vm669_vm3, %v1567_v22, 0.0  ;;  %v1670_v14 = vmul.f32 %v1568_v25, %v1568_v25 }
 0x159   : > { %v1617_v13 = vadd.f32 %v1616_v15, %v1615_v23  ;;  %v1717_v46 = vadd.f32 %v1716_v40, %v1715_v36  ;;  %v6909_v12 = vpop.f32.mrf.mxu1  ;;  %7112 = vmatmul.mubr.msk.bf16.gmra.mxu1 %vm669_vm3, %v11289_v61  ;;  %v1363_v59 = vadd.f32 %v1308_v55, %v1113_v7  ;;  %v11293_v7 = vld [vmem:[#allocation62_spill] sm:$0xff]  ;;  %v1722_v36 = vsel %vm669_vm3, %v1669_v38, 0.0 }
 0x15a   : > { %v6876_v51 = vpop.f32.mrf.mxu0  ;;  %v1618_v47 = vsel %vm669_vm3, %v1566_v39, 0.0  ;;  %v1668_v54 = vmul.f32 %v1566_v39, %v1566_v39  ;;  %1770 = vst.msk [vmem:[#allocation2 + $0xa8] sm:$0xff] %vm669_vm3, %v1566_v39  ;;  %v1571_v3 = vadd.f32 %v6909_v12, %v1365_v32  ;;  %7115 = vmatprep.mubr.msk.bf16.mxu1 %vm669_vm3, %v11290_v53  ;;  %v1137_v30 = vadd.f32 %v11293_v7, %v11292_v31  ;;  %v11295_v39 = vld [vmem:[#allocation60_spill] sm:$0xff]  ;;  %v11298_v12 = vld [vmem:[#allocation65_spill] sm:$0xff] }
 0x15b   : > { %v1719_v49 = vadd.f32 %v1718_v57, %v1717_v46  ;;  %v1619_v27 = vadd.f32 %v1618_v47, %v1617_v13  ;;  %v1514_v9 = vpop.f32.mrf.mxu1  ;;  %v1366_v26 = vadd.f32 %v6876_v51, %v1124_v8  ;;  %v1622_v22 = vsel %vm669_vm3, %v1568_v25, 0.0  ;;  %v11294_v8 = vld [vmem:[#allocation49_spill] sm:$0xff]  ;;  %v11296_v13 = vld [vmem:[#allocation64_spill] sm:$0xff] }
 0x15c   : > { %v1311_v35 = vpop.f32.mrf.mxu0  ;;  %v1720_v48 = vsel %vm669_vm3, %v1668_v54, 0.0  ;;  %1775 = vst.msk [vmem:[#allocation2 + $0xd0] sm:$0xff] %vm669_vm3, %v1571_v3  ;;  %v1569_v29 = vadd.f32 %v1514_v9, %v1363_v59  ;;  %v1129_v46 = vadd.f32 %v11296_v13, %v11295_v39  ;;  %v11297_v57 = vld [vmem:[#allocation61_spill] sm:$0xff]  ;;  %v1724_v25 = vsel %vm669_vm3, %v1670_v14, 0.0 }
 0x15d   : > { %v1621_v23 = vadd.f32 %v1620_v24, %v1619_v27  ;;  %v1721_v10 = vadd.f32 %v1720_v48, %v1719_v49  ;;  %v6910_v17 = vpop.f32.mrf.mxu1  ;;  %v1364_v40 = vadd.f32 %v1311_v35, %v1116_v1  ;;  %v1140_v38 = vadd.f32 %v11298_v12, %v11297_v57  ;;  %v11299_v48 = vld [vmem:[#allocation52_spill] sm:$0xff] }
 0x15e   : > { %v6879_v32 = vpop.f32.mrf.mxu0  ;;  %7082 = vmatmul.mubr.msk.bf16.gmra.mxu0 %vm669_vm3, %v11294_v8  ;;  %v1671_v55 = vmul.f32 %v1569_v29, %v1569_v29  ;;  %1773 = vst.msk [vmem:[#allocation2 + $0xc0] sm:$0xff] %vm669_vm3, %v1569_v29  ;;  %v1572_v15 = vadd.f32 %v6910_v17, %v1366_v26  ;;  %v1624_v1 = vsel %vm669_vm3, %v1569_v29, 0.0  ;;  %v1673_v49 = vmul.f32 %v1571_v3, %v1571_v3 }
 0x15f   : > { %v1723_v59 = vadd.f32 %v1722_v36, %v1721_v10  ;;  %v1623_v51 = vadd.f32 %v1622_v22, %v1621_v23  ;;  %v1517_v47 = vpop.f32.mrf.mxu1  ;;  %7121 = vmatprep.mubr.msk.bf16.mxu0 %vm669_vm3, %v7774_v4  ;;  %v1369_v54 = vadd.f32 %v6879_v32, %v1137_v30  ;;  %v11300_v36 = vld [vmem:[#allocation3_spill] sm:$0xff]  ;;  %v11302_v10 = vld [vmem:[#allocation66_spill] sm:$0xff]  ;;  %v1628_v22 = vsel %vm669_vm3, %v1571_v3, 0.0 }
 0x160   : > { %v1324_v63 = vpop.f32.mrf.mxu0  ;;  %1776 = vst.msk [vmem:[#allocation2 + $0xd8] sm:$0xff] %vm669_vm3, %v1572_v15  ;;  %v1570_v24 = vadd.f32 %v1517_v47, %v1364_v40  ;;  %v1726_v26 = vsel %vm669_vm3, %v1671_v55, 0.0  ;;  %v11301_v23 = vld [vmem:[#allocation63_spill] sm:$0xff]  ;;  %v1674_v13 = vmul.f32 %v1572_v15, %v1572_v15  ;;  %v8959_v3 = vld [vmem:[%s10986_s1 + $0x1c] sm:$0x3] }
 0x161   : > { %v1625_v27 = vadd.f32 %v1624_v1, %v1623_v51  ;;  %v1725_v9 = vadd.f32 %v1724_v25, %v1723_v59  ;;  %v6913_v35 = vpop.f32.mrf.mxu1  ;;  %7116 = vmatmul.mubr.msk.bf16.gmra.mxu1 %vm669_vm3, %v11299_v48  ;;  %v1367_v31 = vadd.f32 %v1324_v63, %v1129_v46  ;;  %v1132_v17 = vadd.f32 %v11302_v10, %v11301_v23 }
 0x162   : > { %v6880_v7 = vpop.f32.mrf.mxu0  ;;  %v1626_v14 = vsel %vm669_vm3, %v1570_v24, 0.0  ;;  %v1672_v30 = vmul.f32 %v1570_v24, %v1570_v24  ;;  %1774 = vst.msk [vmem:[#allocation2 + $0xc8] sm:$0xff] %vm669_vm3, %v1570_v24  ;;  %v1575_v29 = vadd.f32 %v6913_v35, %v1369_v54  ;;  %7155 = vmatprep.mubr.msk.bf16.mxu1 %vm669_vm3, %v11300_v36  ;;  %v1730_v59 = vsel %vm669_vm3, %v1673_v49, 0.0  ;;  %v11303_v36 = vld [vmem:[#allocation9_spill] sm:$0xff] }
 0x163   : > { %v1727_v40 = vadd.f32 %v1726_v26, %v1725_v9  ;;  %v1627_v32 = vadd.f32 %v1626_v14, %v1625_v27  ;;  %v1530_v55 = vpop.f32.mrf.mxu1  ;;  %v1370_v39 = vadd.f32 %v6880_v7, %v1140_v38  ;;  %v1630_v54 = vsel %vm669_vm3, %v1572_v15, 0.0  ;;  %v8982_v14 = vld [vmem:[%s10986_s1 + $0x1e] sm:$0x3] }
 0x164   : > { %v1327_v46 = vpop.f32.mrf.mxu0  ;;  %v1728_v57 = vsel %vm669_vm3, %v1672_v30, 0.0  ;;  %1779 = vst.msk [vmem:[#allocation2 + $0xf0] sm:$0xff] %vm669_vm3, %v1575_v29  ;;  %v1573_v12 = vadd.f32 %v1530_v55, %v1367_v31  ;;  %v4095_v15 = vsel %vm718_vm0, %v8745_v60, 0  ;;  %v1732_v26 = vsel %vm669_vm3, %v1674_v13, 0.0 }
 0x165   : > { %v1629_v51 = vadd.f32 %v1628_v22, %v1627_v32  ;;  %v1729_v47 = vadd.f32 %v1728_v57, %v1727_v40  ;;  %v6914_v25 = vpop.f32.mrf.mxu1  ;;  %v1368_v38 = vadd.f32 %v1327_v46, %v1132_v17  ;;  %v1677_v23 = vmul.f32 %v1575_v29, %v1575_v29 }
 0x166   : > { %v8962_v63 = vpop.f32.mrf.mxu0  ;;  %7122 = vmatmul.mubr.msk.bf16.vlgmr.msra.gmra.mxu0 %vm669_vm3, %v7806_v44  ;;  %v1675_v1 = vmul.f32 %v1573_v12, %v1573_v12  ;;  %1777 = vst.msk [vmem:[#allocation2 + $0xe0] sm:$0xff] %vm669_vm3, %v1573_v12  ;;  %v1576_v24 = vadd.f32 %v6914_v25, %v1370_v39  ;;  %v1632_v31 = vsel %vm669_vm3, %v1573_v12, 0.0  ;;  %v1636_v13 = vsel %vm669_vm3, %v1575_v29, 0.0 }
 0x167   : > { %v1731_v49 = vadd.f32 %v1730_v59, %v1729_v47  ;;  %v1631_v27 = vadd.f32 %v1630_v54, %v1629_v51  ;;  %v1533_v9 = vpop.f32.mrf.mxu1  ;;  %7125 = vmatprep.mubr.msk.bf16.mxu0 %vm669_vm3, %v7834_v18  ;;  %7188 = vmatpush3.bf16.msra.mxu0 %v8798_v20 }
 0x168   : > { %v8973_v35 = vpop.f32.mrf.mxu0  ;;  %1780 = vst.msk [vmem:[#allocation2 + $0xf8] sm:$0xff] %vm669_vm3, %v1576_v24  ;;  %v1574_v7 = vadd.f32 %v1533_v9, %v1368_v38  ;;  %7337 = vmatprep.subr.msk.bf16.mxu0 %vm718_vm0, %v8959_v3  ;;  %v1734_v10 = vsel %vm669_vm3, %v1675_v1, 0.0  ;;  %v1678_v46 = vmul.f32 %v1576_v24, %v1576_v24  ;;  %v1638_v25 = vsel %vm669_vm3, %v1576_v24, 0.0 }
 0x169   : > { %v1633_v20 = vadd.f32 %v1632_v31, %v1631_v27  ;;  %v1733_v30 = vadd.f32 %v1732_v26, %v1731_v49  ;;  %v8984_v60 = vpop.f32.mrf.mxu1  ;;  %7156 = vmatmul.mubr.msk.bf16.vlgmr.msra.gmra.mxu1 %vm669_vm3, %v11303_v36 }
 0x16a   : > { %v8989_v17 = vpop.f32.mrf.mxu0  ;;  %v1634_v22 = vsel %vm669_vm3, %v1574_v7, 0.0  ;;  %v1676_v40 = vmul.f32 %v1574_v7, %v1574_v7  ;;  %1778 = vst.msk [vmem:[#allocation2 + $0xe8] sm:$0xff] %vm669_vm3, %v1574_v7  ;;  %7222 = vmatpush3.bf16.msra.mxu1 %v4095_v15  ;;  %7159 = vmatprep.mubr.msk.bf16.mxu1 %vm669_vm3, %v11186_v37  ;;  %v1738_v37 = vsel %vm669_vm3, %v1677_v23, 0.0  ;;  %v1740_v49 = vsel %vm669_vm3, %v1678_v46, 0.0 }
 0x16b   : > { %v1735_v32 = vadd.f32 %v1734_v10, %v1733_v30  ;;  %v1635_v55 = vadd.f32 %v1634_v22, %v1633_v20  ;;  %v8995_v39 = vpop.f32.mrf.mxu1  ;;  %7338 = vmatprep.subr.msk.bf16.mxu1 %vm718_vm0, %v8982_v14 }
 0x16c   : > { %v9000_v57 = vpop.f32.mrf.mxu0  ;;  %v1736_v12 = vsel %vm669_vm3, %v1676_v40, 0.0 }
 0x16d   : > { %v1637_v59 = vadd.f32 %v1636_v13, %v1635_v55  ;;  %v1737_v51 = vadd.f32 %v1736_v12, %v1735_v32  ;;  %v9003_v47 = vpop.f32.mrf.mxu1  ;;  %v9083_v12 = vld [vmem:[%s7672_s22 + $0xcc] sm:$0xf] }
 0x16e   : > { %v9007_v54 = vpop.f32.mrf.mxu0  ;;  %7126 = vmatmul.mubr.msk.bf16.gmra.mxu0 %vm669_vm3, %v11195_v56 }
 0x16f   : > { %v9011_v38 = vadd.f32 %v1638_v25, %v1637_v59  ;;  %v1739_v29 = vadd.f32 %v1738_v37, %v1737_v51  ;;  %v9013_v1 = vpop.f32.mrf.mxu1  ;;  %7129 = vmatprep.mubr.msk.bf16.mxu0 %vm669_vm3, %v11199_v33  ;;  %v9086_v59 = vld [vmem:[%s7672_s22 + $0xd0] sm:$0xf]  ;;  %v3291_v25 = vshll.u32 %v9083_v12, 16 }
 0x170   : > { %v9018_v27 = vpop.f32.mrf.mxu0 }
 0x171   : > { %11304 = vst [vmem:[#allocation22_spill] sm:$0xff] %v9011_v38  ;;  %v9020_v9 = vadd.f32 %v1740_v49, %v1739_v29  ;;  %v9022_v24 = vpop.f32.mrf.mxu1  ;;  %7160 = vmatmul.mubr.msk.bf16.gmra.mxu1 %vm669_vm3, %v11204_v6  ;;  %v3297_v29 = vshll.u32 %v9086_v59, 16  ;;  %v3301_v49 = vshrl.u32 %v9086_v59, 16 }
 0x172   : > { %v9026_v15 = vpop.f32.mrf.mxu0  ;;  %7163 = vmatprep.mubr.msk.bf16.mxu1 %vm669_vm3, %v11205_v45 }
 0x173   : > { %11305 = vst [vmem:[#allocation40_spill] sm:$0xff] %v9020_v9  ;;  %v9030_v26 = vpop.f32.mrf.mxu1 }
 0x174   : > { %v9032_v31 = vpop.f32.mrf.mxu0 }
 0x175   : > { %v9034_v7 = vpop.f32.mrf.mxu1 }
 0x176   : > { %v9036_v20 = vpop.f32.mrf.mxu0  ;;  %7130 = vmatmul.mubr.msk.bf16.gmra.mxu0 %vm669_vm3, %v11208_v28 }
 0x177   : > { %v9040_v30 = vpop.f32.mrf.mxu1  ;;  %7133 = vmatprep.mubr.msk.bf16.mxu0 %vm669_vm3, %v11266_v21  ;;  %v198_v21 = vld [vmem:[%s7672_s22 + $0xd4] sm:$0x1] }
 0x178   : > { %v9044_v6 = vpop.f32.mrf.mxu0 }
 0x179   : > { %v9046_v36 = vpop.f32.mrf.mxu1  ;;  %7164 = vmatmul.mubr.msk.bf16.gmra.mxu1 %vm669_vm3, %v11210_v16 }
 0x17a   : > { %v9050_v45 = vpop.f32.mrf.mxu0  ;;  %7167 = vmatprep.mubr.msk.bf16.mxu1 %vm669_vm3, %v11262_v2 }
 0x17b   : > { %v9054_v23 = vpop.f32.mrf.mxu1 }
 0x17c   : > { %v9056_v10 = vpop.f32.mrf.mxu0 }
 0x17d   : > { %v9058_v22 = vpop.f32.mrf.mxu1 }
 0x17e   : > { %v9060_v40 = vpop.f32.mrf.mxu0  ;;  %7134 = vmatmul.mubr.msk.bf16.gmra.mxu0 %vm669_vm3, %v11267_v0 }
 0x17f   : > { %v9064_v32 = vpop.f32.mrf.mxu1  ;;  %7137 = vmatprep.mubr.msk.bf16.mxu0 %vm669_vm3, %v11213_v43 }
 0x180   : > { %v9068_v16 = vpop.f32.mrf.mxu0 }
 0x181   : > { %v9070_v2 = vpop.f32.mrf.mxu1  ;;  %7168 = vmatmul.mubr.msk.bf16.gmra.mxu1 %vm669_vm3, %v11265_v62 }
 0x182   : > { %v9074_v55 = vpop.f32.mrf.mxu0  ;;  %7171 = vmatprep.mubr.msk.bf16.mxu1 %vm669_vm3, %v11271_v34  ;;  %v3288_v34 = vshrl.u32 %v9083_v12, 16 }
 0x183   : > { %v9078_v13 = vpop.f32.mrf.mxu1 }
 0x184   : > { %v9080_v46 = vpop.f32.mrf.mxu0  ;;  %v3290_v43 = vrot.slane %v3288_v34, 4 }
 0x185   : > { %11306 = vst [vmem:[#allocation42_spill] sm:$0xff] %v9080_v46  ;;  %v9088_v51 = vpop.f32.mrf.mxu1  ;;  %v3303_v46 = vrot.slane %v3301_v49, 4 }
 0x186   : > { %v9090_v37 = vpop.f32.mrf.mxu0  ;;  %7138 = vmatmul.mubr.msk.bf16.gmra.mxu0 %vm669_vm3, %v11216_v50 }
 0x187   : > { %11307 = vst [vmem:[#allocation24_spill] sm:$0xff] %v9090_v37  ;;  %v9094_v62 = vpop.f32.mrf.mxu1  ;;  %7141 = vmatprep.mubr.msk.bf16.mxu0 %vm669_vm3, %v11282_v42  ;;  %v3293_v37 = vrot.slane %v3291_v25, 5  ;;  %v3307_v25 = vshll.u32 %v198_v21, 16 }
 0x188   : > { %11308 = vst [vmem:[#allocation21_spill] sm:$0xff] %v9094_v62  ;;  %v9102_v9 = vpop.f32.mrf.mxu0  ;;  %v3299_v62 = vrot.slane %v3297_v29, 5 }
 0x189   : > { %11309 = vst [vmem:[#allocation23_spill] sm:$0xff] %v9102_v9  ;;  %v9104_v38 = vpop.f32.mrf.mxu1  ;;  %7172 = vmatmul.mubr.msk.bf16.gmra.mxu1 %vm669_vm3, %v11274_v5 }
 0x18a   : > { %11310 = vst [vmem:[#allocation44_spill] sm:$0xff] %v9104_v38  ;;  %v9108_v50 = vpop.f32.mrf.mxu0  ;;  %7175 = vmatprep.mubr.msk.bf16.mxu1 %vm669_vm3, %v11278_v52  ;;  %v3294_v52 = vor.u32 %v3293_v37, %v3290_v43  ;;  %v3304_v34 = vor.u32 %v3303_v46, %v3299_v62 }
 0x18b   : > { %v9112_v42 = vpop.f32.mrf.mxu1 }
 0x18c   : > { %v9114_v0 = vpop.f32.mrf.mxu0 }
 0x18d   : > { %11311 = vst [vmem:[#allocation26_spill] sm:$0xff] %v9114_v0  ;;  %v9117_v9 = vpop.f32.mrf.mxu1 }
 0x18e   : > { %v9119_v38 = vpop.f32.mrf.mxu0  ;;  %7142 = vmatmul.mubr.msk.bf16.gmra.mxu0 %vm669_vm3, %v11220_v41 }
 0x18f   : > { %11312 = vst [vmem:[#allocation46_spill] sm:$0xff] %v9119_v38  ;;  %v9123_v5 = vpop.f32.mrf.mxu1  ;;  %7145 = vmatprep.mubr.msk.bf16.mxu0 %vm669_vm3, %v11289_v61  ;;  %v3295_v38 = vrot.slane %v3294_v52, 4  ;;  %v3309_v61 = vrot.slane %v3307_v25, 5 }
 0x190   : > { %11313 = vst [vmem:[#allocation17_spill] sm:$0xff] %v9123_v5  ;;  %v9127_v29 = vpop.f32.mrf.mxu0  ;;  %v3305_v5 = vrot.slane %v3304_v34, 4 }
 0x191   : > { %v9129_v49 = vpop.f32.mrf.mxu1  ;;  %7176 = vmatmul.mubr.msk.bf16.gmra.mxu1 %vm669_vm3, %v11281_v58  ;;  %v3300_v37 = vsel %vm7726_vm4, %v3295_v38, %v3299_v62 }
 0x192   : > { %v9133_v0 = vpop.f32.mrf.mxu0  ;;  %7179 = vmatprep.mubr.msk.bf16.mxu1 %vm669_vm3, %v11285_v19  ;;  %v3310_v52 = vsel %vm7726_vm4, %v3305_v5, %v3309_v61  ;;  %v6353_v61 = vcombine.low %v9083_v12, %v9086_v59  ;;  %v11319_v19 = vld [vmem:[#allocation53_spill] sm:$0xff] }
 0x193   : > { %v9137_v41 = vpop.f32.mrf.mxu1 }
 0x194   : > { %v9139_v43 = vpop.f32.mrf.mxu0 }
 0x195   : > { %v9141_v21 = vpop.f32.mrf.mxu1 }
 0x196   : > { %v9143_v46 = vpop.f32.mrf.mxu0  ;;  %7146 = vmatmul.mubr.msk.bf16.gmra.mxu0 %vm669_vm3, %v11290_v53  ;;  %v9163_v53 = vcombine.low %v3300_v37, %v3310_v52 }
 0x197   : > { %11314 = vst [vmem:[#allocation28_spill] sm:$0xff] %v9143_v46  ;;  %v9147_v58 = vpop.f32.mrf.mxu1  ;;  %7149 = vmatprep.mubr.msk.bf16.mxu0 %vm669_vm3, %v11299_v48 }
 0x198   : > { %v9155_v34 = vpop.f32.mrf.mxu0  ;;  %11316 = vst [vmem:[#allocation18_spill] sm:$0xff] %v9163_v53 }
 0x199   : > { %v9157_v25 = vpop.f32.mrf.mxu1  ;;  %7180 = vmatmul.mubr.msk.bf16.gmra.mxu1 %vm669_vm3, %v11288_v11 }
 0x19a   : > { %v9161_v46 = vpop.f32.mrf.mxu0  ;;  %7183 = vmatprep.mubr.msk.bf16.mxu1 %vm669_vm3, %v11294_v8 }
 0x19b   : > { %v9167_v48 = vpop.f32.mrf.mxu1 }
 0x19c   : > { %v9169_v38 = vpop.f32.mrf.mxu0 }
 0x19d   : > { %11317 = vst [vmem:[#allocation10_spill] sm:$0xff] %v9169_v38  ;;  %v9171_v62 = vpop.f32.mrf.mxu1  ;;  %v11323_v38 = vld [vmem:[#allocation16_spill] sm:$0xff] }
 0x19e   : > { %v9175_v5 = vpop.f32.mrf.mxu0  ;;  %7150 = vmatmul.mubr.msk.bf16.gmra.mxu0 %vm669_vm3, %v9163_v53  ;;  %v4261_v53 = vsel %vm718_vm0, %v8959_v3, 0  ;;  %v2214_v3 = vadd.f32 %v8995_v39, %v8973_v35  ;;  %v2217_v35 = vadd.f32 %v9013_v1, %v9000_v57  ;;  %v11331_v57 = vld [vmem:[#allocation39_spill] sm:$0xff]  ;;  %v2230_v1 = vadd.f32 %v9030_v26, %v9018_v27 }
 0x19f   : > { %11318 = vst [vmem:[#allocation20_spill] sm:$0xff] %v9175_v5  ;;  %v9179_v11 = vpop.f32.mrf.mxu1  ;;  %7189 = vmatprep.mubr.msk.bf16.mxu0 %vm669_vm3, %v11319_v19  ;;  %v2222_v19 = vadd.f32 %v8984_v60, %v8962_v63  ;;  %v2225_v63 = vadd.f32 %v9003_v47, %v8989_v17  ;;  %v2238_v17 = vadd.f32 %v9022_v24, %v9007_v54 }
 0x1a0   : > { %v9183_v8 = vpop.f32.mrf.mxu0  ;;  %v2241_v24 = vadd.f32 %v9034_v7, %v9026_v15  ;;  %v2233_v15 = vadd.f32 %v9040_v30, %v9032_v31 }
 0x1a1   : > { %11320 = vst [vmem:[#allocation32_spill] sm:$0xff] %v9183_v8  ;;  %v9185_v37 = vpop.f32.mrf.mxu1  ;;  %7184 = vmatmul.mubr.msk.bf16.gmra.mxu1 %vm669_vm3, %v6353_v61 }
 0x1a2   : > { %11321 = vst [vmem:[#allocation6_spill] sm:$0xff] %v9185_v37  ;;  %v9188_v52 = vpop.f32.mrf.mxu0  ;;  %7223 = vmatprep.mubr.msk.bf16.mxu1 %vm669_vm3, %v11323_v38  ;;  %v11327_v37 = vld [vmem:[#allocation54_spill] sm:$0xff]  ;;  %v4473_v38 = vsel %vm718_vm0, %v8982_v14, 0 }
 0x1a3   : > { %11322 = vst [vmem:[#allocation4_spill] sm:$0xff] %v9188_v52  ;;  %v9192_v12 = vpop.f32.mrf.mxu1  ;;  %v11329_v52 = vld [vmem:[#allocation38_spill] sm:$0xff] }
 0x1a4   : > { %11324 = vst [vmem:[#allocation37_spill] sm:$0xff] %v9192_v12  ;;  %v9194_v59 = vpop.f32.mrf.mxu0 }
 0x1a5   : > { %11325 = vst [vmem:[#allocation7_spill] sm:$0xff] %v9194_v59  ;;  %v9198_v5 = vpop.f32.mrf.mxu1 }
 0x1a6   : > { %11326 = vst [vmem:[#allocation14_spill] sm:$0xff] %v9198_v5  ;;  %v6987_v8 = vpop.f32.mrf.mxu0  ;;  %7190 = vmatmul.mubr.msk.bf16.vlgmr.msra.gmra.mxu0 %vm669_vm3, %v11327_v37 }
 0x1a7   : > { %v9204_v61 = vpop.f32.mrf.mxu1  ;;  %7193 = vmatprep.mubr.msk.bf16.mxu0 %vm669_vm3, %v11329_v52  ;;  %7256 = vmatpush3.bf16.msra.mxu0 %v4261_v53  ;;  %v2508_v59 = vadd.f32 %v6987_v8, %v2222_v19 }
 0x1a8   : > { %11328 = vst [vmem:[#allocation43_spill] sm:$0xff] %v9204_v61  ;;  %v2379_v5 = vpop.f32.mrf.mxu0 }
 0x1a9   : > { %v7021_v12 = vpop.f32.mrf.mxu1  ;;  %7224 = vmatmul.mubr.msk.bf16.vlgmr.msra.gmra.mxu1 %vm669_vm3, %v7774_v4  ;;  %v2506_v60 = vadd.f32 %v2379_v5, %v2214_v3 }
 0x1aa   : > { %v6988_v61 = vpop.f32.mrf.mxu0  ;;  %v2720_v37 = vadd.f32 %v7021_v12, %v2508_v59  ;;  %7290 = vmatpush3.bf16.msra.mxu1 %v4473_v38  ;;  %7227 = vmatprep.mubr.msk.bf16.mxu1 %vm669_vm3, %v7806_v44  ;;  %v11330_v12 = vld [vmem:[#allocation19_spill] sm:$0xff] }
 0x1ab   : > { %v2591_v53 = vpop.f32.mrf.mxu1  ;;  %v2509_v14 = vadd.f32 %v6988_v61, %v2225_v63 }
 0x1ac   : > { %v2382_v39 = vpop.f32.mrf.mxu0  ;;  %2925 = vst.msk [vmem:[#allocation2 + $0x110] sm:$0xff] %vm669_vm3, %v2720_v37  ;;  %v2718_v8 = vadd.f32 %v2591_v53, %v2506_v60  ;;  %v2822_v60 = vmul.f32 %v2720_v37, %v2720_v37  ;;  %v2753_v7 = vsel %vm669_vm3, %v2720_v37, 0.0 }
 0x1ad   : > { %v7022_v19 = vpop.f32.mrf.mxu1  ;;  %v2507_v47 = vadd.f32 %v2382_v39, %v2217_v35 }
 0x1ae   : > { %v6991_v5 = vpop.f32.mrf.mxu0  ;;  %7194 = vmatmul.mubr.msk.bf16.gmra.mxu0 %vm669_vm3, %v11330_v12  ;;  %2923 = vst.msk [vmem:[#allocation2 + $0x100] sm:$0xff] %vm669_vm3, %v2718_v8  ;;  %v2721_v59 = vadd.f32 %v7022_v19, %v2509_v14  ;;  %v2820_v38 = vmul.f32 %v2718_v8, %v2718_v8  ;;  %v2750_v53 = vsel %vm669_vm3, %v2718_v8, 0.0 }
 0x1af   : > { %v2594_v3 = vpop.f32.mrf.mxu1  ;;  %7197 = vmatprep.mubr.msk.bf16.mxu0 %vm669_vm3, %v11331_v57  ;;  %v2512_v61 = vadd.f32 %v6991_v5, %v2238_v17 }
 0x1b0   : > { %v2395_v63 = vpop.f32.mrf.mxu0  ;;  %2926 = vst.msk [vmem:[#allocation2 + $0x118] sm:$0xff] %vm669_vm3, %v2721_v59  ;;  %v2719_v54 = vadd.f32 %v2594_v3, %v2507_v47  ;;  %v2852_v8 = vsel %vm669_vm3, %v2820_v38, 0.0  ;;  %v2823_v3 = vmul.f32 %v2721_v59, %v2721_v59  ;;  %v2755_v38 = vsel %vm669_vm3, %v2721_v59, 0.0 }
 0x1b1   : > { %v7025_v35 = vpop.f32.mrf.mxu1  ;;  %7228 = vmatmul.mubr.msk.bf16.gmra.mxu1 %vm669_vm3, %v7834_v18  ;;  %v2510_v14 = vadd.f32 %v2395_v63, %v2230_v1 }
 0x1b2   : > { %v6992_v39 = vpop.f32.mrf.mxu0  ;;  %v2751_v19 = vsel %vm669_vm3, %v2719_v54, 0.0  ;;  %v2821_v27 = vmul.f32 %v2719_v54, %v2719_v54  ;;  %2924 = vst.msk [vmem:[#allocation2 + $0x108] sm:$0xff] %vm669_vm3, %v2719_v54  ;;  %v2724_v26 = vadd.f32 %v7025_v35, %v2512_v61  ;;  %7231 = vmatprep.mubr.msk.bf16.mxu1 %vm669_vm3, %v11195_v56  ;;  %v2254_v54 = vadd.f32 %v9046_v36, %v9036_v20 }
 0x1b3   : > { %v2752_v17 = vadd.f32 %v2751_v19, %v2750_v53  ;;  %v2607_v47 = vpop.f32.mrf.mxu1  ;;  %v2513_v5 = vadd.f32 %v6992_v39, %v2241_v24  ;;  %v2855_v35 = vsel %vm669_vm3, %v2822_v60, 0.0  ;;  %v11332_v24 = vld [vmem:[#allocation55_spill] sm:$0xff]  ;;  %v2257_v20 = vadd.f32 %v9058_v22, %v9050_v45 }
 0x1b4   : > { %v2398_v1 = vpop.f32.mrf.mxu0  ;;  %v2853_v63 = vsel %vm669_vm3, %v2821_v27, 0.0  ;;  %2929 = vst.msk [vmem:[#allocation2 + $0x130] sm:$0xff] %vm669_vm3, %v2724_v26  ;;  %v2722_v61 = vadd.f32 %v2607_v47, %v2510_v14  ;;  %v2246_v14 = vadd.f32 %v9054_v23, %v9044_v6  ;;  %v2857_v59 = vsel %vm669_vm3, %v2823_v3, 0.0 }
 0x1b5   : > { %v2754_v31 = vadd.f32 %v2753_v7, %v2752_v17  ;;  %v2854_v30 = vadd.f32 %v2853_v63, %v2852_v8  ;;  %v7026_v37 = vpop.f32.mrf.mxu1  ;;  %v2511_v53 = vadd.f32 %v2398_v1, %v2233_v15  ;;  %v11333_v8 = vld [vmem:[#allocation56_spill] sm:$0xff]  ;;  %v2826_v1 = vmul.f32 %v2724_v26, %v2724_v26 }
 0x1b6   : > { %v6995_v19 = vpop.f32.mrf.mxu0  ;;  %7198 = vmatmul.mubr.msk.bf16.gmra.mxu0 %vm669_vm3, %v11332_v24  ;;  %v2824_v39 = vmul.f32 %v2722_v61, %v2722_v61  ;;  %2927 = vst.msk [vmem:[#allocation2 + $0x120] sm:$0xff] %vm669_vm3, %v2722_v61  ;;  %v2725_v27 = vadd.f32 %v7026_v37, %v2513_v5  ;;  %v2757_v47 = vsel %vm669_vm3, %v2722_v61, 0.0 }
 0x1b7   : > { %v2856_v36 = vadd.f32 %v2855_v35, %v2854_v30  ;;  %v2756_v60 = vadd.f32 %v2755_v38, %v2754_v31  ;;  %v2610_v7 = vpop.f32.mrf.mxu1  ;;  %7201 = vmatprep.mubr.msk.bf16.mxu0 %vm669_vm3, %v11333_v8  ;;  %v2516_v15 = vadd.f32 %v6995_v19, %v2254_v54  ;;  %v2249_v31 = vadd.f32 %v9064_v32, %v9056_v10 }
 0x1b8   : > { %v2411_v17 = vpop.f32.mrf.mxu0  ;;  %2930 = vst.msk [vmem:[#allocation2 + $0x138] sm:$0xff] %vm669_vm3, %v2725_v27  ;;  %v2723_v5 = vadd.f32 %v2610_v7, %v2511_v53  ;;  %v2859_v45 = vsel %vm669_vm3, %v2824_v39, 0.0  ;;  %v2761_v30 = vsel %vm669_vm3, %v2724_v26, 0.0  ;;  %v2827_v39 = vmul.f32 %v2725_v27, %v2725_v27 }
 0x1b9   : > { %v2758_v6 = vadd.f32 %v2757_v47, %v2756_v60  ;;  %v2858_v23 = vadd.f32 %v2857_v59, %v2856_v36  ;;  %v7029_v22 = vpop.f32.mrf.mxu1  ;;  %7232 = vmatmul.mubr.msk.bf16.gmra.mxu1 %vm669_vm3, %v11199_v33  ;;  %v2514_v63 = vadd.f32 %v2411_v17, %v2246_v14  ;;  %v2270_v7 = vadd.f32 %v9070_v2, %v9060_v40 }
 0x1ba   : > { %v6996_v35 = vpop.f32.mrf.mxu0  ;;  %v2759_v3 = vsel %vm669_vm3, %v2723_v5, 0.0  ;;  %v2825_v54 = vmul.f32 %v2723_v5, %v2723_v5  ;;  %2928 = vst.msk [vmem:[#allocation2 + $0x128] sm:$0xff] %vm669_vm3, %v2723_v5  ;;  %v2728_v61 = vadd.f32 %v7029_v22, %v2516_v15  ;;  %7235 = vmatprep.mubr.msk.bf16.mxu1 %vm669_vm3, %v11208_v28  ;;  %v2863_v59 = vsel %vm669_vm3, %v2826_v1, 0.0  ;;  %v11335_v22 = vld [vmem:[#allocation58_spill] sm:$0xff] }
 0x1bb   : > { %v2860_v37 = vadd.f32 %v2859_v45, %v2858_v23  ;;  %v2760_v38 = vadd.f32 %v2759_v3, %v2758_v6  ;;  %v2623_v53 = vpop.f32.mrf.mxu1  ;;  %v2517_v19 = vadd.f32 %v6996_v35, %v2257_v20  ;;  %v2763_v26 = vsel %vm669_vm3, %v2725_v27, 0.0  ;;  %v11334_v20 = vld [vmem:[#allocation57_spill] sm:$0xff] }
 0x1bc   : > { %v2414_v14 = vpop.f32.mrf.mxu0  ;;  %v2861_v36 = vsel %vm669_vm3, %v2825_v54, 0.0  ;;  %2933 = vst.msk [vmem:[#allocation2 + $0x150] sm:$0xff] %vm669_vm3, %v2728_v61  ;;  %v2726_v60 = vadd.f32 %v2623_v53, %v2514_v63  ;;  %v2262_v23 = vadd.f32 %v9078_v13, %v9068_v16  ;;  %v2273_v40 = vadd.f32 %v9088_v51, %v9074_v55 }
 0x1bd   : > { %v2762_v15 = vadd.f32 %v2761_v30, %v2760_v38  ;;  %v2862_v10 = vadd.f32 %v2861_v36, %v2860_v37  ;;  %v7030_v32 = vpop.f32.mrf.mxu1  ;;  %v2515_v17 = vadd.f32 %v2414_v14, %v2249_v31  ;;  %v2865_v27 = vsel %vm669_vm3, %v2827_v39, 0.0  ;;  %v11336_v30 = vld [vmem:[#allocation25_spill] sm:$0xff]  ;;  %v11337_v14 = vld [vmem:[#allocation27_spill] sm:$0xff]  ;;  %v11338_v36 = vld [vmem:[#allocation42_spill] sm:$0xff] }
 0x1be   : > { %v6999_v47 = vpop.f32.mrf.mxu0  ;;  %7202 = vmatmul.mubr.msk.bf16.gmra.mxu0 %vm669_vm3, %v11334_v20  ;;  %v2828_v5 = vmul.f32 %v2726_v60, %v2726_v60  ;;  %2931 = vst.msk [vmem:[#allocation2 + $0x140] sm:$0xff] %vm669_vm3, %v2726_v60  ;;  %v2729_v6 = vadd.f32 %v7030_v32, %v2517_v19  ;;  %v2765_v3 = vsel %vm669_vm3, %v2726_v60, 0.0  ;;  %v2830_v31 = vmul.f32 %v2728_v61, %v2728_v61  ;;  %v11339_v60 = vld [vmem:[#allocation21_spill] sm:$0xff] }
 0x1bf   : > { %v2864_v2 = vadd.f32 %v2863_v59, %v2862_v10  ;;  %v2764_v1 = vadd.f32 %v2763_v26, %v2762_v15  ;;  %v2626_v45 = vpop.f32.mrf.mxu1  ;;  %7205 = vmatprep.mubr.msk.bf16.mxu0 %vm669_vm3, %v11335_v22  ;;  %v2520_v63 = vadd.f32 %v6999_v47, %v2270_v7  ;;  %v2265_v7 = vadd.f32 %v11339_v60, %v11338_v36  ;;  %v11344_v36 = vld [vmem:[#allocation13_spill] sm:$0xff] }
 0x1c0   : > { %v2427_v35 = vpop.f32.mrf.mxu0  ;;  %2934 = vst.msk [vmem:[#allocation2 + $0x158] sm:$0xff] %vm669_vm3, %v2729_v6  ;;  %v2727_v54 = vadd.f32 %v2626_v45, %v2515_v17  ;;  %v2867_v55 = vsel %vm669_vm3, %v2828_v5, 0.0  ;;  %v2769_v59 = vsel %vm669_vm3, %v2728_v61, 0.0  ;;  %v2831_v17 = vmul.f32 %v2729_v6, %v2729_v6 }
 0x1c1   : > { %v2766_v16 = vadd.f32 %v2765_v3, %v2764_v1  ;;  %v2866_v13 = vadd.f32 %v2865_v27, %v2864_v2  ;;  %v7033_v51 = vpop.f32.mrf.mxu1  ;;  %7236 = vmatmul.mubr.msk.bf16.gmra.mxu1 %vm669_vm3, %v11336_v30  ;;  %v2518_v37 = vadd.f32 %v2427_v35, %v2262_v23  ;;  %v11340_v2 = vld [vmem:[#allocation24_spill] sm:$0xff]  ;;  %v2871_v27 = vsel %vm669_vm3, %v2830_v31, 0.0 }
 0x1c2   : > { %v7000_v38 = vpop.f32.mrf.mxu0  ;;  %v2767_v53 = vsel %vm669_vm3, %v2727_v54, 0.0  ;;  %v2829_v19 = vmul.f32 %v2727_v54, %v2727_v54  ;;  %2932 = vst.msk [vmem:[#allocation2 + $0x148] sm:$0xff] %vm669_vm3, %v2727_v54  ;;  %v2732_v39 = vadd.f32 %v7033_v51, %v2520_v63  ;;  %7239 = vmatprep.mubr.msk.bf16.mxu1 %vm669_vm3, %v11337_v14  ;;  %v11341_v1 = vld [vmem:[#allocation44_spill] sm:$0xff]  ;;  %v2771_v61 = vsel %vm669_vm3, %v2729_v6, 0.0  ;;  %v11343_v51 = vld [vmem:[#allocation23_spill] sm:$0xff] }
 0x1c3   : > { %v2868_v15 = vadd.f32 %v2867_v55, %v2866_v13  ;;  %v2768_v10 = vadd.f32 %v2767_v53, %v2766_v16  ;;  %v2639_v32 = vpop.f32.mrf.mxu1  ;;  %v2521_v26 = vadd.f32 %v7000_v38, %v2273_v40  ;;  %v2286_v45 = vadd.f32 %v11341_v1, %v11340_v2  ;;  %v11342_v40 = vld [vmem:[#allocation59_spill] sm:$0xff] }
 0x1c4   : > { %v2430_v47 = vpop.f32.mrf.mxu0  ;;  %v2869_v5 = vsel %vm669_vm3, %v2829_v19, 0.0  ;;  %2937 = vst.msk [vmem:[#allocation2 + $0x170] sm:$0xff] %vm669_vm3, %v2732_v39  ;;  %v2730_v23 = vadd.f32 %v2639_v32, %v2518_v37  ;;  %v2278_v37 = vadd.f32 %v9112_v42, %v11343_v51  ;;  %v2289_v31 = vadd.f32 %v9117_v9, %v9108_v50  ;;  %v11346_v1 = vld [vmem:[#allocation35_spill] sm:$0xff] }
 0x1c5   : > { %v2770_v63 = vadd.f32 %v2769_v59, %v2768_v10  ;;  %v2870_v35 = vadd.f32 %v2869_v5, %v2868_v15  ;;  %v7034_v3 = vpop.f32.mrf.mxu1  ;;  %v2519_v54 = vadd.f32 %v2430_v47, %v2265_v7  ;;  %v2873_v6 = vsel %vm669_vm3, %v2831_v17, 0.0 }
 0x1c6   : > { %v7003_v16 = vpop.f32.mrf.mxu0  ;;  %7206 = vmatmul.mubr.msk.bf16.gmra.mxu0 %vm669_vm3, %v11342_v40  ;;  %v2832_v13 = vmul.f32 %v2730_v23, %v2730_v23  ;;  %2935 = vst.msk [vmem:[#allocation2 + $0x160] sm:$0xff] %vm669_vm3, %v2730_v23  ;;  %v2733_v55 = vadd.f32 %v7034_v3, %v2521_v26  ;;  %v2773_v59 = vsel %vm669_vm3, %v2730_v23, 0.0  ;;  %v2834_v10 = vmul.f32 %v2732_v39, %v2732_v39  ;;  %v11345_v26 = vld [vmem:[#allocation30_spill] sm:$0xff] }
 0x1c7   : > { %v2872_v38 = vadd.f32 %v2871_v27, %v2870_v35  ;;  %v2772_v53 = vadd.f32 %v2771_v61, %v2770_v63  ;;  %v2642_v19 = vpop.f32.mrf.mxu1  ;;  %7209 = vmatprep.mubr.msk.bf16.mxu0 %vm669_vm3, %v11344_v36  ;;  %v2524_v60 = vadd.f32 %v7003_v16, %v2286_v45  ;;  %v11347_v45 = vld [vmem:[#allocation26_spill] sm:$0xff]  ;;  %v11348_v27 = vld [vmem:[#allocation17_spill] sm:$0xff]  ;;  %v2777_v35 = vsel %vm669_vm3, %v2732_v39, 0.0 }
 0x1c8   : > { %v2443_v7 = vpop.f32.mrf.mxu0  ;;  %2938 = vst.msk [vmem:[#allocation2 + $0x178] sm:$0xff] %vm669_vm3, %v2733_v55  ;;  %v2731_v15 = vadd.f32 %v2642_v19, %v2519_v54  ;;  %v2875_v50 = vsel %vm669_vm3, %v2832_v13, 0.0  ;;  %v2281_v63 = vadd.f32 %v11348_v27, %v11347_v45  ;;  %v2835_v13 = vmul.f32 %v2733_v55, %v2733_v55 }
 0x1c9   : > { %v2774_v42 = vadd.f32 %v2773_v59, %v2772_v53  ;;  %v2874_v32 = vadd.f32 %v2873_v6, %v2872_v38  ;;  %v7037_v9 = vpop.f32.mrf.mxu1  ;;  %7240 = vmatmul.mubr.msk.bf16.gmra.mxu1 %vm669_vm3, %v11345_v26  ;;  %v2522_v47 = vadd.f32 %v2443_v7, %v2278_v37  ;;  %v11349_v53 = vld [vmem:[#allocation46_spill] sm:$0xff]  ;;  %v2879_v6 = vsel %vm669_vm3, %v2834_v10, 0.0 }
 0x1ca   : > { %v7004_v5 = vpop.f32.mrf.mxu0  ;;  %v2775_v17 = vsel %vm669_vm3, %v2731_v15, 0.0  ;;  %v2833_v2 = vmul.f32 %v2731_v15, %v2731_v15  ;;  %2936 = vst.msk [vmem:[#allocation2 + $0x168] sm:$0xff] %vm669_vm3, %v2731_v15  ;;  %v2736_v23 = vadd.f32 %v7037_v9, %v2524_v60  ;;  %7243 = vmatprep.mubr.msk.bf16.mxu1 %vm669_vm3, %v11346_v1  ;;  %v2302_v19 = vadd.f32 %v9129_v49, %v11349_v53 }
 0x1cb   : > { %v2876_v3 = vadd.f32 %v2875_v50, %v2874_v32  ;;  %v2776_v61 = vadd.f32 %v2775_v17, %v2774_v42  ;;  %v2655_v54 = vpop.f32.mrf.mxu1  ;;  %v2525_v16 = vadd.f32 %v7004_v5, %v2289_v31  ;;  %v2779_v39 = vsel %vm669_vm3, %v2733_v55, 0.0  ;;  %v11350_v31 = vld [vmem:[#allocation29_spill] sm:$0xff]  ;;  %v11351_v17 = vld [vmem:[#allocation31_spill] sm:$0xff] }
 0x1cc   : > { %v2446_v51 = vpop.f32.mrf.mxu0  ;;  %v2877_v37 = vsel %vm669_vm3, %v2833_v2, 0.0  ;;  %2941 = vst.msk [vmem:[#allocation2 + $0x190] sm:$0xff] %vm669_vm3, %v2736_v23  ;;  %v2734_v38 = vadd.f32 %v2655_v54, %v2522_v47  ;;  %v2294_v9 = vadd.f32 %v9137_v41, %v9127_v29  ;;  %v2305_v49 = vadd.f32 %v9141_v21, %v9133_v0 }
 0x1cd   : > { %v2778_v60 = vadd.f32 %v2777_v35, %v2776_v61  ;;  %v2878_v7 = vadd.f32 %v2877_v37, %v2876_v3  ;;  %v7038_v59 = vpop.f32.mrf.mxu1  ;;  %v2523_v15 = vadd.f32 %v2446_v51, %v2281_v63  ;;  %v2881_v55 = vsel %vm669_vm3, %v2835_v13, 0.0  ;;  %v11352_v3 = vld [vmem:[#allocation41_spill] sm:$0xff] }
 0x1ce   : > { %v7007_v42 = vpop.f32.mrf.mxu0  ;;  %7210 = vmatmul.mubr.msk.bf16.gmra.mxu0 %vm669_vm3, %v11350_v31  ;;  %v2836_v32 = vmul.f32 %v2734_v38, %v2734_v38  ;;  %2939 = vst.msk [vmem:[#allocation2 + $0x180] sm:$0xff] %vm669_vm3, %v2734_v38  ;;  %v2737_v50 = vadd.f32 %v7038_v59, %v2525_v16  ;;  %v2781_v27 = vsel %vm669_vm3, %v2734_v38, 0.0  ;;  %v2838_v35 = vmul.f32 %v2736_v23, %v2736_v23  ;;  %v11353_v37 = vld [vmem:[#allocation45_spill] sm:$0xff] }
 0x1cf   : > { %v2880_v10 = vadd.f32 %v2879_v6, %v2878_v7  ;;  %v2780_v47 = vadd.f32 %v2779_v39, %v2778_v60  ;;  %v2658_v5 = vpop.f32.mrf.mxu1  ;;  %7213 = vmatprep.mubr.msk.bf16.mxu0 %vm669_vm3, %v11351_v17  ;;  %v2528_v2 = vadd.f32 %v7007_v42, %v2302_v19  ;;  %v2297_v38 = vadd.f32 %v9147_v58, %v9139_v43 }
 0x1d0   : > { %v2459_v45 = vpop.f32.mrf.mxu0  ;;  %2942 = vst.msk [vmem:[#allocation2 + $0x198] sm:$0xff] %vm669_vm3, %v2737_v50  ;;  %v2735_v63 = vadd.f32 %v2658_v5, %v2523_v15  ;;  %v2883_v0 = vsel %vm669_vm3, %v2836_v32, 0.0  ;;  %v2785_v53 = vsel %vm669_vm3, %v2736_v23, 0.0  ;;  %v2839_v59 = vmul.f32 %v2737_v50, %v2737_v50  ;;  %v11354_v32 = vld [vmem:[#allocation28_spill] sm:$0xff] }
 0x1d1   : > { %v2782_v41 = vadd.f32 %v2781_v27, %v2780_v47  ;;  %v2882_v29 = vadd.f32 %v2881_v55, %v2880_v10  ;;  %v7041_v21 = vpop.f32.mrf.mxu1  ;;  %7244 = vmatmul.mubr.msk.bf16.gmra.mxu1 %vm669_vm3, %v11352_v3  ;;  %v2526_v61 = vadd.f32 %v2459_v45, %v2294_v9  ;;  %v2318_v9 = vadd.f32 %v9157_v25, %v11354_v32 }
 0x1d2   : > { %v7008_v54 = vpop.f32.mrf.mxu0  ;;  %v2783_v16 = vsel %vm669_vm3, %v2735_v63, 0.0  ;;  %v2837_v13 = vmul.f32 %v2735_v63, %v2735_v63  ;;  %2940 = vst.msk [vmem:[#allocation2 + $0x188] sm:$0xff] %vm669_vm3, %v2735_v63  ;;  %v2740_v51 = vadd.f32 %v7041_v21, %v2528_v2  ;;  %7247 = vmatprep.mubr.msk.bf16.mxu1 %vm669_vm3, %v11353_v37  ;;  %v2887_v10 = vsel %vm669_vm3, %v2838_v35, 0.0 }
 0x1d3   : > { %v2884_v19 = vadd.f32 %v2883_v0, %v2882_v29  ;;  %v2784_v6 = vadd.f32 %v2783_v16, %v2782_v41  ;;  %v2671_v60 = vpop.f32.mrf.mxu1  ;;  %v2529_v7 = vadd.f32 %v7008_v54, %v2305_v49  ;;  %v2787_v23 = vsel %vm669_vm3, %v2737_v50, 0.0  ;;  %v11355_v49 = vld [vmem:[#allocation33_spill] sm:$0xff]  ;;  %v11356_v29 = vld [vmem:[#allocation34_spill] sm:$0xff] }
 0x1d4   : > { %v2462_v39 = vpop.f32.mrf.mxu0  ;;  %v2885_v15 = vsel %vm669_vm3, %v2837_v13, 0.0  ;;  %2945 = vst.msk [vmem:[#allocation2 + $0x1b0] sm:$0xff] %vm669_vm3, %v2740_v51  ;;  %v2738_v42 = vadd.f32 %v2671_v60, %v2526_v61  ;;  %v2310_v27 = vadd.f32 %v9167_v48, %v9155_v34  ;;  %v2321_v25 = vadd.f32 %v9171_v62, %v9161_v46  ;;  %v11357_v13 = vld [vmem:[#allocation48_spill] sm:$0xff] }
 0x1d5   : > { %v2786_v47 = vadd.f32 %v2785_v53, %v2784_v6  ;;  %v2886_v43 = vadd.f32 %v2885_v15, %v2884_v19  ;;  %v7042_v58 = vpop.f32.mrf.mxu1  ;;  %v2527_v5 = vadd.f32 %v2462_v39, %v2297_v38  ;;  %v2889_v50 = vsel %vm669_vm3, %v2839_v59, 0.0  ;;  %v11359_v59 = vld [vmem:[#allocation10_spill] sm:$0xff] }
 0x1d6   : > { %v7011_v55 = vpop.f32.mrf.mxu0  ;;  %7214 = vmatmul.mubr.msk.bf16.gmra.mxu0 %vm669_vm3, %v11355_v49  ;;  %v2840_v2 = vmul.f32 %v2738_v42, %v2738_v42  ;;  %2943 = vst.msk [vmem:[#allocation2 + $0x1a0] sm:$0xff] %vm669_vm3, %v2738_v42  ;;  %v2741_v45 = vadd.f32 %v7042_v58, %v2529_v7  ;;  %v2789_v61 = vsel %vm669_vm3, %v2738_v42, 0.0  ;;  %v2842_v16 = vmul.f32 %v2740_v51, %v2740_v51  ;;  %v11358_v7 = vld [vmem:[#allocation50_spill] sm:$0xff] }
 0x1d7   : > { %v2888_v63 = vadd.f32 %v2887_v10, %v2886_v43  ;;  %v2788_v35 = vadd.f32 %v2787_v23, %v2786_v47  ;;  %v2674_v41 = vpop.f32.mrf.mxu1  ;;  %7217 = vmatprep.mubr.msk.bf16.mxu0 %vm669_vm3, %v11356_v29  ;;  %v2532_v0 = vadd.f32 %v7011_v55, %v2318_v9  ;;  %v2313_v39 = vadd.f32 %v9179_v11, %v11359_v59  ;;  %v11361_v55 = vld [vmem:[#allocation6_spill] sm:$0xff] }
 0x1d8   : > { %v2475_v21 = vpop.f32.mrf.mxu0  ;;  %2946 = vst.msk [vmem:[#allocation2 + $0x1b8] sm:$0xff] %vm669_vm3, %v2741_v45  ;;  %v2739_v54 = vadd.f32 %v2674_v41, %v2527_v5  ;;  %v2891_v46 = vsel %vm669_vm3, %v2840_v2, 0.0  ;;  %v2793_v15 = vsel %vm669_vm3, %v2740_v51, 0.0  ;;  %v2843_v47 = vmul.f32 %v2741_v45, %v2741_v45  ;;  %v11360_v5 = vld [vmem:[#allocation20_spill] sm:$0xff] }
 0x1d9   : > { %v2790_v48 = vadd.f32 %v2789_v61, %v2788_v35  ;;  %v2890_v34 = vadd.f32 %v2889_v50, %v2888_v63  ;;  %v7045_v62 = vpop.f32.mrf.mxu1  ;;  %7248 = vmatmul.mubr.msk.bf16.gmra.mxu1 %vm669_vm3, %v11357_v13  ;;  %v2530_v38 = vadd.f32 %v2475_v21, %v2310_v27  ;;  %v2334_v2 = vadd.f32 %v11361_v55, %v11360_v5  ;;  %v11363_v61 = vld [vmem:[#allocation32_spill] sm:$0xff]  ;;  %v11368_v55 = vld [vmem:[#allocation54_spill] sm:$0xff] }
 0x1da   : > { %v7012_v53 = vpop.f32.mrf.mxu0  ;;  %v2791_v19 = vsel %vm669_vm3, %v2739_v54, 0.0  ;;  %v2841_v6 = vmul.f32 %v2739_v54, %v2739_v54  ;;  %2944 = vst.msk [vmem:[#allocation2 + $0x1a8] sm:$0xff] %vm669_vm3, %v2739_v54  ;;  %v2744_v60 = vadd.f32 %v7045_v62, %v2532_v0  ;;  %7251 = vmatprep.mubr.msk.bf16.mxu1 %vm669_vm3, %v11358_v7  ;;  %v2895_v27 = vsel %vm669_vm3, %v2842_v16, 0.0  ;;  %v11364_v54 = vld [vmem:[#allocation37_spill] sm:$0xff] }
 0x1db   : > { %v2892_v42 = vadd.f32 %v2891_v46, %v2890_v34  ;;  %v2792_v32 = vadd.f32 %v2791_v19, %v2790_v48  ;;  %v2687_v9 = vpop.f32.mrf.mxu1  ;;  %v2533_v10 = vadd.f32 %v7012_v53, %v2321_v25  ;;  %v2795_v51 = vsel %vm669_vm3, %v2741_v45, 0.0  ;;  %v11362_v25 = vld [vmem:[#allocation36_spill] sm:$0xff]  ;;  %v11366_v46 = vld [vmem:[#allocation14_spill] sm:$0xff] }
 0x1dc   : > { %v2478_v43 = vpop.f32.mrf.mxu0  ;;  %v2893_v58 = vsel %vm669_vm3, %v2841_v6, 0.0  ;;  %2949 = vst.msk [vmem:[#allocation2 + $0x1d0] sm:$0xff] %vm669_vm3, %v2744_v60  ;;  %v2742_v23 = vadd.f32 %v2687_v9, %v2530_v38  ;;  %v2326_v48 = vadd.f32 %v11364_v54, %v11363_v61  ;;  %v11365_v34 = vld [vmem:[#allocation4_spill] sm:$0xff]  ;;  %v2897_v45 = vsel %vm669_vm3, %v2843_v47, 0.0 }
 0x1dd   : > { %v2794_v63 = vadd.f32 %v2793_v15, %v2792_v32  ;;  %v2894_v11 = vadd.f32 %v2893_v58, %v2892_v42  ;;  %v7046_v35 = vpop.f32.mrf.mxu1  ;;  %v2531_v41 = vadd.f32 %v2478_v43, %v2313_v39  ;;  %v2337_v16 = vadd.f32 %v11366_v46, %v11365_v34  ;;  %v11367_v43 = vld [vmem:[#allocation52_spill] sm:$0xff] }
 0x1de   : > { %v7015_v50 = vpop.f32.mrf.mxu0  ;;  %7218 = vmatmul.mubr.msk.bf16.gmra.mxu0 %vm669_vm3, %v11362_v25  ;;  %v2844_v0 = vmul.f32 %v2742_v23, %v2742_v23  ;;  %2947 = vst.msk [vmem:[#allocation2 + $0x1c0] sm:$0xff] %vm669_vm3, %v2742_v23  ;;  %v2745_v21 = vadd.f32 %v7046_v35, %v2533_v10  ;;  %v2797_v59 = vsel %vm669_vm3, %v2742_v23, 0.0  ;;  %v2846_v15 = vmul.f32 %v2744_v60, %v2744_v60 }
 0x1df   : > { %v2896_v62 = vadd.f32 %v2895_v27, %v2894_v11  ;;  %v2796_v38 = vadd.f32 %v2795_v51, %v2794_v63  ;;  %v2690_v53 = vpop.f32.mrf.mxu1  ;;  %7257 = vmatprep.mubr.msk.bf16.mxu0 %vm669_vm3, %v7774_v4  ;;  %v2536_v19 = vadd.f32 %v7015_v50, %v2334_v2  ;;  %v11369_v2 = vld [vmem:[#allocation7_spill] sm:$0xff]  ;;  %v2801_v11 = vsel %vm669_vm3, %v2744_v60, 0.0 }
 0x1e0   : > { %v2491_v6 = vpop.f32.mrf.mxu0  ;;  %2950 = vst.msk [vmem:[#allocation2 + $0x1d8] sm:$0xff] %vm669_vm3, %v2745_v21  ;;  %v2743_v39 = vadd.f32 %v2690_v53, %v2531_v41  ;;  %v2899_v9 = vsel %vm669_vm3, %v2844_v0, 0.0  ;;  %v11370_v27 = vld [vmem:[#allocation43_spill] sm:$0xff]  ;;  %v2847_v0 = vmul.f32 %v2745_v21, %v2745_v21  ;;  %v2903_v34 = vsel %vm669_vm3, %v2846_v15, 0.0 }
 0x1e1   : > { %v2798_v42 = vadd.f32 %v2797_v59, %v2796_v38  ;;  %v2898_v32 = vadd.f32 %v2897_v45, %v2896_v62  ;;  %v7049_v10 = vpop.f32.mrf.mxu1  ;;  %7252 = vmatmul.mubr.msk.bf16.gmra.mxu1 %vm669_vm3, %v11367_v43  ;;  %v2534_v58 = vadd.f32 %v2491_v6, %v2326_v48  ;;  %v2329_v63 = vadd.f32 %v11370_v27, %v11369_v2  ;;  %v11371_v6 = vld [vmem:[#allocation22_spill] sm:$0xff] }
 0x1e2   : > { %v7016_v4 = vpop.f32.mrf.mxu0  ;;  %v2799_v47 = vsel %vm669_vm3, %v2743_v39, 0.0  ;;  %v2845_v5 = vmul.f32 %v2743_v39, %v2743_v39  ;;  %2948 = vst.msk [vmem:[#allocation2 + $0x1c8] sm:$0xff] %vm669_vm3, %v2743_v39  ;;  %v2748_v23 = vadd.f32 %v7049_v10, %v2536_v19  ;;  %7291 = vmatprep.mubr.msk.bf16.mxu1 %vm669_vm3, %v11368_v55  ;;  %v2803_v53 = vsel %vm669_vm3, %v2745_v21, 0.0  ;;  %v11372_v10 = vld [vmem:[#allocation40_spill] sm:$0xff] }
 0x1e3   : > { %v2900_v35 = vadd.f32 %v2899_v9, %v2898_v32  ;;  %v2800_v51 = vadd.f32 %v2799_v47, %v2798_v42  ;;  %v2703_v41 = vpop.f32.mrf.mxu1  ;;  %v2537_v50 = vadd.f32 %v7016_v4, %v2337_v16  ;;  %v1640_v59 = vrot.slane %v11371_v6, 4 }
 0x1e4   : > { %v2494_v61 = vpop.f32.mrf.mxu0  ;;  %v2901_v54 = vsel %vm669_vm3, %v2845_v5, 0.0  ;;  %2953 = vst.msk [vmem:[#allocation2 + $0x1f0] sm:$0xff] %vm669_vm3, %v2748_v23  ;;  %v2746_v48 = vadd.f32 %v2703_v41, %v2534_v58  ;;  %v2905_v21 = vsel %vm669_vm3, %v2847_v0, 0.0  ;;  %v1742_v58 = vrot.slane %v11372_v10, 4 }
 0x1e5   : > { %v2802_v46 = vadd.f32 %v2801_v11, %v2800_v51  ;;  %v2902_v62 = vadd.f32 %v2901_v54, %v2900_v35  ;;  %v7050_v38 = vpop.f32.mrf.mxu1  ;;  %v2535_v45 = vadd.f32 %v2494_v61, %v2329_v63  ;;  %v2850_v55 = vmul.f32 %v2748_v23, %v2748_v23 }
 0x1e6   : > { %v9416_v60 = vpop.f32.mrf.mxu0  ;;  %7258 = vmatmul.mubr.msk.bf16.vlgmr.msra.gmra.mxu0 %vm669_vm3, %v7806_v44  ;;  %v2848_v16 = vmul.f32 %v2746_v48, %v2746_v48  ;;  %2951 = vst.msk [vmem:[#allocation2 + $0x1e0] sm:$0xff] %vm669_vm3, %v2746_v48  ;;  %v2749_v19 = vadd.f32 %v7050_v38, %v2537_v50  ;;  %v2805_v9 = vsel %vm669_vm3, %v2746_v48, 0.0  ;;  %v1641_v11 = vadd.f32 %v1640_v59, %v11371_v6 }
 0x1e7   : > { %v2904_v39 = vadd.f32 %v2903_v34, %v2902_v62  ;;  %v2804_v42 = vadd.f32 %v2803_v53, %v2802_v46  ;;  %v2706_v15 = vpop.f32.mrf.mxu1  ;;  %7261 = vmatprep.mubr.msk.bf16.mxu0 %vm669_vm3, %v7834_v18  ;;  %v1743_v54 = vadd.f32 %v1742_v58, %v11372_v10 }
 0x1e8   : > { %v9425_v32 = vpop.f32.mrf.mxu0  ;;  %2954 = vst.msk [vmem:[#allocation2 + $0x1f8] sm:$0xff] %vm669_vm3, %v2749_v19  ;;  %v2747_v44 = vadd.f32 %v2706_v15, %v2535_v45  ;;  %v2907_v18 = vsel %vm669_vm3, %v2848_v16, 0.0  ;;  %v2851_v50 = vmul.f32 %v2749_v19, %v2749_v19  ;;  %v2811_v62 = vsel %vm669_vm3, %v2749_v19, 0.0 }
 0x1e9   : > { %v2806_v4 = vadd.f32 %v2805_v9, %v2804_v42  ;;  %v2906_v47 = vadd.f32 %v2905_v21, %v2904_v39  ;;  %v9430_v5 = vpop.f32.mrf.mxu1  ;;  %7292 = vmatmul.mubr.msk.bf16.vlgmr.msra.gmra.mxu1 %vm669_vm3, %v11329_v52  ;;  %v2809_v52 = vsel %vm669_vm3, %v2748_v23, 0.0  ;;  %v1642_v23 = vrot.slane %v1641_v11, 2 }
 0x1ea   : > { %v9435_v2 = vpop.f32.mrf.mxu0  ;;  %v2807_v27 = vsel %vm669_vm3, %v2747_v44, 0.0  ;;  %v2849_v63 = vmul.f32 %v2747_v44, %v2747_v44  ;;  %2952 = vst.msk [vmem:[#allocation2 + $0x1e8] sm:$0xff] %vm669_vm3, %v2747_v44  ;;  %7295 = vmatprep.mubr.msk.bf16.mxu1 %vm669_vm3, %v11330_v12  ;;  %v2911_v12 = vsel %vm669_vm3, %v2850_v55, 0.0  ;;  %v2913_v6 = vsel %vm669_vm3, %v2851_v50, 0.0 }
 0x1eb   : > { %v2908_v35 = vadd.f32 %v2907_v18, %v2906_v47  ;;  %v2808_v51 = vadd.f32 %v2807_v27, %v2806_v4  ;;  %v9442_v41 = vpop.f32.mrf.mxu1  ;;  %v1744_v39 = vrot.slane %v1743_v54, 2  ;;  %v1643_v21 = vadd.f32 %v1642_v23, %v1641_v11 }
 0x1ec   : > { %v9445_v0 = vpop.f32.mrf.mxu0  ;;  %v2909_v61 = vsel %vm669_vm3, %v2849_v63, 0.0 }
 0x1ed   : > { %v2810_v48 = vadd.f32 %v2809_v52, %v2808_v51  ;;  %v2910_v34 = vadd.f32 %v2909_v61, %v2908_v35  ;;  %v9449_v46 = vpop.f32.mrf.mxu1  ;;  %v1745_v58 = vadd.f32 %v1744_v39, %v1743_v54 }
 0x1ee   : > { %v9453_v38 = vpop.f32.mrf.mxu0  ;;  %7262 = vmatmul.mubr.msk.bf16.gmra.mxu0 %vm669_vm3, %v11195_v56 }
 0x1ef   : > { %v2812_v53 = vadd.f32 %v2811_v62, %v2810_v48  ;;  %v2912_v45 = vadd.f32 %v2911_v12, %v2910_v34  ;;  %v9457_v16 = vpop.f32.mrf.mxu1  ;;  %7265 = vmatprep.mubr.msk.bf16.mxu0 %vm669_vm3, %v11199_v33  ;;  %v1746_v35 = vrot.slane %v1745_v58, 1 }
 0x1f0   : > { %v9462_v59 = vpop.f32.mrf.mxu0 }
 0x1f1   : > { %v2813_v42 = vrot.slane %v2812_v53, 4  ;;  %v2914_v19 = vadd.f32 %v2913_v6, %v2912_v45  ;;  %v9464_v15 = vpop.f32.mrf.mxu1  ;;  %7296 = vmatmul.mubr.msk.bf16.gmra.mxu1 %vm669_vm3, %v11331_v57  ;;  %v1644_v57 = vrot.slane %v1643_v21, 1  ;;  %v1747_v12 = vadd.f32 %v1746_v35, %v1745_v58 }
 0x1f2   : > { %v9468_v56 = vpop.f32.mrf.mxu0  ;;  %7299 = vmatprep.mubr.msk.bf16.mxu1 %vm669_vm3, %v11332_v24 }
 0x1f3   : > { %v2814_v9 = vadd.f32 %v2813_v42, %v2812_v53  ;;  %v2915_v33 = vrot.slane %v2914_v19, 4  ;;  %v9472_v44 = vpop.f32.mrf.mxu1 }
 0x1f4   : > { %v9474_v10 = vpop.f32.mrf.mxu0 }
 0x1f5   : > { %v2815_v4 = vrot.slane %v2814_v9, 2  ;;  %v2916_v47 = vadd.f32 %v2915_v33, %v2914_v19  ;;  %v9476_v55 = vpop.f32.mrf.mxu1 }
 0x1f6   : > { %v9478_v18 = vpop.f32.mrf.mxu0  ;;  %7266 = vmatmul.mubr.msk.bf16.gmra.mxu0 %vm669_vm3, %v11208_v28  ;;  %v1645_v28 = vadd.f32 %v1644_v57, %v1643_v21 }
 0x1f7   : > { %v2816_v27 = vadd.f32 %v2815_v4, %v2814_v9  ;;  %v2917_v24 = vrot.slane %v2916_v47, 2  ;;  %v9482_v63 = vpop.f32.mrf.mxu1  ;;  %7269 = vmatprep.mubr.msk.bf16.mxu0 %vm669_vm3, %v11336_v30 }
 0x1f8   : > { %v9486_v11 = vpop.f32.mrf.mxu0 }
 0x1f9   : > { %v2817_v51 = vrot.slane %v2816_v27, 1  ;;  %v2918_v52 = vadd.f32 %v2917_v24, %v2916_v47  ;;  %v9488_v50 = vpop.f32.mrf.mxu1  ;;  %7300 = vmatmul.mubr.msk.bf16.gmra.mxu1 %vm669_vm3, %v11333_v8 }
 0x1fa   : > { %v9492_v61 = vpop.f32.mrf.mxu0  ;;  %7303 = vmatprep.mubr.msk.bf16.mxu1 %vm669_vm3, %v11334_v20 }
 0x1fb   : > { %v2818_v54 = vadd.f32 %v2817_v51, %v2816_v27  ;;  %v2919_v48 = vrot.slane %v2918_v52, 1  ;;  %v9496_v34 = vpop.f32.mrf.mxu1  ;;  %v7611_v27 = vld [vmem:[%s7672_s22 + $0xd0] sm:$0xf] }
 0x1fc   : > { %v9498_v30 = vpop.f32.mrf.mxu0 }
 0x1fd   : > { %v9500_v62 = vadd.f32 %v2818_v54, %v1645_v28  ;;  %v2920_v23 = vadd.f32 %v2919_v48, %v2918_v52  ;;  %v9502_v53 = vpop.f32.mrf.mxu1  ;;  %v7612_v52 = vld [vmem:[%s7672_s22 + $0xcc] sm:$0xf]  ;;  %v7613_v54 = vld [vmem:[%s7672_s22 + $0xd4] sm:$0x1]  ;;  %s7623_s22 = smov 8  }
 0x1fe   : > { %v9504_v45 = vpop.f32.mrf.mxu0  ;;  %7270 = vmatmul.mubr.msk.bf16.gmra.mxu0 %vm669_vm3, %v11337_v14  ;;  %v4462_v48 = vrot.slane %v7613_v54, 5 }
 0x1ff   : > { %11373 = vst [vmem:[#allocation8_spill] sm:$0xff] %v9500_v62  ;;  %v9508_v8 = vadd.f32 %v2920_v23, %v1747_v12  ;;  %v9510_v20 = vpop.f32.mrf.mxu1  ;;  %7273 = vmatprep.mubr.msk.bf16.mxu0 %vm669_vm3, %v11345_v26 }
 0x200   : > { %v9514_v6 = vpop.f32.mrf.mxu0 }
 0x201   : > { %11374 = vst [vmem:[#allocation11_spill] sm:$0xff] %v9508_v8  ;;  %v9516_v39 = vpop.f32.mrf.mxu1  ;;  %7304 = vmatmul.mubr.msk.bf16.gmra.mxu1 %vm669_vm3, %v11335_v22 }
 0x202   : > { %v9520_v42 = vpop.f32.mrf.mxu0  ;;  %7307 = vmatprep.mubr.msk.bf16.mxu1 %vm669_vm3, %v11342_v40 }
 0x203   : > { %v9524_v14 = vpop.f32.mrf.mxu1 }
 0x204   : > { %v9526_v19 = vpop.f32.mrf.mxu0 }
 0x205   : > { %v9528_v21 = vpop.f32.mrf.mxu1 }
 0x206   : > { %v9530_v9 = vpop.f32.mrf.mxu0  ;;  %7274 = vmatmul.mubr.msk.bf16.gmra.mxu0 %vm669_vm3, %v11346_v1 }
 0x207   : > { %v9534_v26 = vpop.f32.mrf.mxu1  ;;  %7277 = vmatprep.mubr.msk.bf16.mxu0 %vm669_vm3, %v11352_v3 }
 0x208   : > { %v9538_v22 = vpop.f32.mrf.mxu0 }
 0x209   : > { %v9540_v33 = vpop.f32.mrf.mxu1  ;;  %7308 = vmatmul.mubr.msk.bf16.gmra.mxu1 %vm669_vm3, %v11344_v36 }
 0x20a   : > { %v9544_v40 = vpop.f32.mrf.mxu0  ;;  %7311 = vmatprep.mubr.msk.bf16.mxu1 %vm669_vm3, %v11350_v31 }
 0x20b   : > { %v9548_v58 = vpop.f32.mrf.mxu1 }
 0x20c   : > { %v9550_v1 = vpop.f32.mrf.mxu0 }
 0x20d   : > { %v9552_v4 = vpop.f32.mrf.mxu1 }
 0x20e   : > { %v9554_v3 = vpop.f32.mrf.mxu0  ;;  %7278 = vmatmul.mubr.msk.bf16.gmra.mxu0 %vm669_vm3, %v11353_v37  ;;  %v4459_v37 = vrot.slane %v7611_v27, 5 }
 0x20f   : > { %v9558_v47 = vpop.f32.mrf.mxu1  ;;  %7281 = vmatprep.mubr.msk.bf16.mxu0 %vm669_vm3, %v11357_v13 }
 0x210   : > { %v9562_v36 = vpop.f32.mrf.mxu0  ;;  %v4461_v28 = vrot.slane %v4459_v37, 4 }
 0x211   : > { %v9564_v31 = vpop.f32.mrf.mxu1  ;;  %7312 = vmatmul.mubr.msk.bf16.gmra.mxu1 %vm669_vm3, %v11351_v17  ;;  %v6421_v17 = vrot.slane %v7612_v52, 9 }
 0x212   : > { %v9568_v57 = vpop.f32.mrf.mxu0  ;;  %7315 = vmatprep.mubr.msk.bf16.mxu1 %vm669_vm3, %v11355_v49  ;;  %v4463_v54 = vsel %vm8178_vm7, %v4461_v28, %v4462_v48 }
 0x213   : > { %v9573_v24 = vpop.f32.mrf.mxu1  ;;  %v4460_v52 = vsel %vm8178_vm7, %v6421_v17, %v4459_v37 }
 0x214   : > { %v9575_v35 = vpop.f32.mrf.mxu0 }
 0x215   : > { %v9577_v13 = vpop.f32.mrf.mxu1 }
 0x216   : > { %v9579_v51 = vpop.f32.mrf.mxu0  ;;  %7282 = vmatmul.mubr.msk.bf16.gmra.mxu0 %vm669_vm3, %v11358_v7 }
 0x217   : > { %v9585_v12 = vpop.f32.mrf.mxu1  ;;  %7285 = vmatprep.mubr.msk.bf16.mxu0 %vm669_vm3, %v11367_v43 }
 0x218   : > { %v9589_v49 = vpop.f32.mrf.mxu0 }
 0x219   : > { %11375 = vst [vmem:[#allocation47_spill] sm:$0xff] %v9589_v49  ;;  %v9591_v23 = vpop.f32.mrf.mxu1  ;;  %7316 = vmatmul.mubr.msk.bf16.gmra.mxu1 %vm669_vm3, %v11356_v29  ;;  %v6423_v49 = vcombine.low %v4460_v52, %v4463_v54  ;;  %v11382_v29 = vld [vmem:[#allocation18_spill] sm:$0xff]  ;;  %v3169_v52 = vadd.f32 %v9430_v5, %v9416_v60 }
 0x21a   : > { %11376 = vst [vmem:[#allocation12_spill] sm:$0xff] %v9591_v23  ;;  %v9595_v27 = vpop.f32.mrf.mxu0  ;;  %7319 = vmatprep.mubr.msk.bf16.mxu1 %vm669_vm3, %v11362_v25 }
 0x21b   : > { %11377 = vst [vmem:[#allocation15_spill] sm:$0xff] %v9595_v27  ;;  %v9603_v8 = vpop.f32.mrf.mxu1 }
 0x21c   : > { %v9605_v43 = vpop.f32.mrf.mxu0 }
 0x21d   : > { %11379 = vst [vmem:[#allocation62_spill] sm:$0xff] %v9605_v43  ;;  %v9607_v62 = vpop.f32.mrf.mxu1 }
 0x21e   : > { %11380 = vst [vmem:[#allocation49_spill] sm:$0xff] %v9607_v62  ;;  %v9609_v23 = vpop.f32.mrf.mxu0  ;;  %7286 = vmatmul.mubr.msk.bf16.gmra.mxu0 %vm669_vm3, %v11382_v29 }
 0x21f   : > { %11381 = vst [vmem:[#allocation60_spill] sm:$0xff] %v9609_v23  ;;  %v9613_v27 = vpop.f32.mrf.mxu1 }
 0x220   : > { %11383 = vst [vmem:[#allocation64_spill] sm:$0xff] %v9613_v27  ;;  %v9615_v25 = vpop.f32.mrf.mxu0 }
 0x221   : > { %11384 = vst [vmem:[#allocation61_spill] sm:$0xff] %v9615_v25  ;;  %v9617_v37 = vpop.f32.mrf.mxu1  ;;  %7320 = vmatmul.mubr.msk.bf16.gmra.mxu1 %vm669_vm3, %v6423_v49  ;;  %v3161_v25 = vadd.f32 %v9442_v41, %v9425_v32  ;;  %v3185_v32 = vadd.f32 %v9464_v15, %v9453_v38 }
 0x222   : > { %11385 = vst [vmem:[#allocation65_spill] sm:$0xff] %v9617_v37  ;;  %v9620_v17 = vpop.f32.mrf.mxu0 }
 0x223   : > { %11386 = vst [vmem:[#allocation3_spill] sm:$0xff] %v9620_v17  ;;  %v9622_v28 = vpop.f32.mrf.mxu1  ;;  %v3172_v17 = vadd.f32 %v9449_v46, %v9435_v2 }
 0x224   : > { %11387 = vst [vmem:[#allocation63_spill] sm:$0xff] %v9622_v28  ;;  %v9624_v48 = vpop.f32.mrf.mxu0 }
 0x225   : > { %11388 = vst [vmem:[#allocation66_spill] sm:$0xff] %v9624_v48  ;;  %v9626_v7 = vpop.f32.mrf.mxu1 }
 0x226   : > { %11389 = vst [vmem:[#allocation9_spill] sm:$0xff] %v9626_v7  ;;  %v7123_v54 = vpop.f32.mrf.mxu0  ;;  %v3164_v7 = vadd.f32 %v9457_v16, %v9445_v0 }
 0x227   : > { %v9630_v29 = vpop.f32.mrf.mxu1  ;;  %v3485_v37 = vadd.f32 %v7123_v54, %v3169_v52 }
 0x228   : > { %11390 = vst [vmem:[#allocation5_spill] sm:$0xff] %v9630_v29  ;;  %v3356_v23 = vpop.f32.mrf.mxu0 }
 0x229   : > { %v7157_v49 = vpop.f32.mrf.mxu1  ;;  %v3483_v28 = vadd.f32 %v3356_v23, %v3161_v25  ;;  %v3177_v25 = vadd.f32 %v9472_v44, %v9462_v59  ;;  %v3180_v44 = vadd.f32 %v9482_v63, %v9474_v10 }
 0x22a   : > { %v7124_v27 = vpop.f32.mrf.mxu0  ;;  %v3691_v48 = vadd.f32 %v7157_v49, %v3485_v37 }
 0x22b   : > { %v3562_v43 = vpop.f32.mrf.mxu1  ;;  %v3486_v60 = vadd.f32 %v7124_v27, %v3172_v17 }
 0x22c   : > { %v3359_v5 = vpop.f32.mrf.mxu0  ;;  %3896 = vst.msk [vmem:[#allocation2 + $0x210] sm:$0xff] %vm669_vm3, %v3691_v48  ;;  %v3689_v29 = vadd.f32 %v3562_v43, %v3483_v28  ;;  %v3188_v43 = vadd.f32 %v9476_v55, %v9468_v56  ;;  %v3793_v37 = vmul.f32 %v3691_v48, %v3691_v48  ;;  %v3724_v54 = vsel %vm669_vm3, %v3691_v48, 0.0 }
 0x22d   : > { %v7158_v62 = vpop.f32.mrf.mxu1  ;;  %v3484_v41 = vadd.f32 %v3359_v5, %v3164_v7 }
 0x22e   : > { %v7127_v52 = vpop.f32.mrf.mxu0  ;;  %3894 = vst.msk [vmem:[#allocation2 + $0x200] sm:$0xff] %vm669_vm3, %v3689_v29  ;;  %v3692_v2 = vadd.f32 %v7158_v62, %v3486_v60  ;;  %v3791_v46 = vmul.f32 %v3689_v29, %v3689_v29  ;;  %v3721_v38 = vsel %vm669_vm3, %v3689_v29, 0.0 }
 0x22f   : > { %v3565_v23 = vpop.f32.mrf.mxu1  ;;  %v3489_v0 = vadd.f32 %v7127_v52, %v3185_v32  ;;  %v3201_v52 = vadd.f32 %v9488_v50, %v9478_v18 }
 0x230   : > { %v3372_v16 = vpop.f32.mrf.mxu0  ;;  %3897 = vst.msk [vmem:[#allocation2 + $0x218] sm:$0xff] %vm669_vm3, %v3692_v2  ;;  %v3690_v27 = vadd.f32 %v3565_v23, %v3484_v41  ;;  %v3823_v49 = vsel %vm669_vm3, %v3791_v46, 0.0  ;;  %v3794_v29 = vmul.f32 %v3692_v2, %v3692_v2  ;;  %v3826_v23 = vsel %vm669_vm3, %v3793_v37, 0.0 }
 0x231   : > { %v7161_v15 = vpop.f32.mrf.mxu1  ;;  %v3487_v17 = vadd.f32 %v3372_v16, %v3177_v25  ;;  %v3726_v46 = vsel %vm669_vm3, %v3692_v2, 0.0 }
 0x232   : > { %v7128_v28 = vpop.f32.mrf.mxu0  ;;  %v3722_v62 = vsel %vm669_vm3, %v3690_v27, 0.0  ;;  %v3792_v7 = vmul.f32 %v3690_v27, %v3690_v27  ;;  %3895 = vst.msk [vmem:[#allocation2 + $0x208] sm:$0xff] %vm669_vm3, %v3690_v27  ;;  %v3695_v59 = vadd.f32 %v7161_v15, %v3489_v0  ;;  %v3828_v15 = vsel %vm669_vm3, %v3794_v29, 0.0 }
 0x233   : > { %v3723_v56 = vadd.f32 %v3722_v62, %v3721_v38  ;;  %v3578_v55 = vpop.f32.mrf.mxu1  ;;  %v3490_v60 = vadd.f32 %v7128_v28, %v3188_v43  ;;  %v3193_v43 = vadd.f32 %v9496_v34, %v9486_v11  ;;  %v3204_v38 = vadd.f32 %v9502_v53, %v9492_v61 }
 0x234   : > { %v3375_v5 = vpop.f32.mrf.mxu0  ;;  %v3824_v32 = vsel %vm669_vm3, %v3792_v7, 0.0  ;;  %3900 = vst.msk [vmem:[#allocation2 + $0x230] sm:$0xff] %vm669_vm3, %v3695_v59  ;;  %v3693_v41 = vadd.f32 %v3578_v55, %v3487_v17  ;;  %v3797_v7 = vmul.f32 %v3695_v59, %v3695_v59  ;;  %v3732_v29 = vsel %vm669_vm3, %v3695_v59, 0.0 }
 0x235   : > { %v3725_v10 = vadd.f32 %v3724_v54, %v3723_v56  ;;  %v3825_v63 = vadd.f32 %v3824_v32, %v3823_v49  ;;  %v7162_v48 = vpop.f32.mrf.mxu1  ;;  %v3488_v25 = vadd.f32 %v3375_v5, %v3180_v44 }
 0x236   : > { %v7131_v0 = vpop.f32.mrf.mxu0  ;;  %v3795_v16 = vmul.f32 %v3693_v41, %v3693_v41  ;;  %3898 = vst.msk [vmem:[#allocation2 + $0x220] sm:$0xff] %vm669_vm3, %v3693_v41  ;;  %v3696_v27 = vadd.f32 %v7162_v48, %v3490_v60  ;;  %v3728_v2 = vsel %vm669_vm3, %v3693_v41, 0.0  ;;  %v3196_v60 = vadd.f32 %v9510_v20, %v9498_v30 }
 0x237   : > { %v3827_v18 = vadd.f32 %v3826_v23, %v3825_v63  ;;  %v3727_v50 = vadd.f32 %v3726_v46, %v3725_v10  ;;  %v3581_v37 = vpop.f32.mrf.mxu1  ;;  %v3493_v17 = vadd.f32 %v7131_v0, %v3201_v52  ;;  %v3217_v46 = vadd.f32 %v9516_v39, %v9504_v45 }
 0x238   : > { %v3388_v28 = vpop.f32.mrf.mxu0  ;;  %3901 = vst.msk [vmem:[#allocation2 + $0x238] sm:$0xff] %vm669_vm3, %v3696_v27  ;;  %v3694_v62 = vadd.f32 %v3581_v37, %v3488_v25  ;;  %v3830_v11 = vsel %vm669_vm3, %v3795_v16, 0.0  ;;  %v3798_v23 = vmul.f32 %v3696_v27, %v3696_v27  ;;  %v3834_v25 = vsel %vm669_vm3, %v3797_v7, 0.0 }
 0x239   : > { %v3729_v44 = vadd.f32 %v3728_v2, %v3727_v50  ;;  %v3829_v54 = vadd.f32 %v3828_v15, %v3827_v18  ;;  %v7165_v34 = vpop.f32.mrf.mxu1  ;;  %v3491_v49 = vadd.f32 %v3388_v28, %v3193_v43  ;;  %v3734_v59 = vsel %vm669_vm3, %v3696_v27, 0.0 }
 0x23a   : > { %v7132_v61 = vpop.f32.mrf.mxu0  ;;  %v3730_v53 = vsel %vm669_vm3, %v3694_v62, 0.0  ;;  %v3796_v56 = vmul.f32 %v3694_v62, %v3694_v62  ;;  %3899 = vst.msk [vmem:[#allocation2 + $0x228] sm:$0xff] %vm669_vm3, %v3694_v62  ;;  %v3699_v55 = vadd.f32 %v7165_v34, %v3493_v17  ;;  %v3209_v50 = vadd.f32 %v9524_v14, %v9514_v6 }
 0x23b   : > { %v3831_v5 = vadd.f32 %v3830_v11, %v3829_v54  ;;  %v3731_v32 = vadd.f32 %v3730_v53, %v3729_v44  ;;  %v3594_v41 = vpop.f32.mrf.mxu1  ;;  %v3494_v52 = vadd.f32 %v7132_v61, %v3204_v38  ;;  %v3220_v37 = vadd.f32 %v9528_v21, %v9520_v42 }
 0x23c   : > { %v3391_v10 = vpop.f32.mrf.mxu0  ;;  %v3832_v63 = vsel %vm669_vm3, %v3796_v56, 0.0  ;;  %3904 = vst.msk [vmem:[#allocation2 + $0x250] sm:$0xff] %vm669_vm3, %v3699_v55  ;;  %v3697_v48 = vadd.f32 %v3594_v41, %v3491_v49  ;;  %v3836_v17 = vsel %vm669_vm3, %v3798_v23, 0.0  ;;  %v3801_v7 = vmul.f32 %v3699_v55, %v3699_v55 }
 0x23d   : > { %v3733_v0 = vadd.f32 %v3732_v29, %v3731_v32  ;;  %v3833_v30 = vadd.f32 %v3832_v63, %v3831_v5  ;;  %v7166_v20 = vpop.f32.mrf.mxu1  ;;  %v3492_v16 = vadd.f32 %v3391_v10, %v3196_v60  ;;  %v3212_v61 = vadd.f32 %v9534_v26, %v9526_v19 }
 0x23e   : > { %v7135_v43 = vpop.f32.mrf.mxu0  ;;  %v3799_v38 = vmul.f32 %v3697_v48, %v3697_v48  ;;  %3902 = vst.msk [vmem:[#allocation2 + $0x240] sm:$0xff] %vm669_vm3, %v3697_v48  ;;  %v3700_v18 = vadd.f32 %v7166_v20, %v3494_v52  ;;  %v3736_v27 = vsel %vm669_vm3, %v3697_v48, 0.0  ;;  %v3740_v53 = vsel %vm669_vm3, %v3699_v55, 0.0 }
 0x23f   : > { %v3835_v45 = vadd.f32 %v3834_v25, %v3833_v30  ;;  %v3735_v39 = vadd.f32 %v3734_v59, %v3733_v0  ;;  %v3597_v15 = vpop.f32.mrf.mxu1  ;;  %v3497_v28 = vadd.f32 %v7135_v43, %v3217_v46  ;;  %v3233_v10 = vadd.f32 %v9540_v33, %v9530_v9 }
 0x240   : > { %v3404_v2 = vpop.f32.mrf.mxu0  ;;  %3905 = vst.msk [vmem:[#allocation2 + $0x258] sm:$0xff] %vm669_vm3, %v3700_v18  ;;  %v3698_v62 = vadd.f32 %v3597_v15, %v3492_v16  ;;  %v3838_v6 = vsel %vm669_vm3, %v3799_v38, 0.0  ;;  %v3802_v32 = vmul.f32 %v3700_v18, %v3700_v18  ;;  %v3842_v63 = vsel %vm669_vm3, %v3801_v7, 0.0 }
 0x241   : > { %v3737_v44 = vadd.f32 %v3736_v27, %v3735_v39  ;;  %v3837_v54 = vadd.f32 %v3836_v17, %v3835_v45  ;;  %v7169_v14 = vpop.f32.mrf.mxu1  ;;  %v3495_v11 = vadd.f32 %v3404_v2, %v3209_v50  ;;  %v3742_v55 = vsel %vm669_vm3, %v3700_v18, 0.0 }
 0x242   : > { %v7136_v42 = vpop.f32.mrf.mxu0  ;;  %v3738_v21 = vsel %vm669_vm3, %v3698_v62, 0.0  ;;  %v3800_v34 = vmul.f32 %v3698_v62, %v3698_v62  ;;  %3903 = vst.msk [vmem:[#allocation2 + $0x248] sm:$0xff] %vm669_vm3, %v3698_v62  ;;  %v3703_v49 = vadd.f32 %v7169_v14, %v3497_v28  ;;  %v3225_v20 = vadd.f32 %v9548_v58, %v9538_v22 }
 0x243   : > { %v3839_v56 = vadd.f32 %v3838_v6, %v3837_v54  ;;  %v3739_v60 = vadd.f32 %v3738_v21, %v3737_v44  ;;  %v3610_v29 = vpop.f32.mrf.mxu1  ;;  %v3498_v5 = vadd.f32 %v7136_v42, %v3220_v37  ;;  %v3236_v59 = vadd.f32 %v9552_v4, %v9544_v40 }
 0x244   : > { %v3407_v41 = vpop.f32.mrf.mxu0  ;;  %v3840_v52 = vsel %vm669_vm3, %v3800_v34, 0.0  ;;  %3908 = vst.msk [vmem:[#allocation2 + $0x270] sm:$0xff] %vm669_vm3, %v3703_v49  ;;  %v3701_v23 = vadd.f32 %v3610_v29, %v3495_v11  ;;  %v3844_v43 = vsel %vm669_vm3, %v3802_v32, 0.0  ;;  %v3805_v45 = vmul.f32 %v3703_v49, %v3703_v49 }
 0x245   : > { %v3741_v48 = vadd.f32 %v3740_v53, %v3739_v60  ;;  %v3841_v19 = vadd.f32 %v3840_v52, %v3839_v56  ;;  %v7170_v26 = vpop.f32.mrf.mxu1  ;;  %v3496_v46 = vadd.f32 %v3407_v41, %v3212_v61  ;;  %v3228_v27 = vadd.f32 %v9558_v47, %v9550_v1 }
 0x246   : > { %v7139_v25 = vpop.f32.mrf.mxu0  ;;  %v3803_v0 = vmul.f32 %v3701_v23, %v3701_v23  ;;  %3906 = vst.msk [vmem:[#allocation2 + $0x260] sm:$0xff] %vm669_vm3, %v3701_v23  ;;  %v3704_v30 = vadd.f32 %v7170_v26, %v3498_v5  ;;  %v3744_v18 = vsel %vm669_vm3, %v3701_v23, 0.0  ;;  %v3748_v62 = vsel %vm669_vm3, %v3703_v49, 0.0 }
 0x247   : > { %v3843_v9 = vadd.f32 %v3842_v63, %v3841_v19  ;;  %v3743_v33 = vadd.f32 %v3742_v55, %v3741_v48  ;;  %v3613_v16 = vpop.f32.mrf.mxu1  ;;  %v3501_v38 = vadd.f32 %v7139_v25, %v3233_v10  ;;  %v3249_v34 = vadd.f32 %v9564_v31, %v9554_v3 }
 0x248   : > { %v3420_v50 = vpop.f32.mrf.mxu0  ;;  %3909 = vst.msk [vmem:[#allocation2 + $0x278] sm:$0xff] %vm669_vm3, %v3704_v30  ;;  %v3702_v37 = vadd.f32 %v3613_v16, %v3496_v46  ;;  %v3846_v22 = vsel %vm669_vm3, %v3803_v0, 0.0  ;;  %v3806_v14 = vmul.f32 %v3704_v30, %v3704_v30  ;;  %v3850_v61 = vsel %vm669_vm3, %v3805_v45, 0.0  ;;  %v11391_v45 = vld [vmem:[#allocation12_spill] sm:$0xff] }
 0x249   : > { %v3745_v39 = vadd.f32 %v3744_v18, %v3743_v33  ;;  %v3845_v15 = vadd.f32 %v3844_v43, %v3843_v9  ;;  %v7173_v58 = vpop.f32.mrf.mxu1  ;;  %v3499_v17 = vadd.f32 %v3420_v50, %v3225_v20  ;;  %v3750_v49 = vsel %vm669_vm3, %v3704_v30, 0.0 }
 0x24a   : > { %v7140_v40 = vpop.f32.mrf.mxu0  ;;  %v3746_v4 = vsel %vm669_vm3, %v3702_v37, 0.0  ;;  %v3804_v28 = vmul.f32 %v3702_v37, %v3702_v37  ;;  %3907 = vst.msk [vmem:[#allocation2 + $0x268] sm:$0xff] %vm669_vm3, %v3702_v37  ;;  %v3707_v2 = vadd.f32 %v7173_v58, %v3501_v38  ;;  %v3241_v32 = vadd.f32 %v9573_v24, %v9562_v36 }
 0x24b   : > { %v3847_v7 = vadd.f32 %v3846_v22, %v3845_v15  ;;  %v3747_v44 = vadd.f32 %v3746_v4, %v3745_v39  ;;  %v3626_v54 = vpop.f32.mrf.mxu1  ;;  %v3502_v6 = vadd.f32 %v7140_v40, %v3236_v59  ;;  %v3252_v41 = vadd.f32 %v9577_v13, %v9568_v57 }
 0x24c   : > { %v3423_v11 = vpop.f32.mrf.mxu0  ;;  %v3848_v42 = vsel %vm669_vm3, %v3804_v28, 0.0  ;;  %3912 = vst.msk [vmem:[#allocation2 + $0x290] sm:$0xff] %vm669_vm3, %v3707_v2  ;;  %v3705_v21 = vadd.f32 %v3626_v54, %v3499_v17  ;;  %v3852_v23 = vsel %vm669_vm3, %v3806_v14, 0.0  ;;  %v3809_v26 = vmul.f32 %v3707_v2, %v3707_v2 }
 0x24d   : > { %v3749_v53 = vadd.f32 %v3748_v62, %v3747_v44  ;;  %v3849_v1 = vadd.f32 %v3848_v42, %v3847_v7  ;;  %v7174_v47 = vpop.f32.mrf.mxu1  ;;  %v3500_v56 = vadd.f32 %v3423_v11, %v3228_v27  ;;  %v3244_v20 = vadd.f32 %v9585_v12, %v9575_v35  ;;  %v11393_v62 = vld [vmem:[#allocation15_spill] sm:$0xff]  ;;  %v11394_v7 = vld [vmem:[#allocation49_spill] sm:$0xff] }
 0x24e   : > { %v7143_v60 = vpop.f32.mrf.mxu0  ;;  %v3807_v29 = vmul.f32 %v3705_v21, %v3705_v21  ;;  %3910 = vst.msk [vmem:[#allocation2 + $0x280] sm:$0xff] %vm669_vm3, %v3705_v21  ;;  %v3708_v5 = vadd.f32 %v7174_v47, %v3502_v6  ;;  %v3752_v48 = vsel %vm669_vm3, %v3705_v21, 0.0  ;;  %v3756_v59 = vsel %vm669_vm3, %v3707_v2, 0.0  ;;  %v11392_v2 = vld [vmem:[#allocation47_spill] sm:$0xff] }
 0x24f   : > { %v3851_v3 = vadd.f32 %v3850_v61, %v3849_v1  ;;  %v3751_v31 = vadd.f32 %v3750_v49, %v3749_v53  ;;  %v3629_v52 = vpop.f32.mrf.mxu1  ;;  %v3505_v10 = vadd.f32 %v7143_v60, %v3249_v34  ;;  %v3265_v39 = vadd.f32 %v11391_v45, %v9579_v51 }
 0x250   : > { %v3436_v63 = vpop.f32.mrf.mxu0  ;;  %3913 = vst.msk [vmem:[#allocation2 + $0x298] sm:$0xff] %vm669_vm3, %v3708_v5  ;;  %v3706_v19 = vadd.f32 %v3629_v52, %v3500_v56  ;;  %v3854_v36 = vsel %vm669_vm3, %v3807_v29, 0.0  ;;  %v3810_v38 = vmul.f32 %v3708_v5, %v3708_v5  ;;  %v3858_v15 = vsel %vm669_vm3, %v3809_v26, 0.0 }
 0x251   : > { %v3753_v55 = vadd.f32 %v3752_v48, %v3751_v31  ;;  %v3853_v46 = vadd.f32 %v3852_v23, %v3851_v3  ;;  %v7177_v24 = vpop.f32.mrf.mxu1  ;;  %v3503_v25 = vadd.f32 %v3436_v63, %v3241_v32  ;;  %v3758_v58 = vsel %vm669_vm3, %v3708_v5, 0.0  ;;  %v11395_v32 = vld [vmem:[#allocation62_spill] sm:$0xff] }
 0x252   : > { %v7144_v57 = vpop.f32.mrf.mxu0  ;;  %v3754_v13 = vsel %vm669_vm3, %v3706_v19, 0.0  ;;  %v3808_v0 = vmul.f32 %v3706_v19, %v3706_v19  ;;  %3911 = vst.msk [vmem:[#allocation2 + $0x288] sm:$0xff] %vm669_vm3, %v3706_v19  ;;  %v3711_v30 = vadd.f32 %v7177_v24, %v3505_v10  ;;  %v3257_v27 = vadd.f32 %v9603_v8, %v11392_v2 }
 0x253   : > { %v3855_v9 = vadd.f32 %v3854_v36, %v3853_v46  ;;  %v3755_v33 = vadd.f32 %v3754_v13, %v3753_v55  ;;  %v3642_v16 = vpop.f32.mrf.mxu1  ;;  %v3506_v43 = vadd.f32 %v7144_v57, %v3252_v41  ;;  %v3268_v44 = vadd.f32 %v11394_v7, %v11393_v62  ;;  %v11396_v41 = vld [vmem:[#allocation64_spill] sm:$0xff]  ;;  %v11398_v36 = vld [vmem:[#allocation65_spill] sm:$0xff] }
 0x254   : > { %v3439_v50 = vpop.f32.mrf.mxu0  ;;  %v3856_v18 = vsel %vm669_vm3, %v3808_v0, 0.0  ;;  %3916 = vst.msk [vmem:[#allocation2 + $0x2b0] sm:$0xff] %vm669_vm3, %v3711_v30  ;;  %v3709_v37 = vadd.f32 %v3642_v16, %v3503_v25  ;;  %v3860_v14 = vsel %vm669_vm3, %v3810_v38, 0.0  ;;  %v3813_v61 = vmul.f32 %v3711_v30, %v3711_v30  ;;  %v11397_v46 = vld [vmem:[#allocation60_spill] sm:$0xff]  ;;  %v11399_v16 = vld [vmem:[#allocation61_spill] sm:$0xff] }
 0x255   : > { %v3757_v22 = vadd.f32 %v3756_v59, %v3755_v33  ;;  %v3857_v35 = vadd.f32 %v3856_v18, %v3855_v9  ;;  %v7178_v12 = vpop.f32.mrf.mxu1  ;;  %v3504_v17 = vadd.f32 %v3439_v50, %v3244_v20  ;;  %v3260_v3 = vadd.f32 %v11396_v41, %v11395_v32  ;;  %v11401_v50 = vld [vmem:[#allocation3_spill] sm:$0xff]  ;;  %v11402_v18 = vld [vmem:[#allocation9_spill] sm:$0xff] }
 0x256   : > { %v7147_v40 = vpop.f32.mrf.mxu0  ;;  %v3811_v4 = vmul.f32 %v3709_v37, %v3709_v37  ;;  %3914 = vst.msk [vmem:[#allocation2 + $0x2a0] sm:$0xff] %vm669_vm3, %v3709_v37  ;;  %v3712_v28 = vadd.f32 %v7178_v12, %v3506_v43  ;;  %v3760_v21 = vsel %vm669_vm3, %v3709_v37, 0.0  ;;  %v3764_v31 = vsel %vm669_vm3, %v3711_v30, 0.0  ;;  %v11400_v43 = vld [vmem:[#allocation63_spill] sm:$0xff] }
 0x257   : > { %v3859_v51 = vadd.f32 %v3858_v15, %v3857_v35  ;;  %v3759_v54 = vadd.f32 %v3758_v58, %v3757_v22  ;;  %v3645_v6 = vpop.f32.mrf.mxu1  ;;  %v3509_v11 = vadd.f32 %v7147_v40, %v3265_v39  ;;  %v3281_v24 = vadd.f32 %v11398_v36, %v11397_v46 }
 0x258   : > { %v3452_v42 = vpop.f32.mrf.mxu0  ;;  %3917 = vst.msk [vmem:[#allocation2 + $0x2b8] sm:$0xff] %vm669_vm3, %v3712_v28  ;;  %v3710_v34 = vadd.f32 %v3645_v6, %v3504_v17  ;;  %v3862_v8 = vsel %vm669_vm3, %v3811_v4, 0.0  ;;  %v3814_v48 = vmul.f32 %v3712_v28, %v3712_v28  ;;  %v3866_v25 = vsel %vm669_vm3, %v3813_v61, 0.0  ;;  %v11403_v6 = vld [vmem:[#allocation66_spill] sm:$0xff] }
 0x259   : > { %v3761_v53 = vadd.f32 %v3760_v21, %v3759_v54  ;;  %v3861_v1 = vadd.f32 %v3860_v14, %v3859_v51  ;;  %v7181_v47 = vpop.f32.mrf.mxu1  ;;  %v3507_v49 = vadd.f32 %v3452_v42, %v3257_v27  ;;  %v3766_v30 = vsel %vm669_vm3, %v3712_v28, 0.0  ;;  %v11404_v14 = vld [vmem:[#allocation5_spill] sm:$0xff] }
 0x25a   : > { %v7148_v56 = vpop.f32.mrf.mxu0  ;;  %v3762_v60 = vsel %vm669_vm3, %v3710_v34, 0.0  ;;  %v3812_v29 = vmul.f32 %v3710_v34, %v3710_v34  ;;  %3915 = vst.msk [vmem:[#allocation2 + $0x2a8] sm:$0xff] %vm669_vm3, %v3710_v34  ;;  %v3715_v5 = vadd.f32 %v7181_v47, %v3509_v11  ;;  %v3273_v38 = vadd.f32 %v11400_v43, %v11399_v16 }
 0x25b   : > { %v3863_v52 = vadd.f32 %v3862_v8, %v3861_v1  ;;  %v3763_v23 = vadd.f32 %v3762_v60, %v3761_v53  ;;  %v3658_v10 = vpop.f32.mrf.mxu1  ;;  %v3510_v63 = vadd.f32 %v7148_v56, %v3268_v44  ;;  %v3284_v37 = vadd.f32 %v11402_v18, %v11401_v50 }
 0x25c   : > { %v3455_v19 = vpop.f32.mrf.mxu0  ;;  %v3864_v26 = vsel %vm669_vm3, %v3812_v29, 0.0  ;;  %3920 = vst.msk [vmem:[#allocation2 + $0x2d0] sm:$0xff] %vm669_vm3, %v3715_v5  ;;  %v3713_v55 = vadd.f32 %v3658_v10, %v3507_v49  ;;  %v3868_v22 = vsel %vm669_vm3, %v3814_v48, 0.0  ;;  %v3817_v40 = vmul.f32 %v3715_v5, %v3715_v5 }
 0x25d   : > { %v3765_v57 = vadd.f32 %v3764_v31, %v3763_v23  ;;  %v3865_v13 = vadd.f32 %v3864_v26, %v3863_v52  ;;  %v7182_v0 = vpop.f32.mrf.mxu1  ;;  %v3508_v20 = vadd.f32 %v3455_v19, %v3260_v3  ;;  %v3276_v11 = vadd.f32 %v11404_v14, %v11403_v6 }
 0x25e   : > { %v7151_v59 = vpop.f32.mrf.mxu0  ;;  %v3815_v9 = vmul.f32 %v3713_v55, %v3713_v55  ;;  %3918 = vst.msk [vmem:[#allocation2 + $0x2c0] sm:$0xff] %vm669_vm3, %v3713_v55  ;;  %v3716_v33 = vadd.f32 %v7182_v0, %v3510_v63  ;;  %v3768_v58 = vsel %vm669_vm3, %v3713_v55, 0.0  ;;  %v3772_v42 = vsel %vm669_vm3, %v3715_v5, 0.0 }
 0x25f   : > { %v3867_v45 = vadd.f32 %v3866_v25, %v3865_v13  ;;  %v3767_v39 = vadd.f32 %v3766_v30, %v3765_v57  ;;  %v3661_v15 = vpop.f32.mrf.mxu1  ;;  %v3513_v35 = vadd.f32 %v7151_v59, %v3281_v24  ;;  %v3874_v56 = vsel %vm669_vm3, %v3817_v40, 0.0 }
 0x260   : > { %v3468_v12 = vpop.f32.mrf.mxu0  ;;  %3921 = vst.msk [vmem:[#allocation2 + $0x2d8] sm:$0xff] %vm669_vm3, %v3716_v33  ;;  %v3714_v17 = vadd.f32 %v3661_v15, %v3508_v20  ;;  %v3870_v2 = vsel %vm669_vm3, %v3815_v9, 0.0  ;;  %v3818_v1 = vmul.f32 %v3716_v33, %v3716_v33  ;;  %v3774_v41 = vsel %vm669_vm3, %v3716_v33, 0.0 }
 0x261   : > { %v3769_v4 = vadd.f32 %v3768_v58, %v3767_v39  ;;  %v3869_v28 = vadd.f32 %v3868_v22, %v3867_v45  ;;  %v7185_v27 = vpop.f32.mrf.mxu1  ;;  %v3511_v62 = vadd.f32 %v3468_v12, %v3273_v38 }
 0x262   : > { %v7152_v7 = vpop.f32.mrf.mxu0  ;;  %v3770_v44 = vsel %vm669_vm3, %v3714_v17, 0.0  ;;  %v3816_v51 = vmul.f32 %v3714_v17, %v3714_v17  ;;  %3919 = vst.msk [vmem:[#allocation2 + $0x2c8] sm:$0xff] %vm669_vm3, %v3714_v17  ;;  %v3719_v54 = vadd.f32 %v7185_v27, %v3513_v35  ;;  %v3876_v48 = vsel %vm669_vm3, %v3818_v1, 0.0 }
 0x263   : > { %v3871_v21 = vadd.f32 %v3870_v2, %v3869_v28  ;;  %v3771_v34 = vadd.f32 %v3770_v44, %v3769_v4  ;;  %v3674_v61 = vpop.f32.mrf.mxu1  ;;  %v3514_v53 = vadd.f32 %v7152_v7, %v3284_v37 }
 0x264   : > { %v3471_v8 = vpop.f32.mrf.mxu0  ;;  %v3872_v47 = vsel %vm669_vm3, %v3816_v51, 0.0  ;;  %3924 = vst.msk [vmem:[#allocation2 + $0x2f0] sm:$0xff] %vm669_vm3, %v3719_v54  ;;  %v3717_v49 = vadd.f32 %v3674_v61, %v3511_v62  ;;  %v3821_v25 = vmul.f32 %v3719_v54, %v3719_v54  ;;  %v3780_v33 = vsel %vm669_vm3, %v3719_v54, 0.0 }
 0x265   : > { %v3773_v60 = vadd.f32 %v3772_v42, %v3771_v34  ;;  %v3873_v29 = vadd.f32 %v3872_v47, %v3871_v21  ;;  %v7186_v32 = vpop.f32.mrf.mxu1  ;;  %v3512_v3 = vadd.f32 %v3471_v8, %v3276_v11 }
 0x266   : > { %v9778_v5 = vpop.f32.mrf.mxu0  ;;  %v3819_v31 = vmul.f32 %v3717_v49, %v3717_v49  ;;  %3922 = vst.msk [vmem:[#allocation2 + $0x2e0] sm:$0xff] %vm669_vm3, %v3717_v49  ;;  %v3720_v52 = vadd.f32 %v7186_v32, %v3514_v53  ;;  %v3776_v26 = vsel %vm669_vm3, %v3717_v49, 0.0  ;;  %v3882_v45 = vsel %vm669_vm3, %v3821_v25, 0.0 }
 0x267   : > { %v3875_v23 = vadd.f32 %v3874_v56, %v3873_v29  ;;  %v3775_v10 = vadd.f32 %v3774_v41, %v3773_v60  ;;  %v3677_v63 = vpop.f32.mrf.mxu1  ;;  %v11405_v29 = vld [vmem:[#allocation8_spill] sm:$0xff] }
 0x268   : > { %v9782_v19 = vpop.f32.mrf.mxu0  ;;  %3925 = vst.msk [vmem:[#allocation2 + $0x2f8] sm:$0xff] %vm669_vm3, %v3720_v52  ;;  %v3718_v55 = vadd.f32 %v3677_v63, %v3512_v3  ;;  %v3878_v57 = vsel %vm669_vm3, %v3819_v31, 0.0  ;;  %v3822_v16 = vmul.f32 %v3720_v52, %v3720_v52  ;;  %v3782_v39 = vsel %vm669_vm3, %v3720_v52, 0.0  ;;  %v11407_v52 = vld [vmem:[#allocation11_spill] sm:$0xff] }
 0x269   : > { %v3777_v46 = vadd.f32 %v3776_v26, %v3775_v10  ;;  %v3877_v36 = vadd.f32 %v3876_v48, %v3875_v23  ;;  %v9786_v24 = vpop.f32.mrf.mxu1 }
 0x26a   : > { %v9789_v13 = vpop.f32.mrf.mxu0  ;;  %v3778_v0 = vsel %vm669_vm3, %v3718_v55, 0.0  ;;  %v3820_v30 = vmul.f32 %v3718_v55, %v3718_v55  ;;  %3923 = vst.msk [vmem:[#allocation2 + $0x2e8] sm:$0xff] %vm669_vm3, %v3718_v55  ;;  %v3884_v58 = vsel %vm669_vm3, %v3822_v16, 0.0 }
 0x26b   : > { %v3879_v20 = vadd.f32 %v3878_v57, %v3877_v36  ;;  %v3779_v59 = vadd.f32 %v3778_v0, %v3777_v46  ;;  %v9793_v9 = vpop.f32.mrf.mxu1 }
 0x26c   : > { %v9796_v43 = vpop.f32.mrf.mxu0  ;;  %v3880_v38 = vsel %vm669_vm3, %v3820_v30, 0.0 }
 0x26d   : > { %v3781_v50 = vadd.f32 %v3780_v33, %v3779_v59  ;;  %v3881_v18 = vadd.f32 %v3880_v38, %v3879_v20  ;;  %v9799_v37 = vpop.f32.mrf.mxu1 }
 0x26e   : > { %v9803_v15 = vpop.f32.mrf.mxu0 }
 0x26f   : > { %v3783_v22 = vadd.f32 %v3782_v39, %v3781_v50  ;;  %v3883_v35 = vadd.f32 %v3882_v45, %v3881_v18  ;;  %v9805_v12 = vpop.f32.mrf.mxu1 }
 0x270   : > { %v9808_v17 = vpop.f32.mrf.mxu0 }
 0x271   : > { %v3784_v40 = vrot.slane %v3783_v22, 4  ;;  %v3885_v4 = vadd.f32 %v3884_v58, %v3883_v35  ;;  %v9810_v28 = vpop.f32.mrf.mxu1 }
 0x272   : > { %v9812_v2 = vpop.f32.mrf.mxu0 }
 0x273   : > { %v3785_v27 = vadd.f32 %v3784_v40, %v3783_v22  ;;  %v3886_v62 = vrot.slane %v3885_v4, 4  ;;  %v9814_v7 = vpop.f32.mrf.mxu1 }
 0x274   : > { %v9816_v44 = vpop.f32.mrf.mxu0 }
 0x275   : > { %v3786_v51 = vrot.slane %v3785_v27, 2  ;;  %v3887_v54 = vadd.f32 %v3886_v62, %v3885_v4  ;;  %v9818_v6 = vpop.f32.mrf.mxu1 }
 0x276   : > { %v9820_v14 = vpop.f32.mrf.mxu0 }
 0x277   : > { %v3787_v11 = vadd.f32 %v3786_v51, %v3785_v27  ;;  %v3888_v42 = vrot.slane %v3887_v54, 2  ;;  %v9822_v21 = vpop.f32.mrf.mxu1 }
 0x278   : > { %v9824_v34 = vpop.f32.mrf.mxu0 }
 0x279   : > { %v3788_v61 = vrot.slane %v3787_v11, 1  ;;  %v3889_v53 = vadd.f32 %v3888_v42, %v3887_v54  ;;  %v9826_v1 = vpop.f32.mrf.mxu1 }
 0x27a   : > { %v9828_v8 = vpop.f32.mrf.mxu0 }
 0x27b   : > { %v3789_v47 = vadd.f32 %v3788_v61, %v3787_v11  ;;  %v3890_v49 = vrot.slane %v3889_v53, 1  ;;  %v9830_v56 = vpop.f32.mrf.mxu1 }
 0x27c   : > { %v9832_v60 = vpop.f32.mrf.mxu0 }
 0x27d   : > { %v9835_v32 = vadd.f32 %v3789_v47, %v11405_v29  ;;  %v3891_v41 = vadd.f32 %v3890_v49, %v3889_v53  ;;  %v9837_v3 = vpop.f32.mrf.mxu1 }
 0x27e   : > { %v9839_v31 = vpop.f32.mrf.mxu0 }
 0x27f   : > { %11406 = vst [vmem:[#allocation53_spill] sm:$0xff] %v9835_v32  ;;  %v9842_v23 = vadd.f32 %v3891_v41, %v11407_v52  ;;  %v9844_v10 = vpop.f32.mrf.mxu1  ;;  %v4140_v32 = vadd.f32 %v9786_v24, %v9778_v5 }
 0x280   : > { %v9846_v63 = vpop.f32.mrf.mxu0 }
 0x281   : > { %11408 = vst [vmem:[#allocation16_spill] sm:$0xff] %v9842_v23  ;;  %v9848_v48 = vpop.f32.mrf.mxu1 }
 0x282   : > { %v9850_v26 = vpop.f32.mrf.mxu0 }
 0x283   : > { %v9852_v55 = vpop.f32.mrf.mxu1 }
 0x284   : > { %v9854_v46 = vpop.f32.mrf.mxu0 }
 0x285   : > { %v9856_v36 = vpop.f32.mrf.mxu1 }
 0x286   : > { %v9858_v25 = vpop.f32.mrf.mxu0 }
 0x287   : > { %v9860_v57 = vpop.f32.mrf.mxu1 }
 0x288   : > { %v9862_v0 = vpop.f32.mrf.mxu0 }
 0x289   : > { %v9864_v30 = vpop.f32.mrf.mxu1 }
 0x28a   : > { %v9866_v20 = vpop.f32.mrf.mxu0 }
 0x28b   : > { %v9868_v59 = vpop.f32.mrf.mxu1 }
 0x28c   : > { %v9870_v33 = vpop.f32.mrf.mxu0 }
 0x28d   : > { %v9872_v16 = vpop.f32.mrf.mxu1 }
 0x28e   : > { %v9874_v38 = vpop.f32.mrf.mxu0 }
 0x28f   : > { %v9876_v50 = vpop.f32.mrf.mxu1 }
 0x290   : > { %v9878_v18 = vpop.f32.mrf.mxu0 }
 0x291   : > { %v9880_v45 = vpop.f32.mrf.mxu1 }
 0x292   : > { %v9882_v39 = vpop.f32.mrf.mxu0 }
 0x293   : > { %v9884_v22 = vpop.f32.mrf.mxu1 }
 0x294   : > { %v9886_v35 = vpop.f32.mrf.mxu0 }
 0x295   : > { %v9888_v58 = vpop.f32.mrf.mxu1 }
 0x296   : > { %v9890_v40 = vpop.f32.mrf.mxu0 }
 0x297   : > { %v9892_v4 = vpop.f32.mrf.mxu1 }
 0x298   : > { %v9894_v27 = vpop.f32.mrf.mxu0 }
 0x299   : > { %11409 = vst [vmem:[#allocation38_spill] sm:$0xff] %v9894_v27  ;;  %v9896_v62 = vpop.f32.mrf.mxu1 }
 0x29a   : > { %v9898_v51 = vpop.f32.mrf.mxu0 }
 0x29b   : > { %11410 = vst [vmem:[#allocation19_spill] sm:$0xff] %v9898_v51  ;;  %v9900_v54 = vpop.f32.mrf.mxu1 }
 0x29c   : > { %11411 = vst [vmem:[#allocation39_spill] sm:$0xff] %v9900_v54  ;;  %v9902_v11 = vpop.f32.mrf.mxu0 }
 0x29d   : > { %11412 = vst [vmem:[#allocation55_spill] sm:$0xff] %v9902_v11  ;;  %v9904_v42 = vpop.f32.mrf.mxu1 }
 0x29e   : > { %11413 = vst [vmem:[#allocation56_spill] sm:$0xff] %v9904_v42  ;;  %v9906_v61 = vpop.f32.mrf.mxu0 }
 0x29f   : > { %11414 = vst [vmem:[#allocation57_spill] sm:$0xff] %v9906_v61  ;;  %v9908_v53 = vpop.f32.mrf.mxu1  ;;  %v4132_v61 = vadd.f32 %v9793_v9, %v9782_v19  ;;  %v4156_v19 = vadd.f32 %v9810_v28, %v9803_v15 }
 0x2a0   : > { %11415 = vst [vmem:[#allocation58_spill] sm:$0xff] %v9908_v53  ;;  %v9910_v47 = vpop.f32.mrf.mxu0 }
 0x2a1   : > { %11416 = vst [vmem:[#allocation25_spill] sm:$0xff] %v9910_v47  ;;  %v9912_v49 = vpop.f32.mrf.mxu1 }
 0x2a2   : > { %11417 = vst [vmem:[#allocation27_spill] sm:$0xff] %v9912_v49  ;;  %v9914_v29 = vpop.f32.mrf.mxu0 }
 0x2a3   : > { %11418 = vst [vmem:[#allocation42_spill] sm:$0xff] %v9914_v29  ;;  %v9916_v41 = vpop.f32.mrf.mxu1  ;;  %v4143_v29 = vadd.f32 %v9799_v37, %v9789_v13 }
 0x2a4   : > { %11419 = vst [vmem:[#allocation21_spill] sm:$0xff] %v9916_v41  ;;  %v9918_v52 = vpop.f32.mrf.mxu0 }
 0x2a5   : > { %11420 = vst [vmem:[#allocation24_spill] sm:$0xff] %v9918_v52  ;;  %v9920_v23 = vpop.f32.mrf.mxu1 }
 0x2a6   : > { %11421 = vst [vmem:[#allocation44_spill] sm:$0xff] %v9920_v23  ;;  %v7259_v11 = vpop.f32.mrf.mxu0  ;;  %v4135_v23 = vadd.f32 %v9805_v12, %v9796_v43 }
 0x2a7   : > { %v9924_v42 = vpop.f32.mrf.mxu1  ;;  %v4426_v47 = vadd.f32 %v7259_v11, %v4140_v32 }
 0x2a8   : > { %11422 = vst [vmem:[#allocation59_spill] sm:$0xff] %v9924_v42  ;;  %v4297_v53 = vpop.f32.mrf.mxu0 }
 0x2a9   : > { %v7293_v49 = vpop.f32.mrf.mxu1  ;;  %v4424_v41 = vadd.f32 %v4297_v53, %v4132_v61  ;;  %v4148_v61 = vadd.f32 %v9814_v7, %v9808_v17  ;;  %v4151_v7 = vadd.f32 %v9822_v21, %v9816_v44 }
 0x2aa   : > { %v7260_v51 = vpop.f32.mrf.mxu0  ;;  %v4638_v52 = vadd.f32 %v7293_v49, %v4426_v47 }
 0x2ab   : > { %v4509_v54 = vpop.f32.mrf.mxu1  ;;  %v4427_v5 = vadd.f32 %v7260_v51, %v4143_v29 }
 0x2ac   : > { %v4300_v24 = vpop.f32.mrf.mxu0  ;;  %4843 = vst.msk [vmem:[#allocation2 + $0x310] sm:$0xff] %vm669_vm3, %v4638_v52  ;;  %v4636_v42 = vadd.f32 %v4509_v54, %v4424_v41  ;;  %v4159_v54 = vadd.f32 %v9818_v6, %v9812_v2  ;;  %v4740_v53 = vmul.f32 %v4638_v52, %v4638_v52  ;;  %v4671_v29 = vsel %vm669_vm3, %v4638_v52, 0.0 }
 0x2ad   : > { %v7294_v27 = vpop.f32.mrf.mxu1  ;;  %v4425_v9 = vadd.f32 %v4300_v24, %v4135_v23 }
 0x2ae   : > { %v7263_v32 = vpop.f32.mrf.mxu0  ;;  %4841 = vst.msk [vmem:[#allocation2 + $0x300] sm:$0xff] %vm669_vm3, %v4636_v42  ;;  %v4639_v13 = vadd.f32 %v7294_v27, %v4427_v5  ;;  %v4738_v37 = vmul.f32 %v4636_v42, %v4636_v42  ;;  %v4668_v15 = vsel %vm669_vm3, %v4636_v42, 0.0 }
 0x2af   : > { %v4512_v11 = vpop.f32.mrf.mxu1  ;;  %v4430_v43 = vadd.f32 %v7263_v32, %v4156_v19  ;;  %v4172_v32 = vadd.f32 %v9826_v1, %v9820_v14 }
 0x2b0   : > { %v4313_v12 = vpop.f32.mrf.mxu0  ;;  %4844 = vst.msk [vmem:[#allocation2 + $0x318] sm:$0xff] %vm669_vm3, %v4639_v13  ;;  %v4637_v51 = vadd.f32 %v4512_v11, %v4425_v9  ;;  %v4770_v41 = vsel %vm669_vm3, %v4738_v37, 0.0  ;;  %v4741_v42 = vmul.f32 %v4639_v13, %v4639_v13  ;;  %v4773_v11 = vsel %vm669_vm3, %v4740_v53, 0.0 }
 0x2b1   : > { %v7297_v28 = vpop.f32.mrf.mxu1  ;;  %v4428_v23 = vadd.f32 %v4313_v12, %v4148_v61  ;;  %v4673_v37 = vsel %vm669_vm3, %v4639_v13, 0.0 }
 0x2b2   : > { %v7264_v47 = vpop.f32.mrf.mxu0  ;;  %v4669_v27 = vsel %vm669_vm3, %v4637_v51, 0.0  ;;  %v4739_v49 = vmul.f32 %v4637_v51, %v4637_v51  ;;  %4842 = vst.msk [vmem:[#allocation2 + $0x308] sm:$0xff] %vm669_vm3, %v4637_v51  ;;  %v4642_v17 = vadd.f32 %v7297_v28, %v4430_v43  ;;  %v4775_v28 = vsel %vm669_vm3, %v4741_v42, 0.0 }
 0x2b3   : > { %v4670_v2 = vadd.f32 %v4669_v27, %v4668_v15  ;;  %v4525_v6 = vpop.f32.mrf.mxu1  ;;  %v4431_v5 = vadd.f32 %v7264_v47, %v4159_v54  ;;  %v4164_v54 = vadd.f32 %v9830_v56, %v9824_v34  ;;  %v4175_v15 = vadd.f32 %v9837_v3, %v9828_v8 }
 0x2b4   : > { %v4316_v24 = vpop.f32.mrf.mxu0  ;;  %v4771_v19 = vsel %vm669_vm3, %v4739_v49, 0.0  ;;  %4847 = vst.msk [vmem:[#allocation2 + $0x330] sm:$0xff] %vm669_vm3, %v4642_v17  ;;  %v4640_v9 = vadd.f32 %v4525_v6, %v4428_v23  ;;  %v4744_v49 = vmul.f32 %v4642_v17, %v4642_v17  ;;  %v4679_v42 = vsel %vm669_vm3, %v4642_v17, 0.0 }
 0x2b5   : > { %v4672_v44 = vadd.f32 %v4671_v29, %v4670_v2  ;;  %v4772_v21 = vadd.f32 %v4771_v19, %v4770_v41  ;;  %v7298_v52 = vpop.f32.mrf.mxu1  ;;  %v4429_v61 = vadd.f32 %v4316_v24, %v4151_v7 }
 0x2b6   : > { %v7267_v43 = vpop.f32.mrf.mxu0  ;;  %v4742_v12 = vmul.f32 %v4640_v9, %v4640_v9  ;;  %4845 = vst.msk [vmem:[#allocation2 + $0x320] sm:$0xff] %vm669_vm3, %v4640_v9  ;;  %v4643_v51 = vadd.f32 %v7298_v52, %v4431_v5  ;;  %v4675_v13 = vsel %vm669_vm3, %v4640_v9, 0.0  ;;  %v4167_v5 = vadd.f32 %v9844_v10, %v9832_v60 }
 0x2b7   : > { %v4774_v14 = vadd.f32 %v4773_v11, %v4772_v21  ;;  %v4674_v1 = vadd.f32 %v4673_v37, %v4672_v44  ;;  %v4528_v53 = vpop.f32.mrf.mxu1  ;;  %v4434_v23 = vadd.f32 %v7267_v43, %v4172_v32  ;;  %v4188_v37 = vadd.f32 %v9848_v48, %v9839_v31 }
 0x2b8   : > { %v4329_v47 = vpop.f32.mrf.mxu0  ;;  %4848 = vst.msk [vmem:[#allocation2 + $0x338] sm:$0xff] %vm669_vm3, %v4643_v51  ;;  %v4641_v27 = vadd.f32 %v4528_v53, %v4429_v61  ;;  %v4777_v34 = vsel %vm669_vm3, %v4742_v12, 0.0  ;;  %v4745_v11 = vmul.f32 %v4643_v51, %v4643_v51  ;;  %v4781_v61 = vsel %vm669_vm3, %v4744_v49, 0.0 }
 0x2b9   : > { %v4676_v7 = vadd.f32 %v4675_v13, %v4674_v1  ;;  %v4776_v29 = vadd.f32 %v4775_v28, %v4774_v14  ;;  %v7301_v56 = vpop.f32.mrf.mxu1  ;;  %v4432_v41 = vadd.f32 %v4329_v47, %v4164_v54  ;;  %v4681_v17 = vsel %vm669_vm3, %v4643_v51, 0.0 }
 0x2ba   : > { %v7268_v8 = vpop.f32.mrf.mxu0  ;;  %v4677_v3 = vsel %vm669_vm3, %v4641_v27, 0.0  ;;  %v4743_v2 = vmul.f32 %v4641_v27, %v4641_v27  ;;  %4846 = vst.msk [vmem:[#allocation2 + $0x328] sm:$0xff] %vm669_vm3, %v4641_v27  ;;  %v4646_v6 = vadd.f32 %v7301_v56, %v4434_v23  ;;  %v4180_v1 = vadd.f32 %v9852_v55, %v9846_v63 }
 0x2bb   : > { %v4778_v24 = vadd.f32 %v4777_v34, %v4776_v29  ;;  %v4678_v19 = vadd.f32 %v4677_v3, %v4676_v7  ;;  %v4541_v9 = vpop.f32.mrf.mxu1  ;;  %v4435_v32 = vadd.f32 %v7268_v8, %v4175_v15  ;;  %v4191_v53 = vadd.f32 %v9856_v36, %v9850_v26 }
 0x2bc   : > { %v4332_v44 = vpop.f32.mrf.mxu0  ;;  %v4779_v21 = vsel %vm669_vm3, %v4743_v2, 0.0  ;;  %4851 = vst.msk [vmem:[#allocation2 + $0x350] sm:$0xff] %vm669_vm3, %v4646_v6  ;;  %v4644_v52 = vadd.f32 %v4541_v9, %v4432_v41  ;;  %v4783_v23 = vsel %vm669_vm3, %v4745_v11, 0.0  ;;  %v4748_v49 = vmul.f32 %v4646_v6, %v4646_v6 }
 0x2bd   : > { %v4680_v43 = vadd.f32 %v4679_v42, %v4678_v19  ;;  %v4780_v60 = vadd.f32 %v4779_v21, %v4778_v24  ;;  %v7302_v10 = vpop.f32.mrf.mxu1  ;;  %v4433_v12 = vadd.f32 %v4332_v44, %v4167_v5  ;;  %v4183_v8 = vadd.f32 %v9860_v57, %v9854_v46 }
 0x2be   : > { %v7271_v54 = vpop.f32.mrf.mxu0  ;;  %v4746_v15 = vmul.f32 %v4644_v52, %v4644_v52  ;;  %4849 = vst.msk [vmem:[#allocation2 + $0x340] sm:$0xff] %vm669_vm3, %v4644_v52  ;;  %v4647_v14 = vadd.f32 %v7302_v10, %v4435_v32  ;;  %v4683_v51 = vsel %vm669_vm3, %v4644_v52, 0.0  ;;  %v4687_v3 = vsel %vm669_vm3, %v4646_v6, 0.0 }
 0x2bf   : > { %v4782_v31 = vadd.f32 %v4781_v61, %v4780_v60  ;;  %v4682_v48 = vadd.f32 %v4681_v17, %v4680_v43  ;;  %v4544_v28 = vpop.f32.mrf.mxu1  ;;  %v4438_v47 = vadd.f32 %v7271_v54, %v4188_v37  ;;  %v4204_v44 = vadd.f32 %v9864_v30, %v9858_v25 }
 0x2c0   : > { %v4345_v13 = vpop.f32.mrf.mxu0  ;;  %4852 = vst.msk [vmem:[#allocation2 + $0x358] sm:$0xff] %vm669_vm3, %v4647_v14  ;;  %v4645_v27 = vadd.f32 %v4544_v28, %v4433_v12  ;;  %v4785_v63 = vsel %vm669_vm3, %v4746_v15, 0.0  ;;  %v4749_v19 = vmul.f32 %v4647_v14, %v4647_v14  ;;  %v4789_v21 = vsel %vm669_vm3, %v4748_v49, 0.0 }
 0x2c1   : > { %v4684_v7 = vadd.f32 %v4683_v51, %v4682_v48  ;;  %v4784_v29 = vadd.f32 %v4783_v23, %v4782_v31  ;;  %v7305_v55 = vpop.f32.mrf.mxu1  ;;  %v4436_v34 = vadd.f32 %v4345_v13, %v4180_v1  ;;  %v4689_v6 = vsel %vm669_vm3, %v4647_v14, 0.0 }
 0x2c2   : > { %v7272_v26 = vpop.f32.mrf.mxu0  ;;  %v4685_v36 = vsel %vm669_vm3, %v4645_v27, 0.0  ;;  %v4747_v56 = vmul.f32 %v4645_v27, %v4645_v27  ;;  %4850 = vst.msk [vmem:[#allocation2 + $0x348] sm:$0xff] %vm669_vm3, %v4645_v27  ;;  %v4650_v41 = vadd.f32 %v7305_v55, %v4438_v47  ;;  %v4196_v10 = vadd.f32 %v9868_v59, %v9862_v0 }
 0x2c3   : > { %v4786_v2 = vadd.f32 %v4785_v63, %v4784_v29  ;;  %v4686_v5 = vadd.f32 %v4685_v36, %v4684_v7  ;;  %v4557_v42 = vpop.f32.mrf.mxu1  ;;  %v4439_v24 = vadd.f32 %v7272_v26, %v4191_v53  ;;  %v4207_v17 = vadd.f32 %v9872_v16, %v9866_v20 }
 0x2c4   : > { %v4348_v9 = vpop.f32.mrf.mxu0  ;;  %v4787_v32 = vsel %vm669_vm3, %v4747_v56, 0.0  ;;  %4855 = vst.msk [vmem:[#allocation2 + $0x370] sm:$0xff] %vm669_vm3, %v4650_v41  ;;  %v4648_v11 = vadd.f32 %v4557_v42, %v4436_v34  ;;  %v4791_v54 = vsel %vm669_vm3, %v4749_v19, 0.0  ;;  %v4752_v31 = vmul.f32 %v4650_v41, %v4650_v41 }
 0x2c5   : > { %v4688_v52 = vadd.f32 %v4687_v3, %v4686_v5  ;;  %v4788_v46 = vadd.f32 %v4787_v32, %v4786_v2  ;;  %v7306_v57 = vpop.f32.mrf.mxu1  ;;  %v4437_v37 = vadd.f32 %v4348_v9, %v4183_v8  ;;  %v4199_v51 = vadd.f32 %v9876_v50, %v9870_v33 }
 0x2c6   : > { %v7275_v61 = vpop.f32.mrf.mxu0  ;;  %v4750_v43 = vmul.f32 %v4648_v11, %v4648_v11  ;;  %4853 = vst.msk [vmem:[#allocation2 + $0x360] sm:$0xff] %vm669_vm3, %v4648_v11  ;;  %v4651_v60 = vadd.f32 %v7306_v57, %v4439_v24  ;;  %v4691_v14 = vsel %vm669_vm3, %v4648_v11, 0.0  ;;  %v4695_v27 = vsel %vm669_vm3, %v4650_v41, 0.0 }
 0x2c7   : > { %v4790_v25 = vadd.f32 %v4789_v21, %v4788_v46  ;;  %v4690_v30 = vadd.f32 %v4689_v6, %v4688_v52  ;;  %v4560_v12 = vpop.f32.mrf.mxu1  ;;  %v4442_v15 = vadd.f32 %v7275_v61, %v4204_v44  ;;  %v4220_v56 = vadd.f32 %v9880_v45, %v9874_v38 }
 0x2c8   : > { %v4361_v1 = vpop.f32.mrf.mxu0  ;;  %4856 = vst.msk [vmem:[#allocation2 + $0x378] sm:$0xff] %vm669_vm3, %v4651_v60  ;;  %v4649_v53 = vadd.f32 %v4560_v12, %v4437_v37  ;;  %v4793_v0 = vsel %vm669_vm3, %v4750_v43, 0.0  ;;  %v4753_v55 = vmul.f32 %v4651_v60, %v4651_v60  ;;  %v4797_v8 = vsel %vm669_vm3, %v4752_v31, 0.0 }
 0x2c9   : > { %v4692_v48 = vadd.f32 %v4691_v14, %v4690_v30  ;;  %v4792_v28 = vadd.f32 %v4791_v54, %v4790_v25  ;;  %v7309_v59 = vpop.f32.mrf.mxu1  ;;  %v4440_v23 = vadd.f32 %v4361_v1, %v4196_v10  ;;  %v4697_v41 = vsel %vm669_vm3, %v4651_v60, 0.0 }
 0x2ca   : > { %v7276_v20 = vpop.f32.mrf.mxu0  ;;  %v4693_v16 = vsel %vm669_vm3, %v4649_v53, 0.0  ;;  %v4751_v47 = vmul.f32 %v4649_v53, %v4649_v53  ;;  %4854 = vst.msk [vmem:[#allocation2 + $0x368] sm:$0xff] %vm669_vm3, %v4649_v53  ;;  %v4654_v13 = vadd.f32 %v7309_v59, %v4442_v15  ;;  %v4212_v19 = vadd.f32 %v9884_v22, %v9878_v18 }
 0x2cb   : > { %v4794_v49 = vadd.f32 %v4793_v0, %v4792_v28  ;;  %v4694_v7 = vadd.f32 %v4693_v16, %v4692_v48  ;;  %v4573_v29 = vpop.f32.mrf.mxu1  ;;  %v4443_v63 = vadd.f32 %v7276_v20, %v4207_v17  ;;  %v4223_v9 = vadd.f32 %v9888_v58, %v9882_v39 }
 0x2cc   : > { %v4364_v34 = vpop.f32.mrf.mxu0  ;;  %v4795_v26 = vsel %vm669_vm3, %v4751_v47, 0.0  ;;  %4859 = vst.msk [vmem:[#allocation2 + $0x390] sm:$0xff] %vm669_vm3, %v4654_v13  ;;  %v4652_v36 = vadd.f32 %v4573_v29, %v4440_v23  ;;  %v4799_v11 = vsel %vm669_vm3, %v4753_v55, 0.0  ;;  %v4756_v57 = vmul.f32 %v4654_v13, %v4654_v13  ;;  %v11423_v47 = vld [vmem:[#allocation38_spill] sm:$0xff] }
 0x2cd   : > { %v4696_v3 = vadd.f32 %v4695_v27, %v4694_v7  ;;  %v4796_v33 = vadd.f32 %v4795_v26, %v4794_v49  ;;  %v7310_v50 = vpop.f32.mrf.mxu1  ;;  %v4441_v2 = vadd.f32 %v4364_v34, %v4199_v51  ;;  %v4215_v10 = vadd.f32 %v9892_v4, %v9886_v35  ;;  %v11425_v27 = vld [vmem:[#allocation19_spill] sm:$0xff]  ;;  %v11426_v49 = vld [vmem:[#allocation56_spill] sm:$0xff] }
 0x2ce   : > { %v7279_v5 = vpop.f32.mrf.mxu0  ;;  %v4754_v42 = vmul.f32 %v4652_v36, %v4652_v36  ;;  %4857 = vst.msk [vmem:[#allocation2 + $0x380] sm:$0xff] %vm669_vm3, %v4652_v36  ;;  %v4655_v24 = vadd.f32 %v7310_v50, %v4443_v63  ;;  %v4699_v52 = vsel %vm669_vm3, %v4652_v36, 0.0  ;;  %v4703_v17 = vsel %vm669_vm3, %v4654_v13, 0.0  ;;  %v11424_v13 = vld [vmem:[#allocation39_spill] sm:$0xff] }
 0x2cf   : > { %v4798_v38 = vadd.f32 %v4797_v8, %v4796_v33  ;;  %v4698_v45 = vadd.f32 %v4697_v41, %v4696_v3  ;;  %v4576_v32 = vpop.f32.mrf.mxu1  ;;  %v4446_v44 = vadd.f32 %v7279_v5, %v4220_v56  ;;  %v4236_v31 = vadd.f32 %v9896_v62, %v9890_v40 }
 0x2d0   : > { %v4377_v21 = vpop.f32.mrf.mxu0  ;;  %4860 = vst.msk [vmem:[#allocation2 + $0x398] sm:$0xff] %vm669_vm3, %v4655_v24  ;;  %v4653_v46 = vadd.f32 %v4576_v32, %v4441_v2  ;;  %v4801_v18 = vsel %vm669_vm3, %v4754_v42, 0.0  ;;  %v4757_v15 = vmul.f32 %v4655_v24, %v4655_v24  ;;  %v4805_v48 = vsel %vm669_vm3, %v4756_v57, 0.0 }
 0x2d1   : > { %v4700_v6 = vadd.f32 %v4699_v52, %v4698_v45  ;;  %v4800_v37 = vadd.f32 %v4799_v11, %v4798_v38  ;;  %v7313_v22 = vpop.f32.mrf.mxu1  ;;  %v4444_v61 = vadd.f32 %v4377_v21, %v4212_v19  ;;  %v4705_v0 = vsel %vm669_vm3, %v4655_v24, 0.0  ;;  %v11427_v19 = vld [vmem:[#allocation55_spill] sm:$0xff] }
 0x2d2   : > { %v7280_v39 = vpop.f32.mrf.mxu0  ;;  %v4701_v58 = vsel %vm669_vm3, %v4653_v46, 0.0  ;;  %v4755_v43 = vmul.f32 %v4653_v46, %v4653_v46  ;;  %4858 = vst.msk [vmem:[#allocation2 + $0x388] sm:$0xff] %vm669_vm3, %v4653_v46  ;;  %v4658_v60 = vadd.f32 %v7313_v22, %v4446_v44  ;;  %v4228_v51 = vadd.f32 %v11424_v13, %v11423_v47 }
 0x2d3   : > { %v4802_v25 = vadd.f32 %v4801_v18, %v4800_v37  ;;  %v4702_v30 = vadd.f32 %v4701_v58, %v4700_v6  ;;  %v4589_v12 = vpop.f32.mrf.mxu1  ;;  %v4447_v54 = vadd.f32 %v7280_v39, %v4223_v9  ;;  %v4239_v7 = vadd.f32 %v11426_v49, %v11425_v27  ;;  %v11428_v9 = vld [vmem:[#allocation58_spill] sm:$0xff]  ;;  %v11429_v37 = vld [vmem:[#allocation57_spill] sm:$0xff]  ;;  %v11430_v18 = vld [vmem:[#allocation27_spill] sm:$0xff] }
 0x2d4   : > { %v4380_v1 = vpop.f32.mrf.mxu0  ;;  %v4803_v14 = vsel %vm669_vm3, %v4755_v43, 0.0  ;;  %4863 = vst.msk [vmem:[#allocation2 + $0x3b0] sm:$0xff] %vm669_vm3, %v4658_v60  ;;  %v4656_v53 = vadd.f32 %v4589_v12, %v4444_v61  ;;  %v4807_v63 = vsel %vm669_vm3, %v4757_v15, 0.0  ;;  %v4760_v56 = vmul.f32 %v4658_v60, %v4658_v60  ;;  %v11431_v12 = vld [vmem:[#allocation25_spill] sm:$0xff] }
 0x2d5   : > { %v4704_v28 = vadd.f32 %v4703_v17, %v4702_v30  ;;  %v4804_v35 = vadd.f32 %v4803_v14, %v4802_v25  ;;  %v7314_v4 = vpop.f32.mrf.mxu1  ;;  %v4445_v59 = vadd.f32 %v4380_v1, %v4215_v10  ;;  %v4231_v38 = vadd.f32 %v11428_v9, %v11427_v19  ;;  %v11433_v1 = vld [vmem:[#allocation42_spill] sm:$0xff]  ;;  %v11434_v14 = vld [vmem:[#allocation44_spill] sm:$0xff] }
 0x2d6   : > { %v7283_v23 = vpop.f32.mrf.mxu0  ;;  %v4758_v20 = vmul.f32 %v4656_v53, %v4656_v53  ;;  %4861 = vst.msk [vmem:[#allocation2 + $0x3a0] sm:$0xff] %vm669_vm3, %v4656_v53  ;;  %v4659_v16 = vadd.f32 %v7314_v4, %v4447_v54  ;;  %v4707_v26 = vsel %vm669_vm3, %v4656_v53, 0.0  ;;  %v4711_v45 = vsel %vm669_vm3, %v4658_v60, 0.0  ;;  %v11432_v54 = vld [vmem:[#allocation21_spill] sm:$0xff] }
 0x2d7   : > { %v4806_v40 = vadd.f32 %v4805_v48, %v4804_v35  ;;  %v4706_v62 = vadd.f32 %v4705_v0, %v4704_v28  ;;  %v4592_v29 = vpop.f32.mrf.mxu1  ;;  %v4450_v55 = vadd.f32 %v7283_v23, %v4236_v31  ;;  %v4252_v22 = vadd.f32 %v11430_v18, %v11429_v37 }
 0x2d8   : > { %v4393_v34 = vpop.f32.mrf.mxu0  ;;  %4864 = vst.msk [vmem:[#allocation2 + $0x3b8] sm:$0xff] %vm669_vm3, %v4659_v16  ;;  %v4657_v36 = vadd.f32 %v4592_v29, %v4445_v59  ;;  %v4809_v33 = vsel %vm669_vm3, %v4758_v20, 0.0  ;;  %v4761_v52 = vmul.f32 %v4659_v16, %v4659_v16  ;;  %v4813_v61 = vsel %vm669_vm3, %v4760_v56, 0.0  ;;  %v11435_v29 = vld [vmem:[#allocation24_spill] sm:$0xff] }
 0x2d9   : > { %v4708_v8 = vadd.f32 %v4707_v26, %v4706_v62  ;;  %v4808_v3 = vadd.f32 %v4807_v63, %v4806_v40  ;;  %v7317_v50 = vpop.f32.mrf.mxu1  ;;  %v4448_v41 = vadd.f32 %v4393_v34, %v4228_v51  ;;  %v4713_v60 = vsel %vm669_vm3, %v4659_v16, 0.0  ;;  %v11436_v63 = vld [vmem:[#allocation59_spill] sm:$0xff] }
 0x2da   : > { %v7284_v2 = vpop.f32.mrf.mxu0  ;;  %v4709_v5 = vsel %vm669_vm3, %v4657_v36, 0.0  ;;  %v4759_v42 = vmul.f32 %v4657_v36, %v4657_v36  ;;  %4862 = vst.msk [vmem:[#allocation2 + $0x3a8] sm:$0xff] %vm669_vm3, %v4657_v36  ;;  %v4662_v24 = vadd.f32 %v7317_v50, %v4450_v55  ;;  %v4244_v15 = vadd.f32 %v11432_v54, %v11431_v12 }
 0x2db   : > { %v4810_v32 = vadd.f32 %v4809_v33, %v4808_v3  ;;  %v4710_v11 = vadd.f32 %v4709_v5, %v4708_v8  ;;  %v4605_v44 = vpop.f32.mrf.mxu1  ;;  %v4451_v21 = vadd.f32 %v7284_v2, %v4239_v7  ;;  %v4255_v53 = vadd.f32 %v11434_v14, %v11433_v1 }
 0x2dc   : > { %v4396_v46 = vpop.f32.mrf.mxu0  ;;  %v4811_v57 = vsel %vm669_vm3, %v4759_v42, 0.0  ;;  %4867 = vst.msk [vmem:[#allocation2 + $0x3d0] sm:$0xff] %vm669_vm3, %v4662_v24  ;;  %v4660_v6 = vadd.f32 %v4605_v44, %v4448_v41  ;;  %v4815_v35 = vsel %vm669_vm3, %v4761_v52, 0.0  ;;  %v4764_v20 = vmul.f32 %v4662_v24, %v4662_v24 }
 0x2dd   : > { %v4712_v39 = vadd.f32 %v4711_v45, %v4710_v11  ;;  %v4812_v58 = vadd.f32 %v4811_v57, %v4810_v32  ;;  %v7318_v43 = vpop.f32.mrf.mxu1  ;;  %v4449_v10 = vadd.f32 %v4396_v46, %v4231_v38  ;;  %v4247_v55 = vadd.f32 %v11436_v63, %v11435_v29 }
 0x2de   : > { %v7287_v17 = vpop.f32.mrf.mxu0  ;;  %v4762_v25 = vmul.f32 %v4660_v6, %v4660_v6  ;;  %4865 = vst.msk [vmem:[#allocation2 + $0x3c0] sm:$0xff] %vm669_vm3, %v4660_v6  ;;  %v4663_v30 = vadd.f32 %v7318_v43, %v4451_v21  ;;  %v4715_v59 = vsel %vm669_vm3, %v4660_v6, 0.0  ;;  %v4719_v34 = vsel %vm669_vm3, %v4662_v24, 0.0 }
 0x2df   : > { %v4814_v31 = vadd.f32 %v4813_v61, %v4812_v58  ;;  %v4714_v48 = vadd.f32 %v4713_v60, %v4712_v39  ;;  %v4608_v28 = vpop.f32.mrf.mxu1  ;;  %v4454_v4 = vadd.f32 %v7287_v17, %v4252_v22  ;;  %v4821_v2 = vsel %vm669_vm3, %v4764_v20, 0.0 }
 0x2e0   : > { %v4409_v0 = vpop.f32.mrf.mxu0  ;;  %4868 = vst.msk [vmem:[#allocation2 + $0x3d8] sm:$0xff] %vm669_vm3, %v4663_v30  ;;  %v4661_v23 = vadd.f32 %v4608_v28, %v4449_v10  ;;  %v4817_v13 = vsel %vm669_vm3, %v4762_v25, 0.0  ;;  %v4765_v3 = vmul.f32 %v4663_v30, %v4663_v30  ;;  %v4721_v9 = vsel %vm669_vm3, %v4663_v30, 0.0 }
 0x2e1   : > { %v4716_v16 = vadd.f32 %v4715_v59, %v4714_v48  ;;  %v4816_v47 = vadd.f32 %v4815_v35, %v4814_v31  ;;  %v7321_v51 = vpop.f32.mrf.mxu1  ;;  %v4452_v27 = vadd.f32 %v4409_v0, %v4244_v15 }
 0x2e2   : > { %v7288_v49 = vpop.f32.mrf.mxu0  ;;  %v4717_v7 = vsel %vm669_vm3, %v4661_v23, 0.0  ;;  %v4763_v40 = vmul.f32 %v4661_v23, %v4661_v23  ;;  %4866 = vst.msk [vmem:[#allocation2 + $0x3c8] sm:$0xff] %vm669_vm3, %v4661_v23  ;;  %v4666_v62 = vadd.f32 %v7321_v51, %v4454_v4  ;;  %v4823_v21 = vsel %vm669_vm3, %v4765_v3, 0.0 }
 0x2e3   : > { %v4818_v26 = vadd.f32 %v4817_v13, %v4816_v47  ;;  %v4718_v36 = vadd.f32 %v4717_v7, %v4716_v16  ;;  %v4621_v56 = vpop.f32.mrf.mxu1  ;;  %v4455_v8 = vadd.f32 %v7288_v49, %v4255_v53  ;;  %v11437_v47 = vld [vmem:[#allocation53_spill] sm:$0xff] }
 0x2e4   : > { %v4412_v33 = vpop.f32.mrf.mxu0  ;;  %v4819_v50 = vsel %vm669_vm3, %v4763_v40, 0.0  ;;  %4871 = vst.msk [vmem:[#allocation2 + $0x3f0] sm:$0xff] %vm669_vm3, %v4666_v62  ;;  %v4664_v41 = vadd.f32 %v4621_v56, %v4452_v27  ;;  %v4768_v37 = vmul.f32 %v4666_v62, %v4666_v62  ;;  %v4727_v43 = vsel %vm669_vm3, %v4666_v62, 0.0  ;;  %v11438_v27 = vld [vmem:[#allocation16_spill] sm:$0xff] }
 0x2e5   : > { %v4720_v5 = vadd.f32 %v4719_v34, %v4718_v36  ;;  %v4820_v42 = vadd.f32 %v4819_v50, %v4818_v26  ;;  %v7322_v19 = vpop.f32.mrf.mxu1  ;;  %v4453_v38 = vadd.f32 %v4412_v33, %v4247_v55  ;;  %v5007_v55 = vld [vmem:[#allocation2 + $0x100] sm:$0xff]  ;;  %v5009_v34 = vld [vmem:[#allocation2 + $0x110] sm:$0xff]  ;;  %v5012_v36 = vld [vmem:[#allocation2 + $0x128] sm:$0xff] }
 0x2e6   : > { %v4766_v24 = vmul.f32 %v4664_v41, %v4664_v41  ;;  %4869 = vst.msk [vmem:[#allocation2 + $0x3e0] sm:$0xff] %vm669_vm3, %v4664_v41  ;;  %v4667_v45 = vadd.f32 %v7322_v19, %v4455_v8  ;;  %v4723_v52 = vsel %vm669_vm3, %v4664_v41, 0.0  ;;  %v4829_v30 = vsel %vm669_vm3, %v4768_v37, 0.0  ;;  %v5011_v26 = vld [vmem:[#allocation2 + $0x120] sm:$0xff]  ;;  %v5008_v56 = vld [vmem:[#allocation2 + $0x108] sm:$0xff]  ;;  %v5010_v8 = vld [vmem:[#allocation2 + $0x118] sm:$0xff] }
 0x2e7   : > { %v4822_v32 = vadd.f32 %v4821_v2, %v4820_v42  ;;  %v4722_v11 = vadd.f32 %v4721_v9, %v4720_v5  ;;  %v4624_v44 = vpop.f32.mrf.mxu1  ;;  %v5013_v41 = vld [vmem:[#allocation2 + $0x130] sm:$0xff]  ;;  %v5014_v2 = vld [vmem:[#allocation2 + $0x138] sm:$0xff] }
 0x2e8   : > { %4872 = vst.msk [vmem:[#allocation2 + $0x3f8] sm:$0xff] %vm669_vm3, %v4667_v45  ;;  %v4665_v46 = vadd.f32 %v4624_v44, %v4453_v38  ;;  %v4825_v18 = vsel %vm669_vm3, %v4766_v24, 0.0  ;;  %v4769_v60 = vmul.f32 %v4667_v45, %v4667_v45  ;;  %v4729_v12 = vsel %vm669_vm3, %v4667_v45, 0.0  ;;  %v5017_v5 = vld [vmem:[#allocation2 + $0x150] sm:$0xff]  ;;  %v5018_v24 = vld [vmem:[#allocation2 + $0x158] sm:$0xff]  ;;  %v5015_v45 = vld [vmem:[#allocation2 + $0x140] sm:$0xff] }
 0x2e9   : > { %v4724_v57 = vadd.f32 %v4723_v52, %v4722_v11  ;;  %v4824_v6 = vadd.f32 %v4823_v21, %v4822_v32  ;;  %v5016_v32 = vld [vmem:[#allocation2 + $0x148] sm:$0xff] }
 0x2ea   : > { %v4725_v22 = vsel %vm669_vm3, %v4665_v46, 0.0  ;;  %v4767_v61 = vmul.f32 %v4665_v46, %v4665_v46  ;;  %4870 = vst.msk [vmem:[#allocation2 + $0x3e8] sm:$0xff] %vm669_vm3, %v4665_v46  ;;  %v4831_v1 = vsel %vm669_vm3, %v4769_v60, 0.0  ;;  %v5021_v46 = vld [vmem:[#allocation2 + $0x170] sm:$0xff] }
 0x2eb   : > { %v4826_v39 = vadd.f32 %v4825_v18, %v4824_v6  ;;  %v4726_v58 = vadd.f32 %v4725_v22, %v4724_v57  ;;  %v5022_v57 = vld [vmem:[#allocation2 + $0x178] sm:$0xff]  ;;  %v5019_v6 = vld [vmem:[#allocation2 + $0x160] sm:$0xff] }
 0x2ec   : > { %v4827_v10 = vsel %vm669_vm3, %v4767_v61, 0.0 }
 0x2ed   : > { %v4728_v17 = vadd.f32 %v4727_v43, %v4726_v58  ;;  %v4828_v25 = vadd.f32 %v4827_v10, %v4826_v39 }
 0x2ef   : > { %v4730_v54 = vadd.f32 %v4729_v12, %v4728_v17  ;;  %v4830_v15 = vadd.f32 %v4829_v30, %v4828_v25 }
 0x2f1   : > { %v4731_v14 = vrot.slane %v4730_v54, 4  ;;  %v4832_v53 = vadd.f32 %v4831_v1, %v4830_v15 }
 0x2f3   : > { %v4732_v31 = vadd.f32 %v4731_v14, %v4730_v54  ;;  %v4833_v48 = vrot.slane %v4832_v53, 4 }
 0x2f5   : > { %v4733_v28 = vrot.slane %v4732_v31, 2  ;;  %v4834_v35 = vadd.f32 %v4833_v48, %v4832_v53 }
 0x2f7   : > { %v4734_v4 = vadd.f32 %v4733_v28, %v4732_v31  ;;  %v4835_v0 = vrot.slane %v4834_v35, 2 }
 0x2f9   : > { %v4735_v59 = vrot.slane %v4734_v4, 1  ;;  %v4836_v23 = vadd.f32 %v4835_v0, %v4834_v35 }
 0x2fb   : > { %v4736_v20 = vadd.f32 %v4735_v59, %v4734_v4  ;;  %v4837_v16 = vrot.slane %v4836_v23, 1 }
 0x2fd   : > { %v4737_v13 = vadd.f32 %v4736_v20, %v11437_v47  ;;  %v4838_v51 = vadd.f32 %v4837_v16, %v4836_v23  ;;  %v5020_v23 = vld [vmem:[#allocation2 + $0x168] sm:$0xff]  ;;  %v5025_v20 = vld [vmem:[#allocation2 + $0x190] sm:$0xff] }
 0x2ff   : > { %v4839_v49 = vadd.f32 %v4838_v51, %v11438_v27  ;;  %v10086_v7 = vmul.f32 0.0009765625, %v4737_v13  ;;  %v5026_v51 = vld [vmem:[#allocation2 + $0x198] sm:$0xff] }
 0x301   : > { %v4874_v40 = vmul.f32 0.0009765625, %v4839_v49  ;;  %v4875_v62 = vmul.f32 %v10086_v7, %v10086_v7  ;;  %v5043_v3 = vsub.f32 %v5011_v26, %v10086_v7  ;;  %v5044_v33 = vsub.f32 %v5012_v36, %v10086_v7 }
 0x302   : > { %v5039_v50 = vsub.f32 %v5007_v55, %v10086_v7  ;;  %v5040_v42 = vsub.f32 %v5008_v56, %v10086_v7  ;;  %v5045_v19 = vsub.f32 %v5013_v41, %v10086_v7  ;;  %v5046_v9 = vsub.f32 %v5014_v2, %v10086_v7  ;;  %v5029_v2 = vld [vmem:[#allocation2 + $0x1b0] sm:$0xff] }
 0x303   : > { %v4876_v29 = vsub.f32 %v4874_v40, %v4875_v62  ;;  %v5041_v38 = vsub.f32 %v5009_v34, %v10086_v7  ;;  %v5042_v11 = vsub.f32 %v5010_v8, %v10086_v7  ;;  %v5049_v44 = vsub.f32 %v5017_v5, %v10086_v7 }
 0x304   : > { %v5050_v21 = vsub.f32 %v5018_v24, %v10086_v7  ;;  %v5047_v52 = vsub.f32 %v5015_v45, %v10086_v7  ;;  %v5048_v18 = vsub.f32 %v5016_v32, %v10086_v7  ;;  %v5053_v22 = vsub.f32 %v5021_v46, %v10086_v7  ;;  %v5027_v46 = vld [vmem:[#allocation2 + $0x1a0] sm:$0xff] }
 0x305   : > { %v4877_v63 = vadd.f32 1e-05, %v4876_v29  ;;  %v5054_v61 = vsub.f32 %v5022_v57, %v10086_v7  ;;  %v5051_v39 = vsub.f32 %v5019_v6, %v10086_v7  ;;  %v5052_v13 = vsub.f32 %v5020_v23, %v10086_v7  ;;  %v5028_v6 = vld [vmem:[#allocation2 + $0x1a8] sm:$0xff] }
 0x306   : > { %v5057_v27 = vsub.f32 %v5025_v20, %v10086_v7  ;;  %v5058_v62 = vsub.f32 %v5026_v51, %v10086_v7 }
 0x307   : > { %7609 = vrsqrt.f32 %v4877_v63 }
 0x314   : > { %v10101_v37 = vpop.eup %7609 }
 0x315   : > { %v5075_v58 = vmul.f32 %v10101_v37, %v5043_v3  ;;  %v5076_v43 = vmul.f32 %v10101_v37, %v5044_v33  ;;  %v5071_v60 = vmul.f32 %v10101_v37, %v5039_v50  ;;  %v5072_v10 = vmul.f32 %v10101_v37, %v5040_v42  ;;  %v5023_v3 = vld [vmem:[#allocation2 + $0x180] sm:$0xff]  ;;  %v5024_v33 = vld [vmem:[#allocation2 + $0x188] sm:$0xff] }
 0x316   : > { %v5077_v17 = vmul.f32 %v10101_v37, %v5045_v19  ;;  %v5078_v25 = vmul.f32 %v10101_v37, %v5046_v9  ;;  %v5073_v30 = vmul.f32 %v10101_v37, %v5041_v38  ;;  %v5074_v12 = vmul.f32 %v10101_v37, %v5042_v11 }
 0x317   : > { %v5107_v54 = vmax.f32 %v5075_v58, 0.0  ;;  %v5108_v15 = vmax.f32 %v5076_v43, 0.0  ;;  %v5103_v1 = vmax.f32 %v5071_v60, 0.0  ;;  %v5104_v14 = vmax.f32 %v5072_v10, 0.0 }
 0x318   : > { %v5109_v53 = vmax.f32 %v5077_v17, 0.0  ;;  %v5110_v31 = vmax.f32 %v5078_v25, 0.0  ;;  %v5105_v48 = vmax.f32 %v5073_v30, 0.0  ;;  %v5106_v28 = vmax.f32 %v5074_v12, 0.0  ;;  %v5033_v25 = vld [vmem:[#allocation2 + $0x1d0] sm:$0xff] }
 0x319   : > { %v7361_v35 = vpack.i.bf16 %v5108_v15, %v5107_v54  ;;  %v7351_v4 = vpack.i.bf16 %v5104_v14, %v5103_v1  ;;  %v5081_v0 = vmul.f32 %v10101_v37, %v5049_v44  ;;  %v5082_v59 = vmul.f32 %v10101_v37, %v5050_v21  ;;  %v5034_v15 = vld [vmem:[#allocation2 + $0x1d8] sm:$0xff]  ;;  %v5031_v1 = vld [vmem:[#allocation2 + $0x1c0] sm:$0xff]  ;;  %v5032_v14 = vld [vmem:[#allocation2 + $0x1c8] sm:$0xff] }
 0x31a   : > { %v5079_v16 = vmul.f32 %v10101_v37, %v5047_v52  ;;  %v5080_v47 = vmul.f32 %v10101_v37, %v5048_v18  ;;  %v7366_v49 = vpack.i.bf16 %v5110_v31, %v5109_v53  ;;  %v7356_v40 = vpack.i.bf16 %v5106_v28, %v5105_v48  ;;  %v5030_v52 = vld [vmem:[#allocation2 + $0x1b8] sm:$0xff] }
 0x31b   : > { %7362 = vrot.lane.b32.xlu1 %v7361_v35, %s7622_s21  ;;  %7352 = vrot.lane.b32.xlu0 %v7351_v4, %s7622_s21  ;;  %v5113_v29 = vmax.f32 %v5081_v0, 0.0  ;;  %v5114_v63 = vmax.f32 %v5082_v59, 0.0  ;;  %v5085_v55 = vmul.f32 %v10101_v37, %v5053_v22  ;;  %v5086_v34 = vmul.f32 %v10101_v37, %v5054_v61  ;;  %v5037_v35 = vld [vmem:[#allocation2 + $0x1f0] sm:$0xff]  ;;  %v5038_v4 = vld [vmem:[#allocation2 + $0x1f8] sm:$0xff] }
 0x31c   : > { %v5111_v26 = vmax.f32 %v5079_v16, 0.0  ;;  %v5112_v36 = vmax.f32 %v5080_v47, 0.0  ;;  %v5083_v56 = vmul.f32 %v10101_v37, %v5051_v39  ;;  %v5084_v8 = vmul.f32 %v10101_v37, %v5052_v13 }
 0x31d   : > { %v5055_v50 = vsub.f32 %v5023_v3, %v10086_v7  ;;  %v5056_v41 = vsub.f32 %v5024_v33, %v10086_v7  ;;  %v5089_v5 = vmul.f32 %v10101_v37, %v5057_v27  ;;  %v5090_v42 = vmul.f32 %v10101_v37, %v5058_v62 }
 0x31e   : > { %v5061_v19 = vsub.f32 %v5029_v2, %v10086_v7  ;;  %v7376_v9 = vpack.i.bf16 %v5114_v63, %v5113_v29  ;;  %v5117_v38 = vmax.f32 %v5085_v55, 0.0  ;;  %v7371_v32 = vpack.i.bf16 %v5112_v36, %v5111_v26  ;;  %v5035_v29 = vld [vmem:[#allocation2 + $0x1e0] sm:$0xff]  ;;  %v5036_v63 = vld [vmem:[#allocation2 + $0x1e8] sm:$0xff]  ;;  %v5137_v26 = vld [vmem:[#allocation2 + $0x210] sm:$0xff] }
 0x31f   : > { %7367 = vrot.lane.b32.xlu1 %v7366_v49, %s7622_s21  ;;  %7357 = vrot.lane.b32.xlu0 %v7356_v40, %s7622_s21  ;;  %v5087_v24 = vmul.f32 %v10101_v37, %v5055_v50  ;;  %v5088_v45 = vmul.f32 %v10101_v37, %v5056_v41  ;;  %v5118_v11 = vmax.f32 %v5086_v34, 0.0  ;;  %v5115_v44 = vmax.f32 %v5083_v56, 0.0 }
 0x320   : > { %v5116_v21 = vmax.f32 %v5084_v8, 0.0  ;;  %v5062_v57 = vsub.f32 %v5030_v52, %v10086_v7  ;;  %v5059_v18 = vsub.f32 %v5027_v46, %v10086_v7  ;;  %v5121_v22 = vmax.f32 %v5089_v5, 0.0 }
 0x321   : > { %v5122_v61 = vmax.f32 %v5090_v42, 0.0  ;;  %v5093_v39 = vmul.f32 %v10101_v37, %v5061_v19  ;;  %v5060_v58 = vsub.f32 %v5028_v6, %v10086_v7  ;;  %v5119_v43 = vmax.f32 %v5087_v24, 0.0 }
 0x322   : > { %v5120_v60 = vmax.f32 %v5088_v45, 0.0  ;;  %v5094_v10 = vmul.f32 %v10101_v37, %v5062_v57  ;;  %v5091_v17 = vmul.f32 %v10101_v37, %v5059_v18  ;;  %v7386_v30 = vpack.i.bf16 %v5118_v11, %v5117_v38  ;;  %v5135_v38 = vld [vmem:[#allocation2 + $0x200] sm:$0xff]  ;;  %v5136_v45 = vld [vmem:[#allocation2 + $0x208] sm:$0xff]  ;;  %v5141_v18 = vld [vmem:[#allocation2 + $0x230] sm:$0xff] }
 0x323   : > { %7377 = vrot.lane.b32.xlu1 %v7376_v9, %s7622_s21  ;;  %7372 = vrot.lane.b32.xlu0 %v7371_v32, %s7622_s21  ;;  %v7381_v12 = vpack.i.bf16 %v5116_v21, %v5115_v44  ;;  %v5092_v54 = vmul.f32 %v10101_v37, %v5060_v58  ;;  %v5065_v53 = vsub.f32 %v5033_v25, %v10086_v7  ;;  %v5125_v59 = vmax.f32 %v5093_v39, 0.0  ;;  %v5138_v9 = vld [vmem:[#allocation2 + $0x218] sm:$0xff] }
 0x324   : > { %v5066_v31 = vsub.f32 %v5034_v15, %v10086_v7  ;;  %v5063_v48 = vsub.f32 %v5031_v1, %v10086_v7  ;;  %v5064_v28 = vsub.f32 %v5032_v14, %v10086_v7  ;;  %v7396_v0 = vpack.i.bf16 %v5122_v61, %v5121_v22  ;;  %v5146_v15 = vld [vmem:[#allocation2 + $0x258] sm:$0xff] }
 0x325   : > { %v5069_v23 = vsub.f32 %v5037_v35, %v10086_v7  ;;  %v5070_v20 = vsub.f32 %v5038_v4, %v10086_v7  ;;  %v7391_v16 = vpack.i.bf16 %v5120_v60, %v5119_v43  ;;  %v5126_v47 = vmax.f32 %v5094_v10, 0.0  ;;  %v5142_v43 = vld [vmem:[#allocation2 + $0x238] sm:$0xff]  ;;  %v5139_v60 = vld [vmem:[#allocation2 + $0x220] sm:$0xff]  ;;  %v5140_v10 = vld [vmem:[#allocation2 + $0x228] sm:$0xff] }
 0x326   : > { %v5123_v13 = vmax.f32 %v5091_v17, 0.0  ;;  %v5097_v51 = vmul.f32 %v10101_v37, %v5065_v53  ;;  %v5124_v27 = vmax.f32 %v5092_v54, 0.0  ;;  %v5098_v49 = vmul.f32 %v10101_v37, %v5066_v31  ;;  %v5145_v54 = vld [vmem:[#allocation2 + $0x250] sm:$0xff] }
 0x327   : > { %7387 = vrot.lane.b32.xlu1 %v7386_v30, %s7622_s21  ;;  %7382 = vrot.lane.b32.xlu0 %v7381_v12, %s7622_s21  ;;  %v5095_v40 = vmul.f32 %v10101_v37, %v5063_v48  ;;  %v5096_v62 = vmul.f32 %v10101_v37, %v5064_v28  ;;  %v5067_v55 = vsub.f32 %v5035_v29, %v10086_v7 }
 0x328   : > { %v5068_v34 = vsub.f32 %v5036_v63, %v10086_v7  ;;  %v5101_v36 = vmul.f32 %v10101_v37, %v5069_v23  ;;  %v5102_v56 = vmul.f32 %v10101_v37, %v5070_v20  ;;  %v5169_v8 = vsub.f32 %v5137_v26, %v10086_v7 }
 0x329   : > { %v7406_v3 = vpack.i.bf16 %v5126_v47, %v5125_v59  ;;  %v5129_v33 = vmax.f32 %v5097_v51, 0.0  ;;  %v5099_v50 = vmul.f32 %v10101_v37, %v5067_v55  ;;  %v7401_v2 = vpack.i.bf16 %v5124_v27, %v5123_v13  ;;  %v5144_v47 = vld [vmem:[#allocation2 + $0x248] sm:$0xff]  ;;  %v5149_v27 = vld [vmem:[#allocation2 + $0x270] sm:$0xff] }
 0x32a   : > { %v5100_v41 = vmul.f32 %v10101_v37, %v5068_v34  ;;  %v5130_v5 = vmax.f32 %v5098_v49, 0.0  ;;  %v5127_v42 = vmax.f32 %v5095_v40, 0.0  ;;  %v5128_v19 = vmax.f32 %v5096_v62, 0.0 }
 0x32b   : > { %7397 = vrot.lane.b32.xlu1 %v7396_v0, %s7622_s21  ;;  %7392 = vrot.lane.b32.xlu0 %v7391_v16, %s7622_s21  ;;  %v5170_v24 = vsub.f32 %v5138_v9, %v10086_v7  ;;  %v5167_v32 = vsub.f32 %v5135_v38, %v10086_v7  ;;  %v5133_v11 = vmax.f32 %v5101_v36, 0.0  ;;  %v5134_v44 = vmax.f32 %v5102_v56, 0.0  ;;  %v5143_v16 = vld [vmem:[#allocation2 + $0x240] sm:$0xff] }
 0x32c   : > { %v5201_v21 = vmul.f32 %v10101_v37, %v5169_v8  ;;  %v5168_v52 = vsub.f32 %v5136_v45, %v10086_v7  ;;  %v5131_v46 = vmax.f32 %v5099_v50, 0.0  ;;  %v5132_v57 = vmax.f32 %v5100_v41, 0.0  ;;  %v5148_v41 = vld [vmem:[#allocation2 + $0x268] sm:$0xff] }
 0x32d   : > { %v5202_v6 = vmul.f32 %v10101_v37, %v5170_v24  ;;  %v7416_v22 = vpack.i.bf16 %v5130_v5, %v5129_v33  ;;  %v7411_v61 = vpack.i.bf16 %v5128_v19, %v5127_v42  ;;  %v5199_v39 = vmul.f32 %v10101_v37, %v5167_v32  ;;  %v5147_v33 = vld [vmem:[#allocation2 + $0x260] sm:$0xff] }
 0x32e   : > { %v5200_v58 = vmul.f32 %v10101_v37, %v5168_v52  ;;  %v5173_v17 = vsub.f32 %v5141_v18, %v10086_v7  ;;  %v5174_v25 = vsub.f32 %v5142_v43, %v10086_v7  ;;  %v5171_v30 = vsub.f32 %v5139_v60, %v10086_v7  ;;  %v5158_v43 = vld [vmem:[#allocation2 + $0x2b8] sm:$0xff] }
 0x32f   : > { %7407 = vrot.lane.b32.xlu1 %v7406_v3, %s7622_s21  ;;  %7402 = vrot.lane.b32.xlu0 %v7401_v2, %s7622_s21  ;;  %v5172_v12 = vsub.f32 %v5140_v10, %v10086_v7  ;;  %v7426_v1 = vpack.i.bf16 %v5134_v44, %v5133_v11  ;;  %v5233_v14 = vmax.f32 %v5201_v21, 0.0  ;;  %v5177_v53 = vsub.f32 %v5145_v54, %v10086_v7  ;;  %v5150_v3 = vld [vmem:[#allocation2 + $0x278] sm:$0xff]  ;;  %v5153_v11 = vld [vmem:[#allocation2 + $0x290] sm:$0xff] }
 0x330   : > { %v5178_v31 = vsub.f32 %v5146_v15, %v10086_v7  ;;  %v7421_v48 = vpack.i.bf16 %v5132_v57, %v5131_v46  ;;  %v5234_v28 = vmax.f32 %v5202_v6, 0.0  ;;  %v5205_v35 = vmul.f32 %v10101_v37, %v5173_v17  ;;  %v5154_v46 = vld [vmem:[#allocation2 + $0x298] sm:$0xff]  ;;  %v5151_v57 = vld [vmem:[#allocation2 + $0x280] sm:$0xff]  ;;  %v5152_v6 = vld [vmem:[#allocation2 + $0x288] sm:$0xff] }
 0x331   : > { %v5206_v4 = vmul.f32 %v10101_v37, %v5174_v25  ;;  %v5231_v0 = vmax.f32 %v5199_v39, 0.0  ;;  %v5232_v59 = vmax.f32 %v5200_v58, 0.0  ;;  %v5203_v23 = vmul.f32 %v10101_v37, %v5171_v30  ;;  %v5157_v58 = vld [vmem:[#allocation2 + $0x2b0] sm:$0xff] }
 0x332   : > { %v5204_v20 = vmul.f32 %v10101_v37, %v5172_v12  ;;  %v5175_v13 = vsub.f32 %v5143_v16, %v10086_v7  ;;  %v5176_v51 = vsub.f32 %v5144_v47, %v10086_v7  ;;  %v5209_v49 = vmul.f32 %v10101_v37, %v5177_v53 }
 0x333   : > { %7417 = vrot.lane.b32.xlu1 %v7416_v22, %s7622_s21  ;;  %7412 = vrot.lane.b32.xlu0 %v7411_v61, %s7622_s21  ;;  %v5210_v40 = vmul.f32 %v10101_v37, %v5178_v31  ;;  %v5181_v62 = vsub.f32 %v5149_v27, %v10086_v7  ;;  %v7436_v29 = vpack.i.bf16 %v5234_v28, %v5233_v14  ;;  %v5237_v63 = vmax.f32 %v5205_v35, 0.0  ;;  %v5156_v28 = vld [vmem:[#allocation2 + $0x2a8] sm:$0xff] }
 0x334   : > { %v5207_v55 = vmul.f32 %v10101_v37, %v5175_v13  ;;  %v5208_v34 = vmul.f32 %v10101_v37, %v5176_v51  ;;  %v7431_v26 = vpack.i.bf16 %v5232_v59, %v5231_v0  ;;  %v5238_v36 = vmax.f32 %v5206_v4, 0.0  ;;  %v5161_v0 = vld [vmem:[#allocation2 + $0x2d0] sm:$0xff] }
 0x335   : > { %v5235_v56 = vmax.f32 %v5203_v23, 0.0  ;;  %v5236_v8 = vmax.f32 %v5204_v20, 0.0  ;;  %v5182_v50 = vsub.f32 %v5150_v3, %v10086_v7  ;;  %v5179_v2 = vsub.f32 %v5147_v33, %v10086_v7 }
 0x336   : > { %v5241_v5 = vmax.f32 %v5209_v49, 0.0  ;;  %v5242_v42 = vmax.f32 %v5210_v40, 0.0  ;;  %v5213_v19 = vmul.f32 %v10101_v37, %v5181_v62  ;;  %v5180_v9 = vsub.f32 %v5148_v41, %v10086_v7 }
 0x337   : > { %7427 = vrot.lane.b32.xlu1 %v7426_v1, %s7622_s21  ;;  %7422 = vrot.lane.b32.xlu0 %v7421_v48, %s7622_s21  ;;  %v5239_v38 = vmax.f32 %v5207_v55, 0.0  ;;  %v5240_v24 = vmax.f32 %v5208_v34, 0.0  ;;  %v5214_v45 = vmul.f32 %v10101_v37, %v5182_v50  ;;  %v5211_v32 = vmul.f32 %v10101_v37, %v5179_v2  ;;  %v5155_v48 = vld [vmem:[#allocation2 + $0x2a0] sm:$0xff]  ;;  %v5160_v34 = vld [vmem:[#allocation2 + $0x2c8] sm:$0xff]  ;;  %v5165_v2 = vld [vmem:[#allocation2 + $0x2f0] sm:$0xff] }
 0x338   : > { %v7446_v44 = vpack.i.bf16 %v5238_v36, %v5237_v63  ;;  %v7441_v21 = vpack.i.bf16 %v5236_v8, %v5235_v56  ;;  %v5212_v52 = vmul.f32 %v10101_v37, %v5180_v9  ;;  %v5185_v18 = vsub.f32 %v5153_v11, %v10086_v7  ;;  %v5159_v63 = vld [vmem:[#allocation2 + $0x2c0] sm:$0xff] }
 0x339   : > { %v5186_v22 = vsub.f32 %v5154_v46, %v10086_v7  ;;  %v5183_v61 = vsub.f32 %v5151_v57, %v10086_v7  ;;  %v5184_v39 = vsub.f32 %v5152_v6, %v10086_v7  ;;  %v7456_v60 = vpack.i.bf16 %v5242_v42, %v5241_v5  ;;  %v5266_v46 = vld [vmem:[#allocation2 + $0x318] sm:$0xff] }
 0x33a   : > { %v5245_v10 = vmax.f32 %v5213_v19, 0.0  ;;  %v5189_v17 = vsub.f32 %v5157_v58, %v10086_v7  ;;  %v5190_v25 = vsub.f32 %v5158_v43, %v10086_v7  ;;  %v7451_v30 = vpack.i.bf16 %v5240_v24, %v5239_v38  ;;  %v5166_v38 = vld [vmem:[#allocation2 + $0x2f8] sm:$0xff]  ;;  %v5163_v24 = vld [vmem:[#allocation2 + $0x2e0] sm:$0xff] }
 0x33b   : > { %7437 = vrot.lane.b32.xlu1 %v7436_v29, %s7623_s22  ;;  %7432 = vrot.lane.b32.xlu0 %v7431_v26, %s7623_s22  ;;  %v5246_v12 = vmax.f32 %v5214_v45, 0.0  ;;  %v5243_v54 = vmax.f32 %v5211_v32, 0.0  ;;  %v5217_v15 = vmul.f32 %v10101_v37, %v5185_v18  ;;  %v5244_v1 = vmax.f32 %v5212_v52, 0.0  ;;  %v5162_v29 = vld [vmem:[#allocation2 + $0x2d8] sm:$0xff]  ;;  %v5164_v45 = vld [vmem:[#allocation2 + $0x2e8] sm:$0xff]  ;;  %v5265_v52 = vld [vmem:[#allocation2 + $0x310] sm:$0xff] }
 0x33c   : > { %v5218_v14 = vmul.f32 %v10101_v37, %v5186_v22  ;;  %v5215_v53 = vmul.f32 %v10101_v37, %v5183_v61  ;;  %v5216_v31 = vmul.f32 %v10101_v37, %v5184_v39  ;;  %v5187_v35 = vsub.f32 %v5155_v48, %v10086_v7 }
 0x33d   : > { %v5188_v4 = vsub.f32 %v5156_v28, %v10086_v7  ;;  %v5221_v59 = vmul.f32 %v10101_v37, %v5189_v17  ;;  %v5222_v23 = vmul.f32 %v10101_v37, %v5190_v25  ;;  %v5193_v20 = vsub.f32 %v5161_v0, %v10086_v7 }
 0x33e   : > { %v7466_v16 = vpack.i.bf16 %v5246_v12, %v5245_v10  ;;  %v5249_v47 = vmax.f32 %v5217_v15, 0.0  ;;  %v5219_v13 = vmul.f32 %v10101_v37, %v5187_v35  ;;  %v7461_v27 = vpack.i.bf16 %v5244_v1, %v5243_v54  ;;  %v5264_v12 = vld [vmem:[#allocation2 + $0x308] sm:$0xff]  ;;  %v5269_v54 = vld [vmem:[#allocation2 + $0x330] sm:$0xff] }
 0x33f   : > { %7447 = vrot.lane.b32.xlu1 %v7446_v44, %s7623_s22  ;;  %7442 = vrot.lane.b32.xlu0 %v7441_v21, %s7623_s22  ;;  %v5220_v51 = vmul.f32 %v10101_v37, %v5188_v4  ;;  %v5250_v49 = vmax.f32 %v5218_v14, 0.0  ;;  %v5247_v40 = vmax.f32 %v5215_v53, 0.0  ;;  %v5248_v62 = vmax.f32 %v5216_v31, 0.0  ;;  %v5270_v14 = vld [vmem:[#allocation2 + $0x338] sm:$0xff] }
 0x340   : > { %v5194_v55 = vsub.f32 %v5162_v29, %v10086_v7  ;;  %v5191_v26 = vsub.f32 %v5159_v63, %v10086_v7  ;;  %v5253_v36 = vmax.f32 %v5221_v59, 0.0  ;;  %v5254_v56 = vmax.f32 %v5222_v23, 0.0  ;;  %v5267_v23 = vld [vmem:[#allocation2 + $0x320] sm:$0xff] }
 0x341   : > { %v5225_v8 = vmul.f32 %v10101_v37, %v5193_v20  ;;  %v5192_v3 = vsub.f32 %v5160_v34, %v10086_v7  ;;  %v5251_v33 = vmax.f32 %v5219_v13, 0.0  ;;  %v5252_v50 = vmax.f32 %v5220_v51, 0.0  ;;  %v5268_v51 = vld [vmem:[#allocation2 + $0x328] sm:$0xff] }
 0x342   : > { %v5226_v41 = vmul.f32 %v10101_v37, %v5194_v55  ;;  %v7476_v5 = vpack.i.bf16 %v5250_v49, %v5249_v47  ;;  %v7471_v42 = vpack.i.bf16 %v5248_v62, %v5247_v40  ;;  %v5223_v19 = vmul.f32 %v10101_v37, %v5191_v26  ;;  %v5274_v49 = vld [vmem:[#allocation2 + $0x358] sm:$0xff] }
 0x343   : > { %7457 = vrot.lane.b32.xlu1 %v7456_v60, %s7623_s22  ;;  %7452 = vrot.lane.b32.xlu0 %v7451_v30, %s7623_s22  ;;  %v5224_v9 = vmul.f32 %v10101_v37, %v5192_v3  ;;  %v5197_v32 = vsub.f32 %v5165_v2, %v10086_v7  ;;  %v5198_v11 = vsub.f32 %v5166_v38, %v10086_v7  ;;  %v5257_v6 = vmax.f32 %v5225_v8, 0.0  ;;  %v5263_v30 = vld [vmem:[#allocation2 + $0x300] sm:$0xff] }
 0x344   : > { %v5195_v44 = vsub.f32 %v5163_v24, %v10086_v7  ;;  %v5196_v21 = vsub.f32 %v5164_v45, %v10086_v7  ;;  %v7486_v57 = vpack.i.bf16 %v5254_v56, %v5253_v36  ;;  %v5297_v18 = vsub.f32 %v5265_v52, %v10086_v7 }
 0x345   : > { %v5298_v22 = vsub.f32 %v5266_v46, %v10086_v7  ;;  %v7481_v61 = vpack.i.bf16 %v5252_v50, %v5251_v33  ;;  %v5258_v39 = vmax.f32 %v5226_v41, 0.0  ;;  %v5229_v58 = vmul.f32 %v10101_v37, %v5197_v32  ;;  %v5278_v46 = vld [vmem:[#allocation2 + $0x378] sm:$0xff] }
 0x346   : > { %v5230_v43 = vmul.f32 %v10101_v37, %v5198_v11  ;;  %v5255_v60 = vmax.f32 %v5223_v19, 0.0  ;;  %v5256_v10 = vmax.f32 %v5224_v9, 0.0  ;;  %v5227_v17 = vmul.f32 %v10101_v37, %v5195_v44  ;;  %v5272_v19 = vld [vmem:[#allocation2 + $0x348] sm:$0xff]  ;;  %v5277_v11 = vld [vmem:[#allocation2 + $0x370] sm:$0xff] }
 0x347   : > { %7467 = vrot.lane.b32.xlu1 %v7466_v16, %s7623_s22  ;;  %7462 = vrot.lane.b32.xlu0 %v7461_v27, %s7623_s22  ;;  %v5228_v25 = vmul.f32 %v10101_v37, %v5196_v21  ;;  %v5295_v15 = vsub.f32 %v5263_v30, %v10086_v7  ;;  %v5296_v1 = vsub.f32 %v5264_v12, %v10086_v7  ;;  %v5261_v4 = vmax.f32 %v5229_v58, 0.0  ;;  %v5273_v27 = vld [vmem:[#allocation2 + $0x350] sm:$0xff]  ;;  %v5276_v58 = vld [vmem:[#allocation2 + $0x368] sm:$0xff] }
 0x348   : > { %v5301_v53 = vsub.f32 %v5269_v54, %v10086_v7  ;;  %v5329_v31 = vmul.f32 %v10101_v37, %v5297_v18  ;;  %v5330_v48 = vmul.f32 %v10101_v37, %v5298_v22  ;;  %v5302_v28 = vsub.f32 %v5270_v14, %v10086_v7 }
 0x349   : > { %v7496_v35 = vpack.i.bf16 %v5258_v39, %v5257_v6  ;;  %v5327_v0 = vmul.f32 %v10101_v37, %v5295_v15  ;;  %v5328_v59 = vmul.f32 %v10101_v37, %v5296_v1  ;;  %v7491_v20 = vpack.i.bf16 %v5256_v10, %v5255_v60  ;;  %v5275_v39 = vld [vmem:[#allocation2 + $0x360] sm:$0xff]  ;;  %v5281_v15 = vld [vmem:[#allocation2 + $0x390] sm:$0xff] }
 0x34a   : > { %v5262_v16 = vmax.f32 %v5230_v43, 0.0  ;;  %v5259_v47 = vmax.f32 %v5227_v17, 0.0  ;;  %v5260_v13 = vmax.f32 %v5228_v25, 0.0  ;;  %v5299_v40 = vsub.f32 %v5267_v23, %v10086_v7 }
 0x34b   : > { %7477 = vrot.lane.b32.xlu1 %v7476_v5, %s7623_s22  ;;  %7472 = vrot.lane.b32.xlu0 %v7471_v42, %s7623_s22  ;;  %v5300_v62 = vsub.f32 %v5268_v51, %v10086_v7  ;;  %v5305_v29 = vsub.f32 %v5273_v27, %v10086_v7  ;;  %v5306_v63 = vsub.f32 %v5274_v49, %v10086_v7  ;;  %v5361_v55 = vmax.f32 %v5329_v31, 0.0  ;;  %v5271_v5 = vld [vmem:[#allocation2 + $0x340] sm:$0xff]  ;;  %v5282_v31 = vld [vmem:[#allocation2 + $0x398] sm:$0xff] }
 0x34c   : > { %v5362_v34 = vmax.f32 %v5330_v48, 0.0  ;;  %v5333_v26 = vmul.f32 %v10101_v37, %v5301_v53  ;;  %v5334_v36 = vmul.f32 %v10101_v37, %v5302_v28  ;;  %v5359_v56 = vmax.f32 %v5327_v0, 0.0  ;;  %v5279_v0 = vld [vmem:[#allocation2 + $0x380] sm:$0xff]  ;;  %v5286_v51 = vld [vmem:[#allocation2 + $0x3b8] sm:$0xff] }
 0x34d   : > { %v5360_v8 = vmax.f32 %v5328_v59, 0.0  ;;  %v5331_v3 = vmul.f32 %v10101_v37, %v5299_v40  ;;  %v5332_v33 = vmul.f32 %v10101_v37, %v5300_v62  ;;  %v7506_v50 = vpack.i.bf16 %v5262_v16, %v5261_v4  ;;  %v5280_v59 = vld [vmem:[#allocation2 + $0x388] sm:$0xff] }
 0x34e   : > { %v7501_v41 = vpack.i.bf16 %v5260_v13, %v5259_v47  ;;  %v5337_v2 = vmul.f32 %v10101_v37, %v5305_v29  ;;  %v5338_v42 = vmul.f32 %v10101_v37, %v5306_v63  ;;  %v5303_v9 = vsub.f32 %v5271_v5, %v10086_v7  ;;  %v5285_v13 = vld [vmem:[#allocation2 + $0x3b0] sm:$0xff] }
 0x34f   : > { %7487 = vrot.lane.b32.xlu1 %v7486_v57, %s7623_s22  ;;  %7482 = vrot.lane.b32.xlu0 %v7481_v61, %s7623_s22  ;;  %v7516_v38 = vpack.i.bf16 %v5362_v34, %v5361_v55  ;;  %v5365_v24 = vmax.f32 %v5333_v26, 0.0  ;;  %v5366_v45 = vmax.f32 %v5334_v36, 0.0  ;;  %v5304_v32 = vsub.f32 %v5272_v19, %v10086_v7  ;;  %v5283_v26 = vld [vmem:[#allocation2 + $0x3a0] sm:$0xff]  ;;  %v5284_v36 = vld [vmem:[#allocation2 + $0x3a8] sm:$0xff]  ;;  %v5289_v19 = vld [vmem:[#allocation2 + $0x3d0] sm:$0xff] }
 0x350   : > { %v7511_v44 = vpack.i.bf16 %v5360_v8, %v5359_v56  ;;  %v5363_v21 = vmax.f32 %v5331_v3, 0.0  ;;  %v5364_v52 = vmax.f32 %v5332_v33, 0.0  ;;  %v5309_v57 = vsub.f32 %v5277_v11, %v10086_v7  ;;  %v5287_v11 = vld [vmem:[#allocation2 + $0x3c0] sm:$0xff] }
 0x351   : > { %v5369_v6 = vmax.f32 %v5337_v2, 0.0  ;;  %v5335_v18 = vmul.f32 %v10101_v37, %v5303_v9  ;;  %v5336_v22 = vmul.f32 %v10101_v37, %v5304_v32  ;;  %v5310_v61 = vsub.f32 %v5278_v46, %v10086_v7  ;;  %v5288_v46 = vld [vmem:[#allocation2 + $0x3c8] sm:$0xff] }
 0x352   : > { %v5370_v43 = vmax.f32 %v5338_v42, 0.0  ;;  %v5341_v60 = vmul.f32 %v10101_v37, %v5309_v57  ;;  %v5307_v10 = vsub.f32 %v5275_v39, %v10086_v7  ;;  %v5308_v17 = vsub.f32 %v5276_v58, %v10086_v7 }
 0x353   : > { %7497 = vrot.lane.b32.xlu1 %v7496_v35, %s7623_s22  ;;  %7492 = vrot.lane.b32.xlu0 %v7491_v20, %s7623_s22  ;;  %v5342_v25 = vmul.f32 %v10101_v37, %v5310_v61  ;;  %v7526_v30 = vpack.i.bf16 %v5366_v45, %v5365_v24  ;;  %v7521_v1 = vpack.i.bf16 %v5364_v52, %v5363_v21  ;;  %v5367_v14 = vmax.f32 %v5335_v18, 0.0  ;;  %v5290_v45 = vld [vmem:[#allocation2 + $0x3d8] sm:$0xff] }
 0x354   : > { %v5339_v12 = vmul.f32 %v10101_v37, %v5307_v10  ;;  %v5340_v54 = vmul.f32 %v10101_v37, %v5308_v17  ;;  %v5368_v53 = vmax.f32 %v5336_v22, 0.0  ;;  %v5313_v48 = vsub.f32 %v5281_v15, %v10086_v7  ;;  %v5293_v17 = vld [vmem:[#allocation2 + $0x3f0] sm:$0xff]  ;;  %v5292_v15 = vld [vmem:[#allocation2 + $0x3e8] sm:$0xff] }
 0x355   : > { %v7536_v28 = vpack.i.bf16 %v5370_v43, %v5369_v6  ;;  %v5373_v35 = vmax.f32 %v5341_v60, 0.0  ;;  %v5314_v4 = vsub.f32 %v5282_v31, %v10086_v7  ;;  %v5374_v23 = vmax.f32 %v5342_v25, 0.0 }
 0x356   : > { %v5345_v20 = vmul.f32 %v10101_v37, %v5313_v48  ;;  %v5311_v16 = vsub.f32 %v5279_v0, %v10086_v7  ;;  %v5312_v47 = vsub.f32 %v5280_v59, %v10086_v7  ;;  %v5371_v27 = vmax.f32 %v5339_v12, 0.0 }
 0x357   : > { %7507 = vrot.lane.b32.xlu1 %v7506_v50, %s7623_s22  ;;  %7502 = vrot.lane.b32.xlu0 %v7501_v41, %s7623_s22  ;;  %v5372_v49 = vmax.f32 %v5340_v54, 0.0  ;;  %v5317_v40 = vsub.f32 %v5285_v13, %v10086_v7  ;;  %v5318_v62 = vsub.f32 %v5286_v51, %v10086_v7  ;;  %v7531_v29 = vpack.i.bf16 %v5368_v53, %v5367_v14  ;;  %v5291_v54 = vld [vmem:[#allocation2 + $0x3e0] sm:$0xff] }
 0x358   : > { %v5346_v63 = vmul.f32 %v10101_v37, %v5314_v4  ;;  %v5343_v55 = vmul.f32 %v10101_v37, %v5311_v16  ;;  %v5344_v34 = vmul.f32 %v10101_v37, %v5312_v47  ;;  %v5315_v3 = vsub.f32 %v5283_v26, %v10086_v7 }
 0x359   : > { %v5349_v56 = vmul.f32 %v10101_v37, %v5317_v40  ;;  %v5350_v8 = vmul.f32 %v10101_v37, %v5318_v62  ;;  %v5316_v33 = vsub.f32 %v5284_v36, %v10086_v7  ;;  %v7546_v50 = vpack.i.bf16 %v5374_v23, %v5373_v35 }
 0x35a   : > { %v7541_v41 = vpack.i.bf16 %v5372_v49, %v5371_v27  ;;  %v5377_v2 = vmax.f32 %v5345_v20, 0.0  ;;  %v5347_v5 = vmul.f32 %v10101_v37, %v5315_v3  ;;  %v5378_v9 = vmax.f32 %v5346_v63, 0.0 }
 0x35b   : > { %7517 = vrot.lane.b32.xlu1 %v7516_v38, %s7624_s23  ;;  %7512 = vrot.lane.b32.xlu0 %v7511_v44, %s7624_s23  ;;  %v5348_v42 = vmul.f32 %v10101_v37, %v5316_v33  ;;  %v5375_v38 = vmax.f32 %v5343_v55, 0.0  ;;  %v5376_v24 = vmax.f32 %v5344_v34, 0.0  ;;  %v5321_v32 = vsub.f32 %v5289_v19, %v10086_v7 }
 0x35c   : > { %v5381_v44 = vmax.f32 %v5349_v56, 0.0  ;;  %v5382_v21 = vmax.f32 %v5350_v8, 0.0  ;;  %v5322_v52 = vsub.f32 %v5290_v45, %v10086_v7  ;;  %v5319_v57 = vsub.f32 %v5287_v11, %v10086_v7  ;;  %v4883_v56 = vld [vmem:[#allocation2 + $0x20] sm:$0xff]  ;;  %v4884_v8 = vld [vmem:[#allocation2 + $0x28] sm:$0xff]  ;;  %v4885_v45 = vld [vmem:[#allocation2 + $0x30] sm:$0xff] }
 0x35d   : > { %v5353_v6 = vmul.f32 %v10101_v37, %v5321_v32  ;;  %v5320_v18 = vsub.f32 %v5288_v46, %v10086_v7  ;;  %v5379_v22 = vmax.f32 %v5347_v5, 0.0  ;;  %v5380_v61 = vmax.f32 %v5348_v42, 0.0  ;;  %v4879_v42 = vld [vmem:[#allocation2] sm:$0xff] }
 0x35e   : > { %v5354_v39 = vmul.f32 %v10101_v37, %v5322_v52  ;;  %v5351_v58 = vmul.f32 %v10101_v37, %v5319_v57  ;;  %v7556_v43 = vpack.i.bf16 %v5378_v9, %v5377_v2  ;;  %v7551_v60 = vpack.i.bf16 %v5376_v24, %v5375_v38  ;;  %v4880_v38 = vld [vmem:[#allocation2 + $0x8] sm:$0xff]  ;;  %v4881_v52 = vld [vmem:[#allocation2 + $0x10] sm:$0xff] }
 0x35f   : > { %7527 = vrot.lane.b32.xlu1 %v7526_v30, %s7624_s23  ;;  %7522 = vrot.lane.b32.xlu0 %v7521_v1, %s7624_s23  ;;  %v5352_v10 = vmul.f32 %v10101_v37, %v5320_v18  ;;  %v7566_v25 = vpack.i.bf16 %v5382_v21, %v5381_v44  ;;  %v5294_v30 = vld [vmem:[#allocation2 + $0x3f8] sm:$0xff]  ;;  %v5325_v12 = vsub.f32 %v5293_v17, %v10086_v7  ;;  %v5385_v1 = vmax.f32 %v5353_v6, 0.0  ;;  %v4887_v17 = vld [vmem:[#allocation2 + $0x40] sm:$0xff] }
 0x360   : > { %v5326_v14 = vsub.f32 %v5294_v30, %v10086_v7  ;;  %v5323_v53 = vsub.f32 %v5291_v54, %v10086_v7  ;;  %v5324_v31 = vsub.f32 %v5292_v15, %v10086_v7  ;;  %v7561_v48 = vpack.i.bf16 %v5380_v61, %v5379_v22  ;;  %v4886_v44 = vld [vmem:[#allocation2 + $0x38] sm:$0xff]  ;;  %v4889_v61 = vld [vmem:[#allocation2 + $0x50] sm:$0xff] }
 0x361   : > { %v5383_v35 = vmax.f32 %v5351_v58, 0.0  ;;  %v5357_v4 = vmul.f32 %v10101_v37, %v5325_v12  ;;  %v5384_v0 = vmax.f32 %v5352_v10, 0.0  ;;  %v4915_v3 = vsub.f32 %v4883_v56, %v10086_v7  ;;  %v4882_v18 = vld [vmem:[#allocation2 + $0x18] sm:$0xff] }
 0x362   : > { %v5358_v59 = vmul.f32 %v10101_v37, %v5326_v14  ;;  %v5355_v23 = vmul.f32 %v10101_v37, %v5323_v53  ;;  %v5356_v20 = vmul.f32 %v10101_v37, %v5324_v31  ;;  %v4911_v24 = vsub.f32 %v4879_v42, %v10086_v7  ;;  %v4893_v53 = vld [vmem:[#allocation2 + $0x70] sm:$0xff] }
 0x363   : > { %7537 = vrot.lane.b32.xlu1 %v7536_v28, %s7624_s23  ;;  %7532 = vrot.lane.b32.xlu0 %v7531_v29, %s7624_s23  ;;  %v5386_v28 = vmax.f32 %v5354_v39, 0.0  ;;  %v5389_v47 = vmax.f32 %v5357_v4, 0.0  ;;  %v7571_v13 = vpack.i.bf16 %v5384_v0, %v5383_v35  ;;  %v10351_v2 = vmul.f32 %v10101_v37, %v4915_v3  ;;  %v4894_v35 = vld [vmem:[#allocation2 + $0x78] sm:$0xff]  ;;  %v4891_v0 = vld [vmem:[#allocation2 + $0x60] sm:$0xff]  ;;  %v4897_v42 = vld [vmem:[#allocation2 + $0x90] sm:$0xff] }
 0x364   : > { %v5390_v51 = vmax.f32 %v5358_v59, 0.0  ;;  %v5387_v27 = vmax.f32 %v5355_v23, 0.0  ;;  %v5388_v49 = vmax.f32 %v5356_v20, 0.0  ;;  %v4912_v11 = vsub.f32 %v4880_v38, %v10086_v7 }
 0x365   : > { %v7576_v16 = vpack.i.bf16 %v5386_v28, %v5385_v1  ;;  %v4917_v21 = vsub.f32 %v4885_v45, %v10086_v7  ;;  %v10366_v57 = vmul.f32 %v10101_v37, %v4911_v24  ;;  %v4918_v6 = vsub.f32 %v4886_v44, %v10086_v7  ;;  %v4888_v1 = vld [vmem:[#allocation2 + $0x48] sm:$0xff]  ;;  %v4907_v44 = vld [vmem:[#allocation2 + $0xe0] sm:$0xff] }
 0x366   : > { %v7586_v40 = vpack.i.bf16 %v5390_v51, %v5389_v47  ;;  %v7581_v62 = vpack.i.bf16 %v5388_v49, %v5387_v27  ;;  %v4913_v22 = vsub.f32 %v4881_v52, %v10086_v7  ;;  %v10371_v39 = vmul.f32 %v10101_v37, %v4912_v11  ;;  %v4892_v49 = vld [vmem:[#allocation2 + $0x68] sm:$0xff] }
 0x367   : > { %7547 = vrot.lane.b32.xlu1 %v7546_v50, %s7624_s23  ;;  %7542 = vrot.lane.b32.xlu0 %v7541_v41, %s7624_s23  ;;  %v4916_v41 = vsub.f32 %v4884_v8, %v10086_v7  ;;  %v10374_v58 = vmul.f32 %v10101_v37, %v4917_v21  ;;  %v4921_v10 = vsub.f32 %v4889_v61, %v10086_v7  ;;  %v4908_v45 = vld [vmem:[#allocation2 + $0xe8] sm:$0xff] }
 0x368   : > { %v10383_v12 = vmul.f32 %v10101_v37, %v4918_v6  ;;  %v10386_v54 = vmul.f32 %v10101_v37, %v4913_v22  ;;  %v4919_v14 = vsub.f32 %v4887_v17, %v10086_v7  ;;  %v4920_v28 = vsub.f32 %v4888_v1, %v10086_v7  ;;  %v4896_v17 = vld [vmem:[#allocation2 + $0x88] sm:$0xff]  ;;  %v4909_v22 = vld [vmem:[#allocation2 + $0xf0] sm:$0xff] }
 0x369   : > { %v10354_v5 = vmul.f32 %v10101_v37, %v4916_v41  ;;  %v4925_v4 = vsub.f32 %v4893_v53, %v10086_v7  ;;  %v4926_v20 = vsub.f32 %v4894_v35, %v10086_v7  ;;  %v4924_v3 = vsub.f32 %v4892_v49, %v10086_v7 }
 0x36a   : > { %v10402_v23 = vmul.f32 %v10101_v37, %v4919_v14  ;;  %v10409_v51 = vmul.f32 %v10101_v37, %v4920_v28  ;;  %v4929_v11 = vsub.f32 %v4897_v42, %v10086_v7  ;;  %v4928_v35 = vsub.f32 %v4896_v17, %v10086_v7  ;;  %v4900_v42 = vld [vmem:[#allocation2 + $0xa8] sm:$0xff]  ;;  %v4905_v14 = vld [vmem:[#allocation2 + $0xd0] sm:$0xff] }
 0x36b   : > { %7557 = vrot.lane.b32.xlu1 %v7556_v43, %s7624_s23  ;;  %7552 = vrot.lane.b32.xlu0 %v7551_v60, %s7624_s23  ;;  %v4914_v43 = vsub.f32 %v4882_v18, %v10086_v7  ;;  %v4890_v60 = vld [vmem:[#allocation2 + $0x58] sm:$0xff]  ;;  %v10412_v27 = vmul.f32 %v10101_v37, %v4925_v4  ;;  %v10420_v8 = vmul.f32 %v10101_v37, %v4926_v20  ;;  %v4901_v4 = vld [vmem:[#allocation2 + $0xb0] sm:$0xff]  ;;  %v4899_v20 = vld [vmem:[#allocation2 + $0xa0] sm:$0xff] }
 0x36c   : > { %v4922_v15 = vsub.f32 %v4890_v60, %v10086_v7  ;;  %v10434_v6 = vmul.f32 %v10101_v37, %v4924_v3  ;;  %v4898_v18 = vld [vmem:[#allocation2 + $0x98] sm:$0xff]  ;;  %v10440_v60 = vmul.f32 %v10101_v37, %v4929_v11  ;;  %v4933_v49 = vsub.f32 %v4901_v4, %v10086_v7 }
 0x36d   : > { %v10391_v31 = vmul.f32 %v10101_v37, %v4914_v43  ;;  %v4930_v43 = vsub.f32 %v4898_v18, %v10086_v7  ;;  %v4931_v11 = vsub.f32 %v4899_v20, %v10086_v7  ;;  %v4932_v17 = vsub.f32 %v4900_v42, %v10086_v7  ;;  %v4906_v20 = vld [vmem:[#allocation2 + $0xd8] sm:$0xff]  ;;  %v4904_v18 = vld [vmem:[#allocation2 + $0xc8] sm:$0xff] }
 0x36e   : > { %v10399_v59 = vmul.f32 %v10101_v37, %v4922_v15  ;;  %v10465_v61 = vmul.f32 %v10101_v37, %v4933_v49  ;;  %v4938_v49 = vsub.f32 %v4906_v20, %v10086_v7  ;;  %v4936_v21 = vsub.f32 %v4904_v18, %v10086_v7 }
 0x36f   : > { %7567 = vrot.lane.b32.xlu1 %v7566_v25, %s7624_s23  ;;  %7562 = vrot.lane.b32.xlu0 %v7561_v48, %s7624_s23  ;;  %v10394_v48 = vmul.f32 %v10101_v37, %v4921_v10  ;;  %v4895_v10 = vld [vmem:[#allocation2 + $0x80] sm:$0xff]  ;;  %v10479_v42 = vmul.f32 %v10101_v37, %v4932_v17  ;;  %v4939_v38 = vsub.f32 %v4907_v44, %v10086_v7 }
 0x370   : > { %v4927_v28 = vsub.f32 %v4895_v10, %v10086_v7  ;;  %v10461_v10 = vmul.f32 %v10101_v37, %v4928_v35  ;;  %v4940_v56 = vsub.f32 %v4908_v45, %v10086_v7  ;;  %v10492_v20 = vmul.f32 %v10101_v37, %v4938_v49 }
 0x371   : > { %v10498_v18 = vmul.f32 %v10101_v37, %v4936_v21 }
 0x372   : > { %v10458_v53 = vmul.f32 %v10101_v37, %v4927_v28  ;;  %v4937_v28 = vsub.f32 %v4905_v14, %v10086_v7  ;;  %v4941_v14 = vsub.f32 %v4909_v22, %v10086_v7  ;;  %v10510_v45 = vmul.f32 %v10101_v37, %v4940_v56 }
 0x373   : > { %7577 = vrot.lane.b32.xlu1 %v7576_v16, %s7624_s23  ;;  %7572 = vrot.lane.b32.xlu0 %v7571_v13, %s7624_s23  ;;  %v4923_v16 = vsub.f32 %v4891_v0, %v10086_v7  ;;  %v4902_v0 = vld [vmem:[#allocation2 + $0xb8] sm:$0xff] }
 0x374   : > { %v4934_v3 = vsub.f32 %v4902_v0, %v10086_v7  ;;  %v10471_v0 = vmul.f32 %v10101_v37, %v4931_v11  ;;  %v4910_v11 = vld [vmem:[#allocation2 + $0xf8] sm:$0xff]  ;;  %v10489_v17 = vmul.f32 %v10101_v37, %v4937_v28  ;;  %v10501_v22 = vmul.f32 %v10101_v37, %v4941_v14  ;;  %11441 = vst [vmem:[#allocation30_spill] sm:$0xff] %v10510_v45 }
 0x375   : > { %v10424_v41 = vmul.f32 %v10101_v37, %v4923_v16  ;;  %v10451_v16 = vmul.f32 %v10101_v37, %v4930_v43  ;;  %v4903_v43 = vld [vmem:[#allocation2 + $0xc0] sm:$0xff]  ;;  %v4942_v24 = vsub.f32 %v4910_v11, %v10086_v7 }
 0x376   : > { %v10468_v4 = vmul.f32 %v10101_v37, %v4934_v3  ;;  %v4935_v3 = vsub.f32 %v4903_v43, %v10086_v7  ;;  %v10507_v7 = vmul.f32 %v10101_v37, %v4939_v38 }
 0x377   : > { %7587 = vrot.lane.b32.xlu1 %v7586_v40, %s7624_s23  ;;  %7582 = vrot.lane.b32.xlu0 %v7581_v62, %s7624_s23  ;;  %v10504_v11 = vmul.f32 %v10101_v37, %v4942_v24 }
 0x378   : > { %v10495_v43 = vmul.f32 %v10101_v37, %v4935_v3 }
 0x38d   : > { %v10332_v29 = vpop.permute.xlu1 %7362  ;;  %v10334_v63 = vpop.permute.xlu0 %7352 }
 0x38e   : > { %v7365_v56 = vunpack.i.h.bf16 %v10332_v29  ;;  %v7364_v47 = vunpack.i.l.bf16 %v10332_v29  ;;  %v7355_v49 = vunpack.i.h.bf16 %v10334_v63  ;;  %v7354_v21 = vunpack.i.l.bf16 %v10334_v63 }
 0x391   : > { %v10336_v55 = vpop.permute.xlu1 %7367  ;;  %v10338_v34 = vpop.permute.xlu0 %7357 }
 0x392   : > { %v7370_v3 = vunpack.i.h.bf16 %v10336_v55  ;;  %v7369_v14 = vunpack.i.l.bf16 %v10336_v55  ;;  %v7360_v24 = vunpack.i.h.bf16 %v10338_v34  ;;  %v7359_v38 = vunpack.i.l.bf16 %v10338_v34 }
 0x393   : > { %v11447_v34 = vmax.f32 %v10351_v2, 0.0  ;;  %v11451_v2 = vmax.f32 %v10374_v58, 0.0  ;;  %v11455_v58 = vmax.f32 %v10394_v48, 0.0  ;;  %v11459_v48 = vmax.f32 %v10412_v27, 0.0 }
 0x395   : > { %v10340_v26 = vpop.permute.xlu1 %7377  ;;  %v10342_v36 = vpop.permute.xlu0 %7372 }
 0x396   : > { %v7380_v37 = vunpack.i.h.bf16 %v10340_v26  ;;  %v7379_v32 = vunpack.i.l.bf16 %v10340_v26  ;;  %v7374_v29 = vunpack.i.l.bf16 %v10342_v36  ;;  %v10559_v26 = vsel %vm669_vm3, %v11447_v34, %v7364_v47 }
 0x397   : > { %v10579_v47 = vsel %vm669_vm3, %v11451_v2, %v7369_v14 }
 0x398   : > { %v10599_v14 = vsel %vm669_vm3, %v11455_v58, %v7379_v32  ;;  %v11463_v58 = vmax.f32 %v10440_v60, 0.0  ;;  %v11467_v60 = vmax.f32 %v10465_v61, 0.0  ;;  %v11471_v61 = vmax.f32 %v10489_v17, 0.0 }
 0x399   : > { %v10345_v33 = vpop.permute.xlu1 %7387  ;;  %v10347_v50 = vpop.permute.xlu0 %7382  ;;  %v11475_v17 = vmax.f32 %v10501_v22, 0.0 }
 0x39a   : > { %v7389_v63 = vunpack.i.l.bf16 %v10345_v33  ;;  %v7384_v55 = vunpack.i.l.bf16 %v10347_v50 }
 0x39c   : > { %v10619_v32 = vsel %vm669_vm3, %v11459_v48, %v7389_v63 }
 0x39d   : > { %v10356_v19 = vpop.permute.xlu1 %7397  ;;  %v10358_v9 = vpop.permute.xlu0 %7392 }
 0x39e   : > { %v7400_v63 = vunpack.i.h.bf16 %v10356_v19 }
 0x3a1   : > { %v10378_v25 = vpop.permute.xlu1 %7407  ;;  %v10380_v30 = vpop.permute.xlu0 %7402 }
 0x3a2   : > { %v7409_v34 = vunpack.i.l.bf16 %v10378_v25 }
 0x3a4   : > { %v10683_v48 = vsel %vm669_vm3, %v11467_v60, %v7409_v34 }
 0x3a5   : > { %v10414_v40 = vpop.permute.xlu1 %7417  ;;  %v10416_v62 = vpop.permute.xlu0 %7412 }
 0x3a6   : > { %v7415_v2 = vunpack.i.h.bf16 %v10416_v62 }
 0x3a9   : > { %v10442_v15 = vpop.permute.xlu1 %7427  ;;  %v10444_v1 = vpop.permute.xlu0 %7422 }
 0x3ad   : > { %v10474_v35 = vpop.permute.xlu1 %7437  ;;  %v10476_v52 = vpop.permute.xlu0 %7432 }
 0x3ae   : > { %11439 = vst [vmem:[#allocation23_spill] sm:$0xff] %v10474_v35  ;;  %11440 = vst [vmem:[#allocation13_spill] sm:$0xff] %v10476_v52  ;;  %v11448_v35 = vmax.f32 %v10354_v5, 0.0  ;;  %v11452_v5 = vmax.f32 %v10383_v12, 0.0  ;;  %v11456_v12 = vmax.f32 %v10399_v59, 0.0  ;;  %v11460_v59 = vmax.f32 %v10420_v8, 0.0 }
 0x3af   : > { %v7399_v8 = vunpack.i.l.bf16 %v10356_v19  ;;  %v7414_v19 = vunpack.i.l.bf16 %v10416_v62 }
 0x3b1   : > { %v10512_v44 = vpop.permute.xlu1 %7447  ;;  %v10514_v28 = vpop.permute.xlu0 %7442 }
 0x3b2   : > { %11442 = vst [vmem:[#allocation35_spill] sm:$0xff] %v10512_v44  ;;  %11443 = vst [vmem:[#allocation26_spill] sm:$0xff] %v10514_v28  ;;  %v7385_v28 = vunpack.i.h.bf16 %v10347_v50  ;;  %v11450_v50 = vmax.f32 %v10371_v39, 0.0  ;;  %v11454_v39 = vmax.f32 %v10391_v31, 0.0  ;;  %v11458_v31 = vmax.f32 %v10409_v51, 0.0 }
 0x3b3   : > { %v11462_v51 = vmax.f32 %v10434_v6, 0.0  ;;  %v7405_v6 = vunpack.i.h.bf16 %v10380_v30 }
 0x3b5   : > { %v10532_v46 = vpop.permute.xlu1 %7457  ;;  %v10534_v13 = vpop.permute.xlu0 %7452 }
 0x3b6   : > { %11444 = vst [vmem:[#allocation17_spill] sm:$0xff] %v10532_v46  ;;  %11445 = vst [vmem:[#allocation46_spill] sm:$0xff] %v10534_v13  ;;  %v7375_v13 = vunpack.i.h.bf16 %v10342_v36  ;;  %v7390_v46 = vunpack.i.h.bf16 %v10345_v33  ;;  %v10564_v36 = vsel %vm669_vm3, %v11448_v35, %v7365_v56  ;;  %v11449_v33 = vmax.f32 %v10366_v57, 0.0 }
 0x3b7   : > { %v10584_v35 = vsel %vm669_vm3, %v11452_v5, %v7370_v3  ;;  %v11453_v57 = vmax.f32 %v10386_v54, 0.0  ;;  %v10604_v3 = vsel %vm669_vm3, %v11456_v12, %v7380_v37  ;;  %v11457_v54 = vmax.f32 %v10402_v23, 0.0 }
 0x3b8   : > { %v10569_v45 = vsel %vm669_vm3, %v11449_v33, %v7354_v21  ;;  %v10624_v37 = vsel %vm669_vm3, %v11460_v59, %v7390_v46  ;;  %v11461_v23 = vmax.f32 %v10424_v41, 0.0  ;;  %v7395_v46 = vunpack.i.h.bf16 %v10358_v9 }
 0x3b9   : > { %v10552_v44 = vpop.permute.xlu1 %7467  ;;  %v10554_v52 = vpop.permute.xlu0 %7462  ;;  %v10589_v21 = vsel %vm669_vm3, %v11453_v57, %v7359_v38  ;;  %v10609_v38 = vsel %vm669_vm3, %v11457_v54, %v7374_v29  ;;  %v7394_v41 = vunpack.i.l.bf16 %v10358_v9  ;;  %v7420_v33 = vunpack.i.h.bf16 %v10414_v40 }
 0x3ba   : > { %11446 = vst [vmem:[#allocation29_spill] sm:$0xff] %v10552_v44  ;;  %v10574_v44 = vsel %vm669_vm3, %v11450_v50, %v7355_v49  ;;  %v10594_v49 = vsel %vm669_vm3, %v11454_v39, %v7360_v24  ;;  %v10614_v24 = vsel %vm669_vm3, %v11458_v31, %v7375_v13  ;;  %v10629_v56 = vsel %vm669_vm3, %v11461_v23, %v7384_v55 }
 0x3bb   : > { %v10634_v13 = vsel %vm669_vm3, %v11462_v51, %v7385_v28  ;;  %v7410_v55 = vunpack.i.h.bf16 %v10378_v25  ;;  %v7404_v28 = vunpack.i.l.bf16 %v10380_v30  ;;  %v7419_v50 = vunpack.i.l.bf16 %v10414_v40 }
 0x3bc   : > { %v7430_v5 = vunpack.i.h.bf16 %v10442_v15  ;;  %v7429_v9 = vunpack.i.l.bf16 %v10442_v15  ;;  %v7425_v57 = vunpack.i.h.bf16 %v10444_v1  ;;  %v7424_v25 = vunpack.i.l.bf16 %v10444_v1 }
 0x3bd   : > { %v10636_v29 = vpop.permute.xlu1 %7477  ;;  %v10638_v27 = vpop.permute.xlu0 %7472  ;;  %v10663_v40 = vsel %vm669_vm3, %v11463_v58, %v7399_v8  ;;  %v11464_v12 = vmax.f32 %v10451_v16, 0.0  ;;  %v11465_v15 = vmax.f32 %v10458_v53, 0.0  ;;  %v11466_v1 = vmax.f32 %v10461_v10, 0.0  ;;  %v11484_v60 = vld [vmem:[#allocation17_spill] sm:$0xff] }
 0x3be   : > { %v11468_v16 = vmax.f32 %v10468_v4, 0.0  ;;  %v11469_v53 = vmax.f32 %v10471_v0, 0.0  ;;  %v11470_v10 = vmax.f32 %v10479_v42, 0.0  ;;  %v11472_v4 = vmax.f32 %v10492_v20, 0.0 }
 0x3bf   : > { %v10668_v62 = vsel %vm669_vm3, %v11464_v12, %v7400_v63  ;;  %v10673_v54 = vsel %vm669_vm3, %v11465_v15, %v7394_v41  ;;  %v10678_v31 = vsel %vm669_vm3, %v11466_v1, %v7395_v46  ;;  %v10703_v63 = vsel %vm669_vm3, %v11471_v61, %v7419_v50  ;;  %v11483_v15 = vld [vmem:[#allocation26_spill] sm:$0xff] }
 0x3c0   : > { %v10688_v59 = vsel %vm669_vm3, %v11468_v16, %v7410_v55  ;;  %v10693_v23 = vsel %vm669_vm3, %v11469_v53, %v7404_v28  ;;  %v10698_v51 = vsel %vm669_vm3, %v11470_v10, %v7405_v6  ;;  %v10708_v8 = vsel %vm669_vm3, %v11472_v4, %v7420_v33  ;;  %v11478_v28 = vld [vmem:[#allocation30_spill] sm:$0xff] }
 0x3c1   : > { %v10656_v39 = vpop.permute.xlu1 %7487  ;;  %v10658_v30 = vpop.permute.xlu0 %7482  ;;  %v11473_v0 = vmax.f32 %v10495_v43, 0.0  ;;  %v11474_v42 = vmax.f32 %v10498_v18, 0.0  ;;  %v10723_v55 = vsel %vm669_vm3, %v11475_v17, %v7429_v9  ;;  %v11476_v20 = vmax.f32 %v10504_v11, 0.0  ;;  %v11485_v10 = vld [vmem:[#allocation46_spill] sm:$0xff] }
 0x3c2   : > { %v11477_v43 = vmax.f32 %v10507_v7, 0.0  ;;  %v11479_v18 = vmax.f32 %v11478_v28, 0.0  ;;  %v7444_v1 = vunpack.i.l.bf16 %v11483_v15  ;;  %v7460_v16 = vunpack.i.h.bf16 %v11484_v60 }
 0x3c3   : > { %v10713_v46 = vsel %vm669_vm3, %v11473_v0, %v7414_v19  ;;  %v10718_v41 = vsel %vm669_vm3, %v11474_v42, %v7415_v2  ;;  %v10728_v34 = vsel %vm669_vm3, %v11476_v20, %v7430_v5  ;;  %v11480_v2 = vld [vmem:[#allocation23_spill] sm:$0xff]  ;;  %v11481_v5 = vld [vmem:[#allocation13_spill] sm:$0xff]  ;;  %v7459_v53 = vunpack.i.l.bf16 %v11484_v60 }
 0x3c4   : > { %v10733_v6 = vsel %vm669_vm3, %v11477_v43, %v7424_v25  ;;  %v10738_v33 = vsel %vm669_vm3, %v11479_v18, %v7425_v57  ;;  %v7440_v11 = vunpack.i.h.bf16 %v11480_v2  ;;  %v7439_v19 = vunpack.i.l.bf16 %v11480_v2  ;;  %v11482_v25 = vld [vmem:[#allocation35_spill] sm:$0xff]  ;;  %v11486_v0 = vld [vmem:[#allocation29_spill] sm:$0xff] }
 0x3c5   : > { %v10740_v50 = vpop.permute.xlu1 %7497  ;;  %v10742_v22 = vpop.permute.xlu0 %7492  ;;  %v7435_v9 = vunpack.i.h.bf16 %v11481_v5  ;;  %v7434_v7 = vunpack.i.l.bf16 %v11481_v5  ;;  %v7450_v58 = vunpack.i.h.bf16 %v11482_v25  ;;  %v7449_v12 = vunpack.i.l.bf16 %v11482_v25 }
 0x3c6   : > { %v7445_v57 = vunpack.i.h.bf16 %v11483_v15  ;;  %v7455_v61 = vunpack.i.h.bf16 %v11485_v10  ;;  %v7454_v4 = vunpack.i.l.bf16 %v11485_v10  ;;  %v7470_v42 = vunpack.i.h.bf16 %v11486_v0 }
 0x3c7   : > { %v7469_v17 = vunpack.i.l.bf16 %v11486_v0  ;;  %v7465_v20 = vunpack.i.h.bf16 %v10554_v52  ;;  %v7464_v43 = vunpack.i.l.bf16 %v10554_v52  ;;  %v5810_v2 = vsel %vm5807_vm8, %v10589_v21, %v7439_v19 }
 0x3c8   : > { %v5811_v5 = vsel %vm5807_vm8, %v10594_v49, %v7440_v11  ;;  %v5808_v25 = vsel %vm5807_vm8, %v10569_v45, %v7434_v7  ;;  %v5809_v15 = vsel %vm5807_vm8, %v10574_v44, %v7435_v9  ;;  %v5814_v52 = vsel %vm5807_vm8, %v10579_v47, %v7449_v12 }
 0x3c9   : > { %v10760_v28 = vpop.permute.xlu1 %7507  ;;  %v10762_v18 = vpop.permute.xlu0 %7502  ;;  %v5815_v60 = vsel %vm5807_vm8, %v10584_v35, %v7450_v58  ;;  %v5812_v10 = vsel %vm5807_vm8, %v10559_v26, %v7444_v1  ;;  %v5813_v21 = vsel %vm5807_vm8, %v10564_v36, %v7445_v57  ;;  %v10782_v49 = vsel %vm5807_vm8, %v10599_v14, %v7459_v53 }
 0x3ca   : > { %v10786_v45 = vsel %vm5807_vm8, %v10604_v3, %v7460_v16  ;;  %v10790_v44 = vsel %vm5807_vm8, %v10609_v38, %v7454_v4  ;;  %v10794_v47 = vsel %vm5807_vm8, %v10614_v24, %v7455_v61  ;;  %v10798_v26 = vsel %vm5807_vm8, %v10619_v32, %v7469_v17 }
 0x3cb   : > { %v10802_v36 = vsel %vm5807_vm8, %v10624_v37, %v7470_v42  ;;  %v10806_v35 = vsel %vm5807_vm8, %v10629_v56, %v7464_v43  ;;  %v10810_v14 = vsel %vm5807_vm8, %v10634_v13, %v7465_v20  ;;  %v7480_v9 = vunpack.i.h.bf16 %v10636_v29 }
 0x3cc   : > { %v7479_v37 = vunpack.i.l.bf16 %v10636_v29  ;;  %v7475_v7 = vunpack.i.h.bf16 %v10638_v27  ;;  %v7474_v56 = vunpack.i.l.bf16 %v10638_v27 }
 0x3cd   : > { %v7518_v3 = vpop.permute.xlu1 %7517  ;;  %v7513_v38 = vpop.permute.xlu0 %7512  ;;  %v10832_v43 = vsel %vm5807_vm8, %v10668_v62, %v7480_v9 }
 0x3ce   : > { %v7520_v24 = vunpack.i.h.bf16 %v7518_v3  ;;  %v7519_v11 = vunpack.i.l.bf16 %v7518_v3  ;;  %v7515_v19 = vunpack.i.h.bf16 %v7513_v38  ;;  %v7514_v32 = vunpack.i.l.bf16 %v7513_v38 }
 0x3cf   : > { %v10828_v20 = vsel %vm5807_vm8, %v10663_v40, %v7479_v37  ;;  %v7485_v37 = vunpack.i.h.bf16 %v10658_v30 }
 0x3d0   : > { %v5843_v13 = vsel %vm5840_vm9, %v5810_v2, %v7519_v11  ;;  %v5844_v58 = vsel %vm5840_vm9, %v5811_v5, %v7520_v24  ;;  %v5841_v12 = vsel %vm5840_vm9, %v5808_v25, %v7514_v32  ;;  %v5842_v57 = vsel %vm5840_vm9, %v5809_v15, %v7515_v19 }
 0x3d1   : > { %v6477_v29 = vpack.c.bf16 %v5843_v13, %v5843_v13  ;;  %v6478_v1 = vpack.c.bf16 %v5844_v58, %v5844_v58  ;;  %v6475_v27 = vpack.c.bf16 %v5841_v12, %v5841_v12  ;;  %v6476_v16 = vpack.c.bf16 %v5842_v57, %v5842_v57  ;;  %v7528_v53 = vpop.permute.xlu1 %7527  ;;  %v7523_v61 = vpop.permute.xlu0 %7522 }
 0x3d2   : > { %v7530_v4 = vunpack.i.h.bf16 %v7528_v53  ;;  %v7529_v0 = vunpack.i.l.bf16 %v7528_v53  ;;  %v7525_v42 = vunpack.i.h.bf16 %v7523_v61  ;;  %v7524_v17 = vunpack.i.l.bf16 %v7523_v61 }
 0x3d3   : > { %v10836_v2 = vsel %vm5807_vm8, %v10673_v54, %v7474_v56  ;;  %v10840_v5 = vsel %vm5807_vm8, %v10678_v31, %v7475_v7  ;;  %6004 = vst.msk [vmem:[%s10820_s27 + $0x8] sm:$0xf] %vm6001_vm10, %v6477_v29  ;;  %6005 = vst.msk [vmem:[%s10820_s27 + $0xc] sm:$0xf] %vm6001_vm10, %v6478_v1  ;;  %v5829_v61 = vsel %vm5807_vm8, %v10698_v51, %v7485_v37 }
 0x3d4   : > { %6002 = vst.msk [vmem:[%s10820_s27] sm:$0xf] %vm6001_vm10, %v6475_v27  ;;  %6003 = vst.msk [vmem:[%s10820_s27 + $0x4] sm:$0xf] %vm6001_vm10, %v6476_v16  ;;  %v5847_v40 = vsel %vm5840_vm9, %v5814_v52, %v7529_v0  ;;  %v5848_v62 = vsel %vm5840_vm9, %v5815_v60, %v7530_v4  ;;  %v5845_v25 = vsel %vm5840_vm9, %v5812_v10, %v7524_v17  ;;  %v7490_v60 = vunpack.i.h.bf16 %v10656_v39 }
 0x3d5   : > { %v5846_v54 = vsel %vm5840_vm9, %v5813_v21, %v7525_v42  ;;  %v6481_v31 = vpack.c.bf16 %v5847_v40, %v5847_v40  ;;  %v6482_v15 = vpack.c.bf16 %v5848_v62, %v5848_v62  ;;  %v6479_v3 = vpack.c.bf16 %v5845_v25, %v5845_v25  ;;  %v7538_v24 = vpop.permute.xlu1 %7537  ;;  %v7533_v11 = vpop.permute.xlu0 %7532 }
 0x3d6   : > { %v6480_v38 = vpack.c.bf16 %v5846_v54, %v5846_v54  ;;  %v7540_v19 = vunpack.i.h.bf16 %v7538_v24  ;;  %v7539_v32 = vunpack.i.l.bf16 %v7538_v24  ;;  %v7535_v9 = vunpack.i.h.bf16 %v7533_v11 }
 0x3d7   : > { %v7534_v52 = vunpack.i.l.bf16 %v7533_v11  ;;  %v7489_v10 = vunpack.i.l.bf16 %v10656_v39  ;;  %v7484_v21 = vunpack.i.l.bf16 %v10658_v30  ;;  %6008 = vst.msk [vmem:[%s10820_s27 + $0x18] sm:$0xf] %vm6001_vm10, %v6481_v31  ;;  %6009 = vst.msk [vmem:[%s10820_s27 + $0x1c] sm:$0xf] %vm6001_vm10, %v6482_v15  ;;  %v5831_v53 = vsel %vm5807_vm8, %v10688_v59, %v7490_v60 }
 0x3d8   : > { %6006 = vst.msk [vmem:[%s10820_s27 + $0x10] sm:$0xf] %vm6001_vm10, %v6479_v3  ;;  %6007 = vst.msk [vmem:[%s10820_s27 + $0x14] sm:$0xf] %vm6001_vm10, %v6480_v38  ;;  %v5851_v7 = vsel %vm5840_vm9, %v10782_v49, %v7539_v32  ;;  %v5852_v56 = vsel %vm5840_vm9, %v10786_v45, %v7540_v19  ;;  %v5850_v30 = vsel %vm5840_vm9, %v10794_v47, %v7535_v9  ;;  %v7500_v31 = vunpack.i.h.bf16 %v10740_v50 }
 0x3d9   : > { %v5849_v39 = vsel %vm5840_vm9, %v10790_v44, %v7534_v52  ;;  %v6485_v13 = vpack.c.bf16 %v5851_v7, %v5851_v7  ;;  %v6486_v58 = vpack.c.bf16 %v5852_v56, %v5852_v56  ;;  %v6484_v57 = vpack.c.bf16 %v5850_v30, %v5850_v30  ;;  %v7548_v29 = vpop.permute.xlu1 %7547  ;;  %v7543_v1 = vpop.permute.xlu0 %7542 }
 0x3da   : > { %v6483_v12 = vpack.c.bf16 %v5849_v39, %v5849_v39  ;;  %v7550_v49 = vunpack.i.h.bf16 %v7548_v29  ;;  %v7549_v27 = vunpack.i.l.bf16 %v7548_v29  ;;  %v7545_v16 = vunpack.i.h.bf16 %v7543_v1 }
 0x3db   : > { %v7544_v45 = vunpack.i.l.bf16 %v7543_v1  ;;  %v5830_v44 = vsel %vm5807_vm8, %v10683_v48, %v7489_v10  ;;  %v5828_v47 = vsel %vm5807_vm8, %v10693_v23, %v7484_v21  ;;  %6012 = vst.msk [vmem:[%s10820_s27 + $0x28] sm:$0xf] %vm6001_vm10, %v6485_v13  ;;  %6013 = vst.msk [vmem:[%s10820_s27 + $0x2c] sm:$0xf] %vm6001_vm10, %v6486_v58  ;;  %v7495_v15 = vunpack.i.h.bf16 %v10742_v22 }
 0x3dc   : > { %6010 = vst.msk [vmem:[%s10820_s27 + $0x20] sm:$0xf] %vm6001_vm10, %v6483_v12  ;;  %6011 = vst.msk [vmem:[%s10820_s27 + $0x24] sm:$0xf] %vm6001_vm10, %v6484_v57  ;;  %v5855_v48 = vsel %vm5840_vm9, %v10798_v26, %v7549_v27  ;;  %v5856_v59 = vsel %vm5840_vm9, %v10802_v36, %v7550_v49  ;;  %v5854_v51 = vsel %vm5840_vm9, %v10810_v14, %v7545_v16  ;;  %v7494_v14 = vunpack.i.l.bf16 %v10742_v22 }
 0x3dd   : > { %v5853_v23 = vsel %vm5840_vm9, %v10806_v35, %v7544_v45  ;;  %v6489_v4 = vpack.c.bf16 %v5855_v48, %v5855_v48  ;;  %v6490_v0 = vpack.c.bf16 %v5856_v59, %v5856_v59  ;;  %v6488_v17 = vpack.c.bf16 %v5854_v51, %v5854_v51  ;;  %v7558_v40 = vpop.permute.xlu1 %7557  ;;  %v7553_v62 = vpop.permute.xlu0 %7552 }
 0x3de   : > { %v6487_v42 = vpack.c.bf16 %v5853_v23, %v5853_v23  ;;  %v7560_v26 = vunpack.i.h.bf16 %v7558_v40  ;;  %v7559_v25 = vunpack.i.l.bf16 %v7558_v40  ;;  %v7555_v54 = vunpack.i.h.bf16 %v7553_v62 }
 0x3df   : > { %v7554_v36 = vunpack.i.l.bf16 %v7553_v62  ;;  %v7499_v35 = vunpack.i.l.bf16 %v10740_v50  ;;  %6016 = vst.msk [vmem:[%s10820_s27 + $0x38] sm:$0xf] %vm6001_vm10, %v6489_v4  ;;  %6017 = vst.msk [vmem:[%s10820_s27 + $0x3c] sm:$0xf] %vm6001_vm10, %v6490_v0  ;;  %v5835_v37 = vsel %vm5807_vm8, %v10708_v8, %v7500_v31  ;;  %v5833_v21 = vsel %vm5807_vm8, %v10718_v41, %v7495_v15 }
 0x3e0   : > { %6014 = vst.msk [vmem:[%s10820_s27 + $0x30] sm:$0xf] %vm6001_vm10, %v6487_v42  ;;  %6015 = vst.msk [vmem:[%s10820_s27 + $0x34] sm:$0xf] %vm6001_vm10, %v6488_v17  ;;  %v5859_v3 = vsel %vm5840_vm9, %v10828_v20, %v7559_v25  ;;  %v5860_v38 = vsel %vm5840_vm9, %v10832_v43, %v7560_v26  ;;  %v5858_v22 = vsel %vm5840_vm9, %v10840_v5, %v7555_v54  ;;  %v7510_v49 = vunpack.i.h.bf16 %v10760_v28 }
 0x3e1   : > { %v5857_v50 = vsel %vm5840_vm9, %v10836_v2, %v7554_v36  ;;  %v6493_v24 = vpack.c.bf16 %v5859_v3, %v5859_v3  ;;  %v6494_v11 = vpack.c.bf16 %v5860_v38, %v5860_v38  ;;  %v6492_v32 = vpack.c.bf16 %v5858_v22, %v5858_v22  ;;  %v7568_v9 = vpop.permute.xlu1 %7567  ;;  %v7563_v52 = vpop.permute.xlu0 %7562 }
 0x3e2   : > { %v6491_v19 = vpack.c.bf16 %v5857_v50, %v5857_v50  ;;  %v7570_v20 = vunpack.i.h.bf16 %v7568_v9  ;;  %v7569_v60 = vunpack.i.l.bf16 %v7568_v9  ;;  %v7565_v10 = vunpack.i.h.bf16 %v7563_v52 }
 0x3e3   : > { %v7564_v43 = vunpack.i.l.bf16 %v7563_v52  ;;  %v5834_v2 = vsel %vm5807_vm8, %v10703_v63, %v7499_v35  ;;  %v5832_v5 = vsel %vm5807_vm8, %v10713_v46, %v7494_v14  ;;  %6020 = vst.msk [vmem:[%s10820_s27 + $0x48] sm:$0xf] %vm6001_vm10, %v6493_v24  ;;  %6021 = vst.msk [vmem:[%s10820_s27 + $0x4c] sm:$0xf] %vm6001_vm10, %v6494_v11  ;;  %v7509_v27 = vunpack.i.l.bf16 %v10760_v28 }
 0x3e4   : > { %6018 = vst.msk [vmem:[%s10820_s27 + $0x40] sm:$0xf] %vm6001_vm10, %v6491_v19  ;;  %6019 = vst.msk [vmem:[%s10820_s27 + $0x44] sm:$0xf] %vm6001_vm10, %v6492_v32  ;;  %v5863_v7 = vsel %vm5840_vm9, %v5830_v44, %v7569_v60  ;;  %v5864_v63 = vsel %vm5840_vm9, %v5831_v53, %v7570_v20  ;;  %v5862_v46 = vsel %vm5840_vm9, %v5829_v61, %v7565_v10  ;;  %v7505_v16 = vunpack.i.h.bf16 %v10762_v18 }
 0x3e5   : > { %v5861_v8 = vsel %vm5840_vm9, %v5828_v47, %v7564_v43  ;;  %v6497_v56 = vpack.c.bf16 %v5863_v7, %v5863_v7  ;;  %v6498_v41 = vpack.c.bf16 %v5864_v63, %v5864_v63  ;;  %v6496_v30 = vpack.c.bf16 %v5862_v46, %v5862_v46  ;;  %v7578_v13 = vpop.permute.xlu1 %7577  ;;  %v7573_v58 = vpop.permute.xlu0 %7572 }
 0x3e6   : > { %v6495_v39 = vpack.c.bf16 %v5861_v8, %v5861_v8  ;;  %v7580_v12 = vunpack.i.h.bf16 %v7578_v13  ;;  %v7579_v57 = vunpack.i.l.bf16 %v7578_v13  ;;  %v7575_v29 = vunpack.i.h.bf16 %v7573_v58 }
 0x3e7   : > { %v7574_v1 = vunpack.i.l.bf16 %v7573_v58  ;;  %v7504_v45 = vunpack.i.l.bf16 %v10762_v18  ;;  %6024 = vst.msk [vmem:[%s10820_s27 + $0x58] sm:$0xf] %vm6001_vm10, %v6497_v56  ;;  %6025 = vst.msk [vmem:[%s10820_s27 + $0x5c] sm:$0xf] %vm6001_vm10, %v6498_v41  ;;  %v5838_v40 = vsel %vm5807_vm8, %v10723_v55, %v7509_v27  ;;  %v5839_v62 = vsel %vm5807_vm8, %v10728_v34, %v7510_v49 }
 0x3e8   : > { %6022 = vst.msk [vmem:[%s10820_s27 + $0x50] sm:$0xf] %vm6001_vm10, %v6495_v39  ;;  %6023 = vst.msk [vmem:[%s10820_s27 + $0x54] sm:$0xf] %vm6001_vm10, %v6496_v30  ;;  %v5867_v44 = vsel %vm5840_vm9, %v5834_v2, %v7579_v57  ;;  %v5868_v53 = vsel %vm5840_vm9, %v5835_v37, %v7580_v12  ;;  %v5866_v28 = vsel %vm5840_vm9, %v5833_v21, %v7575_v29 }
 0x3e9   : > { %v5865_v47 = vsel %vm5840_vm9, %v5832_v5, %v7574_v1  ;;  %v6501_v61 = vpack.c.bf16 %v5867_v44, %v5867_v44  ;;  %v6502_v18 = vpack.c.bf16 %v5868_v53, %v5868_v53  ;;  %v6500_v59 = vpack.c.bf16 %v5866_v28, %v5866_v28  ;;  %v7588_v23 = vpop.permute.xlu1 %7587  ;;  %v7583_v51 = vpop.permute.xlu0 %7582 }
 0x3ea   : > { %v6499_v48 = vpack.c.bf16 %v5865_v47, %v5865_v47  ;;  %v7590_v4 = vunpack.i.h.bf16 %v7588_v23  ;;  %v7589_v0 = vunpack.i.l.bf16 %v7588_v23  ;;  %v7585_v42 = vunpack.i.h.bf16 %v7583_v51 }
 0x3eb   : > { %v7584_v17 = vunpack.i.l.bf16 %v7583_v51  ;;  %v5836_v26 = vsel %vm5807_vm8, %v10733_v6, %v7504_v45  ;;  %v5837_v25 = vsel %vm5807_vm8, %v10738_v33, %v7505_v16  ;;  %6028 = vst.msk [vmem:[%s10820_s27 + $0x68] sm:$0xf] %vm6001_vm10, %v6501_v61  ;;  %6029 = vst.msk [vmem:[%s10820_s27 + $0x6c] sm:$0xf] %vm6001_vm10, %v6502_v18 }
 0x3ec   : > { %6026 = vst.msk [vmem:[%s10820_s27 + $0x60] sm:$0xf] %vm6001_vm10, %v6499_v48  ;;  %6027 = vst.msk [vmem:[%s10820_s27 + $0x64] sm:$0xf] %vm6001_vm10, %v6500_v59  ;;  %v5871_v55 = vsel %vm5840_vm9, %v5838_v40, %v7589_v0  ;;  %v5872_v34 = vsel %vm5840_vm9, %v5839_v62, %v7590_v4  ;;  %v5870_v6 = vsel %vm5840_vm9, %v5837_v25, %v7585_v42 }
 0x3ed   : > { %v5869_v54 = vsel %vm5840_vm9, %v5836_v26, %v7584_v17  ;;  %v6505_v36 = vpack.c.bf16 %v5871_v55, %v5871_v55  ;;  %v6506_v31 = vpack.c.bf16 %v5872_v34, %v5872_v34  ;;  %v6504_v35 = vpack.c.bf16 %v5870_v6, %v5870_v6 }
 0x3ee   : > { %v6503_v33 = vpack.c.bf16 %v5869_v54, %v5869_v54 }
 0x3ef   : > { %6032 = vst.msk [vmem:[%s10820_s27 + $0x78] sm:$0xf] %vm6001_vm10, %v6505_v36  ;;  %6033 = vst.msk [vmem:[%s10820_s27 + $0x7c] sm:$0xf] %vm6001_vm10, %v6506_v31 }
 0x3f0   : > { %6030 = vst.msk [vmem:[%s10820_s27 + $0x70] sm:$0xf] %vm6001_vm10, %v6503_v33  ;;  %6031 = vst.msk [vmem:[%s10820_s27 + $0x74] sm:$0xf] %vm6001_vm10, %v6504_v35 }
 0x3f1 PF: > { %s12_s9 = sadd.s32 1, %s7620_s9  }
 0x3f2   : > { %p9_p4 = scmp.ge.s32.totalorder %s12_s9, 4  }
 0x3f4   :  { %11 = sbr.rel (!%p9_p4) target bundleno = 1 (0x1), region = 76 }

</bundles_post_ra>
